<compile_context>
chip_gen: v7x
topology: tpu7x:2x2x1
jax: 0.10.0
libtpu: 0.0.40
codegen_flags: <defaults>
</compile_context>

<pallas_src>
import math

import jax
import jax.numpy as jnp
from jax import lax
from jax.experimental import pallas as pl
from jax.experimental.pallas import tpu as pltpu


# ----------------------------------------------------------------------------
# small helpers
# ----------------------------------------------------------------------------
def _round_up(x, m):
    return ((x + m - 1) // m) * m


def _vmem_limit_bytes(working_set_bytes):
    """Only raise the scoped-VMEM limit when the working set needs it.

    Default scoped VMEM is 16 MiB on v5e and 32 MiB on v6e/v7x, so anything
    under 12 MiB keeps the default on every generation.  When we do raise it,
    cap well below physical capacity (64 MiB/TC on v7x) to keep compiler
    headroom.
    """
    need = int(working_set_bytes)
    if need <= (12 << 20):
        return None
    try:
        cap = int(pltpu.get_tpu_info().vmem_capacity_bytes)
    except Exception:
        cap = 64 << 20
    return min(need, (cap * 3) // 4)


# ----------------------------------------------------------------------------
# Pallas kernel: one whole KnowledgeEncoder hidden layer per grid step
# ----------------------------------------------------------------------------
def _knowledge_layer_kernel(
        nft_ref, eft_ref, src_oh_ref, dst_oh_ref, dst_oh_t_ref, imp_oh_ref,
        tg_w_ref, tg_b_ref,
        pe_ws_ref, pe_we_ref, pe_wd_ref, pe_b_ref,
        attn1e_ref, attn2_ref, head_mask_ref,
        tw_ref, tb_ref,
        pkv_ref):
    f32 = jnp.float32
    bf16 = jnp.bfloat16

    tg_w = tg_w_ref[...]                               # (Dm, Dg) bf16
    tg_b = tg_b_ref[...]                               # (1, Dg)  f32

    # Shared-weight projections: the node and edge projections of the reference
    # use the same trans_gnn layer, so the weight is loaded into VMEM once.
    x = jnp.dot(nft_ref[...].astype(bf16), tg_w,
                preferred_element_type=f32) + tg_b             # (N, Dg)
    gnn_eft = jnp.dot(eft_ref[...].astype(bf16), tg_w,
                      preferred_element_type=f32) + tg_b       # (Ep, Dg)
    gnn_eft_bf = gnn_eft.astype(bf16)        # cast once, reused by every GAT layer

    src_oh = src_oh_ref[...]                           # (Ep, N) bf16 exact 0/1
    dst_oh = dst_oh_ref[...]                           # (Ep, N) bf16
    dst_oh_t = dst_oh_t_ref[...]                       # (N, Ep) bf16 pre-transposed
    head_mask = head_mask_ref[...]                     # (Dg, Dg) bf16 block-ones

    num_gnn_layers = pe_ws_ref.shape[0]
    for j in range(num_gnn_layers):                    # static unroll over GAT layers
        x_bf = x.astype(bf16)                          # one cast per GAT layer

        # one-hot gathers of edge-endpoint node features (MXU)
        nf_s = jnp.dot(src_oh, x_bf, preferred_element_type=f32)   # (Ep, Dg)
        nf_d = jnp.dot(dst_oh, x_bf, preferred_element_type=f32)   # (Ep, Dg)
        nf_s_bf = nf_s.astype(bf16)

        # path_encoding(concat([nf_s, gnn_eft, nf_d])) with the weight pre-split
        # in three: the (Ep, 3*Dg) concat is never materialised.
        ep = (jnp.dot(nf_s_bf, pe_ws_ref[j], preferred_element_type=f32)
              + jnp.dot(gnn_eft_bf, pe_we_ref[j], preferred_element_type=f32)
              + jnp.dot(nf_d.astype(bf16), pe_wd_ref[j],
                        preferred_element_type=f32)
              + pe_b_ref[j])                                        # (Ep, Dg)

        # lane-dense attention logits: column d carries head(d)'s logit.
        a = (jnp.dot(nf_s_bf, attn1e_ref[j], preferred_element_type=f32)
             + jnp.dot((ep * attn2_ref[j]).astype(bf16), head_mask,
                       preferred_element_type=f32))                 # (Ep, Dg)
        a = jnp.where(a > 0, a, 0.01 * a)              # F.leaky_relu

        # Stable edge softmax: a single global max shift cancels in the
        # per-destination ratio (matches dgl.edge_softmax).  Padded edges only
        # contribute bias-driven logits to this max; their one-hot columns are
        # all-zero so they never reach a denominator or a message.
        m = jnp.max(jnp.max(a, axis=1, keepdims=True), axis=0, keepdims=True)
        ea = jnp.exp(a - m)                                          # (Ep, Dg)

        # destination scatter: contraction over the (256-aligned) edge axis
        # with the pre-transposed one-hot -> plain MXU dot, no XLU transpose.
        denom = jnp.dot(dst_oh_t, ea.astype(bf16),
                        preferred_element_type=f32)                  # (N, Dg)
        msg = jnp.dot(dst_oh_t, (ep * ea).astype(bf16),
                      preferred_element_type=f32)                    # (N, Dg)

        # nodes with no incoming edge get a zero message (dgl sum aggregation)
        denom = jnp.where(denom > 0.0, denom, 1.0)
        x = jnp.maximum(msg * pl.reciprocal(denom, approx=True) + x, 0.0)

    # prefix gather (exact f32 one-hot matmul) + Tanh + trans Linear
    prefix = jnp.dot(imp_oh_ref[...], x, preferred_element_type=f32)   # (P, Dg)
    pkv_ref[...] = (jnp.dot(jnp.tanh(prefix).astype(bf16), tw_ref[...],
                            preferred_element_type=f32) + tb_ref[...])


# ----------------------------------------------------------------------------
# Model (KnowledgeEncoder + GET.forward glue)
# ----------------------------------------------------------------------------
def init_params(key, cfg):
    L = cfg["num_hidden_layers"]
    G = cfg["num_gnn_layers"]
    Dm = cfg["hidden_dim"]
    Dg = cfg["gnn_dim"]
    H = cfg["num_gnn_heads"]
    Dh = Dg // H
    O2 = 2 * cfg["out_ft_dim"]

    ks = jax.random.split(key, 8)

    def nrm(k, shape, std):
        return jax.random.normal(k, shape, jnp.float32) * std

    return {
        "trans_gnn_w": nrm(ks[0], (L, Dm, Dg), 1.0 / math.sqrt(Dm)),
        "trans_gnn_b": nrm(ks[1], (L, 1, Dg), 1.0 / math.sqrt(Dm)),
        # path_encoding: Linear(3*ft_dim, ft_dim), weight stored transposed
        "pe_w": nrm(ks[2], (L, G, 3 * Dg, Dg), 1.0 / math.sqrt(3 * Dg)),
        "pe_b": nrm(ks[3], (L, G, 1, Dg), 1.0 / math.sqrt(3 * Dg)),
        # attn1: Linear(ft_dim, num_heads, bias=False), xavier_normal gain=1.414
        "attn1_w": nrm(ks[4], (L, G, Dg, H), 1.414 * math.sqrt(2.0 / (Dg + H))),
        # attn2: Parameter(1, H, Dh) flattened head-major to (1, Dg)
        "attn2": nrm(ks[5], (L, G, 1, Dg),
                     1.414 * math.sqrt(2.0 / (H * Dh + Dh))),
        "trans_w": nrm(ks[6], (L, Dg, O2), 1.0 / math.sqrt(Dg)),
        "trans_b": nrm(ks[7], (L, 1, O2), 1.0 / math.sqrt(Dg)),
        # kept for parameter fidelity; unused because the reference's sigmoid
        # mix (past_x = x right before) is an identity.
        "lamda": jnp.zeros((max(L - 1, 1),), jnp.float32),
    }


def knowledge_encoder_forward(params, cfg, src, dst, edge_labels,
                              nft, rft, importances, batch_size):
    L = cfg["num_hidden_layers"]
    G = cfg["num_gnn_layers"]
    Dm = cfg["hidden_dim"]
    Dg = cfg["gnn_dim"]
    H = cfg["num_gnn_heads"]
    Dh = Dg // H
    P = cfg["pre_seq_len"]
    out_ft = cfg["out_ft_dim"]
    O2 = 2 * out_ft
    KV = cfg["plm_num_kv_heads"]
    N = nft.shape[1]
    E = src.shape[0]

    # --- graph-structure glue (built once, shared across layers) ------------
    # Pad edges to a multiple of 256 so the destination-scatter contraction
    # fills the 256-deep v6e/v7x MXU.  Out-of-range index N gives an all-zero
    # one-hot row/column: padded edges contribute nothing to any sum.
    Ep = _round_up(max(E, 256), 256)
    pad_e = Ep - E
    src_pad = jnp.concatenate([src, jnp.full((pad_e,), N, src.dtype)])
    dst_pad = jnp.concatenate([dst, jnp.full((pad_e,), N, dst.dtype)])
    src_oh = jax.nn.one_hot(src_pad, N, dtype=jnp.bfloat16)        # (Ep, N)
    dst_oh = jax.nn.one_hot(dst_pad, N, dtype=jnp.bfloat16)        # (Ep, N)
    dst_oh_t = dst_oh.T                                            # (N, Ep)
    # TODO(synk): for graphs with N >~ 1k, replace the O(E*N) one-hot
    # gather/scatter with scalar-prefetched index DMAs (PrefetchScalarGridSpec
    # + SMEM src/dst tables); the one-hot design only wins at small N.

    # TODO(synk): the dgl node_subgraph pruning branch (>2000 nodes) is not
    # reproduced; the un-pruned path of the reference is implemented.
    _, importance = lax.top_k(importances, P)          # torch.topk indices
    imp_oh = jax.nn.one_hot(importance, N, dtype=jnp.float32)      # (P, N)

    # per-layer edge features rft[i][edge_labels], zero-padded edges (glue)
    eft_all = rft[:, edge_labels, :]                               # (L, E, Dm)
    eft_all = jnp.pad(eft_all, ((0, 0), (0, pad_e), (0, 0)))       # (L, Ep, Dm)

    # --- weights: bf16-cast / lane-dense-expanded ONCE on the host ----------
    head_of_lane = jnp.arange(Dg) // Dh
    tg_w = params["trans_gnn_w"].astype(jnp.bfloat16)              # (L, Dm, Dg)
    tg_b = params["trans_gnn_b"]                                   # (L, 1, Dg)
    pe_w = params["pe_w"].astype(jnp.bfloat16)                     # (L, G, 3Dg, Dg)
    pe_ws = pe_w[:, :, :Dg]
    pe_we = pe_w[:, :, Dg:2 * Dg]
    pe_wd = pe_w[:, :, 2 * Dg:]
    pe_b = params["pe_b"]                                          # (L, G, 1, Dg)
    # lane-dense attn1: column d carries head(d)'s weight column
    attn1e = params["attn1_w"][..., head_of_lane].astype(jnp.bfloat16)  # (L,G,Dg,Dg)
    attn2 = params["attn2"]                                        # (L, G, 1, Dg)
    head_mask = (head_of_lane[:, None] == head_of_lane[None, :]
                 ).astype(jnp.bfloat16)                            # (Dg, Dg)
    tw = params["trans_w"].astype(jnp.bfloat16)                    # (L, Dg, O2)
    tb = params["trans_b"]                                         # (L, 1, O2)

    # rough per-step VMEM working set (double-buffered layer blocks + fixed
    # inputs + f32 intermediates), used only to decide whether the default
    # scoped-VMEM limit must be raised.
    ws = (2 * (N * Dm * 4 + Ep * Dm * 4 + Dm * Dg * 2 + Dg * 4
               + G * (4 * Dg * Dg * 2 + 2 * Dg * 4)
               + Dg * O2 * 2 + O2 * 4 + P * O2 * 4)
          + 3 * Ep * N * 2 + P * N * 4 + Dg * Dg * 2
          + 8 * Ep * Dg * 4 + 4 * N * Dg * 4)

    pkv_all = pl.pallas_call(
        _knowledge_layer_kernel,
        grid=(L,),
        in_specs=[
            pl.BlockSpec((None, N, Dm), lambda i: (i, 0, 0)),        # nft[i]
            pl.BlockSpec((None, Ep, Dm), lambda i: (i, 0, 0)),       # eft[i]
            pl.BlockSpec((Ep, N), lambda i: (0, 0)),                 # src one-hot
            pl.BlockSpec((Ep, N), lambda i: (0, 0)),                 # dst one-hot
            pl.BlockSpec((N, Ep), lambda i: (0, 0)),                 # dst one-hot^T
            pl.BlockSpec((P, N), lambda i: (0, 0)),                  # topk one-hot
            pl.BlockSpec((None, Dm, Dg), lambda i: (i, 0, 0)),       # trans_gnn w
            pl.BlockSpec((None, 1, Dg), lambda i: (i, 0, 0)),        # trans_gnn b
            pl.BlockSpec((None, G, Dg, Dg), lambda i: (i, 0, 0, 0)), # pe_w (src part)
            pl.BlockSpec((None, G, Dg, Dg), lambda i: (i, 0, 0, 0)), # pe_w (edge part)
            pl.BlockSpec((None, G, Dg, Dg), lambda i: (i, 0, 0, 0)), # pe_w (dst part)
            pl.BlockSpec((None, G, 1, Dg), lambda i: (i, 0, 0, 0)),  # pe_b
            pl.BlockSpec((None, G, Dg, Dg), lambda i: (i, 0, 0, 0)), # attn1 lane-dense
            pl.BlockSpec((None, G, 1, Dg), lambda i: (i, 0, 0, 0)),  # attn2
            pl.BlockSpec((Dg, Dg), lambda i: (0, 0)),                # head block-ones
            pl.BlockSpec((None, Dg, O2), lambda i: (i, 0, 0)),       # trans w
            pl.BlockSpec((None, 1, O2), lambda i: (i, 0, 0)),        # trans b
        ],
        out_specs=pl.BlockSpec((None, P, O2), lambda i: (i, 0, 0)),
        out_shape=jax.ShapeDtypeStruct((L, P, O2), jnp.float32),
        compiler_params=pltpu.CompilerParams(
            # independent hidden layers -> v7x's two TensorCores split them;
            # plain sequential (but double-buffered) loop on v5e/v6e.
            dimension_semantics=("parallel",),
            vmem_limit_bytes=_vmem_limit_bytes(ws)),
    )(nft, eft_all, src_oh, dst_oh, dst_oh_t, imp_oh,
      tg_w, tg_b, pe_ws, pe_we, pe_wd, pe_b, attn1e, attn2, head_mask, tw, tb)

    # NOTE: the reference's `past_x` sigmoid mix is an identity (past_x = x is
    # assigned immediately before the mix), so it is dropped.
    pkv = []
    for i in range(L):
        pkv_i = jnp.broadcast_to(pkv_all[i][None], (batch_size, P, O2))
        pkv_i = pkv_i.reshape(batch_size, P, 2, KV, out_ft // KV)
        pkv_i = pkv_i.transpose(2, 0, 3, 1, 4)   # (2, B, kv_heads, P, head_dim)
        pkv.append(pkv_i)
    return pkv


def get_forward(params, cfg, src, dst, edge_labels, nft, rft, importances,
                input_ids, attention_mask, h, t):
    batch_size = input_ids.shape[0]
    pkv = knowledge_encoder_forward(params, cfg, src, dst, edge_labels,
                                    nft, rft, importances, h.shape[0])
    flat_input_ids = input_ids.reshape(-1, input_ids.shape[-1])
    flat_attention_mask = attention_mask.reshape(-1, attention_mask.shape[-1])
    prefix_attention_mask = jnp.ones((batch_size, cfg["pre_seq_len"]),
                                     dtype=flat_attention_mask.dtype)
    flat_attention_mask = jnp.concatenate(
        [prefix_attention_mask, flat_attention_mask], axis=1)
    # TODO(synk): the wrapped pretrained LM forward (self.model(...)) is an
    # external checkpointed transformer with no Pallas equivalent here; we
    # return the past_key_values + flattened ids/mask it would consume.
    return pkv, flat_input_ids, flat_attention_mask


# ----------------------------------------------------------------------------
# Driver
# ----------------------------------------------------------------------------
if __name__ == "__main__":
    cfg = dict(
        num_hidden_layers=2,
        hidden_dim=128,
        plm_num_att_heads=4,
        plm_num_kv_heads=2,
        gnn_dim=128,          # module default -> lane-dense 128-wide features
        num_gnn_heads=4,
        num_gnn_layers=2,
        pre_seq_len=8,
    )
    cfg["out_ft_dim"] = (cfg["hidden_dim"] // cfg["plm_num_att_heads"]
                         * cfg["plm_num_kv_heads"])

    N, E, R = 128, 384, 5      # nodes, edges, relation types
    B, S = 2, 8                # batch, sequence length

    key = jax.random.PRNGKey(0)
    k = jax.random.split(key, 10)
    src = jax.random.randint(k[0], (E,), 0, N)
    dst = jax.random.randint(k[1], (E,), 0, N)
    edge_labels = jax.random.randint(k[2], (E,), 0, R)
    nft = jax.random.normal(k[3], (cfg["num_hidden_layers"], N, cfg["hidden_dim"]),
                            jnp.float32)
    rft = jax.random.normal(k[4], (cfg["num_hidden_layers"], R, cfg["hidden_dim"]),
                            jnp.float32)
    importances = jax.random.uniform(k[5], (N,), jnp.float32)
    input_ids = jax.random.randint(k[6], (B, S), 0, 1000)
    attention_mask = jnp.ones((B, S), jnp.int32)
    h = jax.random.randint(k[7], (B, 1), 0, N)
    t = jax.random.randint(k[8], (B, 1), 0, N)
    params = init_params(k[9], cfg)

    pkv, flat_ids, flat_mask = get_forward(params, cfg, src, dst, edge_labels,
                                           nft, rft, importances,
                                           input_ids, attention_mask, h, t)
    jax.block_until_ready(pkv)
    jax.block_until_ready(flat_mask)

    head_dim = cfg["out_ft_dim"] // cfg["plm_num_kv_heads"]
    assert len(pkv) == cfg["num_hidden_layers"]
    assert pkv[0].shape == (2, B, cfg["plm_num_kv_heads"], cfg["pre_seq_len"],
                            head_dim)
    assert flat_mask.shape == (B, cfg["pre_seq_len"] + S)
    assert all(bool(jnp.all(jnp.isfinite(p))) for p in pkv)
    print("KERNEL_OK")
</pallas_src>

<mosaic_0001>
module attributes {stable_mosaic.version = 11 : i64} {
  func.func @_knowledge_layer_kernel(%arg0: i32, %arg1: memref<1x128x128xf32, #tpu.memory_space<vmem>>, %arg2: memref<1x512x128xf32, #tpu.memory_space<vmem>>, %arg3: memref<512x128xbf16, #tpu.memory_space<vmem>>, %arg4: memref<512x128xbf16, #tpu.memory_space<vmem>>, %arg5: memref<128x512xbf16, #tpu.memory_space<vmem>>, %arg6: memref<8x128xf32, #tpu.memory_space<vmem>>, %arg7: memref<1x128x128xbf16, #tpu.memory_space<vmem>>, %arg8: memref<1x1x128xf32, #tpu.memory_space<vmem>>, %arg9: memref<1x2x128x128xbf16, #tpu.memory_space<vmem>>, %arg10: memref<1x2x128x128xbf16, #tpu.memory_space<vmem>>, %arg11: memref<1x2x128x128xbf16, #tpu.memory_space<vmem>>, %arg12: memref<1x2x1x128xf32, #tpu.memory_space<vmem>>, %arg13: memref<1x2x128x128xbf16, #tpu.memory_space<vmem>>, %arg14: memref<1x2x1x128xf32, #tpu.memory_space<vmem>>, %arg15: memref<128x128xbf16, #tpu.memory_space<vmem>>, %arg16: memref<1x128x128xbf16, #tpu.memory_space<vmem>>, %arg17: memref<1x1x128xf32, #tpu.memory_space<vmem>>, %arg18: memref<1x8x128xf32, #tpu.memory_space<vmem>>) attributes {dimension_semantics = [#tpu.dimension_semantics<parallel>], iteration_bounds = array<i64: 2>, scalar_prefetch = 0 : i64, scratch_operands = 0 : i64, tpu.core_type = #tpu.core_type<tc>, window_params = [{transform_indices = @transform_0, window_bounds = array<i64: 1, 128, 128>}, {transform_indices = @transform_1, window_bounds = array<i64: 1, 512, 128>}, {pipeline_mode = #tpu.pipeline_mode<synchronous>, transform_indices = @transform_2, window_bounds = array<i64: 512, 128>}, {pipeline_mode = #tpu.pipeline_mode<synchronous>, transform_indices = @transform_3, window_bounds = array<i64: 512, 128>}, {pipeline_mode = #tpu.pipeline_mode<synchronous>, transform_indices = @transform_4, window_bounds = array<i64: 128, 512>}, {pipeline_mode = #tpu.pipeline_mode<synchronous>, transform_indices = @transform_5, window_bounds = array<i64: 8, 128>}, {transform_indices = @transform_6, window_bounds = array<i64: 1, 128, 128>}, {transform_indices = @transform_7, window_bounds = array<i64: 1, 1, 128>}, {transform_indices = @transform_8, window_bounds = array<i64: 1, 2, 128, 128>}, {transform_indices = @transform_9, window_bounds = array<i64: 1, 2, 128, 128>}, {transform_indices = @transform_10, window_bounds = array<i64: 1, 2, 128, 128>}, {transform_indices = @transform_11, window_bounds = array<i64: 1, 2, 1, 128>}, {transform_indices = @transform_12, window_bounds = array<i64: 1, 2, 128, 128>}, {transform_indices = @transform_13, window_bounds = array<i64: 1, 2, 1, 128>}, {pipeline_mode = #tpu.pipeline_mode<synchronous>, transform_indices = @transform_14, window_bounds = array<i64: 128, 128>}, {transform_indices = @transform_15, window_bounds = array<i64: 1, 128, 128>}, {transform_indices = @transform_16, window_bounds = array<i64: 1, 1, 128>}, {transform_indices = @transform_17, window_bounds = array<i64: 1, 8, 128>}]} {
    %c0 = arith.constant 0 : index
    %c0_0 = arith.constant 0 : index
    %c0_1 = arith.constant 0 : index
    %0 = vector.load %arg7[%c0, %c0_0, %c0_1] : memref<1x128x128xbf16, #tpu.memory_space<vmem>>, vector<1x128x128xbf16>
    %1 = vector.shape_cast %0 : vector<1x128x128xbf16> to vector<128x128xbf16>
    %c0_2 = arith.constant 0 : index
    %c0_3 = arith.constant 0 : index
    %c0_4 = arith.constant 0 : index
    %2 = vector.load %arg8[%c0_2, %c0_3, %c0_4] : memref<1x1x128xf32, #tpu.memory_space<vmem>>, vector<1x1x128xf32>
    %3 = vector.shape_cast %2 : vector<1x1x128xf32> to vector<1x128xf32>
    %c0_5 = arith.constant 0 : index
    %c0_6 = arith.constant 0 : index
    %c0_7 = arith.constant 0 : index
    %4 = vector.load %arg1[%c0_5, %c0_6, %c0_7] : memref<1x128x128xf32, #tpu.memory_space<vmem>>, vector<1x128x128xf32>
    %5 = vector.shape_cast %4 : vector<1x128x128xf32> to vector<128x128xf32>
    %6 = arith.truncf %5 : vector<128x128xf32> to vector<128x128xbf16>
    %cst = arith.constant dense<0.000000e+00> : vector<128x128xf32>
    %7 = tpu.matmul %6, %1, %cst {dimension_numbers = #tpu.dot_dimension_numbers<[1], [0], [0], [1], [0, 0, 1, 1], [], []>} : vector<128x128xbf16>, vector<128x128xbf16>, vector<128x128xf32> -> vector<128x128xf32>
    %8 = vector.broadcast %3 : vector<1x128xf32> to vector<128x128xf32>
    %9 = arith.addf %7, %8 : vector<128x128xf32>
    %c0_8 = arith.constant 0 : index
    %c0_9 = arith.constant 0 : index
    %c0_10 = arith.constant 0 : index
    %10 = vector.load %arg2[%c0_8, %c0_9, %c0_10] : memref<1x512x128xf32, #tpu.memory_space<vmem>>, vector<1x512x128xf32>
    %11 = vector.shape_cast %10 : vector<1x512x128xf32> to vector<512x128xf32>
    %12 = arith.truncf %11 : vector<512x128xf32> to vector<512x128xbf16>
    %cst_11 = arith.constant dense<0.000000e+00> : vector<512x128xf32>
    %13 = tpu.matmul %12, %1, %cst_11 {dimension_numbers = #tpu.dot_dimension_numbers<[1], [0], [0], [1], [0, 0, 1, 1], [], []>} : vector<512x128xbf16>, vector<128x128xbf16>, vector<512x128xf32> -> vector<512x128xf32>
    %14 = vector.broadcast %3 : vector<1x128xf32> to vector<512x128xf32>
    %15 = arith.addf %13, %14 : vector<512x128xf32>
    %16 = arith.truncf %15 : vector<512x128xf32> to vector<512x128xbf16>
    %c0_12 = arith.constant 0 : index
    %c0_13 = arith.constant 0 : index
    %17 = vector.load %arg3[%c0_12, %c0_13] : memref<512x128xbf16, #tpu.memory_space<vmem>>, vector<512x128xbf16>
    %c0_14 = arith.constant 0 : index
    %c0_15 = arith.constant 0 : index
    %18 = vector.load %arg4[%c0_14, %c0_15] : memref<512x128xbf16, #tpu.memory_space<vmem>>, vector<512x128xbf16>
    %c0_16 = arith.constant 0 : index
    %c0_17 = arith.constant 0 : index
    %19 = vector.load %arg5[%c0_16, %c0_17] : memref<128x512xbf16, #tpu.memory_space<vmem>>, vector<128x512xbf16>
    %c0_18 = arith.constant 0 : index
    %c0_19 = arith.constant 0 : index
    %20 = vector.load %arg15[%c0_18, %c0_19] : memref<128x128xbf16, #tpu.memory_space<vmem>>, vector<128x128xbf16>
    %21 = arith.truncf %9 : vector<128x128xf32> to vector<128x128xbf16>
    %cst_20 = arith.constant dense<0.000000e+00> : vector<512x128xf32>
    %22 = tpu.matmul %17, %21, %cst_20 {dimension_numbers = #tpu.dot_dimension_numbers<[1], [0], [0], [1], [0, 0, 1, 1], [], []>} : vector<512x128xbf16>, vector<128x128xbf16>, vector<512x128xf32> -> vector<512x128xf32>
    %cst_21 = arith.constant dense<0.000000e+00> : vector<512x128xf32>
    %23 = tpu.matmul %18, %21, %cst_21 {dimension_numbers = #tpu.dot_dimension_numbers<[1], [0], [0], [1], [0, 0, 1, 1], [], []>} : vector<512x128xbf16>, vector<128x128xbf16>, vector<512x128xf32> -> vector<512x128xf32>
    %24 = arith.truncf %22 : vector<512x128xf32> to vector<512x128xbf16>
    %c0_22 = arith.constant 0 : index
    %c0_23 = arith.constant 0 : index
    %c0_24 = arith.constant 0 : index
    %c0_25 = arith.constant 0 : index
    %25 = vector.load %arg9[%c0_22, %c0_23, %c0_24, %c0_25] : memref<1x2x128x128xbf16, #tpu.memory_space<vmem>>, vector<1x1x128x128xbf16>
    %26 = vector.shape_cast %25 : vector<1x1x128x128xbf16> to vector<128x128xbf16>
    %cst_26 = arith.constant dense<0.000000e+00> : vector<512x128xf32>
    %27 = tpu.matmul %24, %26, %cst_26 {dimension_numbers = #tpu.dot_dimension_numbers<[1], [0], [0], [1], [0, 0, 1, 1], [], []>} : vector<512x128xbf16>, vector<128x128xbf16>, vector<512x128xf32> -> vector<512x128xf32>
    %c0_27 = arith.constant 0 : index
    %c0_28 = arith.constant 0 : index
    %c0_29 = arith.constant 0 : index
    %c0_30 = arith.constant 0 : index
    %28 = vector.load %arg10[%c0_27, %c0_28, %c0_29, %c0_30] : memref<1x2x128x128xbf16, #tpu.memory_space<vmem>>, vector<1x1x128x128xbf16>
    %29 = vector.shape_cast %28 : vector<1x1x128x128xbf16> to vector<128x128xbf16>
    %cst_31 = arith.constant dense<0.000000e+00> : vector<512x128xf32>
    %30 = tpu.matmul %16, %29, %cst_31 {dimension_numbers = #tpu.dot_dimension_numbers<[1], [0], [0], [1], [0, 0, 1, 1], [], []>} : vector<512x128xbf16>, vector<128x128xbf16>, vector<512x128xf32> -> vector<512x128xf32>
    %31 = arith.addf %27, %30 : vector<512x128xf32>
    %32 = arith.truncf %23 : vector<512x128xf32> to vector<512x128xbf16>
    %c0_32 = arith.constant 0 : index
    %c0_33 = arith.constant 0 : index
    %c0_34 = arith.constant 0 : index
    %c0_35 = arith.constant 0 : index
    %33 = vector.load %arg11[%c0_32, %c0_33, %c0_34, %c0_35] : memref<1x2x128x128xbf16, #tpu.memory_space<vmem>>, vector<1x1x128x128xbf16>
    %34 = vector.shape_cast %33 : vector<1x1x128x128xbf16> to vector<128x128xbf16>
    %cst_36 = arith.constant dense<0.000000e+00> : vector<512x128xf32>
    %35 = tpu.matmul %32, %34, %cst_36 {dimension_numbers = #tpu.dot_dimension_numbers<[1], [0], [0], [1], [0, 0, 1, 1], [], []>} : vector<512x128xbf16>, vector<128x128xbf16>, vector<512x128xf32> -> vector<512x128xf32>
    %36 = arith.addf %31, %35 : vector<512x128xf32>
    %c0_37 = arith.constant 0 : index
    %c0_38 = arith.constant 0 : index
    %c0_39 = arith.constant 0 : index
    %c0_40 = arith.constant 0 : index
    %37 = vector.load %arg12[%c0_37, %c0_38, %c0_39, %c0_40] : memref<1x2x1x128xf32, #tpu.memory_space<vmem>>, vector<1x1x1x128xf32>
    %38 = vector.shape_cast %37 : vector<1x1x1x128xf32> to vector<1x128xf32>
    %39 = vector.broadcast %38 : vector<1x128xf32> to vector<512x128xf32>
    %40 = arith.addf %36, %39 : vector<512x128xf32>
    %c0_41 = arith.constant 0 : index
    %c0_42 = arith.constant 0 : index
    %c0_43 = arith.constant 0 : index
    %c0_44 = arith.constant 0 : index
    %41 = vector.load %arg13[%c0_41, %c0_42, %c0_43, %c0_44] : memref<1x2x128x128xbf16, #tpu.memory_space<vmem>>, vector<1x1x128x128xbf16>
    %42 = vector.shape_cast %41 : vector<1x1x128x128xbf16> to vector<128x128xbf16>
    %cst_45 = arith.constant dense<0.000000e+00> : vector<512x128xf32>
    %43 = tpu.matmul %24, %42, %cst_45 {dimension_numbers = #tpu.dot_dimension_numbers<[1], [0], [0], [1], [0, 0, 1, 1], [], []>} : vector<512x128xbf16>, vector<128x128xbf16>, vector<512x128xf32> -> vector<512x128xf32>
    %c0_46 = arith.constant 0 : index
    %c0_47 = arith.constant 0 : index
    %c0_48 = arith.constant 0 : index
    %c0_49 = arith.constant 0 : index
    %44 = vector.load %arg14[%c0_46, %c0_47, %c0_48, %c0_49] : memref<1x2x1x128xf32, #tpu.memory_space<vmem>>, vector<1x1x1x128xf32>
    %45 = vector.shape_cast %44 : vector<1x1x1x128xf32> to vector<1x128xf32>
    %46 = vector.broadcast %45 : vector<1x128xf32> to vector<512x128xf32>
    %47 = arith.mulf %40, %46 : vector<512x128xf32>
    %48 = arith.truncf %47 : vector<512x128xf32> to vector<512x128xbf16>
    %cst_50 = arith.constant dense<0.000000e+00> : vector<512x128xf32>
    %49 = tpu.matmul %48, %20, %cst_50 {dimension_numbers = #tpu.dot_dimension_numbers<[1], [0], [0], [1], [0, 0, 1, 1], [], []>} : vector<512x128xbf16>, vector<128x128xbf16>, vector<512x128xf32> -> vector<512x128xf32>
    %50 = arith.addf %43, %49 : vector<512x128xf32>
    %cst_51 = arith.constant 0.000000e+00 : f32
    %51 = vector.broadcast %cst_51 : f32 to vector<512x128xf32>
    %52 = arith.cmpf ogt, %50, %51 : vector<512x128xf32>
    %cst_52 = arith.constant 0.00999999977 : f32
    %53 = vector.broadcast %cst_52 : f32 to vector<512x128xf32>
    %54 = arith.mulf %53, %50 : vector<512x128xf32>
    %55 = arith.select %52, %50, %54 : vector<512x128xi1>, vector<512x128xf32>
    %cst_53 = arith.constant dense<0xFF800000> : vector<512xf32>
    %56 = vector.multi_reduction <maximumf>, %55, %cst_53 [1] : vector<512x128xf32> to vector<512xf32>
    %57 = vector.shape_cast %56 : vector<512xf32> to vector<512x1xf32>
    %cst_54 = arith.constant dense<0xFF800000> : vector<1xf32>
    %58 = vector.multi_reduction <maximumf>, %57, %cst_54 [0] : vector<512x1xf32> to vector<1xf32>
    %59 = vector.shape_cast %58 : vector<1xf32> to vector<1x1xf32>
    %60 = vector.broadcast %59 : vector<1x1xf32> to vector<512x128xf32>
    %61 = arith.subf %55, %60 : vector<512x128xf32>
    %62 = math.exp %61 : vector<512x128xf32>
    %63 = arith.truncf %62 : vector<512x128xf32> to vector<512x128xbf16>
    %cst_55 = arith.constant dense<0.000000e+00> : vector<128x128xf32>
    %64 = tpu.matmul %19, %63, %cst_55 {dimension_numbers = #tpu.dot_dimension_numbers<[1], [0], [0], [1], [0, 0, 1, 1], [], []>} : vector<128x512xbf16>, vector<512x128xbf16>, vector<128x128xf32> -> vector<128x128xf32>
    %65 = arith.mulf %40, %62 : vector<512x128xf32>
    %66 = arith.truncf %65 : vector<512x128xf32> to vector<512x128xbf16>
    %cst_56 = arith.constant dense<0.000000e+00> : vector<128x128xf32>
    %67 = tpu.matmul %19, %66, %cst_56 {dimension_numbers = #tpu.dot_dimension_numbers<[1], [0], [0], [1], [0, 0, 1, 1], [], []>} : vector<128x512xbf16>, vector<512x128xbf16>, vector<128x128xf32> -> vector<128x128xf32>
    %cst_57 = arith.constant 0.000000e+00 : f32
    %68 = vector.broadcast %cst_57 : f32 to vector<128x128xf32>
    %69 = arith.cmpf ogt, %64, %68 : vector<128x128xf32>
    %cst_58 = arith.constant 1.000000e+00 : f32
    %70 = vector.broadcast %cst_58 : f32 to vector<128x128xf32>
    %71 = arith.select %69, %64, %70 : vector<128x128xi1>, vector<128x128xf32>
    %72 = tpu.reciprocal %71 {approx = true} : vector<128x128xf32> -> vector<128x128xf32>
    %73 = arith.mulf %67, %72 : vector<128x128xf32>
    %74 = arith.addf %73, %9 : vector<128x128xf32>
    %cst_59 = arith.constant 0.000000e+00 : f32
    %75 = vector.broadcast %cst_59 : f32 to vector<128x128xf32>
    %76 = arith.maximumf %74, %75 : vector<128x128xf32>
    %77 = arith.truncf %76 : vector<128x128xf32> to vector<128x128xbf16>
    %cst_60 = arith.constant dense<0.000000e+00> : vector<512x128xf32>
    %78 = tpu.matmul %17, %77, %cst_60 {dimension_numbers = #tpu.dot_dimension_numbers<[1], [0], [0], [1], [0, 0, 1, 1], [], []>} : vector<512x128xbf16>, vector<128x128xbf16>, vector<512x128xf32> -> vector<512x128xf32>
    %cst_61 = arith.constant dense<0.000000e+00> : vector<512x128xf32>
    %79 = tpu.matmul %18, %77, %cst_61 {dimension_numbers = #tpu.dot_dimension_numbers<[1], [0], [0], [1], [0, 0, 1, 1], [], []>} : vector<512x128xbf16>, vector<128x128xbf16>, vector<512x128xf32> -> vector<512x128xf32>
    %80 = arith.truncf %78 : vector<512x128xf32> to vector<512x128xbf16>
    %c0_62 = arith.constant 0 : index
    %c1 = arith.constant 1 : index
    %c0_63 = arith.constant 0 : index
    %c0_64 = arith.constant 0 : index
    %81 = vector.load %arg9[%c0_62, %c1, %c0_63, %c0_64] : memref<1x2x128x128xbf16, #tpu.memory_space<vmem>>, vector<1x1x128x128xbf16>
    %82 = vector.shape_cast %81 : vector<1x1x128x128xbf16> to vector<128x128xbf16>
    %cst_65 = arith.constant dense<0.000000e+00> : vector<512x128xf32>
    %83 = tpu.matmul %80, %82, %cst_65 {dimension_numbers = #tpu.dot_dimension_numbers<[1], [0], [0], [1], [0, 0, 1, 1], [], []>} : vector<512x128xbf16>, vector<128x128xbf16>, vector<512x128xf32> -> vector<512x128xf32>
    %c0_66 = arith.constant 0 : index
    %c1_67 = arith.constant 1 : index
    %c0_68 = arith.constant 0 : index
    %c0_69 = arith.constant 0 : index
    %84 = vector.load %arg10[%c0_66, %c1_67, %c0_68, %c0_69] : memref<1x2x128x128xbf16, #tpu.memory_space<vmem>>, vector<1x1x128x128xbf16>
    %85 = vector.shape_cast %84 : vector<1x1x128x128xbf16> to vector<128x128xbf16>
    %cst_70 = arith.constant dense<0.000000e+00> : vector<512x128xf32>
    %86 = tpu.matmul %16, %85, %cst_70 {dimension_numbers = #tpu.dot_dimension_numbers<[1], [0], [0], [1], [0, 0, 1, 1], [], []>} : vector<512x128xbf16>, vector<128x128xbf16>, vector<512x128xf32> -> vector<512x128xf32>
    %87 = arith.addf %83, %86 : vector<512x128xf32>
    %88 = arith.truncf %79 : vector<512x128xf32> to vector<512x128xbf16>
    %c0_71 = arith.constant 0 : index
    %c1_72 = arith.constant 1 : index
    %c0_73 = arith.constant 0 : index
    %c0_74 = arith.constant 0 : index
    %89 = vector.load %arg11[%c0_71, %c1_72, %c0_73, %c0_74] : memref<1x2x128x128xbf16, #tpu.memory_space<vmem>>, vector<1x1x128x128xbf16>
    %90 = vector.shape_cast %89 : vector<1x1x128x128xbf16> to vector<128x128xbf16>
    %cst_75 = arith.constant dense<0.000000e+00> : vector<512x128xf32>
    %91 = tpu.matmul %88, %90, %cst_75 {dimension_numbers = #tpu.dot_dimension_numbers<[1], [0], [0], [1], [0, 0, 1, 1], [], []>} : vector<512x128xbf16>, vector<128x128xbf16>, vector<512x128xf32> -> vector<512x128xf32>
    %92 = arith.addf %87, %91 : vector<512x128xf32>
    %c0_76 = arith.constant 0 : index
    %c1_77 = arith.constant 1 : index
    %c0_78 = arith.constant 0 : index
    %c0_79 = arith.constant 0 : index
    %93 = vector.load %arg12[%c0_76, %c1_77, %c0_78, %c0_79] : memref<1x2x1x128xf32, #tpu.memory_space<vmem>>, vector<1x1x1x128xf32>
    %94 = vector.shape_cast %93 : vector<1x1x1x128xf32> to vector<1x128xf32>
    %95 = vector.broadcast %94 : vector<1x128xf32> to vector<512x128xf32>
    %96 = arith.addf %92, %95 : vector<512x128xf32>
    %c0_80 = arith.constant 0 : index
    %c1_81 = arith.constant 1 : index
    %c0_82 = arith.constant 0 : index
    %c0_83 = arith.constant 0 : index
    %97 = vector.load %arg13[%c0_80, %c1_81, %c0_82, %c0_83] : memref<1x2x128x128xbf16, #tpu.memory_space<vmem>>, vector<1x1x128x128xbf16>
    %98 = vector.shape_cast %97 : vector<1x1x128x128xbf16> to vector<128x128xbf16>
    %cst_84 = arith.constant dense<0.000000e+00> : vector<512x128xf32>
    %99 = tpu.matmul %80, %98, %cst_84 {dimension_numbers = #tpu.dot_dimension_numbers<[1], [0], [0], [1], [0, 0, 1, 1], [], []>} : vector<512x128xbf16>, vector<128x128xbf16>, vector<512x128xf32> -> vector<512x128xf32>
    %c0_85 = arith.constant 0 : index
    %c1_86 = arith.constant 1 : index
    %c0_87 = arith.constant 0 : index
    %c0_88 = arith.constant 0 : index
    %100 = vector.load %arg14[%c0_85, %c1_86, %c0_87, %c0_88] : memref<1x2x1x128xf32, #tpu.memory_space<vmem>>, vector<1x1x1x128xf32>
    %101 = vector.shape_cast %100 : vector<1x1x1x128xf32> to vector<1x128xf32>
    %102 = vector.broadcast %101 : vector<1x128xf32> to vector<512x128xf32>
    %103 = arith.mulf %96, %102 : vector<512x128xf32>
    %104 = arith.truncf %103 : vector<512x128xf32> to vector<512x128xbf16>
    %cst_89 = arith.constant dense<0.000000e+00> : vector<512x128xf32>
    %105 = tpu.matmul %104, %20, %cst_89 {dimension_numbers = #tpu.dot_dimension_numbers<[1], [0], [0], [1], [0, 0, 1, 1], [], []>} : vector<512x128xbf16>, vector<128x128xbf16>, vector<512x128xf32> -> vector<512x128xf32>
    %106 = arith.addf %99, %105 : vector<512x128xf32>
    %cst_90 = arith.constant 0.000000e+00 : f32
    %107 = vector.broadcast %cst_90 : f32 to vector<512x128xf32>
    %108 = arith.cmpf ogt, %106, %107 : vector<512x128xf32>
    %cst_91 = arith.constant 0.00999999977 : f32
    %109 = vector.broadcast %cst_91 : f32 to vector<512x128xf32>
    %110 = arith.mulf %109, %106 : vector<512x128xf32>
    %111 = arith.select %108, %106, %110 : vector<512x128xi1>, vector<512x128xf32>
    %cst_92 = arith.constant dense<0xFF800000> : vector<512xf32>
    %112 = vector.multi_reduction <maximumf>, %111, %cst_92 [1] : vector<512x128xf32> to vector<512xf32>
    %113 = vector.shape_cast %112 : vector<512xf32> to vector<512x1xf32>
    %cst_93 = arith.constant dense<0xFF800000> : vector<1xf32>
    %114 = vector.multi_reduction <maximumf>, %113, %cst_93 [0] : vector<512x1xf32> to vector<1xf32>
    %115 = vector.shape_cast %114 : vector<1xf32> to vector<1x1xf32>
    %116 = vector.broadcast %115 : vector<1x1xf32> to vector<512x128xf32>
    %117 = arith.subf %111, %116 : vector<512x128xf32>
    %118 = math.exp %117 : vector<512x128xf32>
    %119 = arith.truncf %118 : vector<512x128xf32> to vector<512x128xbf16>
    %cst_94 = arith.constant dense<0.000000e+00> : vector<128x128xf32>
    %120 = tpu.matmul %19, %119, %cst_94 {dimension_numbers = #tpu.dot_dimension_numbers<[1], [0], [0], [1], [0, 0, 1, 1], [], []>} : vector<128x512xbf16>, vector<512x128xbf16>, vector<128x128xf32> -> vector<128x128xf32>
    %121 = arith.mulf %96, %118 : vector<512x128xf32>
    %122 = arith.truncf %121 : vector<512x128xf32> to vector<512x128xbf16>
    %cst_95 = arith.constant dense<0.000000e+00> : vector<128x128xf32>
    %123 = tpu.matmul %19, %122, %cst_95 {dimension_numbers = #tpu.dot_dimension_numbers<[1], [0], [0], [1], [0, 0, 1, 1], [], []>} : vector<128x512xbf16>, vector<512x128xbf16>, vector<128x128xf32> -> vector<128x128xf32>
    %cst_96 = arith.constant 0.000000e+00 : f32
    %124 = vector.broadcast %cst_96 : f32 to vector<128x128xf32>
    %125 = arith.cmpf ogt, %120, %124 : vector<128x128xf32>
    %cst_97 = arith.constant 1.000000e+00 : f32
    %126 = vector.broadcast %cst_97 : f32 to vector<128x128xf32>
    %127 = arith.select %125, %120, %126 : vector<128x128xi1>, vector<128x128xf32>
    %128 = tpu.reciprocal %127 {approx = true} : vector<128x128xf32> -> vector<128x128xf32>
    %129 = arith.mulf %123, %128 : vector<128x128xf32>
    %130 = arith.addf %129, %76 : vector<128x128xf32>
    %cst_98 = arith.constant 0.000000e+00 : f32
    %131 = vector.broadcast %cst_98 : f32 to vector<128x128xf32>
    %132 = arith.maximumf %130, %131 : vector<128x128xf32>
    %c0_99 = arith.constant 0 : index
    %c0_100 = arith.constant 0 : index
    %133 = vector.load %arg6[%c0_99, %c0_100] : memref<8x128xf32, #tpu.memory_space<vmem>>, vector<8x128xf32>
    %cst_101 = arith.constant dense<0.000000e+00> : vector<8x128xf32>
    %134 = tpu.matmul %133, %132, %cst_101 {dimension_numbers = #tpu.dot_dimension_numbers<[1], [0], [0], [1], [0, 0, 1, 1], [], []>} : vector<8x128xf32>, vector<128x128xf32>, vector<8x128xf32> -> vector<8x128xf32>
    %135 = math.tanh %134 : vector<8x128xf32>
    %136 = arith.truncf %135 : vector<8x128xf32> to vector<8x128xbf16>
    %c0_102 = arith.constant 0 : index
    %c0_103 = arith.constant 0 : index
    %c0_104 = arith.constant 0 : index
    %137 = vector.load %arg16[%c0_102, %c0_103, %c0_104] : memref<1x128x128xbf16, #tpu.memory_space<vmem>>, vector<1x128x128xbf16>
    %138 = vector.shape_cast %137 : vector<1x128x128xbf16> to vector<128x128xbf16>
    %cst_105 = arith.constant dense<0.000000e+00> : vector<8x128xf32>
    %139 = tpu.matmul %136, %138, %cst_105 {dimension_numbers = #tpu.dot_dimension_numbers<[1], [0], [0], [1], [0, 0, 1, 1], [], []>} : vector<8x128xbf16>, vector<128x128xbf16>, vector<8x128xf32> -> vector<8x128xf32>
    %c0_106 = arith.constant 0 : index
    %c0_107 = arith.constant 0 : index
    %c0_108 = arith.constant 0 : index
    %140 = vector.load %arg17[%c0_106, %c0_107, %c0_108] : memref<1x1x128xf32, #tpu.memory_space<vmem>>, vector<1x1x128xf32>
    %141 = vector.shape_cast %140 : vector<1x1x128xf32> to vector<1x128xf32>
    %142 = vector.broadcast %141 : vector<1x128xf32> to vector<8x128xf32>
    %143 = arith.addf %139, %142 : vector<8x128xf32>
    %c0_109 = arith.constant 0 : index
    %c0_110 = arith.constant 0 : index
    %c0_111 = arith.constant 0 : index
    %144 = vector.load %arg18[%c0_109, %c0_110, %c0_111] : memref<1x8x128xf32, #tpu.memory_space<vmem>>, vector<1x8x128xf32>
    %145 = vector.shape_cast %144 : vector<1x8x128xf32> to vector<8x128xf32>
    %146 = vector.shape_cast %143 : vector<8x128xf32> to vector<1x8x128xf32>
    tpu.vector_store %arg18[%c0_109, %c0_110, %c0_111], %146 {strides = array<i32>} : memref<1x8x128xf32, #tpu.memory_space<vmem>>, vector<1x8x128xf32>,
    return
  }
  func.func @transform_0(%arg0: i32) -> (i32, i32, i32) {
    %c0_i32 = arith.constant 0 : i32
    %c0_i32_0 = arith.constant 0 : i32
    %c0_i32_1 = arith.constant 0 : i32
    return %arg0, %c0_i32, %c0_i32_0 : i32, i32, i32
  }
  func.func @transform_1(%arg0: i32) -> (i32, i32, i32) {
    %c0_i32 = arith.constant 0 : i32
    %c0_i32_0 = arith.constant 0 : i32
    %c0_i32_1 = arith.constant 0 : i32
    return %arg0, %c0_i32, %c0_i32_0 : i32, i32, i32
  }
  func.func @transform_2(%arg0: i32) -> (i32, i32) {
    %c0_i32 = arith.constant 0 : i32
    %c0_i32_0 = arith.constant 0 : i32
    %c0_i32_1 = arith.constant 0 : i32
    return %c0_i32, %c0_i32_0 : i32, i32
  }
  func.func @transform_3(%arg0: i32) -> (i32, i32) {
    %c0_i32 = arith.constant 0 : i32
    %c0_i32_0 = arith.constant 0 : i32
    %c0_i32_1 = arith.constant 0 : i32
    return %c0_i32, %c0_i32_0 : i32, i32
  }
  func.func @transform_4(%arg0: i32) -> (i32, i32) {
    %c0_i32 = arith.constant 0 : i32
    %c0_i32_0 = arith.constant 0 : i32
    %c0_i32_1 = arith.constant 0 : i32
    return %c0_i32, %c0_i32_0 : i32, i32
  }
  func.func @transform_5(%arg0: i32) -> (i32, i32) {
    %c0_i32 = arith.constant 0 : i32
    %c0_i32_0 = arith.constant 0 : i32
    %c0_i32_1 = arith.constant 0 : i32
    return %c0_i32, %c0_i32_0 : i32, i32
  }
  func.func @transform_6(%arg0: i32) -> (i32, i32, i32) {
    %c0_i32 = arith.constant 0 : i32
    %c0_i32_0 = arith.constant 0 : i32
    %c0_i32_1 = arith.constant 0 : i32
    return %arg0, %c0_i32, %c0_i32_0 : i32, i32, i32
  }
  func.func @transform_7(%arg0: i32) -> (i32, i32, i32) {
    %c0_i32 = arith.constant 0 : i32
    %c0_i32_0 = arith.constant 0 : i32
    %c0_i32_1 = arith.constant 0 : i32
    return %arg0, %c0_i32, %c0_i32_0 : i32, i32, i32
  }
  func.func @transform_8(%arg0: i32) -> (i32, i32, i32, i32) {
    %c0_i32 = arith.constant 0 : i32
    %c0_i32_0 = arith.constant 0 : i32
    %c0_i32_1 = arith.constant 0 : i32
    %c0_i32_2 = arith.constant 0 : i32
    return %arg0, %c0_i32, %c0_i32_0, %c0_i32_1 : i32, i32, i32, i32
  }
  func.func @transform_9(%arg0: i32) -> (i32, i32, i32, i32) {
    %c0_i32 = arith.constant 0 : i32
    %c0_i32_0 = arith.constant 0 : i32
    %c0_i32_1 = arith.constant 0 : i32
    %c0_i32_2 = arith.constant 0 : i32
    return %arg0, %c0_i32, %c0_i32_0, %c0_i32_1 : i32, i32, i32, i32
  }
  func.func @transform_10(%arg0: i32) -> (i32, i32, i32, i32) {
    %c0_i32 = arith.constant 0 : i32
    %c0_i32_0 = arith.constant 0 : i32
    %c0_i32_1 = arith.constant 0 : i32
    %c0_i32_2 = arith.constant 0 : i32
    return %arg0, %c0_i32, %c0_i32_0, %c0_i32_1 : i32, i32, i32, i32
  }
  func.func @transform_11(%arg0: i32) -> (i32, i32, i32, i32) {
    %c0_i32 = arith.constant 0 : i32
    %c0_i32_0 = arith.constant 0 : i32
    %c0_i32_1 = arith.constant 0 : i32
    %c0_i32_2 = arith.constant 0 : i32
    return %arg0, %c0_i32, %c0_i32_0, %c0_i32_1 : i32, i32, i32, i32
  }
  func.func @transform_12(%arg0: i32) -> (i32, i32, i32, i32) {
    %c0_i32 = arith.constant 0 : i32
    %c0_i32_0 = arith.constant 0 : i32
    %c0_i32_1 = arith.constant 0 : i32
    %c0_i32_2 = arith.constant 0 : i32
    return %arg0, %c0_i32, %c0_i32_0, %c0_i32_1 : i32, i32, i32, i32
  }
  func.func @transform_13(%arg0: i32) -> (i32, i32, i32, i32) {
    %c0_i32 = arith.constant 0 : i32
    %c0_i32_0 = arith.constant 0 : i32
    %c0_i32_1 = arith.constant 0 : i32
    %c0_i32_2 = arith.constant 0 : i32
    return %arg0, %c0_i32, %c0_i32_0, %c0_i32_1 : i32, i32, i32, i32
  }
  func.func @transform_14(%arg0: i32) -> (i32, i32) {
    %c0_i32 = arith.constant 0 : i32
    %c0_i32_0 = arith.constant 0 : i32
    %c0_i32_1 = arith.constant 0 : i32
    return %c0_i32, %c0_i32_0 : i32, i32
  }
  func.func @transform_15(%arg0: i32) -> (i32, i32, i32) {
    %c0_i32 = arith.constant 0 : i32
    %c0_i32_0 = arith.constant 0 : i32
    %c0_i32_1 = arith.constant 0 : i32
    return %arg0, %c0_i32, %c0_i32_0 : i32, i32, i32
  }
  func.func @transform_16(%arg0: i32) -> (i32, i32, i32) {
    %c0_i32 = arith.constant 0 : i32
    %c0_i32_0 = arith.constant 0 : i32
    %c0_i32_1 = arith.constant 0 : i32
    return %arg0, %c0_i32, %c0_i32_0 : i32, i32, i32
  }
  func.func @transform_17(%arg0: i32) -> (i32, i32, i32) {
    %c0_i32 = arith.constant 0 : i32
    %c0_i32_0 = arith.constant 0 : i32
    %c0_i32_1 = arith.constant 0 : i32
    return %arg0, %c0_i32, %c0_i32_0 : i32, i32, i32
  }
}

</mosaic_0001>

<bundles_post_ra>
// kernel: tpu_custom_call.1
= control target key start
LH: loop header
LB: loop body
LE: loop exit
PB: predicated region body
PF: predicated region fallthrough
CT: control target
= control target key end

     0   :  { %s19471_s0 = inlined_call_operand.hbm [shape: f32[2,128,128], index: 0, kind: input, shape index: {}]   ;;  %s19472_s1 = inlined_call_operand.hbm [shape: f32[2,512,128], index: 1, kind: input, shape index: {}]   ;;  %s19473_s2 = inlined_call_operand.hbm [shape: bf16[512,128], index: 2, kind: input, shape index: {}]   ;;  %s19474_s3 = inlined_call_operand.hbm [shape: bf16[512,128], index: 3, kind: input, shape index: {}]   ;;  %s19475_s4 = inlined_call_operand.hbm [shape: bf16[128,512], index: 4, kind: input, shape index: {}]   ;;  %s19476_s5 = inlined_call_operand.vmem [shape: f32[8,128], index: 5, kind: input, shape index: {}]   ;;  %s19477_s6 = inlined_call_operand.hbm [shape: bf16[2,128,128], index: 6, kind: input, shape index: {}]   ;;  %s19478_s7 = inlined_call_operand.vmem [shape: f32[2,1,128], index: 7, kind: input, shape index: {}]   ;;  %s19479_s8 = inlined_call_operand.hbm [shape: bf16[2,2,128,128], index: 8, kind: input, shape index: {}]   ;;  %s19480_s9 = inlined_call_operand.hbm [shape: bf16[2,2,128,128], index: 9, kind: input, shape index: {}]   ;;  %s19481_s10 = inlined_call_operand.hbm [shape: bf16[2,2,128,128], index: 10, kind: input, shape index: {}]   ;;  %s19482_s11 = inlined_call_operand.vmem [shape: f32[2,2,1,128], index: 11, kind: input, shape index: {}]   ;;  %s19483_s12 = inlined_call_operand.hbm [shape: bf16[2,2,128,128], index: 12, kind: input, shape index: {}]   ;;  %s19484_s13 = inlined_call_operand.vmem [shape: f32[2,2,1,128], index: 13, kind: input, shape index: {}]   ;;  %s19485_s14 = inlined_call_operand.hbm [shape: bf16[128,128], index: 14, kind: input, shape index: {}]   ;;  %s19486_s15 = inlined_call_operand.hbm [shape: bf16[2,128,128], index: 15, kind: input, shape index: {}]   ;;  %s19487_s16 = inlined_call_operand.vmem [shape: f32[2,1,128], index: 16, kind: input, shape index: {}]   ;;  %s19488_s17 = inlined_call_operand.hbm [shape: f32[2,8,128], index: 17, kind: output, shape index: {}]  }
   0x1   :  { %19984 = sst [smem:[#allocation222_spill]] %s19471_s0 }
   0x2   :  { %19985 = sst [smem:[#allocation223_spill]] %s19472_s1 }
   0x3   :  { %19986 = sst [smem:[#allocation224_spill]] %s19473_s2 }
   0x4   :  { %19987 = sst [smem:[#allocation225_spill]] %s19474_s3 }
   0x5   :  { %19988 = sst [smem:[#allocation226_spill]] %s19475_s4 }
   0x6   :  { %19989 = sst [smem:[#allocation227_spill]] %s19476_s5 }
   0x7   :  { %19990 = sst [smem:[#allocation228_spill]] %s19477_s6 }
   0x8   :  { %19991 = sst [smem:[#allocation229_spill]] %s19478_s7 }
   0x9   :  { %19992 = sst [smem:[#allocation230_spill]] %s19480_s9 }
   0xa   :  { %19993 = sst [smem:[#allocation231_spill]] %s19482_s11 }
   0xb   :  { %19994 = sst [smem:[#allocation232_spill]] %s19484_s13 }
   0xc   :  { %19995 = sst [smem:[#allocation233_spill]] %s19485_s14 }
   0xd   :  { %19996 = sst [smem:[#allocation234_spill]] %s19487_s16 }
   0xe   :  { %19997 = sst [smem:[#allocation235_spill]] %s19488_s17 }
   0xf   :  { %22 = vsyncpa [#allocation3], 0 }
  0x10   :  { %24 = vsyncpa [#allocation3 + $0x1], 0 }
  0x11   :  { %25 = vsyncpa [#allocation6], 0 }
  0x12   :  { %27 = vsyncpa [#allocation6 + $0x1], 0 }
  0x13   :  { %28 = vsyncpa [#allocation9], 0 }
  0x14   :  { %29 = vsyncpa [#allocation12], 0 }
  0x15   :  { %31 = vsyncpa [#allocation12 + $0x1], 0 }
  0x16   :  { %32 = vsyncpa [#allocation15], 0 }
  0x17   :  { %34 = vsyncpa [#allocation15 + $0x1], 0 }
  0x18   :  { %35 = vsyncpa [#allocation18], 0 }
  0x19   :  { %37 = vsyncpa [#allocation18 + $0x1], 0 }
  0x1a   :  { %38 = vsyncpa [#allocation21], 0 }
  0x1b   :  { %40 = vsyncpa [#allocation21 + $0x1], 0 }
  0x1c   :  { %41 = vsyncpa [#allocation4], 0 }
  0x1d   :  { %43 = vsyncpa [#allocation4 + $0x1], 0  ;;  %s14898_s24 = smov 0   ;;  %s14900_s25 = smov 0  }
  0x1e   :  { %s14902_s26 = smov 0   ;;  %s14904_s27 = smov 0  }
  0x1f LB: > { %19998 = sst [smem:[#allocation33_spill]] %s14772_s24  ;;  %s14919_s28 = sadd.s32 4294967295, %s14784_s27   ;;  %s14784_s27 = sphi %s14904_s27, %s20976_s27   ;;  %s14780_s26 = sphi %s14902_s26, %s20978_s26   ;;  %s14776_s25 = sphi %s14900_s25, %s20980_s25   ;;  %s14772_s24 = sphi %s14898_s24, %s20979_s24  }
  0x20   : > { %19999 = sst [smem:[#allocation34_spill]] %s14780_s26  ;;  %s10411_s29 = sadd.s32 4294967294, %s14784_s27  }
  0x21   : > { %20000 = sst [smem:[#allocation35_spill]] %s14919_s28  ;;  %s14923_s0 = sadd.s32 1, %s14784_s27  }
  0x22   : > { %20001 = sst [smem:[#allocation36_spill]] %s14923_s0  ;;  %s56_s30 = sadd.s32 1, %s14780_s26 }
  0x23   : > { %s53_s18 = ssub.s32 %s14784_s27, %s14923_s0  ;;  %p63_p0 = scmp.ne.s32.totalorder %s14780_s26, %s14776_s25 }
  0x24   : > { %p54_p1 = scmp.eq.s32.totalorder %s53_s18, 0  ;;  %p64_p2 = scmp.eq.s32.totalorder %s14784_s27, 0 }
  0x25   : > { %p69_p3 = scmp.ne.s32.totalorder %s14776_s25, %s14772_s24  ;;  %p19498_p4 = scmp.eq.s32.totalorder %s14919_s28, 0 }
  0x26   : > { %s14935_s19 = scalar_select %p54_p1, %s14780_s26, %s56_s30  }
  0x27   : > { %p14937_p5 = por %p64_p2, %p63_p0  ;;  %p14943_p6 = por %p19498_p4, %p69_p3 }
  0x28   : > { %20002 = sst [smem:[#allocation37_spill]] %s14935_s19  ;;  %p484_p7 = scmp.eq.s32.totalorder %s14919_s28, 1 }
  0x29   : > { %s20003_s1 = scalar_select %p14937_p5, 1, 0 }
  0x2a   : > { %s20004_s20 = scalar_select %p14943_p6, 1, 0 }
  0x2b   : > { %p490_p8 = scmp.eq.s32.totalorder %s10411_s29, 1  ;;  %p10412_p9 = scmp.ge.s32.totalorder %s14784_s27, 1 }
  0x2c   : > { %p497_p10 = scmp.lt.s32.totalorder %s14784_s27, 3  ;;  %p14950_p11 = por %p484_p7, %p63_p0 }
  0x2d   : > { %p14954_p12 = por %p490_p8, %p69_p3  ;;  %s14786_s30 = smov [#allocation7]  }
  0x2e   : > { %s20005_s21 = scalar_select %p14950_p11, 1, 0 }
  0x2f   : > { %s20007_s22 = scalar_select %p14954_p12, 1, 0 }
  0x30   : > { %20006 = sst [smem:[#allocation38_spill]] %s20005_s21  ;;  %p14958_p13 = pnand %p10412_p9, %p497_p10 }
  0x31   : > { %20008 = sst [smem:[#allocation39_spill]] %s20007_s22  ;;  %s509_s18 = sshll.u32 %s14786_s30, 4  ;;  %s510_s18 = int_to_ptr.vmem [resolvable:$true] %s509_s18 }
  0x32   : > { %s20009_s23 = scalar_select %p14958_p13, 1, 0 }
  0x33   : > { %p13609_p1 = pneg %p14958_p13  ;;  %s14787_s19 = smov [#allocation8]  }
  0x34   : > { %s522_s0 = sshll.u32 %s14787_s19, 4  ;;  %s20011_s2 = sld [smem:[#allocation224_spill]]  ;;  %s523_s0 = int_to_ptr.vmem [resolvable:$true] %s522_s0 }
  0x35   : > { %p14966_p2 = pnand %p13609_p1, %p19498_p4 }
  0x37   : > { %s20010_s29 = scalar_select %p14966_p2, 1, 0 }
  0x38   : > { %p14980_p8 = pneg %p14966_p2 }
  0x3a   : > { %s14334_s17 = scalar_lea.hbm %s20011_s2, 4096 }
  0x3b   : > { %p14335_p7 = scmp.ne.s32.totalorder %s20011_s2, %s14334_s17  ;;  %p14341_p1 = scmp.lt.u32.totalorder %s14334_s17, %s20011_s2 }
  0x3c   : > { %s20012_s30 = scalar_select %p14980_p8, 1, 0 }
  0x3d   : > { %p14337_p9 = pnand %p14980_p8, %p14335_p7 }
  0x3f   : > { %p14338_p10 = pneg %p14337_p9 }
  0x41   : > { %p14343_p0 = pnand %p14341_p1, %p14338_p10 }
  0x43   : > { %14346 = shalt.err (!%p14343_p0)
}
  0x44   : > { %s14347_s24 = scalar_lea.vmem %s510_s18, 4096  ;;  %p14355_p11 = scmp.lt.s32.totalorder %s510_s18, %s510_s18 }
  0x45   : > { %p14348_p4 = scmp.ne.s32.totalorder %s510_s18, %s14347_s24  ;;  %p14356_p6 = scmp.lt.s32.totalorder %s14347_s24, %s14347_s24 }
  0x47   : > { %p14350_p3 = pnand %p14348_p4, %p14980_p8  ;;  %p14357_p13 = por %p14356_p6, %p14355_p11 }
  0x49   : > { %p14351_p12 = pneg %p14350_p3 }
  0x4b   : > { %p14358_p5 = pnand %p14357_p13, %p14351_p12 }
  0x4d   : > { %14361 = shalt.err (!%p14358_p5)
}
  0x4e   : > { %s19505_s16 = smov 64   ;;  %s19512_s5 = smov 4  }
  0x4f   : > { %13612 = dma.hbm_to_vmem [thread:$0]  (!%p14966_p2), %s20011_s2, 4096, %s510_s18, [#allocation6], %s19505_s16, %s19505_s16, %s19512_s5  }
  0x50   : > { %p20013_p4 = scmp.ne.s32.totalorder %s20003_s1, 0  ;;  %p20014_p0 = scmp.lt.s32.totalorder %s14784_s27, 2 }
  0x51   : > { %s20016_s3 = sld [smem:[#allocation225_spill]] }
  0x52   : > { %p15003_p3 = pnand %p20014_p0, %p20013_p4 }
  0x54   : > { %s20015_s19 = scalar_select %p15003_p3, 1, 0 }
  0x57   : > { %s14362_s24 = scalar_lea.hbm %s20016_s3, 4096 }
  0x58   : > { %p14363_p5 = scmp.ne.s32.totalorder %s20016_s3, %s14362_s24  ;;  %p14369_p12 = scmp.lt.u32.totalorder %s14362_s24, %s20016_s3 }
  0x5a   : > { %p14365_p6 = pnand %p14363_p5, %p14980_p8 }
  0x5c   : > { %p14366_p11 = pneg %p14365_p6 }
  0x5e   : > { %p14371_p13 = pnand %p14369_p12, %p14366_p11 }
  0x60   : > { %14374 = shalt.err (!%p14371_p13)
}
  0x61   : > { %s14375_s1 = scalar_lea.vmem %s523_s0, 4096  ;;  %p14383_p1 = scmp.lt.s32.totalorder %s523_s0, %s523_s0 }
  0x62   : > { %p14376_p7 = scmp.ne.s32.totalorder %s523_s0, %s14375_s1  ;;  %p14384_p4 = scmp.lt.s32.totalorder %s14375_s1, %s14375_s1 }
  0x64   : > { %p14378_p9 = pnand %p14376_p7, %p14980_p8  ;;  %p14385_p0 = por %p14384_p4, %p14383_p1 }
  0x66   : > { %p14379_p10 = pneg %p14378_p9 }
  0x68   : > { %p14386_p3 = pnand %p14385_p0, %p14379_p10 }
  0x6a   : > { %14389 = shalt.err (!%p14386_p3)
}
  0x6b   : > { %13615 = dma.hbm_to_vmem [thread:$0]  (!%p14966_p2), %s20016_s3, 4096, %s523_s0, [#allocation9], %s19505_s16, %s19505_s16, %s19512_s5  }
  0x6c   : > { %s14790_s17 = smov [#allocation19]   ;;  %s15029_s22 = sand.u32 1, %s14780_s26  }
  0x6d   : > { %s551_s21 = sshll.u32 %s14790_s17, 4  ;;  %s15032_s24 = sand.u32 1, %s14784_s27   ;;  %s552_s21 = int_to_ptr.vmem [resolvable:$true] %s551_s21 }
  0x6e   : > { %s20017_s14 = sld [smem:[#allocation233_spill]] }
  0x74   : > { %s14390_s1 = scalar_lea.hbm %s20017_s14, 1024 }
  0x75   : > { %p14391_p3 = scmp.ne.s32.totalorder %s20017_s14, %s14390_s1  ;;  %p14397_p11 = scmp.lt.u32.totalorder %s14390_s1, %s20017_s14 }
  0x77   : > { %p14393_p5 = pnand %p14391_p3, %p14980_p8 }
  0x79   : > { %p14394_p6 = pneg %p14393_p5 }
  0x7b   : > { %p14399_p12 = pnand %p14397_p11, %p14394_p6 }
  0x7d   : > { %14402 = shalt.err (!%p14399_p12)
}
  0x7e   : > { %s14403_s11 = scalar_lea.vmem %s552_s21, 1024  ;;  %p14411_p10 = scmp.lt.s32.totalorder %s552_s21, %s552_s21 }
  0x7f   : > { %p14404_p13 = scmp.ne.s32.totalorder %s552_s21, %s14403_s11  ;;  %p14412_p1 = scmp.lt.s32.totalorder %s14403_s11, %s14403_s11 }
  0x81   : > { %p14406_p7 = pnand %p14404_p13, %p14980_p8  ;;  %p14413_p4 = por %p14412_p1, %p14411_p10 }
  0x83   : > { %p14407_p9 = pneg %p14406_p7 }
  0x85   : > { %p14414_p0 = pnand %p14413_p4, %p14407_p9 }
  0x87   : > { %14417 = shalt.err (!%p14414_p0)
}
  0x88   : > { %13621 = dma.hbm_to_vmem [thread:$0]  (!%p14966_p2), %s20017_s14, 1024, %s552_s21, [#allocation18], %s19505_s16, %s19505_s16, %s19512_s5  }
  0x89   : > { %s19507_s17 = sshll.u32 %s15029_s22, 6  ;;  %s19508_s13 = sshll.u32 %s14784_s27, 10 }
  0x8a   : > { %s20018_s6 = sld [smem:[#allocation228_spill]]  ;;  %s611_s0 = scalar_lea.vmem [#allocation11], %s19507_s17 }
  0x8b   : > { %s618_s11 = sshll.u32 %s611_s0, 4  ;;  %s15069_s2 = sshll.u32 %s15029_s22, 7  ;;  %s15066_s11 = int_to_ptr.vmem [resolvable:$true] %s618_s11 }
  0x8c   : > { %p20019_p5 = scmp.ne.s32.totalorder %s20015_s19, 0 }
  0x8e   : > { %p15076_p6 = pneg %p20019_p5 }
  0x90   : > { %s15062_s7 = scalar_lea.hbm %s20018_s6, %s19508_s13  ;;  %s14423_s0 = scalar_lea.hbm %s20018_s6, 2048 }
  0x91   : > { %s14418_s28 = scalar_lea.hbm %s15062_s7, 1024  ;;  %p14424_p13 = scmp.lt.u32.totalorder %s15062_s7, %s20018_s6 }
  0x92   : > { %p14419_p3 = scmp.ne.s32.totalorder %s15062_s7, %s14418_s28  ;;  %p14425_p7 = scmp.lt.u32.totalorder %s14423_s0, %s14418_s28 }
  0x93   : > { %p14427_p10 = scmp.lt.u32.totalorder %s14418_s28, %s15062_s7 }
  0x94   : > { %p14421_p11 = pnand %p15076_p6, %p14419_p3  ;;  %p14426_p9 = por %p14425_p7, %p14424_p13 }
  0x96   : > { %p14422_p12 = pneg %p14421_p11  ;;  %p14428_p1 = por %p14427_p10, %p14426_p9 }
  0x98   : > { %p14429_p4 = pnand %p14428_p1, %p14422_p12 }
  0x9a   : > { %14432 = shalt.err (!%p14429_p4)
}
  0x9b   : > { %s14433_s21 = scalar_lea.vmem %s15066_s11, 1024  ;;  %s14791_s18 = smov [#allocation11]  }
  0x9c   : > { %p14434_p0 = scmp.ne.s32.totalorder %s15066_s11, %s14433_s21  ;;  %s14438_s1 = sshll.u32 %s14791_s18, 4  ;;  %s14439_s1 = int_to_ptr.vmem [resolvable:$false] %s14438_s1 }
  0x9d   : > { %s14440_s17 = scalar_lea.vmem %s14439_s1, 2048  ;;  %p14441_p2 = scmp.lt.s32.totalorder %s15066_s11, %s14439_s1 }
  0x9e   : > { %p14436_p3 = pnand %p14434_p0, %p15076_p6  ;;  %p14442_p8 = scmp.lt.s32.totalorder %s14440_s17, %s14433_s21 }
  0xa0   : > { %p14437_p11 = pneg %p14436_p3  ;;  %p14443_p13 = por %p14442_p8, %p14441_p2 }
  0xa2   : > { %p14444_p7 = pnand %p14443_p13, %p14437_p11 }
  0xa4   : > { %14447 = shalt.err (!%p14444_p7)
}
  0xa5   : > { %s20021_s13 = smov 64   ;;  %s20022_s28 = scalar_lea.sflag [#allocation12], %s15032_s24 }
  0xa6   : > { %13631 = dma.hbm_to_vmem [thread:$0]  (!%p20019_p5), %s15062_s7, 1024, %s15066_s11, %s20022_s28, %s20021_s13, %s20021_s13, %s19512_s5  }
  0xa7   : > { %s15105_s0 = sshll.u32 %s14784_s27, 11  ;;  %s20023_s9 = sld [smem:[#allocation230_spill]] }
  0xa8   : > { %s659_s17 = scalar_lea.vmem [#allocation14], %s15069_s2  ;;  %s14792_s6 = smov [#allocation10]  }
  0xa9   : > { %s666_s3 = sshll.u32 %s659_s17, 4  ;;  %s15116_s14 = sshll.u32 %s14792_s6, 4  ;;  %s15114_s3 = int_to_ptr.vmem [resolvable:$true] %s666_s3  ;;  %s536_s14 = int_to_ptr.vmem [resolvable:$true] %s15116_s14 }
  0xaa   : > { %s19516_s7 = scalar_lea.sflag [#allocation15], %s15032_s24 }
  0xad   : > { %s15111_s1 = scalar_lea.hbm %s20023_s9, %s15105_s0  ;;  %s14453_s18 = scalar_lea.hbm %s20023_s9, 4096 }
  0xae   : > { %s14448_s11 = scalar_lea.hbm %s15111_s1, 2048  ;;  %p14454_p9 = scmp.lt.u32.totalorder %s15111_s1, %s20023_s9 }
  0xaf   : > { %p14449_p2 = scmp.ne.s32.totalorder %s15111_s1, %s14448_s11  ;;  %p14455_p10 = scmp.lt.u32.totalorder %s14453_s18, %s14448_s11 }
  0xb0   : > { %p14457_p4 = scmp.lt.u32.totalorder %s14448_s11, %s15111_s1 }
  0xb1   : > { %p14451_p8 = pnand %p14449_p2, %p15076_p6  ;;  %p14456_p1 = por %p14455_p10, %p14454_p9 }
  0xb3   : > { %p14452_p12 = pneg %p14451_p8  ;;  %p14458_p0 = por %p14457_p4, %p14456_p1 }
  0xb5   : > { %p14459_p3 = pnand %p14458_p0, %p14452_p12 }
  0xb7   : > { %14462 = shalt.err (!%p14459_p3)
}
  0xb8   : > { %s14463_s6 = scalar_lea.vmem %s15114_s3, 2048  ;;  %s14793_s17 = smov [#allocation14]  }
  0xb9   : > { %p14464_p11 = scmp.ne.s32.totalorder %s15114_s3, %s14463_s6  ;;  %s14468_s28 = sshll.u32 %s14793_s17, 4  ;;  %s14469_s28 = int_to_ptr.vmem [resolvable:$false] %s14468_s28 }
  0xba   : > { %s14470_s26 = scalar_lea.vmem %s14469_s28, 4096  ;;  %p14471_p2 = scmp.lt.s32.totalorder %s15114_s3, %s14469_s28 }
  0xbb   : > { %p14466_p13 = pnand %p14464_p11, %p15076_p6  ;;  %p14472_p8 = scmp.lt.s32.totalorder %s14470_s26, %s14463_s6 }
  0xbd   : > { %p14467_p7 = pneg %p14466_p13  ;;  %p14473_p9 = por %p14472_p8, %p14471_p2 }
  0xbf   : > { %p14474_p10 = pnand %p14473_p9, %p14467_p7 }
  0xc1   : > { %14477 = shalt.err (!%p14474_p10)
}
  0xc2   : > { %s20024_s5 = smov 4   ;;  %s20025_s4 = sld [smem:[#allocation226_spill]] }
  0xc3   : > { %13637 = dma.hbm_to_vmem [thread:$0]  (!%p20019_p5), %s15111_s1, 2048, %s15114_s3, %s19516_s7, %s20021_s13, %s20021_s13, %s20024_s5  }
  0xc4   : > { %p20026_p1 = scmp.ne.s32.totalorder %s20012_s30, 0 }
  0xc8   : > { %s14478_s18 = scalar_lea.hbm %s20025_s4, 4096 }
  0xc9   : > { %p14479_p12 = scmp.ne.s32.totalorder %s20025_s4, %s14478_s18  ;;  %p14485_p3 = scmp.lt.u32.totalorder %s14478_s18, %s20025_s4 }
  0xcb   : > { %p14481_p4 = pnand %p14479_p12, %p20026_p1 }
  0xcd   : > { %p14482_p0 = pneg %p14481_p4 }
  0xcf   : > { %p14487_p11 = pnand %p14485_p3, %p14482_p0 }
  0xd1   : > { %14490 = shalt.err (!%p14487_p11)
}
  0xd2   : > { %s14491_s9 = scalar_lea.vmem %s536_s14, 4096  ;;  %p14499_p8 = scmp.lt.s32.totalorder %s536_s14, %s536_s14 }
  0xd3   : > { %p14492_p13 = scmp.ne.s32.totalorder %s536_s14, %s14491_s9  ;;  %p14500_p9 = scmp.lt.s32.totalorder %s14491_s9, %s14491_s9 }
  0xd5   : > { %p14494_p7 = pnand %p14492_p13, %p20026_p1  ;;  %p14501_p10 = por %p14500_p9, %p14499_p8 }
  0xd7   : > { %p14495_p2 = pneg %p14494_p7 }
  0xd9   : > { %p14502_p5 = pnand %p14501_p10, %p14495_p2 }
  0xdb   : > { %14505 = shalt.err (!%p14502_p5)
}
  0xdc   : > { %s14794_s3 = smov 256   ;;  %s14795_s1 = smov 16  }
  0xdd   : > { %p20027_p12 = scmp.ne.s32.totalorder %s20010_s29, 0  ;;  %s20028_s6 = sld [smem:[#allocation222_spill]] }
  0xde   : > { %s569_s9 = scalar_lea.vmem [#allocation2], %s15069_s2  ;;  %s566_s26 = scalar_lea.sflag [#allocation3], %s15029_s22 }
  0xdf   : > { %13618 = dma.hbm_to_vmem [thread:$0]  (!%p20027_p12), %s20025_s4, 4096, %s536_s14, [#allocation9], %s14794_s3, %s14794_s3, %s14795_s1  }
  0xe0   : > { %s576_s28 = sshll.u32 %s569_s9, 4  ;;  %s15171_s28 = int_to_ptr.vmem [resolvable:$true] %s576_s28 }
  0xe3   : > { %s15168_s17 = scalar_lea.hbm %s20028_s6, %s15105_s0  ;;  %s14511_s3 = scalar_lea.hbm %s20028_s6, 4096 }
  0xe4   : > { %s14506_s7 = scalar_lea.hbm %s15168_s17, 2048  ;;  %p14512_p0 = scmp.lt.u32.totalorder %s15168_s17, %s20028_s6 }
  0xe5   : > { %p14507_p5 = scmp.ne.s32.totalorder %s15168_s17, %s14506_s7  ;;  %p14513_p3 = scmp.lt.u32.totalorder %s14511_s3, %s14506_s7 }
  0xe6   : > { %p14515_p13 = scmp.lt.u32.totalorder %s14506_s7, %s15168_s17 }
  0xe7   : > { %p14509_p1 = pnand %p14507_p5, %p15076_p6  ;;  %p14514_p11 = por %p14513_p3, %p14512_p0 }
  0xe9   : > { %p14510_p4 = pneg %p14509_p1  ;;  %p14516_p7 = por %p14515_p13, %p14514_p11 }
  0xeb   : > { %p14517_p2 = pnand %p14516_p7, %p14510_p4 }
  0xed   : > { %14520 = shalt.err (!%p14517_p2)
}
  0xee   : > { %s14521_s21 = scalar_lea.vmem %s15171_s28, 2048  ;;  %s14796_s30 = smov [#allocation2]  }
  0xef   : > { %p14522_p8 = scmp.ne.s32.totalorder %s15171_s28, %s14521_s21  ;;  %s14526_s18 = sshll.u32 %s14796_s30, 4  ;;  %s14527_s18 = int_to_ptr.vmem [resolvable:$false] %s14526_s18 }
  0xf0   : > { %s14528_s9 = scalar_lea.vmem %s14527_s18, 4096  ;;  %p14529_p12 = scmp.lt.s32.totalorder %s15171_s28, %s14527_s18 }
  0xf1   : > { %p14524_p9 = pnand %p14522_p8, %p15076_p6  ;;  %p14530_p5 = scmp.lt.s32.totalorder %s14528_s9, %s14521_s21 }
  0xf3   : > { %p14525_p10 = pneg %p14524_p9  ;;  %p14531_p1 = por %p14530_p5, %p14529_p12 }
  0xf5   : > { %p14532_p0 = pnand %p14531_p1, %p14525_p10 }
  0xf7   : > { %14535 = shalt.err (!%p14532_p0)
}
  0xf8   : > { %s14797_s7 = smov 128   ;;  %s14798_s14 = smov 8  }
  0xf9   : > { %p20029_p4 = scmp.ne.s32.totalorder %s20015_s19, 0  ;;  %s10421_s29 = sshll.u32 %s15029_s22, 9 }
  0xfa   : > { %s10719_s3 = sshll.u32 %s14784_s27, 13  ;;  %s20030_s21 = sld [smem:[#allocation223_spill]] }
  0xfb   : > { %13625 = dma.hbm_to_vmem [thread:$0]  (!%p20029_p4), %s15168_s17, 2048, %s15171_s28, %s566_s26, %s14797_s7, %s14797_s7, %s14798_s14  }
  0xfc   : > { %s590_s18 = scalar_lea.vmem [#allocation5], %s10421_s29  ;;  %s587_s4 = scalar_lea.sflag [#allocation6], %s15032_s24 }
  0xfd   : > { %s597_s9 = sshll.u32 %s590_s18, 4  ;;  %s15207_s9 = int_to_ptr.vmem [resolvable:$true] %s597_s9 }
 0x100   : > { %s15205_s30 = scalar_lea.hbm %s20030_s21, %s10719_s3  ;;  %s14541_s26 = scalar_lea.hbm %s20030_s21, 16384 }
 0x101   : > { %s14536_s6 = scalar_lea.hbm %s15205_s30, 8192  ;;  %p14542_p7 = scmp.lt.u32.totalorder %s15205_s30, %s20030_s21 }
 0x102   : > { %p14537_p3 = scmp.ne.s32.totalorder %s15205_s30, %s14536_s6  ;;  %p14543_p2 = scmp.lt.u32.totalorder %s14541_s26, %s14536_s6 }
 0x103   : > { %p14545_p9 = scmp.lt.u32.totalorder %s14536_s6, %s15205_s30 }
 0x104   : > { %p14539_p11 = pnand %p14537_p3, %p15076_p6  ;;  %p14544_p8 = por %p14543_p2, %p14542_p7 }
 0x106   : > { %p14540_p13 = pneg %p14539_p11  ;;  %p14546_p10 = por %p14545_p9, %p14544_p8 }
 0x108   : > { %p14547_p12 = pnand %p14546_p10, %p14540_p13 }
 0x10a   : > { %14550 = shalt.err (!%p14547_p12)
}
 0x10b   : > { %s14551_s29 = scalar_lea.vmem %s15207_s9, 8192  ;;  %s14799_s11 = smov [#allocation5]  }
 0x10c   : > { %p14552_p5 = scmp.ne.s32.totalorder %s15207_s9, %s14551_s29  ;;  %s14556_s18 = sshll.u32 %s14799_s11, 4  ;;  %s14557_s18 = int_to_ptr.vmem [resolvable:$false] %s14556_s18 }
 0x10d   : > { %s14558_s17 = scalar_lea.vmem %s14557_s18, 16384  ;;  %p14559_p3 = scmp.lt.s32.totalorder %s15207_s9, %s14557_s18 }
 0x10e   : > { %p14554_p1 = pnand %p14552_p5, %p15076_p6  ;;  %p14560_p11 = scmp.lt.s32.totalorder %s14558_s17, %s14551_s29 }
 0x110   : > { %p14555_p0 = pneg %p14554_p1  ;;  %p14561_p7 = por %p14560_p11, %p14559_p3 }
 0x112   : > { %p14562_p2 = pnand %p14561_p7, %p14555_p0 }
 0x114   : > { %14565 = shalt.err (!%p14562_p2)
}
 0x115   : > { %13628 = dma.hbm_to_vmem [thread:$0]  (!%p20029_p4), %s15205_s30, 8192, %s15207_s9, %s587_s4, %s14797_s7, %s14797_s7, %s14798_s14  }
 0x116   : > { %s15240_s26 = scalar_lea.hbm %s19479_s8, %s15105_s0  ;;  %s638_s3 = scalar_lea.vmem [#allocation13], %s15069_s2 }
 0x117   : > { %s645_s1 = sshll.u32 %s638_s3, 4  ;;  %s14566_s29 = scalar_lea.hbm %s15240_s26, 2048  ;;  %s15243_s1 = int_to_ptr.vmem [resolvable:$true] %s645_s1 }
 0x118   : > { %p14567_p13 = scmp.ne.s32.totalorder %s15240_s26, %s14566_s29  ;;  %s14571_s7 = scalar_lea.hbm %s19479_s8, 4096 }
 0x119   : > { %p14572_p10 = scmp.lt.u32.totalorder %s15240_s26, %s19479_s8  ;;  %p14573_p12 = scmp.lt.u32.totalorder %s14571_s7, %s14566_s29 }
 0x11a   : > { %p14569_p8 = pnand %p14567_p13, %p15076_p6  ;;  %p14575_p1 = scmp.lt.u32.totalorder %s14566_s29, %s15240_s26 }
 0x11b   : > { %p14574_p5 = por %p14573_p12, %p14572_p10 }
 0x11c   : > { %p14570_p9 = pneg %p14569_p8 }
 0x11d   : > { %p14576_p0 = por %p14575_p1, %p14574_p5 }
 0x11f   : > { %p14577_p3 = pnand %p14576_p0, %p14570_p9 }
 0x121   : > { %14580 = shalt.err (!%p14577_p3)
}
 0x122   : > { %s14581_s9 = scalar_lea.vmem %s15243_s1, 2048  ;;  %s14800_s18 = smov [#allocation13]  }
 0x123   : > { %p14582_p11 = scmp.ne.s32.totalorder %s15243_s1, %s14581_s9  ;;  %s14586_s17 = sshll.u32 %s14800_s18, 4  ;;  %s14587_s17 = int_to_ptr.vmem [resolvable:$false] %s14586_s17 }
 0x124   : > { %s14588_s6 = scalar_lea.vmem %s14587_s17, 4096  ;;  %p14589_p13 = scmp.lt.s32.totalorder %s15243_s1, %s14587_s17 }
 0x125   : > { %p14584_p7 = pnand %p14582_p11, %p15076_p6  ;;  %p14590_p8 = scmp.lt.s32.totalorder %s14588_s6, %s14581_s9 }
 0x127   : > { %p14585_p2 = pneg %p14584_p7  ;;  %p14591_p10 = por %p14590_p8, %p14589_p13 }
 0x129   : > { %p14592_p12 = pnand %p14591_p10, %p14585_p2 }
 0x12b   : > { %14595 = shalt.err (!%p14592_p12)
}
 0x12c   : > { %s20031_s28 = scalar_lea.sflag [#allocation12], %s15032_s24  ;;  %s15275_s11 = scalar_lea.hbm %s19481_s10, %s15105_s0 }
 0x12d   : > { %13634 = dma.hbm_to_vmem [thread:$0]  (!%p20029_p4), %s15240_s26, 2048, %s15243_s1, %s20031_s28, %s20021_s13, %s20021_s13, %s20024_s5  }
 0x12e   : > { %s680_s4 = scalar_lea.vmem [#allocation16], %s15069_s2  ;;  %s14596_s14 = scalar_lea.hbm %s15275_s11, 2048 }
 0x12f   : > { %s687_s7 = sshll.u32 %s680_s4, 4  ;;  %p14597_p9 = scmp.ne.s32.totalorder %s15275_s11, %s14596_s14  ;;  %s15278_s7 = int_to_ptr.vmem [resolvable:$true] %s687_s7 }
 0x130   : > { %s14601_s1 = scalar_lea.hbm %s19481_s10, 4096  ;;  %p14602_p0 = scmp.lt.u32.totalorder %s15275_s11, %s19481_s10 }
 0x131   : > { %p14599_p5 = pnand %p14597_p9, %p15076_p6  ;;  %p14603_p3 = scmp.lt.u32.totalorder %s14601_s1, %s14596_s14 }
 0x132   : > { %p14605_p7 = scmp.lt.u32.totalorder %s14596_s14, %s15275_s11 }
 0x133   : > { %p14600_p1 = pneg %p14599_p5  ;;  %p14604_p11 = por %p14603_p3, %p14602_p0 }
 0x135   : > { %p14606_p2 = por %p14605_p7, %p14604_p11 }
 0x137   : > { %p14607_p13 = pnand %p14606_p2, %p14600_p1 }
 0x139   : > { %14610 = shalt.err (!%p14607_p13)
}
 0x13a   : > { %s14611_s17 = scalar_lea.vmem %s15278_s7, 2048  ;;  %s14801_s6 = smov [#allocation16]  }
 0x13b   : > { %p14612_p8 = scmp.ne.s32.totalorder %s15278_s7, %s14611_s17  ;;  %s14616_s28 = sshll.u32 %s14801_s6, 4  ;;  %s14617_s28 = int_to_ptr.vmem [resolvable:$false] %s14616_s28 }
 0x13c   : > { %s14618_s3 = scalar_lea.vmem %s14617_s28, 4096  ;;  %p14619_p9 = scmp.lt.s32.totalorder %s15278_s7, %s14617_s28 }
 0x13d   : > { %p14614_p10 = pnand %p14612_p8, %p15076_p6  ;;  %p14620_p5 = scmp.lt.s32.totalorder %s14618_s3, %s14611_s17 }
 0x13f   : > { %p14615_p12 = pneg %p14614_p10  ;;  %p14621_p0 = por %p14620_p5, %p14619_p9 }
 0x141   : > { %p14622_p3 = pnand %p14621_p0, %p14615_p12 }
 0x143   : > { %14625 = shalt.err (!%p14622_p3)
}
 0x144   : > { %s20032_s29 = scalar_lea.sflag [#allocation15], %s15032_s24  ;;  %s15310_s30 = scalar_lea.hbm %s19483_s12, %s15105_s0 }
 0x145   : > { %13640 = dma.hbm_to_vmem [thread:$0]  (!%p20029_p4), %s15275_s11, 2048, %s15278_s7, %s20032_s29, %s20021_s13, %s20021_s13, %s20024_s5  }
 0x146   : > { %s708_s26 = scalar_lea.vmem [#allocation17], %s15069_s2  ;;  %s705_s9 = scalar_lea.sflag [#allocation18], %s15032_s24 }
 0x147   : > { %s715_s1 = sshll.u32 %s708_s26, 4  ;;  %s14626_s18 = scalar_lea.hbm %s15310_s30, 2048  ;;  %s15313_s1 = int_to_ptr.vmem [resolvable:$true] %s715_s1 }
 0x148   : > { %p14627_p1 = scmp.ne.s32.totalorder %s15310_s30, %s14626_s18  ;;  %s14631_s17 = scalar_lea.hbm %s19483_s12, 4096 }
 0x149   : > { %p14632_p2 = scmp.lt.u32.totalorder %s15310_s30, %s19483_s12  ;;  %p14633_p13 = scmp.lt.u32.totalorder %s14631_s17, %s14626_s18 }
 0x14a   : > { %p14629_p11 = pnand %p14627_p1, %p15076_p6  ;;  %p14635_p10 = scmp.lt.u32.totalorder %s14626_s18, %s15310_s30 }
 0x14b   : > { %p14634_p8 = por %p14633_p13, %p14632_p2 }
 0x14c   : > { %p14630_p7 = pneg %p14629_p11 }
 0x14d   : > { %p14636_p12 = por %p14635_p10, %p14634_p8 }
 0x14f   : > { %p14637_p9 = pnand %p14636_p12, %p14630_p7 }
 0x151   : > { %14640 = shalt.err (!%p14637_p9)
}
 0x152   : > { %s14641_s2 = scalar_lea.vmem %s15313_s1, 2048  ;;  %s14802_s28 = smov [#allocation17]  }
 0x153   : > { %p14642_p5 = scmp.ne.s32.totalorder %s15313_s1, %s14641_s2  ;;  %s14646_s3 = sshll.u32 %s14802_s28, 4  ;;  %s14647_s3 = int_to_ptr.vmem [resolvable:$false] %s14646_s3 }
 0x154   : > { %s14648_s29 = scalar_lea.vmem %s14647_s3, 4096  ;;  %p14649_p1 = scmp.lt.s32.totalorder %s15313_s1, %s14647_s3 }
 0x155   : > { %p14644_p0 = pnand %p14642_p5, %p15076_p6  ;;  %p14650_p11 = scmp.lt.s32.totalorder %s14648_s29, %s14641_s2 }
 0x157   : > { %p14645_p3 = pneg %p14644_p0  ;;  %p14651_p2 = por %p14650_p11, %p14649_p1 }
 0x159   : > { %p14652_p13 = pnand %p14651_p2, %p14645_p3 }
 0x15b   : > { %14655 = shalt.err (!%p14652_p13)
}
 0x15c   : > { %13643 = dma.hbm_to_vmem [thread:$0]  (!%p20029_p4), %s15310_s30, 2048, %s15313_s1, %s705_s9, %s20021_s13, %s20021_s13, %s20024_s5  }
 0x15d   : > { %s20033_s4 = sshll.u32 %s14784_s27, 10  ;;  %s20034_s11 = sshll.u32 %s15029_s22, 6 }
 0x15e   : > { %s15347_s18 = scalar_lea.hbm %s19486_s15, %s20033_s4  ;;  %s736_s7 = scalar_lea.vmem [#allocation20], %s20034_s11 }
 0x15f   : > { %s743_s24 = sshll.u32 %s736_s7, 4  ;;  %s733_s17 = scalar_lea.sflag [#allocation21], %s15029_s22  ;;  %s15351_s24 = int_to_ptr.vmem [resolvable:$true] %s743_s24 }
 0x160   : > { %s14656_s0 = scalar_lea.hbm %s15347_s18, 1024  ;;  %s14661_s9 = scalar_lea.hbm %s19486_s15, 2048 }
 0x161   : > { %p14657_p7 = scmp.ne.s32.totalorder %s15347_s18, %s14656_s0  ;;  %p14662_p12 = scmp.lt.u32.totalorder %s15347_s18, %s19486_s15 }
 0x162   : > { %p14663_p9 = scmp.lt.u32.totalorder %s14661_s9, %s14656_s0  ;;  %p14665_p0 = scmp.lt.u32.totalorder %s14656_s0, %s15347_s18 }
 0x163   : > { %p14659_p8 = pnand %p14657_p7, %p15076_p6 }
 0x164   : > { %p14664_p5 = por %p14663_p9, %p14662_p12 }
 0x165   : > { %p14660_p10 = pneg %p14659_p8 }
 0x166   : > { %p14666_p3 = por %p14665_p0, %p14664_p5 }
 0x168   : > { %p14667_p1 = pnand %p14666_p3, %p14660_p10 }
 0x16a   : > { %14670 = shalt.err (!%p14667_p1)
}
 0x16b   : > { %s14671_s28 = scalar_lea.vmem %s15351_s24, 1024  ;;  %s14803_s3 = smov [#allocation20]  }
 0x16c   : > { %p14672_p11 = scmp.ne.s32.totalorder %s15351_s24, %s14671_s28  ;;  %s14676_s29 = sshll.u32 %s14803_s3, 4  ;;  %s14677_s29 = int_to_ptr.vmem [resolvable:$false] %s14676_s29 }
 0x16d   : > { %s14678_s4 = scalar_lea.vmem %s14677_s29, 2048  ;;  %p14679_p7 = scmp.lt.s32.totalorder %s15351_s24, %s14677_s29 }
 0x16e   : > { %p14674_p2 = pnand %p14672_p11, %p15076_p6  ;;  %p14680_p8 = scmp.lt.s32.totalorder %s14678_s4, %s14671_s28 }
 0x170   : > { %p14675_p13 = pneg %p14674_p2  ;;  %p14681_p12 = por %p14680_p8, %p14679_p7 }
 0x172   : > { %p14682_p9 = pnand %p14681_p12, %p14675_p13 }
 0x174   : > { %14685 = shalt.err (!%p14682_p9)
}
 0x175   : > { %13646 = dma.hbm_to_vmem [thread:$0]  (!%p20029_p4), %s15347_s18, 1024, %s15351_s24, %s733_s17, %s20021_s13, %s20021_s13, %s20024_s5  }
 0x176   : > { %p20035_p6 = scmp.ne.s32.totalorder %s20009_s23, 0 }
 0x178   : > { %761 = sbr.rel (%p20035_p6) target bundleno = 4550 (0x11c6), region = 88 }
 0x17f   : > { %s15383_s16 = sand.u32 1, %s14776_s25   ;;  %p20036_p10 = scmp.ne.s32.totalorder %s20004_s20, 0 }
 0x180   : > { %s10443_s14 = sshll.u32 %s15383_s16, 7  ;;  %s764_s26 = scalar_lea.sflag [#allocation3], %s15383_s16 }
 0x181   : > { %s15387_s19 = scalar_lea.vmem [#allocation2], %s10443_s14 }
 0x182   : > { %14731 = dma.done.wait (%p20036_p10), %s764_s26, 2048  }
 0x183   : > { %14733 = vsyncadd (%p20036_p10), %s764_s26, 4294965248  ;;  %s20037_s22 = sld [smem:[#allocation35_spill]]  ;;  %s10444_s13 = sshll.u32 %s15383_s16, 9 }
 0x184   : > { %s15395_s18 = scalar_lea.vmem [#allocation5], %s10444_s13 }
 0x189   : > { %s772_s23 = sand.u32 1, %s20037_s22  }
 0x18a   : > { %s773_s5 = scalar_lea.sflag [#allocation6], %s772_s23 }
 0x18b   : > { %14735 = dma.done.wait (%p20036_p10), %s773_s5, 8192  }
 0x18c   : > { %14737 = vsyncadd (%p20036_p10), %s773_s5, 4294959104  ;;  %p20038_p4 = scmp.eq.s32.totalorder %s20037_s22, 0 }
 0x18e   : > { %14739 = dma.done.wait (%p20038_p4), [#allocation6], 4096   ;;  %p20039_p5 = pmov %p20038_p4 }
 0x18f   : > { %p20040_p0 = pmov %p20038_p4 }
 0x190   : > { %14741 = vsyncadd (%p20039_p5), [#allocation6], 4294963200 }
 0x191   : > { %14743 = dma.done.wait (%p20040_p0), [#allocation9], 8192   ;;  %p20041_p3 = pmov %p20040_p0 }
 0x192   : > { %s10448_s11 = sshll.u32 %s15383_s16, 6  ;;  %s794_s7 = scalar_lea.sflag [#allocation12], %s772_s23 }
 0x193   : > { %14745 = vsyncadd (%p20041_p3), [#allocation9], 4294959104  ;;  %s15410_s24 = scalar_lea.vmem [#allocation11], %s10448_s11 }
 0x194   : > { %14747 = dma.done.wait (%p20036_p10), %s794_s7, 3072  }
 0x195   : > { %14749 = vsyncadd (%p20036_p10), %s794_s7, 4294964224  ;;  %s15416_s17 = scalar_lea.vmem [#allocation13], %s10443_s14  ;;  %s812_s0 = scalar_lea.sflag [#allocation15], %s772_s23 }
 0x196   : > { %s15418_s30 = scalar_lea.vmem [#allocation14], %s10443_s14 }
 0x197   : > { %14751 = dma.done.wait (%p20036_p10), %s812_s0, 4096  }
 0x198   : > { %14753 = vsyncadd (%p20036_p10), %s812_s0, 4294963200  ;;  %s15424_s1 = scalar_lea.vmem [#allocation16], %s10443_s14  ;;  %s830_s9 = scalar_lea.sflag [#allocation18], %s772_s23 }
 0x199   : > { %s15426_s6 = scalar_lea.vmem [#allocation17], %s10443_s14 }
 0x19a   : > { %14755 = dma.done.wait (%p20036_p10), %s830_s9, 2048  }
 0x19b   : > { %14757 = vsyncadd (%p20036_p10), %s830_s9, 4294965248  ;;  %p20042_p1 = pmov %p20040_p0 }
 0x19c   : > { %p20043_p11 = pmov %p20040_p0 }
 0x19d   : > { %14759 = dma.done.wait (%p20042_p1), [#allocation18], 1024  }
 0x19e   : > { %14761 = vsyncadd (%p20043_p11), [#allocation18], 4294966272  ;;  %s843_s2 = scalar_lea.sflag [#allocation21], %s15383_s16  ;;  %s15437_s28 = scalar_lea.vmem [#allocation20], %s10448_s11 }
 0x19f   : > { %14763 = dma.done.wait (%p20036_p10), %s843_s2, 1024  }
 0x1a0   : > { %14765 = vsyncadd (%p20036_p10), %s843_s2, 4294966272  ;;  %v13706_v0 = vld [vmem:[%s15410_s24] sm:$0xff]   ;;  %v13707_v1 = vld [vmem:[%s15410_s24 + $0x8] sm:$0xff]   ;;  %p946_p2 = scmp.lt.s32.totalorder %s20037_s22, 1  ;;  %s20044_s4 = sld [smem:[#allocation229_spill]] }
 0x1a1   : > { %11880 = vmatprep.subr.bf16.mxu1 %v13706_v0  ;;  %v13708_v2 = vld [vmem:[%s15410_s24 + $0x10] sm:$0xff]   ;;  %v13709_v3 = vld [vmem:[%s15410_s24 + $0x18] sm:$0xff]   ;;  %v978_v4 = vld [vmem:[%s15387_s19] sm:$0xff]  ;;  %s20169_s13 = sld [smem:[#allocation231_spill]]  ;;  %s20170_s7 = sld [smem:[#allocation232_spill]] }
 0x1a2   : > { %11881 = vmatpush3.bf16.msra.mxu1 %v13706_v0  ;;  %v979_v5 = vld [vmem:[%s15387_s19 + $0x8] sm:$0xff]  ;;  %v13710_v7 = vld [vmem:[%s15410_s24 + $0x20] sm:$0xff]   ;;  %v13712_v9 = vld [vmem:[%s15410_s24 + $0x30] sm:$0xff]   ;;  %s15533_s20 = scalar_select %p946_p2, %s20037_s22, 1 }
 0x1a3   : > { %11882 = vmatprep.subr.bf16.mxu1 %v13707_v1  ;;  %v994_v6 = vpack.c.bf16 %v979_v5, %v978_v4  ;;  %v13711_v8 = vld [vmem:[%s15410_s24 + $0x28] sm:$0xff]   ;;  %v13713_v10 = vld [vmem:[%s15410_s24 + $0x38] sm:$0xff]   ;;  %v980_v11 = vld [vmem:[%s15387_s19 + $0x10] sm:$0xff]  ;;  %s20968_s2 = sld [smem:[#allocation234_spill]]  ;;  %s20969_s29 = sld [smem:[#allocation38_spill]] }
 0x1a4   : > { %v981_v12 = vld [vmem:[%s15387_s19 + $0x18] sm:$0xff]  ;;  %v982_v13 = vld [vmem:[%s15387_s19 + $0x20] sm:$0xff]  ;;  %v983_v14 = vld [vmem:[%s15387_s19 + $0x28] sm:$0xff]  ;;  %s10456_s26 = sshll.u32 %s15533_s20, 1  ;;  %s20970_s23 = sld [smem:[#allocation235_spill]] }
 0x1a5   : > { %11896 = vmatprep.mubr.bf16.mxu1 %v994_v6  ;;  %v995_v15 = vpack.c.bf16 %v981_v12, %v980_v11  ;;  %v996_v16 = vpack.c.bf16 %v983_v14, %v982_v13  ;;  %v984_v17 = vld [vmem:[%s15387_s19 + $0x30] sm:$0xff]  ;;  %v985_v18 = vld [vmem:[%s15387_s19 + $0x38] sm:$0xff]  ;;  %v986_v19 = vld [vmem:[%s15387_s19 + $0x40] sm:$0xff] }
 0x1a6   : > { %11883 = vmatpush3.bf16.msra.mxu1 %v13707_v1  ;;  %v987_v20 = vld [vmem:[%s15387_s19 + $0x48] sm:$0xff]  ;;  %v997_v21 = vpack.c.bf16 %v985_v18, %v984_v17  ;;  %v988_v23 = vld [vmem:[%s15387_s19 + $0x50] sm:$0xff]  ;;  %v989_v24 = vld [vmem:[%s15387_s19 + $0x58] sm:$0xff]  ;;  %s948_s14 = scalar_lea.vmem %s20044_s4, %s15533_s20  ;;  %s10715_s4 = sshll.u32 %s20037_s22, 7 }
 0x1a7   : > { %11884 = vmatprep.subr.bf16.mxu1 %v13708_v2  ;;  %v998_v22 = vpack.c.bf16 %v987_v20, %v986_v19  ;;  %v990_v25 = vld [vmem:[%s15387_s19 + $0x60] sm:$0xff]  ;;  %v991_v26 = vld [vmem:[%s15387_s19 + $0x68] sm:$0xff]  ;;  %v999_v27 = vpack.c.bf16 %v989_v24, %v988_v23  ;;  %v992_v29 = vld [vmem:[%s15387_s19 + $0x70] sm:$0xff]  ;;  %s16164_s5 = scalar_lea.vmem %s20169_s13, %s10456_s26  ;;  %s16172_s24 = scalar_lea.vmem %s20170_s7, %s10456_s26 }
 0x1a8   : > { %v1000_v28 = vpack.c.bf16 %v991_v26, %v990_v25  ;;  %v993_v30 = vld [vmem:[%s15387_s19 + $0x78] sm:$0xff]  ;;  %v1153_v31 = vld [vmem:[%s15395_s18] sm:$0xff]  ;;  %v1154_v32 = vld [vmem:[%s15395_s18 + $0x8] sm:$0xff] }
 0x1a9   : > { %v1001_v33 = vpack.c.bf16 %v993_v30, %v992_v29  ;;  %v1217_v34 = vpack.c.bf16 %v1154_v32, %v1153_v31  ;;  %v1155_v35 = vld [vmem:[%s15395_s18 + $0x10] sm:$0xff]  ;;  %v1156_v36 = vld [vmem:[%s15395_s18 + $0x18] sm:$0xff]  ;;  %v1157_v37 = vld [vmem:[%s15395_s18 + $0x20] sm:$0xff]  ;;  %s959_s3 = scalar_lea.vmem %s20968_s2, %s15533_s20  ;;  %s10094_s20 = scalar_lea.sflag [#allocation4], %s15383_s16 }
 0x1aa   : > { %11885 = vmatpush3.bf16.msra.mxu1 %v13708_v2  ;;  %v1158_v38 = vld [vmem:[%s15395_s18 + $0x28] sm:$0xff]  ;;  %v1218_v39 = vpack.c.bf16 %v1156_v36, %v1155_v35  ;;  %v1159_v41 = vld [vmem:[%s15395_s18 + $0x30] sm:$0xff]  ;;  %v1160_v42 = vld [vmem:[%s15395_s18 + $0x38] sm:$0xff]  ;;  %s19427_s13 = scalar_lea.hbm %s20970_s23, %s10715_s4  ;;  %p20971_p7 = scmp.ne.s32.totalorder %s20969_s29, 0 }
 0x1ab   : > { %11886 = vmatprep.subr.bf16.mxu1 %v13709_v3  ;;  %v1219_v40 = vpack.c.bf16 %v1158_v38, %v1157_v37  ;;  %v1161_v43 = vld [vmem:[%s15395_s18 + $0x40] sm:$0xff]  ;;  %v1162_v44 = vld [vmem:[%s15395_s18 + $0x48] sm:$0xff]  ;;  %v1220_v45 = vpack.c.bf16 %v1160_v42, %v1159_v41  ;;  %v1163_v47 = vld [vmem:[%s15395_s18 + $0x50] sm:$0xff] }
 0x1ac   : > { %v1221_v46 = vpack.c.bf16 %v1162_v44, %v1161_v43  ;;  %v1164_v48 = vld [vmem:[%s15395_s18 + $0x58] sm:$0xff]  ;;  %v1165_v49 = vld [vmem:[%s15395_s18 + $0x60] sm:$0xff]  ;;  %v1166_v50 = vld [vmem:[%s15395_s18 + $0x68] sm:$0xff] }
 0x1ad   : > { %v1222_v51 = vpack.c.bf16 %v1164_v48, %v1163_v47  ;;  %v1223_v52 = vpack.c.bf16 %v1166_v50, %v1165_v49  ;;  %v1167_v53 = vld [vmem:[%s15395_s18 + $0x70] sm:$0xff]  ;;  %v1168_v54 = vld [vmem:[%s15395_s18 + $0x78] sm:$0xff]  ;;  %v1169_v55 = vld [vmem:[%s15395_s18 + $0x80] sm:$0xff] }
 0x1ae   : > { %11887 = vmatpush3.bf16.msra.mxu1 %v13709_v3  ;;  %v1170_v56 = vld [vmem:[%s15395_s18 + $0x88] sm:$0xff]  ;;  %v1224_v57 = vpack.c.bf16 %v1168_v54, %v1167_v53  ;;  %v1171_v59 = vld [vmem:[%s15395_s18 + $0x90] sm:$0xff]  ;;  %v1172_v60 = vld [vmem:[%s15395_s18 + $0x98] sm:$0xff] }
 0x1af   : > { %11888 = vmatprep.subr.bf16.mxu1 %v13710_v7  ;;  %v1225_v58 = vpack.c.bf16 %v1170_v56, %v1169_v55  ;;  %v1173_v61 = vld [vmem:[%s15395_s18 + $0xa0] sm:$0xff]  ;;  %v1174_v62 = vld [vmem:[%s15395_s18 + $0xa8] sm:$0xff]  ;;  %v1226_v63 = vpack.c.bf16 %v1172_v60, %v1171_v59  ;;  %v1183_v13 = vld [vmem:[%s15395_s18 + $0xf0] sm:$0xff] }
 0x1b0   : > { %v1178_v4 = vld [vmem:[%s15395_s18 + $0xc8] sm:$0xff]  ;;  %v1184_v14 = vld [vmem:[%s15395_s18 + $0xf8] sm:$0xff]  ;;  %v1187_v19 = vld [vmem:[%s15395_s18 + $0x110] sm:$0xff] }
 0x1b1   : > { %v1182_v11 = vld [vmem:[%s15395_s18 + $0xe8] sm:$0xff]  ;;  %v1188_v20 = vld [vmem:[%s15395_s18 + $0x118] sm:$0xff]  ;;  %v1191_v25 = vld [vmem:[%s15395_s18 + $0x130] sm:$0xff] }
 0x1b2   : > { %11889 = vmatpush3.bf16.msra.mxu1 %v13710_v7  ;;  %v1186_v17 = vld [vmem:[%s15395_s18 + $0x108] sm:$0xff]  ;;  %v1192_v26 = vld [vmem:[%s15395_s18 + $0x138] sm:$0xff]  ;;  %v1195_v31 = vld [vmem:[%s15395_s18 + $0x150] sm:$0xff] }
 0x1b3   : > { %11890 = vmatprep.subr.bf16.mxu1 %v13711_v8  ;;  %v1190_v23 = vld [vmem:[%s15395_s18 + $0x128] sm:$0xff]  ;;  %v1196_v32 = vld [vmem:[%s15395_s18 + $0x158] sm:$0xff]  ;;  %v1199_v37 = vld [vmem:[%s15395_s18 + $0x170] sm:$0xff] }
 0x1b4   : > { %v1194_v29 = vld [vmem:[%s15395_s18 + $0x148] sm:$0xff]  ;;  %v1200_v38 = vld [vmem:[%s15395_s18 + $0x178] sm:$0xff]  ;;  %v1201_v41 = vld [vmem:[%s15395_s18 + $0x180] sm:$0xff] }
 0x1b5   : > { %v1198_v35 = vld [vmem:[%s15395_s18 + $0x168] sm:$0xff]  ;;  %v1203_v44 = vld [vmem:[%s15395_s18 + $0x190] sm:$0xff]  ;;  %v1205_v47 = vld [vmem:[%s15395_s18 + $0x1a0] sm:$0xff] }
 0x1b6   : > { %11891 = vmatpush3.bf16.msra.mxu1 %v13711_v8  ;;  %v1202_v42 = vld [vmem:[%s15395_s18 + $0x188] sm:$0xff]  ;;  %v1207_v50 = vld [vmem:[%s15395_s18 + $0x1b0] sm:$0xff]  ;;  %v1209_v53 = vld [vmem:[%s15395_s18 + $0x1c0] sm:$0xff] }
 0x1b7   : > { %11892 = vmatprep.subr.bf16.mxu1 %v13712_v9  ;;  %v1241_v43 = vpack.c.bf16 %v1202_v42, %v1201_v41  ;;  %v1206_v48 = vld [vmem:[%s15395_s18 + $0x1a8] sm:$0xff]  ;;  %v1211_v56 = vld [vmem:[%s15395_s18 + $0x1d0] sm:$0xff]  ;;  %v1213_v59 = vld [vmem:[%s15395_s18 + $0x1e0] sm:$0xff] }
 0x1b8   : > { %v1243_v49 = vpack.c.bf16 %v1206_v48, %v1205_v47  ;;  %v1210_v54 = vld [vmem:[%s15395_s18 + $0x1c8] sm:$0xff] }
 0x1b9   : > { %v1245_v55 = vpack.c.bf16 %v1210_v54, %v1209_v53  ;;  %v1214_v60 = vld [vmem:[%s15395_s18 + $0x1e8] sm:$0xff] }
 0x1ba   : > { %11893 = vmatpush3.bf16.msra.mxu1 %v13712_v9  ;;  %v13741_v54 = vld [vmem:[%s15418_s30 + $0x8] sm:$0xff]  }
 0x1bb   : > { %11894 = vmatprep.subr.bf16.mxu1 %v13713_v10 }
 0x1be   : > { %11895 = vmatpush3.bf16.msra.mxu1 %v13713_v10 }
 0x1bf   : > { %11912 = vmatprep.subr.bf16.mxu1 %v13706_v0 }
 0x1c1   : > { %11897 = vmatmul.mubr.bf16.vlgmr.msra.gmra.mrb[0].mxu1 %v995_v15  ;;  %v1232_v15 = vpack.c.bf16 %v1184_v14, %v1183_v13 }
 0x1c2   : > { %11900 = vmatprep.mubr.bf16.mxu1 %v996_v16  ;;  %11913 = vmatpush3.bf16.msra.mxu1 %v13706_v0  ;;  %v1227_v0 = vpack.c.bf16 %v1174_v62, %v1173_v61  ;;  %v1185_v16 = vld [vmem:[%s15395_s18 + $0x100] sm:$0xff]  ;;  %v1247_v61 = vpack.c.bf16 %v1214_v60, %v1213_v59  ;;  %v1215_v62 = vld [vmem:[%s15395_s18 + $0x1f0] sm:$0xff] }
 0x1c3   : > { %11914 = vmatprep.subr.bf16.mxu1 %v13707_v1  ;;  %v1233_v18 = vpack.c.bf16 %v1186_v17, %v1185_v16  ;;  %v13744_v59 = vld [vmem:[%s15418_s30 + $0x10] sm:$0xff]  }
 0x1c6   : > { %11915 = vmatpush3.bf16.msra.mxu1 %v13707_v1  ;;  %v1175_v1 = vld [vmem:[%s15395_s18 + $0xb0] sm:$0xff] }
 0x1c7   : > { %11916 = vmatprep.subr.bf16.mxu1 %v13708_v2 }
 0x1c9   : > { %11901 = vmatmul.mubr.bf16.gmra.mrb[4].mxu1 %v997_v21  ;;  %v1234_v21 = vpack.c.bf16 %v1188_v20, %v1187_v19 }
 0x1ca   : > { %11904 = vmatprep.mubr.bf16.mxu1 %v998_v22  ;;  %11917 = vmatpush3.bf16.msra.mxu1 %v13708_v2  ;;  %v1176_v2 = vld [vmem:[%s15395_s18 + $0xb8] sm:$0xff]  ;;  %v1189_v22 = vld [vmem:[%s15395_s18 + $0x120] sm:$0xff] }
 0x1cb   : > { %11918 = vmatprep.subr.bf16.mxu1 %v13709_v3  ;;  %v1228_v5 = vpack.c.bf16 %v1176_v2, %v1175_v1  ;;  %v1235_v24 = vpack.c.bf16 %v1190_v23, %v1189_v22  ;;  %v15539_v2 = vld [vmem:[%s948_s14] ss:$0 sm:$0xff] }
 0x1ce   : > { %11919 = vmatpush3.bf16.msra.mxu1 %v13709_v3  ;;  %v1177_v3 = vld [vmem:[%s15395_s18 + $0xc0] sm:$0xff] }
 0x1cf   : > { %11920 = vmatprep.subr.bf16.mxu1 %v13710_v7  ;;  %v1229_v6 = vpack.c.bf16 %v1178_v4, %v1177_v3 }
 0x1d1   : > { %11905 = vmatmul.mubr.bf16.gmra.mrb[8].mxu1 %v999_v27  ;;  %v1236_v27 = vpack.c.bf16 %v1192_v26, %v1191_v25 }
 0x1d2   : > { %11908 = vmatprep.mubr.bf16.mxu1 %v1000_v28  ;;  %11921 = vmatpush3.bf16.msra.mxu1 %v13710_v7  ;;  %v1179_v7 = vld [vmem:[%s15395_s18 + $0xd0] sm:$0xff]  ;;  %v1193_v28 = vld [vmem:[%s15395_s18 + $0x140] sm:$0xff] }
 0x1d3   : > { %11922 = vmatprep.subr.bf16.mxu1 %v13711_v8  ;;  %v1237_v30 = vpack.c.bf16 %v1194_v29, %v1193_v28 }
 0x1d6   : > { %11923 = vmatpush3.bf16.msra.mxu1 %v13711_v8  ;;  %v1180_v8 = vld [vmem:[%s15395_s18 + $0xd8] sm:$0xff] }
 0x1d7   : > { %11924 = vmatprep.subr.bf16.mxu1 %v13712_v9 }
 0x1d9   : > { %11909 = vmatmul.mubr.bf16.gmra.mrb[12].mxu1 %v1001_v33  ;;  %v1238_v33 = vpack.c.bf16 %v1196_v32, %v1195_v31 }
 0x1da   : > { %11925 = vmatpush3.bf16.msra.mxu1 %v13712_v9  ;;  %11928 = vmatprep.mubr.bf16.mxu1 %v1217_v34  ;;  %v1230_v9 = vpack.c.bf16 %v1180_v8, %v1179_v7  ;;  %v1197_v34 = vld [vmem:[%s15395_s18 + $0x160] sm:$0xff] }
 0x1db   : > { %11926 = vmatprep.subr.bf16.mxu1 %v13713_v10  ;;  %v1239_v36 = vpack.c.bf16 %v1198_v35, %v1197_v34 }
 0x1de   : > { %11927 = vmatpush3.bf16.msra.mxu1 %v13713_v10  ;;  %v1181_v10 = vld [vmem:[%s15395_s18 + $0xe0] sm:$0xff] }
 0x1df   : > { %v1231_v12 = vpack.c.bf16 %v1182_v11, %v1181_v10 }
 0x1e1   : > { %11929 = vmatmul.mubr.bf16.vlgmr.msra.gmra.mrb[16].mxu1 %v1218_v39  ;;  %v1240_v39 = vpack.c.bf16 %v1200_v38, %v1199_v37 }
 0x1e2   : > { %11932 = vmatprep.mubr.bf16.mxu1 %v1219_v40  ;;  %v13714_v40 = vld [vmem:[#allocation7] sm:$0xff]  }
 0x1e3   : > { %12008 = vmatprep.mubr.bf16.mxu0 %v13714_v40 }
 0x1e9   : > { %11933 = vmatmul.mubr.bf16.gmra.mrb[20].mxu1 %v1220_v45  ;;  %v1204_v45 = vld [vmem:[%s15395_s18 + $0x198] sm:$0xff] }
 0x1ea   : > { %11936 = vmatprep.mubr.bf16.mxu1 %v1221_v46  ;;  %v1242_v46 = vpack.c.bf16 %v1204_v45, %v1203_v44  ;;  %v13740_v45 = vld [vmem:[%s15418_s30] sm:$0xff]  }
 0x1f1   : > { %11937 = vmatmul.mubr.bf16.gmra.mrb[24].mxu1 %v1222_v51  ;;  %v1208_v51 = vld [vmem:[%s15395_s18 + $0x1b8] sm:$0xff] }
 0x1f2   : > { %11940 = vmatprep.mubr.bf16.mxu1 %v1223_v52  ;;  %v1244_v52 = vpack.c.bf16 %v1208_v51, %v1207_v50  ;;  %v13715_v50 = vld [vmem:[#allocation7 + $0x8] sm:$0xff]  }
 0x1f9   : > { %11941 = vmatmul.mubr.bf16.gmra.mrb[28].mxu1 %v1224_v57  ;;  %v1212_v57 = vld [vmem:[%s15395_s18 + $0x1d8] sm:$0xff] }
 0x1fa   : > { %11944 = vmatprep.mubr.bf16.mxu1 %v1225_v58  ;;  %v1246_v58 = vpack.c.bf16 %v1212_v57, %v1211_v56 }
 0x201   : > { %11945 = vmatmul.mubr.bf16.gmra.mrb[32].mxu1 %v1226_v63  ;;  %v1216_v63 = vld [vmem:[%s15395_s18 + $0x1f8] sm:$0xff] }
 0x202   : > { %11948 = vmatprep.mubr.bf16.mxu1 %v1227_v0  ;;  %v1248_v0 = vpack.c.bf16 %v1216_v63, %v1215_v62 }
 0x209   : > { %11949 = vmatmul.mubr.bf16.gmra.mrb[36].mxu1 %v1228_v5 }
 0x20a   : > { %11952 = vmatprep.mubr.bf16.mxu1 %v1229_v6 }
 0x211   : > { %11953 = vmatmul.mubr.bf16.gmra.mrb[40].mxu1 %v1230_v9 }
 0x212   : > { %11956 = vmatprep.mubr.bf16.mxu1 %v1231_v12 }
 0x219   : > { %11957 = vmatmul.mubr.bf16.gmra.mrb[44].mxu1 %v1232_v15 }
 0x21a   : > { %11960 = vmatprep.mubr.bf16.mxu1 %v1233_v18 }
 0x221   : > { %11961 = vmatmul.mubr.bf16.gmra.mrb[48].mxu1 %v1234_v21 }
 0x222   : > { %11964 = vmatprep.mubr.bf16.mxu1 %v1235_v24 }
 0x229   : > { %11965 = vmatmul.mubr.bf16.gmra.mrb[52].mxu1 %v1236_v27 }
 0x22a   : > { %11968 = vmatprep.mubr.bf16.mxu1 %v1237_v30 }
 0x231   : > { %11969 = vmatmul.mubr.bf16.gmra.mrb[56].mxu1 %v1238_v33 }
 0x232   : > { %11972 = vmatprep.mubr.bf16.mxu1 %v1239_v36 }
 0x239   : > { %11973 = vmatmul.mubr.bf16.gmra.mrb[60].mxu1 %v1240_v39 }
 0x23a   : > { %11976 = vmatprep.mubr.bf16.mxu1 %v1241_v43 }
 0x241   : > { %11977 = vmatmul.mubr.bf16.gmra.mrb[64].mxu1 %v1242_v46 }
 0x242   : > { %11980 = vmatprep.mubr.bf16.mxu1 %v1243_v49 }
 0x249   : > { %11981 = vmatmul.mubr.bf16.gmra.mrb[68].mxu1 %v1244_v52  ;;  %v13716_v52 = vld [vmem:[#allocation7 + $0x10] sm:$0xff]  }
 0x24a   : > { %11984 = vmatprep.mubr.bf16.mxu1 %v1245_v55 }
 0x251   : > { %11985 = vmatmul.mubr.bf16.gmra.mrb[72].mxu1 %v1246_v58 }
 0x252   : > { %11988 = vmatprep.mubr.bf16.mxu1 %v1247_v61 }
 0x259   : > { %11989 = vmatmul.mubr.bf16.gmra.mrb[76].mxu1 %v1248_v0  ;;  %v13717_v0 = vld [vmem:[#allocation7 + $0x18] sm:$0xff]  }
 0x294   : > { %v11898_v1 = vpop.f32.mrb[0].mxu1 }
 0x295   : > { %v1090_v3 = vpop.f32.mrb[1].mxu1  ;;  %v15551_v9 = vadd.f32 %v11898_v1, %v15539_v2 }
 0x296   : > { %v11899_v4 = vpop.f32.mrb[2].mxu1  ;;  %v15542_v6 = vadd.f32 %v15539_v2, %v1090_v3  ;;  %v13718_v3 = vld [vmem:[#allocation7 + $0x20] sm:$0xff]  }
 0x297   : > { %v1093_v5 = vpop.f32.mrb[3].mxu1  ;;  %v15545_v7 = vadd.f32 %v11899_v4, %v15539_v2  ;;  %20048 = vst [vmem:[#allocation43_spill] sm:$0xff] %v15551_v9 }
 0x298   : > { %20045 = vst [vmem:[#allocation40_spill] sm:$0xff] %v15542_v6  ;;  %v15548_v8 = vadd.f32 %v15539_v2, %v1093_v5  ;;  %v13745_v5 = vld [vmem:[%s15418_s30 + $0x18] sm:$0xff]  }
 0x299   : > { %20046 = vst [vmem:[#allocation41_spill] sm:$0xff] %v15545_v7  ;;  %v1747_v11 = vpack.c.bf16 %v15545_v7, %v15551_v9 }
 0x29a   : > { %20047 = vst [vmem:[#allocation42_spill] sm:$0xff] %v15548_v8  ;;  %v1746_v10 = vpack.c.bf16 %v15548_v8, %v15542_v6 }
 0x29c   : > { %v11902_v12 = vpop.f32.mrb[4].mxu1  ;;  %11992 = vmatprep.subr.bf16.mxu0 %v1746_v10  ;;  %12072 = vmatprep.subr.bf16.mxu1 %v1746_v10 }
 0x29d   : > { %v1106_v13 = vpop.f32.mrb[5].mxu1  ;;  %11993 = vmatpush3.bf16.msra.mxu0 %v1746_v10  ;;  %12073 = vmatpush3.bf16.msra.mxu1 %v1746_v10  ;;  %v15567_v19 = vadd.f32 %v11902_v12, %v15539_v2 }
 0x29e   : > { %v11903_v14 = vpop.f32.mrb[6].mxu1  ;;  %11994 = vmatprep.subr.bf16.mxu0 %v1747_v11  ;;  %12074 = vmatprep.subr.bf16.mxu1 %v1747_v11  ;;  %v15558_v16 = vadd.f32 %v15539_v2, %v1106_v13 }
 0x29f   : > { %v1109_v15 = vpop.f32.mrb[7].mxu1  ;;  %v15561_v17 = vadd.f32 %v11903_v14, %v15539_v2  ;;  %20052 = vst [vmem:[#allocation47_spill] sm:$0xff] %v15567_v19  ;;  %v13748_v14 = vld [vmem:[%s15418_s30 + $0x20] sm:$0xff]  }
 0x2a0   : > { %20049 = vst [vmem:[#allocation44_spill] sm:$0xff] %v15558_v16  ;;  %v15564_v18 = vadd.f32 %v15539_v2, %v1109_v15 }
 0x2a1   : > { %20050 = vst [vmem:[#allocation45_spill] sm:$0xff] %v15561_v17  ;;  %11995 = vmatpush3.bf16.msra.mxu0 %v1747_v11  ;;  %12075 = vmatpush3.bf16.msra.mxu1 %v1747_v11  ;;  %v1749_v21 = vpack.c.bf16 %v15561_v17, %v15567_v19 }
 0x2a2   : > { %20051 = vst [vmem:[#allocation46_spill] sm:$0xff] %v15564_v18  ;;  %v1748_v20 = vpack.c.bf16 %v15564_v18, %v15558_v16 }
 0x2a4   : > { %v11906_v22 = vpop.f32.mrb[8].mxu1  ;;  %11996 = vmatprep.subr.bf16.mxu0 %v1748_v20  ;;  %12076 = vmatprep.subr.bf16.mxu1 %v1748_v20 }
 0x2a5   : > { %v1122_v23 = vpop.f32.mrb[9].mxu1  ;;  %11997 = vmatpush3.bf16.msra.mxu0 %v1748_v20  ;;  %12077 = vmatpush3.bf16.msra.mxu1 %v1748_v20  ;;  %v15583_v29 = vadd.f32 %v11906_v22, %v15539_v2 }
 0x2a6   : > { %v11907_v24 = vpop.f32.mrb[10].mxu1  ;;  %11998 = vmatprep.subr.bf16.mxu0 %v1749_v21  ;;  %12078 = vmatprep.subr.bf16.mxu1 %v1749_v21  ;;  %v15574_v26 = vadd.f32 %v15539_v2, %v1122_v23  ;;  %v13719_v23 = vld [vmem:[#allocation7 + $0x28] sm:$0xff]  }
 0x2a7   : > { %v1125_v25 = vpop.f32.mrb[11].mxu1  ;;  %v15577_v27 = vadd.f32 %v11907_v24, %v15539_v2  ;;  %20056 = vst [vmem:[#allocation51_spill] sm:$0xff] %v15583_v29 }
 0x2a8   : > { %20053 = vst [vmem:[#allocation48_spill] sm:$0xff] %v15574_v26  ;;  %v15580_v28 = vadd.f32 %v15539_v2, %v1125_v25  ;;  %v13720_v25 = vld [vmem:[#allocation7 + $0x30] sm:$0xff]  }
 0x2a9   : > { %20054 = vst [vmem:[#allocation49_spill] sm:$0xff] %v15577_v27  ;;  %11999 = vmatpush3.bf16.msra.mxu0 %v1749_v21  ;;  %12079 = vmatpush3.bf16.msra.mxu1 %v1749_v21  ;;  %v1751_v31 = vpack.c.bf16 %v15577_v27, %v15583_v29 }
 0x2aa   : > { %20055 = vst [vmem:[#allocation50_spill] sm:$0xff] %v15580_v28  ;;  %v1750_v30 = vpack.c.bf16 %v15580_v28, %v15574_v26 }
 0x2ac   : > { %v11910_v32 = vpop.f32.mrb[12].mxu1  ;;  %12000 = vmatprep.subr.bf16.mxu0 %v1750_v30  ;;  %12080 = vmatprep.subr.bf16.mxu1 %v1750_v30 }
 0x2ad   : > { %v1138_v33 = vpop.f32.mrb[13].mxu1  ;;  %12001 = vmatpush3.bf16.msra.mxu0 %v1750_v30  ;;  %12081 = vmatpush3.bf16.msra.mxu1 %v1750_v30  ;;  %v15599_v39 = vadd.f32 %v11910_v32, %v15539_v2 }
 0x2ae   : > { %v11911_v34 = vpop.f32.mrb[14].mxu1  ;;  %12002 = vmatprep.subr.bf16.mxu0 %v1751_v31  ;;  %12082 = vmatprep.subr.bf16.mxu1 %v1751_v31  ;;  %v15590_v36 = vadd.f32 %v15539_v2, %v1138_v33 }
 0x2af   : > { %v1141_v35 = vpop.f32.mrb[15].mxu1  ;;  %v15593_v37 = vadd.f32 %v11911_v34, %v15539_v2  ;;  %20060 = vst [vmem:[#allocation55_spill] sm:$0xff] %v15599_v39 }
 0x2b0   : > { %20057 = vst [vmem:[#allocation52_spill] sm:$0xff] %v15590_v36  ;;  %v15596_v38 = vadd.f32 %v15539_v2, %v1141_v35 }
 0x2b1   : > { %20058 = vst [vmem:[#allocation53_spill] sm:$0xff] %v15593_v37  ;;  %12003 = vmatpush3.bf16.msra.mxu0 %v1751_v31  ;;  %12083 = vmatpush3.bf16.msra.mxu1 %v1751_v31  ;;  %v1753_v41 = vpack.c.bf16 %v15593_v37, %v15599_v39  ;;  %v13749_v31 = vld [vmem:[%s15418_s30 + $0x28] sm:$0xff]  }
 0x2b2   : > { %20059 = vst [vmem:[#allocation54_spill] sm:$0xff] %v15596_v38  ;;  %v1752_v40 = vpack.c.bf16 %v15596_v38, %v15590_v36 }
 0x2b4   : > { %12004 = vmatprep.subr.bf16.mxu0 %v1752_v40  ;;  %12084 = vmatprep.subr.bf16.mxu1 %v1752_v40  ;;  %v11930_v42 = vpop.f32.mrb[16].mxu1 }
 0x2b5   : > { %12005 = vmatpush3.bf16.msra.mxu0 %v1752_v40  ;;  %12085 = vmatpush3.bf16.msra.mxu1 %v1752_v40  ;;  %v1292_v43 = vadd.f32 %v11930_v42, %v15539_v2  ;;  %v1283_v44 = vpop.f32.mrb[17].mxu1  ;;  %v13752_v40 = vld [vmem:[%s15418_s30 + $0x30] sm:$0xff]  }
 0x2b6   : > { %12006 = vmatprep.subr.bf16.mxu0 %v1753_v41  ;;  %12086 = vmatprep.subr.bf16.mxu1 %v1753_v41  ;;  %v1284_v46 = vadd.f32 %v15539_v2, %v1283_v44  ;;  %v11931_v47 = vpop.f32.mrb[18].mxu1 }
 0x2b7   : > { %v1295_v48 = vadd.f32 %v11931_v47, %v15539_v2  ;;  %v1286_v49 = vpop.f32.mrb[19].mxu1  ;;  %v13722_v47 = vld [vmem:[#allocation7 + $0x40] sm:$0xff]  }
 0x2b8   : > { %v1287_v51 = vadd.f32 %v15539_v2, %v1286_v49  ;;  %v13753_v49 = vld [vmem:[%s15418_s30 + $0x38] sm:$0xff]  }
 0x2b9   : > { %12007 = vmatpush3.bf16.msra.mxu0 %v1753_v41  ;;  %12087 = vmatpush3.bf16.msra.mxu1 %v1753_v41  ;;  %v15610_v53 = vpack.c.bf16 %v1295_v48, %v1292_v43 }
 0x2ba   : > { %12152 = vmatprep.subr.bf16.mxu0 %v13740_v45  ;;  %v15613_v55 = vpack.c.bf16 %v1287_v51, %v1284_v46 }
 0x2bb   : > { %20061 = vst [vmem:[#allocation56_spill] sm:$0xff] %v15610_v53 }
 0x2bc   : > { %20062 = vst [vmem:[#allocation57_spill] sm:$0xff] %v15613_v55  ;;  %12009 = vmatmul.mubr.bf16.vlgmr.msra.gmra.mrb[0].mxu0 %v13715_v50  ;;  %v11934_v56 = vpop.f32.mrb[20].mxu1 }
 0x2bd   : > { %12012 = vmatprep.mubr.bf16.mxu0 %v13716_v52  ;;  %12153 = vmatpush3.bf16.msra.mxu0 %v13740_v45  ;;  %v1308_v57 = vadd.f32 %v11934_v56, %v15539_v2  ;;  %v1299_v58 = vpop.f32.mrb[21].mxu1  ;;  %v13721_v45 = vld [vmem:[#allocation7 + $0x38] sm:$0xff]  }
 0x2be   : > { %12154 = vmatprep.subr.bf16.mxu0 %v13741_v54  ;;  %v1300_v60 = vadd.f32 %v15539_v2, %v1299_v58  ;;  %v11935_v61 = vpop.f32.mrb[22].mxu1 }
 0x2bf   : > { %v1311_v62 = vadd.f32 %v11935_v61, %v15539_v2  ;;  %v1302_v63 = vpop.f32.mrb[23].mxu1 }
 0x2c0   : > { %v1303_v1 = vadd.f32 %v15539_v2, %v1302_v63 }
 0x2c1   : > { %12155 = vmatpush3.bf16.msra.mxu0 %v13741_v54  ;;  %v15620_v4 = vpack.c.bf16 %v1311_v62, %v1308_v57  ;;  %v13724_v62 = vld [vmem:[#allocation7 + $0x50] sm:$0xff]  }
 0x2c2   : > { %12156 = vmatprep.subr.bf16.mxu0 %v13744_v59  ;;  %v15623_v10 = vpack.c.bf16 %v1303_v1, %v1300_v60  ;;  %v13723_v60 = vld [vmem:[#allocation7 + $0x48] sm:$0xff]  }
 0x2c3   : > { %20063 = vst [vmem:[#allocation58_spill] sm:$0xff] %v15620_v4 }
 0x2c4   : > { %20064 = vst [vmem:[#allocation59_spill] sm:$0xff] %v15623_v10  ;;  %12013 = vmatmul.mubr.bf16.gmra.mrb[4].mxu0 %v13717_v0  ;;  %v11938_v11 = vpop.f32.mrb[24].mxu1 }
 0x2c5   : > { %12016 = vmatprep.mubr.bf16.mxu0 %v13718_v3  ;;  %12157 = vmatpush3.bf16.msra.mxu0 %v13744_v59  ;;  %v1324_v12 = vadd.f32 %v11938_v11, %v15539_v2  ;;  %v1315_v13 = vpop.f32.mrb[25].mxu1  ;;  %v13754_v3 = vld [vmem:[#allocation8] sm:$0xff]  }
 0x2c6   : > { %12158 = vmatprep.subr.bf16.mxu0 %v13745_v5  ;;  %v1316_v15 = vadd.f32 %v15539_v2, %v1315_v13  ;;  %v11939_v20 = vpop.f32.mrb[26].mxu1  ;;  %12088 = vmatprep.mubr.bf16.mxu1 %v13754_v3 }
 0x2c7   : > { %v1327_v21 = vadd.f32 %v11939_v20, %v15539_v2  ;;  %v1318_v22 = vpop.f32.mrb[27].mxu1 }
 0x2c8   : > { %v1319_v24 = vadd.f32 %v15539_v2, %v1318_v22 }
 0x2c9   : > { %12159 = vmatpush3.bf16.msra.mxu0 %v13745_v5  ;;  %v15630_v30 = vpack.c.bf16 %v1327_v21, %v1324_v12  ;;  %v13755_v5 = vld [vmem:[#allocation8 + $0x8] sm:$0xff]   ;;  %v13725_v21 = vld [vmem:[#allocation7 + $0x58] sm:$0xff]  }
 0x2ca   : > { %12160 = vmatprep.subr.bf16.mxu0 %v13748_v14  ;;  %v15633_v32 = vpack.c.bf16 %v1319_v24, %v1316_v15  ;;  %12089 = vmatmul.mubr.bf16.vlgmr.msra.gmra.mrb[80].mxu1 %v13755_v5  ;;  %v13730_v5 = vld [vmem:[#allocation7 + $0x80] sm:$0xff]  }
 0x2cb   : > { %20065 = vst [vmem:[#allocation60_spill] sm:$0xff] %v15630_v30 }
 0x2cc   : > { %20066 = vst [vmem:[#allocation61_spill] sm:$0xff] %v15633_v32  ;;  %12017 = vmatmul.mubr.bf16.gmra.mrb[8].mxu0 %v13719_v23  ;;  %v11942_v33 = vpop.f32.mrb[28].mxu1  ;;  %v13726_v23 = vld [vmem:[#allocation7 + $0x60] sm:$0xff]  }
 0x2cd   : > { %12020 = vmatprep.mubr.bf16.mxu0 %v13720_v25  ;;  %12161 = vmatpush3.bf16.msra.mxu0 %v13748_v14  ;;  %v1340_v34 = vadd.f32 %v11942_v33, %v15539_v2  ;;  %v1331_v35 = vpop.f32.mrb[29].mxu1  ;;  %v13756_v33 = vld [vmem:[#allocation8 + $0x10] sm:$0xff]  }
 0x2ce   : > { %12162 = vmatprep.subr.bf16.mxu0 %v13749_v31  ;;  %v1332_v41 = vadd.f32 %v15539_v2, %v1331_v35  ;;  %v11943_v42 = vpop.f32.mrb[30].mxu1  ;;  %12092 = vmatprep.mubr.bf16.mxu1 %v13756_v33 }
 0x2cf   : > { %v1343_v43 = vadd.f32 %v11943_v42, %v15539_v2  ;;  %v1334_v44 = vpop.f32.mrb[31].mxu1 }
 0x2d0   : > { %v1335_v46 = vadd.f32 %v15539_v2, %v1334_v44 }
 0x2d1   : > { %12163 = vmatpush3.bf16.msra.mxu0 %v13749_v31  ;;  %v15640_v48 = vpack.c.bf16 %v1343_v43, %v1340_v34  ;;  %v13757_v34 = vld [vmem:[#allocation8 + $0x18] sm:$0xff]  }
 0x2d2   : > { %12164 = vmatprep.subr.bf16.mxu0 %v13752_v40  ;;  %v15643_v50 = vpack.c.bf16 %v1335_v46, %v1332_v41  ;;  %12093 = vmatmul.mubr.bf16.gmra.mrb[84].mxu1 %v13757_v34  ;;  %v13731_v34 = vld [vmem:[#allocation7 + $0x88] sm:$0xff]  }
 0x2d3   : > { %20067 = vst [vmem:[#allocation62_spill] sm:$0xff] %v15640_v48 }
 0x2d4   : > { %20068 = vst [vmem:[#allocation63_spill] sm:$0xff] %v15643_v50  ;;  %12021 = vmatmul.mubr.bf16.gmra.mrb[12].mxu0 %v13721_v45  ;;  %v11946_v51 = vpop.f32.mrb[32].mxu1  ;;  %v13727_v45 = vld [vmem:[#allocation7 + $0x68] sm:$0xff]  }
 0x2d5   : > { %12024 = vmatprep.mubr.bf16.mxu0 %v13722_v47  ;;  %12165 = vmatpush3.bf16.msra.mxu0 %v13752_v40  ;;  %v1356_v52 = vadd.f32 %v11946_v51, %v15539_v2  ;;  %v1347_v54 = vpop.f32.mrb[33].mxu1  ;;  %v13728_v47 = vld [vmem:[#allocation7 + $0x70] sm:$0xff]  }
 0x2d6   : > { %12166 = vmatprep.subr.bf16.mxu0 %v13753_v49  ;;  %v1348_v56 = vadd.f32 %v15539_v2, %v1347_v54  ;;  %v11947_v57 = vpop.f32.mrb[34].mxu1  ;;  %v13758_v54 = vld [vmem:[#allocation8 + $0x20] sm:$0xff]  }
 0x2d7   : > { %v1359_v58 = vadd.f32 %v11947_v57, %v15539_v2  ;;  %v1350_v59 = vpop.f32.mrb[35].mxu1  ;;  %12096 = vmatprep.mubr.bf16.mxu1 %v13758_v54 }
 0x2d8   : > { %v1351_v61 = vadd.f32 %v15539_v2, %v1350_v59 }
 0x2d9   : > { %12167 = vmatpush3.bf16.msra.mxu0 %v13753_v49  ;;  %v15649_v63 = vpack.c.bf16 %v1359_v58, %v1356_v52 }
 0x2da   : > { %v15651_v0 = vpack.c.bf16 %v1351_v61, %v1348_v56  ;;  %v13759_v56 = vld [vmem:[#allocation8 + $0x28] sm:$0xff]  }
 0x2db   : > { %20069 = vst [vmem:[#allocation64_spill] sm:$0xff] %v15649_v63  ;;  %12097 = vmatmul.mubr.bf16.gmra.mrb[88].mxu1 %v13759_v56 }
 0x2dc   : > { %20070 = vst [vmem:[#allocation65_spill] sm:$0xff] %v15651_v0  ;;  %12025 = vmatmul.mubr.bf16.gmra.mrb[16].mxu0 %v13723_v60  ;;  %v11950_v1 = vpop.f32.mrb[36].mxu1 }
 0x2dd   : > { %12028 = vmatprep.mubr.bf16.mxu0 %v13724_v62  ;;  %v1372_v11 = vadd.f32 %v11950_v1, %v15539_v2  ;;  %v1363_v12 = vpop.f32.mrb[37].mxu1  ;;  %v13729_v1 = vld [vmem:[#allocation7 + $0x78] sm:$0xff]  }
 0x2de   : > { %v1364_v13 = vadd.f32 %v15539_v2, %v1363_v12  ;;  %v11951_v14 = vpop.f32.mrb[38].mxu1 }
 0x2df   : > { %v1375_v15 = vadd.f32 %v11951_v14, %v15539_v2  ;;  %v1366_v20 = vpop.f32.mrb[39].mxu1  ;;  %v13760_v14 = vld [vmem:[#allocation8 + $0x30] sm:$0xff]  }
 0x2e0   : > { %v1367_v22 = vadd.f32 %v15539_v2, %v1366_v20  ;;  %12100 = vmatprep.mubr.bf16.mxu1 %v13760_v14 }
 0x2e1   : > { %v15657_v24 = vpack.c.bf16 %v1375_v15, %v1372_v11  ;;  %v13761_v15 = vld [vmem:[#allocation8 + $0x38] sm:$0xff]  }
 0x2e2   : > { %v15659_v25 = vpack.c.bf16 %v1367_v22, %v1364_v13 }
 0x2e3   : > { %20071 = vst [vmem:[#allocation66_spill] sm:$0xff] %v15657_v24  ;;  %12101 = vmatmul.mubr.bf16.gmra.mrb[92].mxu1 %v13761_v15 }
 0x2e4   : > { %20072 = vst [vmem:[#allocation67_spill] sm:$0xff] %v15659_v25  ;;  %12029 = vmatmul.mubr.bf16.gmra.mrb[20].mxu0 %v13725_v21  ;;  %v11954_v31 = vpop.f32.mrb[40].mxu1 }
 0x2e5   : > { %12032 = vmatprep.mubr.bf16.mxu0 %v13726_v23  ;;  %v1388_v35 = vadd.f32 %v11954_v31, %v15539_v2  ;;  %v1379_v40 = vpop.f32.mrb[41].mxu1 }
 0x2e6   : > { %v1380_v41 = vadd.f32 %v15539_v2, %v1379_v40  ;;  %v11955_v42 = vpop.f32.mrb[42].mxu1  ;;  %v13732_v40 = vld [vmem:[#allocation7 + $0x90] sm:$0xff]  }
 0x2e7   : > { %v1391_v43 = vadd.f32 %v11955_v42, %v15539_v2  ;;  %v1382_v44 = vpop.f32.mrb[43].mxu1 }
 0x2e8   : > { %v1383_v46 = vadd.f32 %v15539_v2, %v1382_v44  ;;  %v13762_v44 = vld [vmem:[#allocation8 + $0x40] sm:$0xff]  }
 0x2e9   : > { %v15665_v49 = vpack.c.bf16 %v1391_v43, %v1388_v35  ;;  %12104 = vmatprep.mubr.bf16.mxu1 %v13762_v44 }
 0x2ea   : > { %v15667_v51 = vpack.c.bf16 %v1383_v46, %v1380_v41 }
 0x2eb   : > { %20073 = vst [vmem:[#allocation68_spill] sm:$0xff] %v15665_v49 }
 0x2ec   : > { %20074 = vst [vmem:[#allocation69_spill] sm:$0xff] %v15667_v51  ;;  %12033 = vmatmul.mubr.bf16.gmra.mrb[24].mxu0 %v13727_v45  ;;  %v11958_v52 = vpop.f32.mrb[44].mxu1  ;;  %v13763_v45 = vld [vmem:[#allocation8 + $0x48] sm:$0xff]  }
 0x2ed   : > { %12036 = vmatprep.mubr.bf16.mxu0 %v13728_v47  ;;  %v1404_v57 = vadd.f32 %v11958_v52, %v15539_v2  ;;  %v1395_v58 = vpop.f32.mrb[45].mxu1  ;;  %12105 = vmatmul.mubr.bf16.gmra.mrb[96].mxu1 %v13763_v45 }
 0x2ee   : > { %v1396_v59 = vadd.f32 %v15539_v2, %v1395_v58  ;;  %v11959_v60 = vpop.f32.mrb[46].mxu1  ;;  %v13733_v58 = vld [vmem:[#allocation7 + $0x98] sm:$0xff]  }
 0x2ef   : > { %v1407_v61 = vadd.f32 %v11959_v60, %v15539_v2  ;;  %v1398_v62 = vpop.f32.mrb[47].mxu1  ;;  %v13734_v60 = vld [vmem:[#allocation7 + $0xa0] sm:$0xff]  }
 0x2f0   : > { %v1399_v3 = vadd.f32 %v15539_v2, %v1398_v62 }
 0x2f1   : > { %v15673_v11 = vpack.c.bf16 %v1407_v61, %v1404_v57 }
 0x2f2   : > { %v15675_v12 = vpack.c.bf16 %v1399_v3, %v1396_v59  ;;  %v13764_v3 = vld [vmem:[#allocation8 + $0x50] sm:$0xff]  }
 0x2f3   : > { %20075 = vst [vmem:[#allocation70_spill] sm:$0xff] %v15673_v11  ;;  %12108 = vmatprep.mubr.bf16.mxu1 %v13764_v3 }
 0x2f4   : > { %20076 = vst [vmem:[#allocation71_spill] sm:$0xff] %v15675_v12  ;;  %12037 = vmatmul.mubr.bf16.gmra.mrb[28].mxu0 %v13729_v1  ;;  %v11962_v13 = vpop.f32.mrb[48].mxu1 }
 0x2f5   : > { %12040 = vmatprep.mubr.bf16.mxu0 %v13730_v5  ;;  %v1420_v20 = vadd.f32 %v11962_v13, %v15539_v2  ;;  %v1411_v21 = vpop.f32.mrb[49].mxu1  ;;  %v13765_v5 = vld [vmem:[#allocation8 + $0x58] sm:$0xff]  }
 0x2f6   : > { %v1412_v22 = vadd.f32 %v15539_v2, %v1411_v21  ;;  %v11963_v23 = vpop.f32.mrb[50].mxu1  ;;  %12109 = vmatmul.mubr.bf16.gmra.mrb[100].mxu1 %v13765_v5  ;;  %v13768_v5 = vld [vmem:[#allocation8 + $0x70] sm:$0xff]  }
 0x2f7   : > { %v1423_v31 = vadd.f32 %v11963_v23, %v15539_v2  ;;  %v1414_v33 = vpop.f32.mrb[51].mxu1  ;;  %v13735_v23 = vld [vmem:[#allocation7 + $0xa8] sm:$0xff]  }
 0x2f8   : > { %v1415_v35 = vadd.f32 %v15539_v2, %v1414_v33  ;;  %v13736_v33 = vld [vmem:[#allocation7 + $0xb0] sm:$0xff]  }
 0x2f9   : > { %v15681_v41 = vpack.c.bf16 %v1423_v31, %v1420_v20 }
 0x2fa   : > { %v15683_v42 = vpack.c.bf16 %v1415_v35, %v1412_v22 }
 0x2fb   : > { %20077 = vst [vmem:[#allocation72_spill] sm:$0xff] %v15681_v41 }
 0x2fc   : > { %20078 = vst [vmem:[#allocation73_spill] sm:$0xff] %v15683_v42  ;;  %12041 = vmatmul.mubr.bf16.gmra.mrb[32].mxu0 %v13731_v34  ;;  %v11966_v43 = vpop.f32.mrb[52].mxu1 }
 0x2fd   : > { %12044 = vmatprep.mubr.bf16.mxu0 %v13732_v40  ;;  %v1436_v46 = vadd.f32 %v11966_v43, %v15539_v2  ;;  %v1427_v47 = vpop.f32.mrb[53].mxu1  ;;  %v13766_v43 = vld [vmem:[#allocation8 + $0x60] sm:$0xff]  }
 0x2fe   : > { %v1428_v52 = vadd.f32 %v15539_v2, %v1427_v47  ;;  %v11967_v54 = vpop.f32.mrb[54].mxu1  ;;  %12112 = vmatprep.mubr.bf16.mxu1 %v13766_v43 }
 0x2ff   : > { %v1439_v56 = vadd.f32 %v11967_v54, %v15539_v2  ;;  %v1430_v57 = vpop.f32.mrb[55].mxu1 }
 0x300   : > { %v1431_v59 = vadd.f32 %v15539_v2, %v1430_v57  ;;  %v13737_v57 = vld [vmem:[#allocation7 + $0xb8] sm:$0xff]  }
 0x301   : > { %v15689_v61 = vpack.c.bf16 %v1439_v56, %v1436_v46  ;;  %v13767_v46 = vld [vmem:[#allocation8 + $0x68] sm:$0xff]  }
 0x302   : > { %v15691_v62 = vpack.c.bf16 %v1431_v59, %v1428_v52  ;;  %12113 = vmatmul.mubr.bf16.gmra.mrb[104].mxu1 %v13767_v46  ;;  %v13738_v59 = vld [vmem:[#allocation7 + $0xc0] sm:$0xff]  }
 0x303   : > { %20079 = vst [vmem:[#allocation74_spill] sm:$0xff] %v15689_v61  ;;  %12116 = vmatprep.mubr.bf16.mxu1 %v13768_v5  ;;  %v13743_v5 = vld [vmem:[#allocation7 + $0xd8] sm:$0xff]  }
 0x304   : > { %20080 = vst [vmem:[#allocation75_spill] sm:$0xff] %v15691_v62  ;;  %12045 = vmatmul.mubr.bf16.gmra.mrb[36].mxu0 %v13733_v58  ;;  %v11970_v1 = vpop.f32.mrb[56].mxu1 }
 0x305   : > { %12048 = vmatprep.mubr.bf16.mxu0 %v13734_v60  ;;  %v1452_v13 = vadd.f32 %v11970_v1, %v15539_v2  ;;  %v1443_v14 = vpop.f32.mrb[57].mxu1 }
 0x306   : > { %v1444_v15 = vadd.f32 %v15539_v2, %v1443_v14  ;;  %v11971_v20 = vpop.f32.mrb[58].mxu1 }
 0x307   : > { %v1455_v21 = vadd.f32 %v11971_v20, %v15539_v2  ;;  %v1446_v22 = vpop.f32.mrb[59].mxu1 }
 0x308   : > { %v1447_v31 = vadd.f32 %v15539_v2, %v1446_v22 }
 0x309   : > { %v15697_v34 = vpack.c.bf16 %v1455_v21, %v1452_v13 }
 0x30a   : > { %v15699_v35 = vpack.c.bf16 %v1447_v31, %v1444_v15  ;;  %v13769_v15 = vld [vmem:[#allocation8 + $0x78] sm:$0xff]   ;;  %v13739_v31 = vld [vmem:[#allocation7 + $0xc8] sm:$0xff]  }
 0x30b   : > { %20081 = vst [vmem:[#allocation76_spill] sm:$0xff] %v15697_v34  ;;  %12117 = vmatmul.mubr.bf16.gmra.mrb[108].mxu1 %v13769_v15 }
 0x30c   : > { %20082 = vst [vmem:[#allocation77_spill] sm:$0xff] %v15699_v35  ;;  %12049 = vmatmul.mubr.bf16.gmra.mrb[40].mxu0 %v13735_v23  ;;  %v11974_v40 = vpop.f32.mrb[60].mxu1 }
 0x30d   : > { %12052 = vmatprep.mubr.bf16.mxu0 %v13736_v33  ;;  %v1468_v44 = vadd.f32 %v11974_v40, %v15539_v2  ;;  %v1459_v45 = vpop.f32.mrb[61].mxu1  ;;  %v13742_v40 = vld [vmem:[#allocation7 + $0xd0] sm:$0xff]  }
 0x30e   : > { %v1460_v47 = vadd.f32 %v15539_v2, %v1459_v45  ;;  %v11975_v52 = vpop.f32.mrb[62].mxu1  ;;  %v15718_v45 = vld [vmem:[%s15416_s17] sm:$0xff]  }
 0x30f   : > { %v1471_v54 = vadd.f32 %v11975_v52, %v15539_v2  ;;  %v1462_v56 = vpop.f32.mrb[63].mxu1  ;;  %12232 = vmatprep.subr.bf16.mxu0 %v15718_v45 }
 0x310   : > { %v1463_v58 = vadd.f32 %v15539_v2, %v1462_v56  ;;  %v13772_v56 = vld [vmem:[#allocation8 + $0x88] sm:$0xff]  }
 0x311   : > { %v15705_v60 = vpack.c.bf16 %v1471_v54, %v1468_v44 }
 0x312   : > { %v15707_v1 = vpack.c.bf16 %v1463_v58, %v1460_v47  ;;  %v13771_v47 = vld [vmem:[#allocation8 + $0x80] sm:$0xff]  }
 0x313   : > { %20083 = vst [vmem:[#allocation78_spill] sm:$0xff] %v15705_v60  ;;  %12120 = vmatprep.mubr.bf16.mxu1 %v13771_v47 }
 0x314   : > { %20084 = vst [vmem:[#allocation79_spill] sm:$0xff] %v15707_v1  ;;  %12053 = vmatmul.mubr.bf16.gmra.mrb[44].mxu0 %v13737_v57  ;;  %v11978_v3 = vpop.f32.mrb[64].mxu1  ;;  %12121 = vmatmul.mubr.bf16.gmra.mrb[112].mxu1 %v13772_v56 }
 0x315   : > { %12056 = vmatprep.mubr.bf16.mxu0 %v13738_v59  ;;  %v1484_v13 = vadd.f32 %v11978_v3, %v15539_v2  ;;  %v1475_v14 = vpop.f32.mrb[65].mxu1 }
 0x316   : > { %v1476_v20 = vadd.f32 %v15539_v2, %v1475_v14  ;;  %v11979_v21 = vpop.f32.mrb[66].mxu1  ;;  %v13746_v14 = vld [vmem:[#allocation7 + $0xe0] sm:$0xff]  }
 0x317   : > { %v1487_v22 = vadd.f32 %v11979_v21, %v15539_v2  ;;  %v1478_v23 = vpop.f32.mrb[67].mxu1 }
 0x318   : > { %v1479_v33 = vadd.f32 %v15539_v2, %v1478_v23 }
 0x319   : > { %v15713_v43 = vpack.c.bf16 %v1487_v22, %v1484_v13  ;;  %v13775_v22 = vld [vmem:[#allocation8 + $0x90] sm:$0xff]  }
 0x31a   : > { %v15715_v44 = vpack.c.bf16 %v1479_v33, %v1476_v20  ;;  %v13776_v33 = vld [vmem:[#allocation8 + $0x98] sm:$0xff]   ;;  %12124 = vmatprep.mubr.bf16.mxu1 %v13775_v22 }
 0x31b   : > { %20085 = vst [vmem:[#allocation80_spill] sm:$0xff] %v15713_v43 }
 0x31c   : > { %20086 = vst [vmem:[#allocation81_spill] sm:$0xff] %v15715_v44  ;;  %12057 = vmatmul.mubr.bf16.gmra.mrb[48].mxu0 %v13739_v31  ;;  %v11982_v46 = vpop.f32.mrb[68].mxu1  ;;  %12125 = vmatmul.mubr.bf16.gmra.mrb[116].mxu1 %v13776_v33 }
 0x31d   : > { %12060 = vmatprep.mubr.bf16.mxu0 %v13742_v40  ;;  %v1500_v52 = vadd.f32 %v11982_v46, %v15539_v2  ;;  %v1491_v54 = vpop.f32.mrb[69].mxu1 }
 0x31e   : > { %v1492_v57 = vadd.f32 %v15539_v2, %v1491_v54  ;;  %v11983_v58 = vpop.f32.mrb[70].mxu1 }
 0x31f   : > { %v1503_v59 = vadd.f32 %v11983_v58, %v15539_v2  ;;  %v1494_v3 = vpop.f32.mrb[71].mxu1 }
 0x320   : > { %v1495_v13 = vadd.f32 %v15539_v2, %v1494_v3 }
 0x321   : > { %v15725_v15 = vpack.c.bf16 %v1503_v59, %v1500_v52  ;;  %v13747_v52 = vld [vmem:[#allocation7 + $0xe8] sm:$0xff]  }
 0x322   : > { %v15727_v20 = vpack.c.bf16 %v1495_v13, %v1492_v57  ;;  %v13750_v57 = vld [vmem:[#allocation7 + $0xf0] sm:$0xff]  }
 0x323   : > { %20087 = vst [vmem:[#allocation82_spill] sm:$0xff] %v15725_v15 }
 0x324   : > { %20088 = vst [vmem:[#allocation83_spill] sm:$0xff] %v15727_v20  ;;  %12061 = vmatmul.mubr.bf16.gmra.mrb[52].mxu0 %v13743_v5  ;;  %v11986_v21 = vpop.f32.mrb[72].mxu1  ;;  %v13779_v5 = vld [vmem:[#allocation8 + $0xa0] sm:$0xff]  }
 0x325   : > { %12064 = vmatprep.mubr.bf16.mxu0 %v13746_v14  ;;  %v1516_v23 = vadd.f32 %v11986_v21, %v15539_v2  ;;  %v1507_v31 = vpop.f32.mrb[73].mxu1  ;;  %v13780_v21 = vld [vmem:[#allocation8 + $0xa8] sm:$0xff]   ;;  %12128 = vmatprep.mubr.bf16.mxu1 %v13779_v5  ;;  %v13774_v5 = vld [vmem:[%s15416_s17 + $0x10] sm:$0xff]  }
 0x326   : > { %v1508_v40 = vadd.f32 %v15539_v2, %v1507_v31  ;;  %v11987_v46 = vpop.f32.mrb[74].mxu1  ;;  %12129 = vmatmul.mubr.bf16.gmra.mrb[120].mxu1 %v13780_v21  ;;  %v13789_v21 = vld [vmem:[#allocation8 + $0xd8] sm:$0xff]  }
 0x327   : > { %v1519_v47 = vadd.f32 %v11987_v46, %v15539_v2  ;;  %v1510_v54 = vpop.f32.mrb[75].mxu1 }
 0x328   : > { %v1511_v56 = vadd.f32 %v15539_v2, %v1510_v54 }
 0x329   : > { %v15733_v58 = vpack.c.bf16 %v1519_v47, %v1516_v23  ;;  %v13751_v23 = vld [vmem:[#allocation7 + $0xf8] sm:$0xff]  }
 0x32a   : > { %v15735_v59 = vpack.c.bf16 %v1511_v56, %v1508_v40  ;;  %v13784_v56 = vld [vmem:[#allocation8 + $0xb8] sm:$0xff]  }
 0x32b   : > { %20089 = vst [vmem:[#allocation84_spill] sm:$0xff] %v15733_v58 }
 0x32c   : > { %20090 = vst [vmem:[#allocation85_spill] sm:$0xff] %v15735_v59  ;;  %12065 = vmatmul.mubr.bf16.gmra.mrb[56].mxu0 %v13747_v52  ;;  %v11990_v3 = vpop.f32.mrb[76].mxu1  ;;  %v13783_v52 = vld [vmem:[#allocation8 + $0xb0] sm:$0xff]  }
 0x32d   : > { %12068 = vmatprep.mubr.bf16.mxu0 %v13750_v57  ;;  %v1532_v13 = vadd.f32 %v11990_v3, %v15539_v2  ;;  %v1523_v14 = vpop.f32.mrb[77].mxu1  ;;  %12132 = vmatprep.mubr.bf16.mxu1 %v13783_v52  ;;  %v13773_v57 = vld [vmem:[%s15416_s17 + $0x8] sm:$0xff]   ;;  %v13786_v3 = vld [vmem:[#allocation8 + $0xc0] sm:$0xff]   ;;  %v13793_v52 = vld [vmem:[#allocation8 + $0xf8] sm:$0xff]  }
 0x32e   : > { %v1524_v22 = vadd.f32 %v15539_v2, %v1523_v14  ;;  %v11991_v31 = vpop.f32.mrb[78].mxu1  ;;  %12133 = vmatmul.mubr.bf16.gmra.mrb[124].mxu1 %v13784_v56  ;;  %v13788_v14 = vld [vmem:[#allocation8 + $0xd0] sm:$0xff]  }
 0x32f   : > { %v1535_v33 = vadd.f32 %v11991_v31, %v15539_v2  ;;  %v1526_v46 = vpop.f32.mrb[79].mxu1  ;;  %12136 = vmatprep.mubr.bf16.mxu1 %v13786_v3  ;;  %v13790_v31 = vld [vmem:[#allocation8 + $0xe0] sm:$0xff]  }
 0x330   : > { %v1527_v40 = vadd.f32 %v15539_v2, %v1526_v46  ;;  %v13787_v2 = vld [vmem:[#allocation8 + $0xc8] sm:$0xff]   ;;  %v13782_v46 = vld [vmem:[%s15416_s17 + $0x30] sm:$0xff]  }
 0x331   : > { %v15741_v47 = vpack.c.bf16 %v1535_v33, %v1532_v13  ;;  %v13777_v13 = vld [vmem:[%s15416_s17 + $0x18] sm:$0xff]   ;;  %v13791_v33 = vld [vmem:[#allocation8 + $0xe8] sm:$0xff]  }
 0x332   : > { %v15743_v54 = vpack.c.bf16 %v1527_v40, %v1524_v22  ;;  %v13778_v22 = vld [vmem:[%s15416_s17 + $0x20] sm:$0xff]   ;;  %v13792_v40 = vld [vmem:[#allocation8 + $0xf0] sm:$0xff]  }
 0x333   : > { %20091 = vst [vmem:[#allocation86_spill] sm:$0xff] %v15741_v47 }
 0x334   : > { %20092 = vst [vmem:[#allocation87_spill] sm:$0xff] %v15743_v54  ;;  %12069 = vmatmul.mubr.bf16.gmra.mrb[60].mxu0 %v13751_v23  ;;  %v13785_v23 = vld [vmem:[%s15416_s17 + $0x38] sm:$0xff]  }
 0x335   : > { %12168 = vmatprep.mubr.bf16.mxu0 %v15613_v55 }
 0x336   : > { %12137 = vmatmul.mubr.bf16.gmra.mrb[128].mxu1 %v13787_v2 }
 0x337   : > { %12140 = vmatprep.mubr.bf16.mxu1 %v13788_v14 }
 0x33c   : > { %12169 = vmatmul.mubr.bf16.vlgmr.msra.gmra.mrb[64].mxu0 %v15610_v53 }
 0x33d   : > { %12172 = vmatprep.mubr.bf16.mxu0 %v15623_v10  ;;  %12233 = vmatpush3.bf16.msra.mxu0 %v15718_v45  ;;  %v13781_v45 = vld [vmem:[%s15416_s17 + $0x28] sm:$0xff]  }
 0x33e   : > { %12234 = vmatprep.subr.bf16.mxu0 %v13773_v57  ;;  %12141 = vmatmul.mubr.bf16.gmra.mrb[132].mxu1 %v13789_v21 }
 0x33f   : > { %12144 = vmatprep.mubr.bf16.mxu1 %v13790_v31 }
 0x341   : > { %12235 = vmatpush3.bf16.msra.mxu0 %v13773_v57 }
 0x342   : > { %12236 = vmatprep.subr.bf16.mxu0 %v13774_v5 }
 0x344   : > { %12173 = vmatmul.mubr.bf16.gmra.mrb[68].mxu0 %v15620_v4 }
 0x345   : > { %12176 = vmatprep.mubr.bf16.mxu0 %v15633_v32  ;;  %12237 = vmatpush3.bf16.msra.mxu0 %v13774_v5 }
 0x346   : > { %12238 = vmatprep.subr.bf16.mxu0 %v13777_v13  ;;  %12145 = vmatmul.mubr.bf16.gmra.mrb[136].mxu1 %v13791_v33  ;;  %v13794_v33 = vld [vmem:[%s15424_s1] sm:$0xff]  }
 0x347   : > { %12148 = vmatprep.mubr.bf16.mxu1 %v13792_v40 }
 0x349   : > { %12239 = vmatpush3.bf16.msra.mxu0 %v13777_v13 }
 0x34a   : > { %12240 = vmatprep.subr.bf16.mxu0 %v13778_v22 }
 0x34c   : > { %12177 = vmatmul.mubr.bf16.gmra.mrb[72].mxu0 %v15630_v30  ;;  %v13801_v30 = vld [vmem:[%s15424_s1 + $0x38] sm:$0xff]  }
 0x34d   : > { %12180 = vmatprep.mubr.bf16.mxu0 %v15643_v50  ;;  %12241 = vmatpush3.bf16.msra.mxu0 %v13778_v22 }
 0x34e   : > { %12242 = vmatprep.subr.bf16.mxu0 %v13781_v45  ;;  %12149 = vmatmul.mubr.bf16.gmra.mrb[140].mxu1 %v13793_v52 }
 0x351   : > { %12243 = vmatpush3.bf16.msra.mxu0 %v13781_v45 }
 0x352   : > { %12244 = vmatprep.subr.bf16.mxu0 %v13782_v46 }
 0x354   : > { %12181 = vmatmul.mubr.bf16.gmra.mrb[76].mxu0 %v15640_v48 }
 0x355   : > { %12184 = vmatprep.mubr.bf16.mxu0 %v15651_v0  ;;  %12245 = vmatpush3.bf16.msra.mxu0 %v13782_v46 }
 0x356   : > { %12246 = vmatprep.subr.bf16.mxu0 %v13785_v23 }
 0x359   : > { %12247 = vmatpush3.bf16.msra.mxu0 %v13785_v23 }
 0x35a   : > { %12312 = vmatprep.subr.bf16.mxu0 %v13794_v33 }
 0x35c   : > { %12185 = vmatmul.mubr.bf16.gmra.mrb[80].mxu0 %v15649_v63 }
 0x35d   : > { %12188 = vmatprep.mubr.bf16.mxu0 %v15659_v25 }
 0x364   : > { %12189 = vmatmul.mubr.bf16.gmra.mrb[84].mxu0 %v15657_v24 }
 0x365   : > { %12192 = vmatprep.mubr.bf16.mxu0 %v15667_v51 }
 0x36c   : > { %12193 = vmatmul.mubr.bf16.gmra.mrb[88].mxu0 %v15665_v49 }
 0x36d   : > { %12196 = vmatprep.mubr.bf16.mxu0 %v15675_v12 }
 0x374   : > { %12197 = vmatmul.mubr.bf16.gmra.mrb[92].mxu0 %v15673_v11 }
 0x375   : > { %12200 = vmatprep.mubr.bf16.mxu0 %v15683_v42 }
 0x37c   : > { %12201 = vmatmul.mubr.bf16.gmra.mrb[96].mxu0 %v15681_v41 }
 0x37d   : > { %12204 = vmatprep.mubr.bf16.mxu0 %v15691_v62 }
 0x384   : > { %12205 = vmatmul.mubr.bf16.gmra.mrb[100].mxu0 %v15689_v61 }
 0x385   : > { %12208 = vmatprep.mubr.bf16.mxu0 %v15699_v35 }
 0x38c   : > { %12209 = vmatmul.mubr.bf16.gmra.mrb[104].mxu0 %v15697_v34 }
 0x38d   : > { %12212 = vmatprep.mubr.bf16.mxu0 %v15707_v1 }
 0x38f   : > { %v12010_v56 = vpop.f32.mrb[0].mxu0 }
 0x390   : > { %v1980_v57 = vpop.f32.mrb[1].mxu0 }
 0x391   : > { %v12011_v3 = vpop.f32.mrb[2].mxu0 }
 0x392   : > { %v15776_v2 = vpack.c.bf16 %v12011_v3, %v12010_v56  ;;  %v1983_v5 = vpop.f32.mrb[3].mxu0 }
 0x393   : > { %v15778_v13 = vpack.c.bf16 %v1983_v5, %v1980_v57 }
 0x394   : > { %20093 = vst [vmem:[#allocation88_spill] sm:$0xff] %v15776_v2  ;;  %12213 = vmatmul.mubr.bf16.gmra.mrb[108].mxu0 %v15705_v60 }
 0x395   : > { %20094 = vst [vmem:[#allocation89_spill] sm:$0xff] %v15778_v13  ;;  %12216 = vmatprep.mubr.bf16.mxu0 %v15715_v44 }
 0x397   : > { %v12014_v14 = vpop.f32.mrb[4].mxu0 }
 0x398   : > { %v1996_v21 = vpop.f32.mrb[5].mxu0 }
 0x399   : > { %v12015_v22 = vpop.f32.mrb[6].mxu0 }
 0x39a   : > { %v1999_v45 = vpop.f32.mrb[7].mxu0  ;;  %v15782_v31 = vpack.c.bf16 %v12015_v22, %v12014_v14 }
 0x39b   : > { %v15785_v46 = vpack.c.bf16 %v1999_v45, %v1996_v21 }
 0x39c   : > { %20095 = vst [vmem:[#allocation90_spill] sm:$0xff] %v15782_v31  ;;  %12217 = vmatmul.mubr.bf16.gmra.mrb[112].mxu0 %v15713_v43 }
 0x39d   : > { %20096 = vst [vmem:[#allocation91_spill] sm:$0xff] %v15785_v46  ;;  %12220 = vmatprep.mubr.bf16.mxu0 %v15727_v20 }
 0x39f   : > { %v12018_v23 = vpop.f32.mrb[8].mxu0 }
 0x3a0   : > { %v2012_v40 = vpop.f32.mrb[9].mxu0 }
 0x3a1   : > { %v12019_v52 = vpop.f32.mrb[10].mxu0 }
 0x3a2   : > { %v2015_v56 = vpop.f32.mrb[11].mxu0  ;;  %v15789_v57 = vpack.c.bf16 %v12019_v52, %v12018_v23 }
 0x3a3   : > { %v15791_v3 = vpack.c.bf16 %v2015_v56, %v2012_v40 }
 0x3a4   : > { %20097 = vst [vmem:[#allocation92_spill] sm:$0xff] %v15789_v57  ;;  %12221 = vmatmul.mubr.bf16.gmra.mrb[116].mxu0 %v15725_v15 }
 0x3a5   : > { %20098 = vst [vmem:[#allocation93_spill] sm:$0xff] %v15791_v3  ;;  %12224 = vmatprep.mubr.bf16.mxu0 %v15735_v59  ;;  %v15803_v59 = vpop.f32.mrb[80].mxu1 }
 0x3a6   : > { %v15807_v44 = vpop.f32.mrb[81].mxu1 }
 0x3a7   : > { %v12022_v5 = vpop.f32.mrb[12].mxu0 }
 0x3a8   : > { %v2028_v14 = vpop.f32.mrb[13].mxu0 }
 0x3a9   : > { %v12023_v21 = vpop.f32.mrb[14].mxu0 }
 0x3aa   : > { %v2031_v22 = vpop.f32.mrb[15].mxu0  ;;  %v15795_v45 = vpack.c.bf16 %v12023_v21, %v12022_v5  ;;  %v15810_v5 = vpop.f32.mrb[82].mxu1 }
 0x3ab   : > { %v15797_v43 = vpack.c.bf16 %v2031_v22, %v2028_v14  ;;  %v15815_v21 = vpop.f32.mrb[83].mxu1 }
 0x3ac   : > { %20099 = vst [vmem:[#allocation94_spill] sm:$0xff] %v15795_v45  ;;  %12225 = vmatmul.mubr.bf16.gmra.mrb[120].mxu0 %v15733_v58  ;;  %v15822_v58 = vpop.f32.mrb[84].mxu1 }
 0x3ad   : > { %20100 = vst [vmem:[#allocation95_spill] sm:$0xff] %v15797_v43  ;;  %12228 = vmatprep.mubr.bf16.mxu0 %v15743_v54  ;;  %v15826_v1 = vpop.f32.mrb[85].mxu1 }
 0x3ae   : > { %v15829_v14 = vpop.f32.mrb[86].mxu1 }
 0x3af   : > { %v12026_v23 = vpop.f32.mrb[16].mxu0  ;;  %v15832_v22 = vpop.f32.mrb[87].mxu1 }
 0x3b0   : > { %v2044_v52 = vpop.f32.mrb[17].mxu0  ;;  %v15842_v41 = vpop.f32.mrb[88].mxu1 }
 0x3b1   : > { %v12027_v40 = vpop.f32.mrb[18].mxu0 }
 0x3b2   : > { %v2047_v56 = vpop.f32.mrb[19].mxu0  ;;  %v15801_v15 = vpack.c.bf16 %v12027_v40, %v12026_v23 }
 0x3b3   : > { %v15805_v20 = vpack.c.bf16 %v2047_v56, %v2044_v52 }
 0x3b4   : > { %20101 = vst [vmem:[#allocation96_spill] sm:$0xff] %v15801_v15  ;;  %12229 = vmatmul.mubr.bf16.gmra.mrb[124].mxu0 %v15741_v47  ;;  %v13795_v47 = vld [vmem:[%s15424_s1 + $0x8] sm:$0xff]  }
 0x3b5   : > { %20102 = vst [vmem:[#allocation97_spill] sm:$0xff] %v15805_v20  ;;  %12248 = vmatprep.mubr.bf16.mxu0 %v15778_v13 }
 0x3b7   : > { %v12030_v23 = vpop.f32.mrb[20].mxu0 }
 0x3b8   : > { %v2060_v52 = vpop.f32.mrb[21].mxu0 }
 0x3b9   : > { %v12031_v40 = vpop.f32.mrb[22].mxu0 }
 0x3ba   : > { %v2063_v56 = vpop.f32.mrb[23].mxu0  ;;  %v15819_v54 = vpack.c.bf16 %v12031_v40, %v12030_v23  ;;  %v13796_v40 = vld [vmem:[%s15424_s1 + $0x10] sm:$0xff]   ;;  %v15846_v23 = vpop.f32.mrb[89].mxu1 }
 0x3bb   : > { %v15824_v60 = vpack.c.bf16 %v2063_v56, %v2060_v52  ;;  %v15849_v52 = vpop.f32.mrb[90].mxu1 }
 0x3bc   : > { %20103 = vst [vmem:[#allocation98_spill] sm:$0xff] %v15819_v54  ;;  %12249 = vmatmul.mubr.bf16.vlgmr.msra.gmra.mrb[64].mxu0 %v15776_v2 }
 0x3bd   : > { %20104 = vst [vmem:[#allocation99_spill] sm:$0xff] %v15824_v60  ;;  %12252 = vmatprep.mubr.bf16.mxu0 %v15785_v46  ;;  %12313 = vmatpush3.bf16.msra.mxu0 %v13794_v33  ;;  %v13797_v33 = vld [vmem:[%s15424_s1 + $0x18] sm:$0xff]  }
 0x3be   : > { %12314 = vmatprep.subr.bf16.mxu0 %v13795_v47 }
 0x3bf   : > { %v12034_v56 = vpop.f32.mrb[24].mxu0 }
 0x3c0   : > { %v2076_v34 = vpop.f32.mrb[25].mxu0 }
 0x3c1   : > { %v12035_v35 = vpop.f32.mrb[26].mxu0  ;;  %12315 = vmatpush3.bf16.msra.mxu0 %v13795_v47  ;;  %v15852_v47 = vpop.f32.mrb[91].mxu1 }
 0x3c2   : > { %v2079_v61 = vpop.f32.mrb[27].mxu0  ;;  %v15839_v62 = vpack.c.bf16 %v12035_v35, %v12034_v56  ;;  %12316 = vmatprep.subr.bf16.mxu0 %v13796_v40  ;;  %v13798_v56 = vld [vmem:[%s15424_s1 + $0x20] sm:$0xff]   ;;  %v15862_v24 = vpop.f32.mrb[92].mxu1 }
 0x3c3   : > { %v15844_v42 = vpack.c.bf16 %v2079_v61, %v2076_v34  ;;  %v15866_v35 = vpop.f32.mrb[93].mxu1 }
 0x3c4   : > { %20105 = vst [vmem:[#allocation100_spill] sm:$0xff] %v15839_v62  ;;  %12253 = vmatmul.mubr.bf16.gmra.mrb[68].mxu0 %v15782_v31  ;;  %v15869_v61 = vpop.f32.mrb[94].mxu1 }
 0x3c5   : > { %20106 = vst [vmem:[#allocation101_spill] sm:$0xff] %v15844_v42  ;;  %12256 = vmatprep.mubr.bf16.mxu0 %v15791_v3  ;;  %12317 = vmatpush3.bf16.msra.mxu0 %v13796_v40  ;;  %v13799_v40 = vld [vmem:[%s15424_s1 + $0x28] sm:$0xff]  }
 0x3c6   : > { %12318 = vmatprep.subr.bf16.mxu0 %v13797_v33 }
 0x3c7   : > { %v12038_v34 = vpop.f32.mrb[28].mxu0 }
 0x3c8   : > { %v2092_v11 = vpop.f32.mrb[29].mxu0 }
 0x3c9   : > { %v12039_v12 = vpop.f32.mrb[30].mxu0  ;;  %12319 = vmatpush3.bf16.msra.mxu0 %v13797_v33  ;;  %v15872_v33 = vpop.f32.mrb[95].mxu1 }
 0x3ca   : > { %v2095_v49 = vpop.f32.mrb[31].mxu0  ;;  %v15859_v51 = vpack.c.bf16 %v12039_v12, %v12038_v34  ;;  %12320 = vmatprep.subr.bf16.mxu0 %v13798_v56  ;;  %v13800_v34 = vld [vmem:[%s15424_s1 + $0x30] sm:$0xff]  }
 0x3cb   : > { %v15864_v25 = vpack.c.bf16 %v2095_v49, %v2092_v11 }
 0x3cc   : > { %20107 = vst [vmem:[#allocation102_spill] sm:$0xff] %v15859_v51  ;;  %12257 = vmatmul.mubr.bf16.gmra.mrb[72].mxu0 %v15789_v57 }
 0x3cd   : > { %20108 = vst [vmem:[#allocation103_spill] sm:$0xff] %v15864_v25  ;;  %12260 = vmatprep.mubr.bf16.mxu0 %v15797_v43  ;;  %12321 = vmatpush3.bf16.msra.mxu0 %v13798_v56  ;;  %v15882_v56 = vpop.f32.mrb[96].mxu1 }
 0x3ce   : > { %12322 = vmatprep.subr.bf16.mxu0 %v13799_v40  ;;  %v15886_v4 = vpop.f32.mrb[97].mxu1 }
 0x3cf   : > { %v12042_v11 = vpop.f32.mrb[32].mxu0  ;;  %v15889_v12 = vpop.f32.mrb[98].mxu1 }
 0x3d0   : > { %v2108_v63 = vpop.f32.mrb[33].mxu0  ;;  %v15892_v49 = vpop.f32.mrb[99].mxu1 }
 0x3d1   : > { %v12043_v0 = vpop.f32.mrb[34].mxu0  ;;  %12323 = vmatpush3.bf16.msra.mxu0 %v13799_v40  ;;  %v15900_v55 = vpop.f32.mrb[100].mxu1 }
 0x3d2   : > { %v2111_v48 = vpop.f32.mrb[35].mxu0  ;;  %v15879_v50 = vpack.c.bf16 %v12043_v0, %v12042_v11  ;;  %12324 = vmatprep.subr.bf16.mxu0 %v13800_v34 }
 0x3d3   : > { %v15884_v32 = vpack.c.bf16 %v2111_v48, %v2108_v63 }
 0x3d4   : > { %20109 = vst [vmem:[#allocation104_spill] sm:$0xff] %v15879_v50  ;;  %12261 = vmatmul.mubr.bf16.gmra.mrb[76].mxu0 %v15795_v45 }
 0x3d5   : > { %20110 = vst [vmem:[#allocation105_spill] sm:$0xff] %v15884_v32  ;;  %12264 = vmatprep.mubr.bf16.mxu0 %v15805_v20  ;;  %12325 = vmatpush3.bf16.msra.mxu0 %v13800_v34  ;;  %v15904_v34 = vpop.f32.mrb[101].mxu1 }
 0x3d6   : > { %12326 = vmatprep.subr.bf16.mxu0 %v13801_v30  ;;  %v15907_v0 = vpop.f32.mrb[102].mxu1 }
 0x3d7   : > { %v12046_v48 = vpop.f32.mrb[36].mxu0  ;;  %v15910_v40 = vpop.f32.mrb[103].mxu1 }
 0x3d8   : > { %v2124_v63 = vpop.f32.mrb[37].mxu0  ;;  %v15918_v36 = vpop.f32.mrb[104].mxu1 }
 0x3d9   : > { %v12047_v11 = vpop.f32.mrb[38].mxu0  ;;  %12327 = vmatpush3.bf16.msra.mxu0 %v13801_v30  ;;  %v15922_v29 = vpop.f32.mrb[105].mxu1 }
 0x3da   : > { %v2127_v10 = vpop.f32.mrb[39].mxu0  ;;  %v15898_v53 = vpack.c.bf16 %v12047_v11, %v12046_v48  ;;  %v15925_v28 = vpop.f32.mrb[106].mxu1 }
 0x3db   : > { %v15902_v37 = vpack.c.bf16 %v2127_v10, %v2124_v63  ;;  %v15928_v30 = vpop.f32.mrb[107].mxu1 }
 0x3dc   : > { %20111 = vst [vmem:[#allocation106_spill] sm:$0xff] %v15898_v53  ;;  %12265 = vmatmul.mubr.bf16.gmra.mrb[80].mxu0 %v15801_v15 }
 0x3dd   : > { %20112 = vst [vmem:[#allocation107_spill] sm:$0xff] %v15902_v37  ;;  %12268 = vmatprep.mubr.bf16.mxu0 %v15824_v60 }
 0x3de   : > { %v15936_v19 = vpop.f32.mrb[108].mxu1 }
 0x3df   : > { %v12050_v11 = vpop.f32.mrb[40].mxu0  ;;  %v15940_v16 = vpop.f32.mrb[109].mxu1 }
 0x3e0   : > { %v2140_v39 = vpop.f32.mrb[41].mxu0  ;;  %v15943_v7 = vpop.f32.mrb[110].mxu1 }
 0x3e1   : > { %v12051_v10 = vpop.f32.mrb[42].mxu0  ;;  %v15946_v48 = vpop.f32.mrb[111].mxu1 }
 0x3e2   : > { %v2143_v63 = vpop.f32.mrb[43].mxu0  ;;  %v15916_v38 = vpack.c.bf16 %v12051_v10, %v12050_v11 }
 0x3e3   : > { %v15920_v27 = vpack.c.bf16 %v2143_v63, %v2140_v39 }
 0x3e4   : > { %20113 = vst [vmem:[#allocation108_spill] sm:$0xff] %v15916_v38  ;;  %12269 = vmatmul.mubr.bf16.gmra.mrb[84].mxu0 %v15819_v54 }
 0x3e5   : > { %20114 = vst [vmem:[#allocation109_spill] sm:$0xff] %v15920_v27  ;;  %12272 = vmatprep.mubr.bf16.mxu0 %v15844_v42 }
 0x3e7   : > { %v12054_v10 = vpop.f32.mrb[44].mxu0  ;;  %v15954_v6 = vpop.f32.mrb[112].mxu1 }
 0x3e8   : > { %v2156_v26 = vpop.f32.mrb[45].mxu0  ;;  %v15958_v42 = vpop.f32.mrb[113].mxu1 }
 0x3e9   : > { %v12055_v39 = vpop.f32.mrb[46].mxu0 }
 0x3ea   : > { %v2159_v63 = vpop.f32.mrb[47].mxu0  ;;  %v15934_v17 = vpack.c.bf16 %v12055_v39, %v12054_v10 }
 0x3eb   : > { %v15938_v18 = vpack.c.bf16 %v2159_v63, %v2156_v26 }
 0x3ec   : > { %20115 = vst [vmem:[#allocation110_spill] sm:$0xff] %v15934_v17  ;;  %12273 = vmatmul.mubr.bf16.gmra.mrb[88].mxu0 %v15839_v62 }
 0x3ed   : > { %20116 = vst [vmem:[#allocation111_spill] sm:$0xff] %v15938_v18  ;;  %12276 = vmatprep.mubr.bf16.mxu0 %v15864_v25  ;;  %v15961_v25 = vpop.f32.mrb[114].mxu1 }
 0x3ee   : > { %v15964_v11 = vpop.f32.mrb[115].mxu1 }
 0x3ef   : > { %v12058_v39 = vpop.f32.mrb[48].mxu0  ;;  %v15972_v15 = vpop.f32.mrb[116].mxu1 }
 0x3f0   : > { %v2172_v9 = vpop.f32.mrb[49].mxu0  ;;  %v15976_v20 = vpop.f32.mrb[117].mxu1 }
 0x3f1   : > { %v12059_v26 = vpop.f32.mrb[50].mxu0 }
 0x3f2   : > { %v2175_v63 = vpop.f32.mrb[51].mxu0  ;;  %v15952_v8 = vpack.c.bf16 %v12059_v26, %v12058_v39 }
 0x3f3   : > { %v15956_v62 = vpack.c.bf16 %v2175_v63, %v2172_v9 }
 0x3f4   : > { %20117 = vst [vmem:[#allocation112_spill] sm:$0xff] %v15952_v8  ;;  %12277 = vmatmul.mubr.bf16.gmra.mrb[92].mxu0 %v15859_v51 }
 0x3f5   : > { %20118 = vst [vmem:[#allocation113_spill] sm:$0xff] %v15956_v62  ;;  %12280 = vmatprep.mubr.bf16.mxu0 %v15884_v32  ;;  %v15979_v32 = vpop.f32.mrb[118].mxu1 }
 0x3f6   : > { %v15982_v10 = vpop.f32.mrb[119].mxu1 }
 0x3f7   : > { %v12062_v26 = vpop.f32.mrb[52].mxu0 }
 0x3f8   : > { %v2188_v54 = vpop.f32.mrb[53].mxu0 }
 0x3f9   : > { %v12063_v9 = vpop.f32.mrb[54].mxu0  ;;  %v15990_v57 = vpop.f32.mrb[120].mxu1 }
 0x3fa   : > { %v2191_v63 = vpop.f32.mrb[55].mxu0  ;;  %v15970_v60 = vpack.c.bf16 %v12063_v9, %v12062_v26  ;;  %v15994_v3 = vpop.f32.mrb[121].mxu1 }
 0x3fb   : > { %v15974_v51 = vpack.c.bf16 %v2191_v63, %v2188_v54 }
 0x3fc   : > { %20119 = vst [vmem:[#allocation114_spill] sm:$0xff] %v15970_v60  ;;  %12281 = vmatmul.mubr.bf16.gmra.mrb[96].mxu0 %v15879_v50 }
 0x3fd   : > { %20120 = vst [vmem:[#allocation115_spill] sm:$0xff] %v15974_v51  ;;  %12284 = vmatprep.mubr.bf16.mxu0 %v15902_v37  ;;  %v15997_v37 = vpop.f32.mrb[122].mxu1 }
 0x3fe   : > { %v16000_v39 = vpop.f32.mrb[123].mxu1 }
 0x3ff   : > { %v12066_v9 = vpop.f32.mrb[56].mxu0 }
 0x400   : > { %v2204_v45 = vpop.f32.mrb[57].mxu0 }
 0x401   : > { %v12067_v54 = vpop.f32.mrb[58].mxu0  ;;  %v16008_v2 = vpop.f32.mrb[124].mxu1 }
 0x402   : > { %v2207_v63 = vpop.f32.mrb[59].mxu0  ;;  %v15988_v43 = vpack.c.bf16 %v12067_v54, %v12066_v9  ;;  %20122 = vst [vmem:[#allocation117_spill] sm:$0xff] %v16008_v2  ;;  %v16012_v13 = vpop.f32.mrb[125].mxu1 }
 0x403   : > { %v15992_v50 = vpack.c.bf16 %v2207_v63, %v2204_v45 }
 0x404   : > { %12285 = vmatmul.mubr.bf16.gmra.mrb[100].mxu0 %v15898_v53 }
 0x405   : > { %20121 = vst [vmem:[#allocation116_spill] sm:$0xff] %v15992_v50  ;;  %12288 = vmatprep.mubr.bf16.mxu0 %v15920_v27  ;;  %v16015_v27 = vpop.f32.mrb[126].mxu1 }
 0x406   : > { %20123 = vst [vmem:[#allocation118_spill] sm:$0xff] %v16015_v27  ;;  %v16018_v26 = vpop.f32.mrb[127].mxu1 }
 0x407   : > { %v12070_v54 = vpop.f32.mrb[60].mxu0 }
 0x408   : > { %v2220_v31 = vpop.f32.mrb[61].mxu0 }
 0x409   : > { %v12071_v45 = vpop.f32.mrb[62].mxu0 }
 0x40a   : > { %v2223_v63 = vpop.f32.mrb[63].mxu0  ;;  %v16006_v46 = vpack.c.bf16 %v12071_v45, %v12070_v54  ;;  %v16024_v45 = vpop.f32.mrb[128].mxu1 }
 0x40b   : > { %v16010_v53 = vpack.c.bf16 %v2223_v63, %v2220_v31  ;;  %20124 = vst [vmem:[#allocation119_spill] sm:$0xff] %v16024_v45  ;;  %v16026_v31 = vpop.f32.mrb[129].mxu1 }
 0x40c   : > { %12289 = vmatmul.mubr.bf16.gmra.mrb[104].mxu0 %v15916_v38  ;;  %20125 = vst [vmem:[#allocation120_spill] sm:$0xff] %v16026_v31  ;;  %v16029_v63 = vpop.f32.mrb[130].mxu1  ;;  %v13803_v31 = vld [vmem:[#allocation19 + $0x8] sm:$0xff]  }
 0x40d   : > { %12292 = vmatprep.mubr.bf16.mxu0 %v15938_v18  ;;  %20126 = vst [vmem:[#allocation121_spill] sm:$0xff] %v16029_v63  ;;  %v16032_v38 = vpop.f32.mrb[131].mxu1 }
 0x411   : > { %v16038_v2 = vpop.f32.mrb[132].mxu1 }
 0x412   : > { %20127 = vst [vmem:[#allocation122_spill] sm:$0xff] %v16038_v2  ;;  %v16040_v54 = vpop.f32.mrb[133].mxu1 }
 0x413   : > { %20128 = vst [vmem:[#allocation123_spill] sm:$0xff] %v16040_v54  ;;  %v16043_v27 = vpop.f32.mrb[134].mxu1 }
 0x414   : > { %12293 = vmatmul.mubr.bf16.gmra.mrb[108].mxu0 %v15934_v17  ;;  %20129 = vst [vmem:[#allocation124_spill] sm:$0xff] %v16043_v27  ;;  %v16046_v17 = vpop.f32.mrb[135].mxu1 }
 0x415   : > { %12296 = vmatprep.mubr.bf16.mxu0 %v15956_v62  ;;  %20130 = vst [vmem:[#allocation125_spill] sm:$0xff] %v16046_v17  ;;  %v13802_v17 = vld [vmem:[#allocation19] sm:$0xff]  }
 0x416   : > { %12392 = vmatprep.subr.bf16.mxu1 %v13802_v17 }
 0x417   : > { %12393 = vmatpush3.bf16.msra.mxu1 %v13802_v17  ;;  %v20134_v17 = vpack.c.bf16 %v15829_v14, %v15822_v58  ;;  %v20138_v58 = vpack.c.bf16 %v15869_v61, %v15862_v24  ;;  %v20142_v14 = vpack.c.bf16 %v15907_v0, %v15900_v55  ;;  %v20143_v24 = vpack.c.bf16 %v15928_v30, %v15922_v29 }
 0x418   : > { %12394 = vmatprep.subr.bf16.mxu1 %v13803_v31  ;;  %v20147_v55 = vpack.c.bf16 %v15964_v11, %v15958_v42  ;;  %v20148_v29 = vpack.c.bf16 %v15961_v25, %v15954_v6  ;;  %v20153_v6 = vpack.c.bf16 %v16018_v26, %v16012_v13  ;;  %v20154_v25 = vld [vmem:[#allocation118_spill] sm:$0xff] }
 0x419   : > { %v16052_v45 = vpop.f32.mrb[136].mxu1  ;;  %v20166_v61 = vld [vmem:[#allocation122_spill] sm:$0xff] }
 0x41a   : > { %v16054_v9 = vpop.f32.mrb[137].mxu1 }
 0x41b   : > { %v16057_v63 = vpop.f32.mrb[138].mxu1  ;;  %12395 = vmatpush3.bf16.msra.mxu1 %v13803_v31 }
 0x41c   : > { %12297 = vmatmul.mubr.bf16.gmra.mrb[112].mxu0 %v15952_v8  ;;  %v16060_v8 = vpop.f32.mrb[139].mxu1 }
 0x41d   : > { %12300 = vmatprep.mubr.bf16.mxu0 %v15974_v51  ;;  %v3482_v62 = vpack.c.bf16 %v16060_v8, %v16054_v9  ;;  %v20131_v51 = vpack.c.bf16 %v15815_v21, %v15807_v44  ;;  %v13804_v8 = vld [vmem:[#allocation19 + $0x10] sm:$0xff]   ;;  %v20132_v9 = vpack.c.bf16 %v15810_v5, %v15803_v59  ;;  %v20135_v44 = vpack.c.bf16 %v15852_v47, %v15846_v23  ;;  %v20162_v23 = vld [vmem:[#allocation125_spill] sm:$0xff] }
 0x41e   : > { %12396 = vmatprep.subr.bf16.mxu1 %v13804_v8  ;;  %v20137_v59 = vpack.c.bf16 %v15872_v33, %v15866_v35  ;;  %v20140_v5 = vpack.c.bf16 %v15889_v12, %v15882_v56  ;;  %v20145_v21 = vpack.c.bf16 %v15946_v48, %v15940_v16  ;;  %v20150_v16 = vpack.c.bf16 %v15979_v32, %v15972_v15  ;;  %v20155_v32 = vld [vmem:[#allocation117_spill] sm:$0xff]  ;;  %v20165_v35 = vld [vmem:[#allocation124_spill] sm:$0xff] }
 0x41f   : > { %12397 = vmatpush3.bf16.msra.mxu1 %v13804_v8  ;;  %v20156_v42 = vpack.c.bf16 %v20154_v25, %v20155_v32  ;;  %v13809_v15 = vld [vmem:[#allocation19 + $0x38] sm:$0xff]   ;;  %v20167_v33 = vpack.c.bf16 %v20165_v35, %v20166_v61  ;;  %v20168_v12 = vpack.c.bf16 %v16057_v63, %v16052_v45 }
 0x421   : > { %v16066_v2 = vpop.f32.mrb[140].mxu1 }
 0x422   : > { %v2701_v18 = vpop.f32.mrb[141].mxu1 }
 0x423   : > { %v12151_v27 = vpop.f32.mrb[142].mxu1 }
 0x424   : > { %12301 = vmatmul.mubr.bf16.gmra.mrb[116].mxu0 %v15970_v60  ;;  %v2704_v60 = vpop.f32.mrb[143].mxu1  ;;  %v3485_v54 = vpack.c.bf16 %v12151_v27, %v16066_v2  ;;  %v13805_v27 = vld [vmem:[#allocation19 + $0x18] sm:$0xff]   ;;  %v20139_v2 = vpack.c.bf16 %v15892_v49, %v15886_v4  ;;  %v20144_v4 = vpack.c.bf16 %v15925_v28, %v15918_v36  ;;  %v20149_v28 = vpack.c.bf16 %v15982_v10, %v15976_v20  ;;  %v13808_v36 = vld [vmem:[#allocation19 + $0x30] sm:$0xff]   ;;  %v16167_v49 = vld [vmem:[%s16164_s5] ss:$0 sm:$0xff] }
 0x425   : > { %12304 = vmatprep.mubr.bf16.mxu0 %v15992_v50  ;;  %v3484_v50 = vpack.c.bf16 %v2704_v60, %v2701_v18  ;;  %v20133_v18 = vpack.c.bf16 %v15832_v22, %v15826_v1  ;;  %12398 = vmatprep.subr.bf16.mxu1 %v13805_v27  ;;  %v13806_v60 = vld [vmem:[#allocation19 + $0x20] sm:$0xff]   ;;  %v20136_v1 = vpack.c.bf16 %v15849_v52, %v15842_v41  ;;  %v20157_v20 = vld [vmem:[#allocation120_spill] sm:$0xff]  ;;  %v20163_v52 = vld [vmem:[#allocation123_spill] sm:$0xff] }
 0x426   : > { %12399 = vmatpush3.bf16.msra.mxu1 %v13805_v27  ;;  %v20141_v41 = vpack.c.bf16 %v15910_v40, %v15904_v34  ;;  %v20146_v22 = vpack.c.bf16 %v15943_v7, %v15936_v19  ;;  %v20151_v7 = vpack.c.bf16 %v16000_v39, %v15994_v3  ;;  %v20152_v19 = vpack.c.bf16 %v15997_v37, %v15990_v57  ;;  %v20159_v37 = vld [vmem:[#allocation121_spill] sm:$0xff]  ;;  %v20160_v57 = vld [vmem:[#allocation119_spill] sm:$0xff]  ;;  %v16181_v34 = vld [vmem:[%s16172_s24] ss:$0 sm:$0xff] }
 0x427   : > { %12400 = vmatprep.subr.bf16.mxu1 %v13806_v60  ;;  %v20158_v3 = vpack.c.bf16 %v16032_v38, %v20157_v20  ;;  %v20161_v13 = vpack.c.bf16 %v20159_v37, %v20160_v57  ;;  %v20164_v47 = vpack.c.bf16 %v20162_v23, %v20163_v52  ;;  %v13810_v38 = vld [vmem:[%s15426_s6] sm:$0xff]   ;;  %v13815_v37 = vld [vmem:[%s15426_s6 + $0x28] sm:$0xff]  }
 0x42a   : > { %12401 = vmatpush3.bf16.msra.mxu1 %v13806_v60 }
 0x42c   : > { %12305 = vmatmul.mubr.bf16.gmra.mrb[120].mxu0 %v15988_v43 }
 0x42d   : > { %12308 = vmatprep.mubr.bf16.mxu0 %v16010_v53 }
 0x434   : > { %12309 = vmatmul.mubr.bf16.gmra.mrb[124].mxu0 %v16006_v46 }
 0x435   : > { %12328 = vmatprep.mubr.bf16.mxu0 %v20131_v51  ;;  %v13807_v51 = vld [vmem:[#allocation19 + $0x28] sm:$0xff]  }
 0x436   : > { %12402 = vmatprep.subr.bf16.mxu1 %v13807_v51 }
 0x437   : > { %12403 = vmatpush3.bf16.msra.mxu1 %v13807_v51 }
 0x438   : > { %12404 = vmatprep.subr.bf16.mxu1 %v13808_v36 }
 0x43b   : > { %12405 = vmatpush3.bf16.msra.mxu1 %v13808_v36 }
 0x43c   : > { %12329 = vmatmul.mubr.bf16.vlgmr.msra.gmra.mrb[64].mxu0 %v20132_v9  ;;  %12406 = vmatprep.subr.bf16.mxu1 %v13809_v15  ;;  %v13811_v9 = vld [vmem:[%s15426_s6 + $0x8] sm:$0xff]  }
 0x43d   : > { %12332 = vmatprep.mubr.bf16.mxu0 %v20133_v18 }
 0x43f   : > { %12407 = vmatpush3.bf16.msra.mxu1 %v13809_v15 }
 0x440   : > { %12472 = vmatprep.subr.bf16.mxu1 %v13810_v38 }
 0x444   : > { %12333 = vmatmul.mubr.bf16.gmra.mrb[68].mxu0 %v20134_v17 }
 0x445   : > { %12336 = vmatprep.mubr.bf16.mxu0 %v20135_v44 }
 0x44c   : > { %12337 = vmatmul.mubr.bf16.gmra.mrb[72].mxu0 %v20136_v1 }
 0x44d   : > { %12340 = vmatprep.mubr.bf16.mxu0 %v20137_v59  ;;  %v13812_v59 = vld [vmem:[%s15426_s6 + $0x10] sm:$0xff]  }
 0x454   : > { %12341 = vmatmul.mubr.bf16.gmra.mrb[76].mxu0 %v20138_v58 }
 0x455   : > { %12344 = vmatprep.mubr.bf16.mxu0 %v20139_v2 }
 0x45c   : > { %12345 = vmatmul.mubr.bf16.gmra.mrb[80].mxu0 %v20140_v5 }
 0x45d   : > { %12348 = vmatprep.mubr.bf16.mxu0 %v20141_v41 }
 0x464   : > { %12349 = vmatmul.mubr.bf16.gmra.mrb[84].mxu0 %v20142_v14 }
 0x465   : > { %12352 = vmatprep.mubr.bf16.mxu0 %v20143_v24 }
 0x46c   : > { %12353 = vmatmul.mubr.bf16.gmra.mrb[88].mxu0 %v20144_v4 }
 0x46d   : > { %12356 = vmatprep.mubr.bf16.mxu0 %v20145_v21  ;;  %v13813_v21 = vld [vmem:[%s15426_s6 + $0x18] sm:$0xff]  }
 0x474   : > { %12357 = vmatmul.mubr.bf16.gmra.mrb[92].mxu0 %v20146_v22 }
 0x475   : > { %12360 = vmatprep.mubr.bf16.mxu0 %v20147_v55 }
 0x47c   : > { %12361 = vmatmul.mubr.bf16.gmra.mrb[96].mxu0 %v20148_v29 }
 0x47d   : > { %12364 = vmatprep.mubr.bf16.mxu0 %v20149_v28 }
 0x484   : > { %12365 = vmatmul.mubr.bf16.gmra.mrb[100].mxu0 %v20150_v16 }
 0x485   : > { %12368 = vmatprep.mubr.bf16.mxu0 %v20151_v7 }
 0x48c   : > { %12369 = vmatmul.mubr.bf16.gmra.mrb[104].mxu0 %v20152_v19 }
 0x48d   : > { %12372 = vmatprep.mubr.bf16.mxu0 %v20153_v6  ;;  %v13814_v6 = vld [vmem:[%s15426_s6 + $0x20] sm:$0xff]  }
 0x494   : > { %12373 = vmatmul.mubr.bf16.gmra.mrb[108].mxu0 %v20156_v42 }
 0x495   : > { %12376 = vmatprep.mubr.bf16.mxu0 %v20158_v3 }
 0x49c   : > { %12377 = vmatmul.mubr.bf16.gmra.mrb[112].mxu0 %v20161_v13 }
 0x49d   : > { %12380 = vmatprep.mubr.bf16.mxu0 %v20164_v47 }
 0x4a4   : > { %12381 = vmatmul.mubr.bf16.gmra.mrb[116].mxu0 %v20167_v33  ;;  %v13816_v33 = vld [vmem:[%s15426_s6 + $0x30] sm:$0xff]  }
 0x4a5   : > { %12384 = vmatprep.mubr.bf16.mxu0 %v3482_v62 }
 0x4ac   : > { %12385 = vmatmul.mubr.bf16.gmra.mrb[120].mxu0 %v20168_v12 }
 0x4ad   : > { %12388 = vmatprep.mubr.bf16.mxu0 %v3484_v50 }
 0x4b4   : > { %12389 = vmatmul.mubr.bf16.gmra.mrb[124].mxu0 %v3485_v54 }
 0x50f   : > { %v12330_v62 = vpop.f32.mrb[64].mxu0 }
 0x510   : > { %v3584_v50 = vpop.f32.mrb[65].mxu0  ;;  %v16178_v40 = vadd.f32 %v12330_v62, %v16167_v49 }
 0x511   : > { %v16175_v56 = vadd.f32 %v16167_v49, %v3584_v50  ;;  %v12331_v0 = vpop.f32.mrb[66].mxu0 }
 0x512   : > { %20172 = vst [vmem:[#allocation117_spill] sm:$0xff] %v16178_v40  ;;  %v16184_v30 = vadd.f32 %v12331_v0, %v16167_v49  ;;  %v3587_v48 = vpop.f32.mrb[67].mxu0  ;;  %v3999_v54 = vmul.f32 %v16181_v34, %v16178_v40 }
 0x513   : > { %20171 = vst [vmem:[#allocation118_spill] sm:$0xff] %v16175_v56  ;;  %v16187_v11 = vadd.f32 %v16167_v49, %v3587_v48  ;;  %v3997_v39 = vmul.f32 %v16181_v34, %v16175_v56 }
 0x514   : > { %20173 = vst [vmem:[#allocation120_spill] sm:$0xff] %v16184_v30  ;;  %v4000_v10 = vmul.f32 %v16181_v34, %v16184_v30 }
 0x515   : > { %20174 = vst [vmem:[#allocation121_spill] sm:$0xff] %v16187_v11  ;;  %v3998_v26 = vmul.f32 %v16181_v34, %v16187_v11 }
 0x516   : > { %v4062_v63 = vpack.c.bf16 %v4000_v10, %v3999_v54 }
 0x517   : > { %v12334_v45 = vpop.f32.mrb[68].mxu0  ;;  %v4061_v31 = vpack.c.bf16 %v3998_v26, %v3997_v39  ;;  %v13817_v39 = vld [vmem:[%s15426_s6 + $0x38] sm:$0xff]  }
 0x518   : > { %v3600_v8 = vpop.f32.mrb[69].mxu0  ;;  %v16202_v60 = vadd.f32 %v12334_v45, %v16167_v49 }
 0x519   : > { %v16199_v27 = vadd.f32 %v16167_v49, %v3600_v8  ;;  %v12335_v18 = vpop.f32.mrb[70].mxu0  ;;  %12408 = vmatprep.mubr.bf16.mxu1 %v4061_v31 }
 0x51a   : > { %20176 = vst [vmem:[#allocation125_spill] sm:$0xff] %v16202_v60  ;;  %v16205_v17 = vadd.f32 %v12335_v18, %v16167_v49  ;;  %v3603_v51 = vpop.f32.mrb[71].mxu0  ;;  %12409 = vmatmul.mubr.bf16.vlgmr.msra.gmra.mrb[144].mxu1 %v4062_v63  ;;  %v4003_v5 = vmul.f32 %v16181_v34, %v16202_v60 }
 0x51b   : > { %20175 = vst [vmem:[#allocation119_spill] sm:$0xff] %v16199_v27  ;;  %v16208_v44 = vadd.f32 %v16167_v49, %v3603_v51  ;;  %12473 = vmatpush3.bf16.msra.mxu1 %v13810_v38  ;;  %v4001_v58 = vmul.f32 %v16181_v34, %v16199_v27 }
 0x51c   : > { %20177 = vst [vmem:[#allocation123_spill] sm:$0xff] %v16205_v17  ;;  %v4004_v1 = vmul.f32 %v16181_v34, %v16205_v17  ;;  %12474 = vmatprep.subr.bf16.mxu1 %v13811_v9 }
 0x51d   : > { %20178 = vst [vmem:[#allocation124_spill] sm:$0xff] %v16208_v44  ;;  %v4002_v2 = vmul.f32 %v16181_v34, %v16208_v44 }
 0x51e   : > { %v4064_v4 = vpack.c.bf16 %v4004_v1, %v4003_v5 }
 0x51f   : > { %v12338_v41 = vpop.f32.mrb[72].mxu0  ;;  %v4063_v14 = vpack.c.bf16 %v4002_v2, %v4001_v58  ;;  %12475 = vmatpush3.bf16.msra.mxu1 %v13811_v9 }
 0x520   : > { %v3616_v24 = vpop.f32.mrb[73].mxu0  ;;  %12476 = vmatprep.subr.bf16.mxu1 %v13812_v59  ;;  %v16224_v29 = vadd.f32 %v12338_v41, %v16167_v49 }
 0x521   : > { %v16221_v22 = vadd.f32 %v16167_v49, %v3616_v24  ;;  %v12339_v55 = vpop.f32.mrb[74].mxu0  ;;  %12412 = vmatprep.mubr.bf16.mxu1 %v4063_v14 }
 0x522   : > { %20180 = vst [vmem:[#allocation126_spill] sm:$0xff] %v16224_v29  ;;  %v16227_v28 = vadd.f32 %v12339_v55, %v16167_v49  ;;  %v3619_v16 = vpop.f32.mrb[75].mxu0  ;;  %12413 = vmatmul.mubr.bf16.gmra.mrb[148].mxu1 %v4064_v4  ;;  %v4007_v32 = vmul.f32 %v16181_v34, %v16224_v29 }
 0x523   : > { %20179 = vst [vmem:[#allocation122_spill] sm:$0xff] %v16221_v22  ;;  %v16230_v7 = vadd.f32 %v16167_v49, %v3619_v16  ;;  %12477 = vmatpush3.bf16.msra.mxu1 %v13812_v59  ;;  %v4005_v36 = vmul.f32 %v16181_v34, %v16221_v22 }
 0x524   : > { %20181 = vst [vmem:[#allocation127_spill] sm:$0xff] %v16227_v28  ;;  %v4008_v19 = vmul.f32 %v16181_v34, %v16227_v28  ;;  %12478 = vmatprep.subr.bf16.mxu1 %v13813_v21 }
 0x525   : > { %20182 = vst [vmem:[#allocation128_spill] sm:$0xff] %v16230_v7  ;;  %v4006_v25 = vmul.f32 %v16181_v34, %v16230_v7 }
 0x526   : > { %v4066_v3 = vpack.c.bf16 %v4008_v19, %v4007_v32 }
 0x527   : > { %v12342_v42 = vpop.f32.mrb[76].mxu0  ;;  %v4065_v15 = vpack.c.bf16 %v4006_v25, %v4005_v36  ;;  %12479 = vmatpush3.bf16.msra.mxu1 %v13813_v21 }
 0x528   : > { %v3632_v20 = vpop.f32.mrb[77].mxu0  ;;  %12480 = vmatprep.subr.bf16.mxu1 %v13814_v6  ;;  %v16246_v23 = vadd.f32 %v12342_v42, %v16167_v49 }
 0x529   : > { %v16243_v57 = vadd.f32 %v16167_v49, %v3632_v20  ;;  %v12343_v13 = vpop.f32.mrb[78].mxu0  ;;  %12416 = vmatprep.mubr.bf16.mxu1 %v4065_v15 }
 0x52a   : > { %20184 = vst [vmem:[#allocation130_spill] sm:$0xff] %v16246_v23  ;;  %v16249_v52 = vadd.f32 %v12343_v13, %v16167_v49  ;;  %v3635_v47 = vpop.f32.mrb[79].mxu0  ;;  %12417 = vmatmul.mubr.bf16.gmra.mrb[152].mxu1 %v4066_v3  ;;  %v4011_v62 = vmul.f32 %v16181_v34, %v16246_v23 }
 0x52b   : > { %20183 = vst [vmem:[#allocation129_spill] sm:$0xff] %v16243_v57  ;;  %v16252_v35 = vadd.f32 %v16167_v49, %v3635_v47  ;;  %12481 = vmatpush3.bf16.msra.mxu1 %v13814_v6  ;;  %v4009_v12 = vmul.f32 %v16181_v34, %v16243_v57 }
 0x52c   : > { %20185 = vst [vmem:[#allocation131_spill] sm:$0xff] %v16249_v52  ;;  %v4012_v61 = vmul.f32 %v16181_v34, %v16249_v52  ;;  %12482 = vmatprep.subr.bf16.mxu1 %v13815_v37 }
 0x52d   : > { %20186 = vst [vmem:[#allocation132_spill] sm:$0xff] %v16252_v35  ;;  %v4010_v38 = vmul.f32 %v16181_v34, %v16252_v35 }
 0x52e   : > { %v4068_v10 = vpack.c.bf16 %v4012_v61, %v4011_v62 }
 0x52f   : > { %v12346_v50 = vpop.f32.mrb[80].mxu0  ;;  %v4067_v0 = vpack.c.bf16 %v4010_v38, %v4009_v12  ;;  %12483 = vmatpush3.bf16.msra.mxu1 %v13815_v37 }
 0x530   : > { %v3648_v48 = vpop.f32.mrb[81].mxu0  ;;  %12484 = vmatprep.subr.bf16.mxu1 %v13816_v33  ;;  %v16268_v45 = vadd.f32 %v12346_v50, %v16167_v49 }
 0x531   : > { %v16265_v26 = vadd.f32 %v16167_v49, %v3648_v48  ;;  %v12347_v54 = vpop.f32.mrb[82].mxu0  ;;  %12420 = vmatprep.mubr.bf16.mxu1 %v4067_v0 }
 0x532   : > { %20188 = vst [vmem:[#allocation134_spill] sm:$0xff] %v16268_v45  ;;  %v16271_v31 = vadd.f32 %v12347_v54, %v16167_v49  ;;  %v3651_v63 = vpop.f32.mrb[83].mxu0  ;;  %12421 = vmatmul.mubr.bf16.gmra.mrb[156].mxu1 %v4068_v10  ;;  %v4015_v1 = vmul.f32 %v16181_v34, %v16268_v45 }
 0x533   : > { %20187 = vst [vmem:[#allocation133_spill] sm:$0xff] %v16265_v26  ;;  %v16274_v8 = vadd.f32 %v16167_v49, %v3651_v63  ;;  %12485 = vmatpush3.bf16.msra.mxu1 %v13816_v33  ;;  %v4013_v18 = vmul.f32 %v16181_v34, %v16265_v26 }
 0x534   : > { %20189 = vst [vmem:[#allocation135_spill] sm:$0xff] %v16271_v31  ;;  %v4016_v9 = vmul.f32 %v16181_v34, %v16271_v31  ;;  %12486 = vmatprep.subr.bf16.mxu1 %v13817_v39 }
 0x535   : > { %20190 = vst [vmem:[#allocation136_spill] sm:$0xff] %v16274_v8  ;;  %v4014_v51 = vmul.f32 %v16181_v34, %v16274_v8 }
 0x536   : > { %v4070_v5 = vpack.c.bf16 %v4016_v9, %v4015_v1 }
 0x537   : > { %v12350_v59 = vpop.f32.mrb[84].mxu0  ;;  %v4069_v58 = vpack.c.bf16 %v4014_v51, %v4013_v18  ;;  %12487 = vmatpush3.bf16.msra.mxu1 %v13817_v39 }
 0x538   : > { %v3664_v2 = vpop.f32.mrb[85].mxu0  ;;  %v16288_v24 = vadd.f32 %v12350_v59, %v16167_v49 }
 0x539   : > { %v16285_v41 = vadd.f32 %v16167_v49, %v3664_v2  ;;  %v12351_v14 = vpop.f32.mrb[86].mxu0  ;;  %12424 = vmatprep.mubr.bf16.mxu1 %v4069_v58 }
 0x53a   : > { %20192 = vst [vmem:[#allocation138_spill] sm:$0xff] %v16288_v24  ;;  %v16291_v4 = vadd.f32 %v12351_v14, %v16167_v49  ;;  %v3667_v21 = vpop.f32.mrb[87].mxu0  ;;  %12425 = vmatmul.mubr.bf16.gmra.mrb[160].mxu1 %v4070_v5  ;;  %v4019_v36 = vmul.f32 %v16181_v34, %v16288_v24 }
 0x53b   : > { %20191 = vst [vmem:[#allocation137_spill] sm:$0xff] %v16285_v41  ;;  %v16294_v55 = vadd.f32 %v16167_v49, %v3667_v21  ;;  %v4017_v19 = vmul.f32 %v16181_v34, %v16285_v41 }
 0x53c   : > { %20193 = vst [vmem:[#allocation139_spill] sm:$0xff] %v16291_v4  ;;  %v4020_v16 = vmul.f32 %v16181_v34, %v16291_v4 }
 0x53d   : > { %20194 = vst [vmem:[#allocation140_spill] sm:$0xff] %v16294_v55  ;;  %v4018_v6 = vmul.f32 %v16181_v34, %v16294_v55 }
 0x53e   : > { %v4072_v15 = vpack.c.bf16 %v4020_v16, %v4019_v36 }
 0x53f   : > { %v12354_v25 = vpop.f32.mrb[88].mxu0  ;;  %v4071_v32 = vpack.c.bf16 %v4018_v6, %v4017_v19 }
 0x540   : > { %v3680_v42 = vpop.f32.mrb[89].mxu0  ;;  %v16308_v37 = vadd.f32 %v12354_v25, %v16167_v49 }
 0x541   : > { %v16305_v20 = vadd.f32 %v16167_v49, %v3680_v42  ;;  %v12355_v3 = vpop.f32.mrb[90].mxu0  ;;  %12428 = vmatprep.mubr.bf16.mxu1 %v4071_v32 }
 0x542   : > { %20196 = vst [vmem:[#allocation142_spill] sm:$0xff] %v16308_v37  ;;  %v16311_v13 = vadd.f32 %v12355_v3, %v16167_v49  ;;  %v3683_v47 = vpop.f32.mrb[91].mxu0  ;;  %12429 = vmatmul.mubr.bf16.gmra.mrb[164].mxu1 %v4072_v15  ;;  %v4023_v62 = vmul.f32 %v16181_v34, %v16308_v37 }
 0x543   : > { %20195 = vst [vmem:[#allocation141_spill] sm:$0xff] %v16305_v20  ;;  %v16314_v61 = vadd.f32 %v16167_v49, %v3683_v47  ;;  %v4021_v12 = vmul.f32 %v16181_v34, %v16305_v20 }
 0x544   : > { %20197 = vst [vmem:[#allocation143_spill] sm:$0xff] %v16311_v13  ;;  %v4024_v33 = vmul.f32 %v16181_v34, %v16311_v13 }
 0x545   : > { %20198 = vst [vmem:[#allocation144_spill] sm:$0xff] %v16314_v61  ;;  %v4022_v38 = vmul.f32 %v16181_v34, %v16314_v61 }
 0x546   : > { %v4074_v10 = vpack.c.bf16 %v4024_v33, %v4023_v62 }
 0x547   : > { %v12358_v50 = vpop.f32.mrb[92].mxu0  ;;  %v4073_v0 = vpack.c.bf16 %v4022_v38, %v4021_v12 }
 0x548   : > { %v3696_v48 = vpop.f32.mrb[93].mxu0  ;;  %v16328_v63 = vadd.f32 %v12358_v50, %v16167_v49 }
 0x549   : > { %v16325_v39 = vadd.f32 %v16167_v49, %v3696_v48  ;;  %v12359_v54 = vpop.f32.mrb[94].mxu0  ;;  %12432 = vmatprep.mubr.bf16.mxu1 %v4073_v0 }
 0x54a   : > { %20200 = vst [vmem:[#allocation146_spill] sm:$0xff] %v16328_v63  ;;  %v16331_v9 = vadd.f32 %v12359_v54, %v16167_v49  ;;  %v3699_v18 = vpop.f32.mrb[95].mxu0  ;;  %12433 = vmatmul.mubr.bf16.gmra.mrb[168].mxu1 %v4074_v10  ;;  %v4027_v2 = vmul.f32 %v16181_v34, %v16328_v63 }
 0x54b   : > { %20199 = vst [vmem:[#allocation145_spill] sm:$0xff] %v16325_v39  ;;  %v16334_v51 = vadd.f32 %v16167_v49, %v3699_v18  ;;  %v4025_v59 = vmul.f32 %v16181_v34, %v16325_v39 }
 0x54c   : > { %20201 = vst [vmem:[#allocation147_spill] sm:$0xff] %v16331_v9  ;;  %v4028_v1 = vmul.f32 %v16181_v34, %v16331_v9 }
 0x54d   : > { %20202 = vst [vmem:[#allocation148_spill] sm:$0xff] %v16334_v51  ;;  %v4026_v58 = vmul.f32 %v16181_v34, %v16334_v51 }
 0x54e   : > { %v4076_v16 = vpack.c.bf16 %v4028_v1, %v4027_v2 }
 0x54f   : > { %v12362_v5 = vpop.f32.mrb[96].mxu0  ;;  %v4075_v14 = vpack.c.bf16 %v4026_v58, %v4025_v59 }
 0x550   : > { %v3712_v21 = vpop.f32.mrb[97].mxu0  ;;  %v16348_v36 = vadd.f32 %v12362_v5, %v16167_v49 }
 0x551   : > { %v16345_v19 = vadd.f32 %v16167_v49, %v3712_v21  ;;  %v12363_v6 = vpop.f32.mrb[98].mxu0  ;;  %12436 = vmatprep.mubr.bf16.mxu1 %v4075_v14 }
 0x552   : > { %20204 = vst [vmem:[#allocation150_spill] sm:$0xff] %v16348_v36  ;;  %v16351_v25 = vadd.f32 %v12363_v6, %v16167_v49  ;;  %v3715_v32 = vpop.f32.mrb[99].mxu0  ;;  %12437 = vmatmul.mubr.bf16.gmra.mrb[172].mxu1 %v4076_v16  ;;  %v4031_v33 = vmul.f32 %v16181_v34, %v16348_v36 }
 0x553   : > { %20203 = vst [vmem:[#allocation149_spill] sm:$0xff] %v16345_v19  ;;  %v16354_v42 = vadd.f32 %v16167_v49, %v3715_v32  ;;  %v4029_v3 = vmul.f32 %v16181_v34, %v16345_v19 }
 0x554   : > { %20205 = vst [vmem:[#allocation151_spill] sm:$0xff] %v16351_v25  ;;  %v4032_v15 = vmul.f32 %v16181_v34, %v16351_v25 }
 0x555   : > { %20206 = vst [vmem:[#allocation152_spill] sm:$0xff] %v16354_v42  ;;  %v4030_v47 = vmul.f32 %v16181_v34, %v16354_v42 }
 0x556   : > { %v4078_v50 = vpack.c.bf16 %v4032_v15, %v4031_v33 }
 0x557   : > { %v12366_v12 = vpop.f32.mrb[100].mxu0  ;;  %v4077_v38 = vpack.c.bf16 %v4030_v47, %v4029_v3 }
 0x558   : > { %v3728_v62 = vpop.f32.mrb[101].mxu0  ;;  %v16368_v10 = vadd.f32 %v12366_v12, %v16167_v49 }
 0x559   : > { %v16365_v0 = vadd.f32 %v16167_v49, %v3728_v62  ;;  %v12367_v48 = vpop.f32.mrb[102].mxu0  ;;  %12440 = vmatprep.mubr.bf16.mxu1 %v4077_v38 }
 0x55a   : > { %20208 = vst [vmem:[#allocation154_spill] sm:$0xff] %v16368_v10  ;;  %v16371_v54 = vadd.f32 %v12367_v48, %v16167_v49  ;;  %v3731_v18 = vpop.f32.mrb[103].mxu0  ;;  %12441 = vmatmul.mubr.bf16.gmra.mrb[176].mxu1 %v4078_v50  ;;  %v4035_v5 = vmul.f32 %v16181_v34, %v16368_v10 }
 0x55b   : > { %20207 = vst [vmem:[#allocation153_spill] sm:$0xff] %v16365_v0  ;;  %v16374_v1 = vadd.f32 %v16167_v49, %v3731_v18  ;;  %v4033_v58 = vmul.f32 %v16181_v34, %v16365_v0 }
 0x55c   : > { %20209 = vst [vmem:[#allocation155_spill] sm:$0xff] %v16371_v54  ;;  %v4036_v59 = vmul.f32 %v16181_v34, %v16371_v54 }
 0x55d   : > { %20210 = vst [vmem:[#allocation156_spill] sm:$0xff] %v16374_v1  ;;  %v4034_v2 = vmul.f32 %v16181_v34, %v16374_v1 }
 0x55e   : > { %v4080_v6 = vpack.c.bf16 %v4036_v59, %v4035_v5 }
 0x55f   : > { %v12370_v14 = vpop.f32.mrb[104].mxu0  ;;  %v4079_v21 = vpack.c.bf16 %v4034_v2, %v4033_v58 }
 0x560   : > { %v3744_v16 = vpop.f32.mrb[105].mxu0  ;;  %v16388_v3 = vadd.f32 %v12370_v14, %v16167_v49 }
 0x561   : > { %v16385_v32 = vadd.f32 %v16167_v49, %v3744_v16  ;;  %v12371_v15 = vpop.f32.mrb[106].mxu0  ;;  %12444 = vmatprep.mubr.bf16.mxu1 %v4079_v21 }
 0x562   : > { %20212 = vst [vmem:[#allocation158_spill] sm:$0xff] %v16388_v3  ;;  %v16391_v47 = vadd.f32 %v12371_v15, %v16167_v49  ;;  %v3747_v33 = vpop.f32.mrb[107].mxu0  ;;  %12445 = vmatmul.mubr.bf16.gmra.mrb[180].mxu1 %v4080_v6  ;;  %v4039_v48 = vmul.f32 %v16181_v34, %v16388_v3 }
 0x563   : > { %20211 = vst [vmem:[#allocation157_spill] sm:$0xff] %v16385_v32  ;;  %v16394_v12 = vadd.f32 %v16167_v49, %v3747_v33  ;;  %v4037_v62 = vmul.f32 %v16181_v34, %v16385_v32 }
 0x564   : > { %20213 = vst [vmem:[#allocation159_spill] sm:$0xff] %v16391_v47  ;;  %v4040_v38 = vmul.f32 %v16181_v34, %v16391_v47 }
 0x565   : > { %20214 = vst [vmem:[#allocation160_spill] sm:$0xff] %v16394_v12  ;;  %v4038_v50 = vmul.f32 %v16181_v34, %v16394_v12 }
 0x566   : > { %v4082_v2 = vpack.c.bf16 %v4040_v38, %v4039_v48 }
 0x567   : > { %v12374_v18 = vpop.f32.mrb[108].mxu0  ;;  %v4081_v59 = vpack.c.bf16 %v4038_v50, %v4037_v62 }
 0x568   : > { %v3760_v58 = vpop.f32.mrb[109].mxu0  ;;  %v16408_v21 = vadd.f32 %v12374_v18, %v16167_v49 }
 0x569   : > { %v16405_v5 = vadd.f32 %v16167_v49, %v3760_v58  ;;  %v12375_v14 = vpop.f32.mrb[110].mxu0  ;;  %12448 = vmatprep.mubr.bf16.mxu1 %v4081_v59 }
 0x56a   : > { %20216 = vst [vmem:[#allocation162_spill] sm:$0xff] %v16408_v21  ;;  %v16411_v16 = vadd.f32 %v12375_v14, %v16167_v49  ;;  %v3763_v6 = vpop.f32.mrb[111].mxu0  ;;  %12449 = vmatmul.mubr.bf16.gmra.mrb[184].mxu1 %v4082_v2  ;;  %v4043_v50 = vmul.f32 %v16181_v34, %v16408_v21 }
 0x56b   : > { %20215 = vst [vmem:[#allocation161_spill] sm:$0xff] %v16405_v5  ;;  %v16414_v15 = vadd.f32 %v16167_v49, %v3763_v6  ;;  %v4041_v38 = vmul.f32 %v16181_v34, %v16405_v5 }
 0x56c   : > { %20217 = vst [vmem:[#allocation163_spill] sm:$0xff] %v16411_v16  ;;  %v4044_v33 = vmul.f32 %v16181_v34, %v16411_v16 }
 0x56d   : > { %20218 = vst [vmem:[#allocation164_spill] sm:$0xff] %v16414_v15  ;;  %v4042_v62 = vmul.f32 %v16181_v34, %v16414_v15 }
 0x56e   : > { %v4084_v58 = vpack.c.bf16 %v4044_v33, %v4043_v50 }
 0x56f   : > { %v12378_v48 = vpop.f32.mrb[112].mxu0  ;;  %v4083_v18 = vpack.c.bf16 %v4042_v62, %v4041_v38 }
 0x570   : > { %v3776_v59 = vpop.f32.mrb[113].mxu0  ;;  %v16428_v6 = vadd.f32 %v12378_v48, %v16167_v49 }
 0x571   : > { %v16425_v2 = vadd.f32 %v16167_v49, %v3776_v59  ;;  %v12379_v14 = vpop.f32.mrb[114].mxu0  ;;  %12452 = vmatprep.mubr.bf16.mxu1 %v4083_v18 }
 0x572   : > { %20220 = vst [vmem:[#allocation166_spill] sm:$0xff] %v16428_v6  ;;  %v16431_v16 = vadd.f32 %v12379_v14, %v16167_v49  ;;  %v3779_v5 = vpop.f32.mrb[115].mxu0  ;;  %12453 = vmatmul.mubr.bf16.gmra.mrb[188].mxu1 %v4084_v58  ;;  %v4047_v50 = vmul.f32 %v16181_v34, %v16428_v6 }
 0x573   : > { %20219 = vst [vmem:[#allocation165_spill] sm:$0xff] %v16425_v2  ;;  %v16434_v15 = vadd.f32 %v16167_v49, %v3779_v5  ;;  %v4045_v33 = vmul.f32 %v16181_v34, %v16425_v2 }
 0x574   : > { %20221 = vst [vmem:[#allocation167_spill] sm:$0xff] %v16431_v16  ;;  %v4048_v38 = vmul.f32 %v16181_v34, %v16431_v16 }
 0x575   : > { %20222 = vst [vmem:[#allocation168_spill] sm:$0xff] %v16434_v15  ;;  %v4046_v62 = vmul.f32 %v16181_v34, %v16434_v15 }
 0x576   : > { %v4086_v14 = vpack.c.bf16 %v4048_v38, %v4047_v50 }
 0x577   : > { %v12382_v48 = vpop.f32.mrb[116].mxu0  ;;  %v4085_v18 = vpack.c.bf16 %v4046_v62, %v4045_v33 }
 0x578   : > { %v3792_v59 = vpop.f32.mrb[117].mxu0  ;;  %v16448_v21 = vadd.f32 %v12382_v48, %v16167_v49 }
 0x579   : > { %v16445_v58 = vadd.f32 %v16167_v49, %v3792_v59  ;;  %v12383_v5 = vpop.f32.mrb[118].mxu0  ;;  %12456 = vmatprep.mubr.bf16.mxu1 %v4085_v18 }
 0x57a   : > { %20224 = vst [vmem:[#allocation170_spill] sm:$0xff] %v16448_v21  ;;  %v16451_v47 = vadd.f32 %v12383_v5, %v16167_v49  ;;  %v3795_v3 = vpop.f32.mrb[119].mxu0  ;;  %12457 = vmatmul.mubr.bf16.gmra.mrb[192].mxu1 %v4086_v14  ;;  %v4051_v50 = vmul.f32 %v16181_v34, %v16448_v21 }
 0x57b   : > { %20223 = vst [vmem:[#allocation169_spill] sm:$0xff] %v16445_v58  ;;  %v16454_v12 = vadd.f32 %v16167_v49, %v3795_v3  ;;  %v4049_v38 = vmul.f32 %v16181_v34, %v16445_v58 }
 0x57c   : > { %20225 = vst [vmem:[#allocation171_spill] sm:$0xff] %v16451_v47  ;;  %v4052_v33 = vmul.f32 %v16181_v34, %v16451_v47 }
 0x57d   : > { %20226 = vst [vmem:[#allocation172_spill] sm:$0xff] %v16454_v12  ;;  %v4050_v62 = vmul.f32 %v16181_v34, %v16454_v12 }
 0x57e   : > { %v4088_v5 = vpack.c.bf16 %v4052_v33, %v4051_v50 }
 0x57f   : > { %v12386_v48 = vpop.f32.mrb[120].mxu0  ;;  %v4087_v18 = vpack.c.bf16 %v4050_v62, %v4049_v38 }
 0x580   : > { %v3808_v59 = vpop.f32.mrb[121].mxu0  ;;  %v16468_v32 = vadd.f32 %v12386_v48, %v16167_v49 }
 0x581   : > { %v16465_v14 = vadd.f32 %v16167_v49, %v3808_v59  ;;  %v12387_v3 = vpop.f32.mrb[122].mxu0  ;;  %12460 = vmatprep.mubr.bf16.mxu1 %v4087_v18 }
 0x582   : > { %20228 = vst [vmem:[#allocation174_spill] sm:$0xff] %v16468_v32  ;;  %v16471_v54 = vadd.f32 %v12387_v3, %v16167_v49  ;;  %v3811_v10 = vpop.f32.mrb[123].mxu0  ;;  %12461 = vmatmul.mubr.bf16.gmra.mrb[196].mxu1 %v4088_v5  ;;  %v4055_v50 = vmul.f32 %v16181_v34, %v16468_v32 }
 0x583   : > { %20227 = vst [vmem:[#allocation173_spill] sm:$0xff] %v16465_v14  ;;  %v16474_v47 = vadd.f32 %v16167_v49, %v3811_v10  ;;  %v4053_v33 = vmul.f32 %v16181_v34, %v16465_v14 }
 0x584   : > { %20229 = vst [vmem:[#allocation175_spill] sm:$0xff] %v16471_v54  ;;  %v4056_v38 = vmul.f32 %v16181_v34, %v16471_v54 }
 0x585   : > { %20230 = vst [vmem:[#allocation176_spill] sm:$0xff] %v16474_v47  ;;  %v4054_v62 = vmul.f32 %v16181_v34, %v16474_v47 }
 0x586   : > { %v4090_v3 = vpack.c.bf16 %v4056_v38, %v4055_v50 }
 0x587   : > { %v12390_v48 = vpop.f32.mrb[124].mxu0  ;;  %v4089_v18 = vpack.c.bf16 %v4054_v62, %v4053_v33 }
 0x588   : > { %v3824_v59 = vpop.f32.mrb[125].mxu0  ;;  %v16488_v54 = vadd.f32 %v12390_v48, %v16167_v49 }
 0x589   : > { %v16485_v5 = vadd.f32 %v16167_v49, %v3824_v59  ;;  %v12391_v10 = vpop.f32.mrb[126].mxu0  ;;  %12464 = vmatprep.mubr.bf16.mxu1 %v4089_v18  ;;  %v20235_v59 = vld [vmem:[#allocation89_spill] sm:$0xff] }
 0x58a   : > { %20232 = vst [vmem:[#allocation178_spill] sm:$0xff] %v16488_v54  ;;  %v16491_v14 = vadd.f32 %v12391_v10, %v16167_v49  ;;  %v3827_v21 = vpop.f32.mrb[127].mxu0  ;;  %12465 = vmatmul.mubr.bf16.gmra.mrb[200].mxu1 %v4090_v3  ;;  %v4059_v50 = vmul.f32 %v16181_v34, %v16488_v54  ;;  %v20238_v3 = vld [vmem:[#allocation90_spill] sm:$0xff]  ;;  %v20239_v10 = vld [vmem:[#allocation93_spill] sm:$0xff] }
 0x58b   : > { %20231 = vst [vmem:[#allocation177_spill] sm:$0xff] %v16485_v5  ;;  %v16494_v47 = vadd.f32 %v16167_v49, %v3827_v21  ;;  %v4057_v38 = vmul.f32 %v16181_v34, %v16485_v5  ;;  %v20236_v49 = vld [vmem:[#allocation88_spill] sm:$0xff]  ;;  %v20237_v21 = vld [vmem:[#allocation91_spill] sm:$0xff]  ;;  %v20242_v5 = vld [vmem:[#allocation94_spill] sm:$0xff] }
 0x58c   : > { %20233 = vst [vmem:[#allocation179_spill] sm:$0xff] %v16491_v14  ;;  %v4060_v33 = vmul.f32 %v16181_v34, %v16491_v14  ;;  %v20240_v14 = vld [vmem:[#allocation92_spill] sm:$0xff] }
 0x58d   : > { %20234 = vst [vmem:[#allocation180_spill] sm:$0xff] %v16494_v47  ;;  %v4058_v62 = vmul.f32 %v16181_v34, %v16494_v47  ;;  %v20241_v47 = vld [vmem:[#allocation95_spill] sm:$0xff]  ;;  %v20243_v34 = vld [vmem:[#allocation97_spill] sm:$0xff] }
 0x58e   : > { %v4092_v18 = vpack.c.bf16 %v4060_v33, %v4059_v50  ;;  %v20244_v33 = vld [vmem:[#allocation96_spill] sm:$0xff]  ;;  %v20247_v50 = vld [vmem:[#allocation101_spill] sm:$0xff] }
 0x58f   : > { %v4091_v48 = vpack.c.bf16 %v4058_v62, %v4057_v38  ;;  %v20245_v38 = vld [vmem:[#allocation99_spill] sm:$0xff]  ;;  %v20246_v62 = vld [vmem:[#allocation98_spill] sm:$0xff] }
 0x591   : > { %12468 = vmatprep.mubr.bf16.mxu1 %v4091_v48  ;;  %v20248_v48 = vld [vmem:[#allocation100_spill] sm:$0xff] }
 0x592   : > { %12469 = vmatmul.mubr.bf16.gmra.mrb[204].mxu1 %v4092_v18  ;;  %v20249_v18 = vld [vmem:[#allocation103_spill] sm:$0xff] }
 0x593   : > { %12488 = vmatprep.mubr.bf16.mxu1 %v20235_v59  ;;  %v20250_v59 = vld [vmem:[#allocation102_spill] sm:$0xff] }
 0x59a   : > { %12489 = vmatmul.mubr.bf16.vlgmr.msra.gmra.mrb[144].mxu1 %v20236_v49  ;;  %v20254_v49 = vld [vmem:[#allocation106_spill] sm:$0xff] }
 0x59b   : > { %12492 = vmatprep.mubr.bf16.mxu1 %v20237_v21  ;;  %v20255_v21 = vld [vmem:[#allocation109_spill] sm:$0xff] }
 0x5a2   : > { %12493 = vmatmul.mubr.bf16.gmra.mrb[148].mxu1 %v20238_v3  ;;  %v20256_v3 = vld [vmem:[#allocation108_spill] sm:$0xff] }
 0x5a3   : > { %12496 = vmatprep.mubr.bf16.mxu1 %v20239_v10  ;;  %v20257_v10 = vld [vmem:[#allocation111_spill] sm:$0xff] }
 0x5aa   : > { %12497 = vmatmul.mubr.bf16.gmra.mrb[152].mxu1 %v20240_v14  ;;  %v20251_v14 = vld [vmem:[#allocation105_spill] sm:$0xff] }
 0x5ab   : > { %12500 = vmatprep.mubr.bf16.mxu1 %v20241_v47  ;;  %v20252_v47 = vld [vmem:[#allocation104_spill] sm:$0xff] }
 0x5b2   : > { %12501 = vmatmul.mubr.bf16.gmra.mrb[156].mxu1 %v20242_v5  ;;  %v20253_v5 = vld [vmem:[#allocation107_spill] sm:$0xff] }
 0x5b3   : > { %12504 = vmatprep.mubr.bf16.mxu1 %v20243_v34  ;;  %v20258_v34 = vld [vmem:[#allocation110_spill] sm:$0xff] }
 0x5ba   : > { %12505 = vmatmul.mubr.bf16.gmra.mrb[160].mxu1 %v20244_v33  ;;  %v20259_v33 = vld [vmem:[#allocation113_spill] sm:$0xff] }
 0x5bb   : > { %12508 = vmatprep.mubr.bf16.mxu1 %v20245_v38  ;;  %v20260_v38 = vld [vmem:[#allocation112_spill] sm:$0xff] }
 0x5c2   : > { %12509 = vmatmul.mubr.bf16.gmra.mrb[164].mxu1 %v20246_v62  ;;  %v20261_v62 = vld [vmem:[#allocation115_spill] sm:$0xff] }
 0x5c3   : > { %12512 = vmatprep.mubr.bf16.mxu1 %v20247_v50  ;;  %v20262_v50 = vld [vmem:[#allocation114_spill] sm:$0xff] }
 0x5ca   : > { %12513 = vmatmul.mubr.bf16.gmra.mrb[168].mxu1 %v20248_v48  ;;  %v20263_v48 = vld [vmem:[#allocation116_spill] sm:$0xff] }
 0x5cb   : > { %12516 = vmatprep.mubr.bf16.mxu1 %v20249_v18 }
 0x5d2   : > { %12517 = vmatmul.mubr.bf16.gmra.mrb[172].mxu1 %v20250_v59 }
 0x5d3   : > { %12520 = vmatprep.mubr.bf16.mxu1 %v20251_v14 }
 0x5da   : > { %12521 = vmatmul.mubr.bf16.gmra.mrb[176].mxu1 %v20252_v47 }
 0x5db   : > { %12524 = vmatprep.mubr.bf16.mxu1 %v20253_v5 }
 0x5e2   : > { %12525 = vmatmul.mubr.bf16.gmra.mrb[180].mxu1 %v20254_v49 }
 0x5e3   : > { %12528 = vmatprep.mubr.bf16.mxu1 %v20255_v21 }
 0x5ea   : > { %12529 = vmatmul.mubr.bf16.gmra.mrb[184].mxu1 %v20256_v3 }
 0x5eb   : > { %12532 = vmatprep.mubr.bf16.mxu1 %v20257_v10 }
 0x5f2   : > { %12533 = vmatmul.mubr.bf16.gmra.mrb[188].mxu1 %v20258_v34 }
 0x5f3   : > { %12536 = vmatprep.mubr.bf16.mxu1 %v20259_v33 }
 0x5fa   : > { %12537 = vmatmul.mubr.bf16.gmra.mrb[192].mxu1 %v20260_v38 }
 0x5fb   : > { %12540 = vmatprep.mubr.bf16.mxu1 %v20261_v62 }
 0x602   : > { %12541 = vmatmul.mubr.bf16.gmra.mrb[196].mxu1 %v20262_v50 }
 0x603   : > { %12544 = vmatprep.mubr.bf16.mxu1 %v20263_v48 }
 0x60a   : > { %12545 = vmatmul.mubr.bf16.gmra.mrb[200].mxu1 %v15988_v43 }
 0x60b   : > { %12548 = vmatprep.mubr.bf16.mxu1 %v16010_v53 }
 0x612   : > { %12549 = vmatmul.mubr.bf16.gmra.mrb[204].mxu1 %v16006_v46 }
 0x66d   : > { %v12490_v18 = vpop.f32.mrb[144].mxu1 }
 0x66e   : > { %v4512_v59 = vpop.f32.mrb[145].mxu1  ;;  %vm4769_vm0 = vcmp.gt.f32.partialorder %v12490_v18, 0.0  ;;  %v4833_v14 = vmul.f32 0.01, %v12490_v18 }
 0x66f   : > { %v12491_v47 = vpop.f32.mrb[146].mxu1  ;;  %vm4767_vm1 = vcmp.gt.f32.partialorder %v4512_v59, 0.0  ;;  %v4831_v5 = vmul.f32 0.01, %v4512_v59 }
 0x670   : > { %v4515_v49 = vpop.f32.mrb[147].mxu1  ;;  %v16536_v21 = vsel %vm4769_vm0, %v12490_v18, %v4833_v14  ;;  %v4834_v3 = vmul.f32 0.01, %v12491_v47  ;;  %vm4770_vm2 = vcmp.gt.f32.partialorder %v12491_v47, 0.0 }
 0x671   : > { %20264 = vst [vmem:[#allocation89_spill] sm:$0xff] %v16536_v21  ;;  %4963 = vmax.xlane.f32.xlu1 %v16536_v21  ;;  %v16539_v10 = vsel %vm4767_vm1, %v4512_v59, %v4831_v5  ;;  %v4832_v43 = vmul.f32 0.01, %v4515_v49  ;;  %vm4768_vm3 = vcmp.gt.f32.partialorder %v4515_v49, 0.0 }
 0x672   : > { %20265 = vst [vmem:[#allocation88_spill] sm:$0xff] %v16539_v10  ;;  %4959 = vmax.xlane.f32.xlu0 %v16539_v10  ;;  %v16542_v53 = vsel %vm4770_vm2, %v12491_v47, %v4834_v3 }
 0x673   : > { %20266 = vst [vmem:[#allocation91_spill] sm:$0xff] %v16542_v53  ;;  %v16545_v34 = vsel %vm4768_vm3, %v4515_v49, %v4832_v43 }
 0x674   : > { %20267 = vst [vmem:[#allocation90_spill] sm:$0xff] %v16545_v34 }
 0x675   : > { %4965 = vmax.xlane.f32.xlu1 %v16542_v53  ;;  %v12494_v46 = vpop.f32.mrb[148].mxu1 }
 0x676   : > { %4961 = vmax.xlane.f32.xlu0 %v16545_v34  ;;  %v4528_v33 = vpop.f32.mrb[149].mxu1  ;;  %vm4773_vm4 = vcmp.gt.f32.partialorder %v12494_v46, 0.0  ;;  %v4837_v38 = vmul.f32 0.01, %v12494_v46 }
 0x677   : > { %v12495_v62 = vpop.f32.mrb[150].mxu1  ;;  %v4835_v59 = vmul.f32 0.01, %v4528_v33  ;;  %vm4771_vm6 = vcmp.gt.f32.partialorder %v4528_v33, 0.0 }
 0x678   : > { %v4531_v50 = vpop.f32.mrb[151].mxu1  ;;  %v16548_v48 = vsel %vm4773_vm4, %v12494_v46, %v4837_v38  ;;  %vm4774_vm5 = vcmp.gt.f32.partialorder %v12495_v62, 0.0  ;;  %v4838_v18 = vmul.f32 0.01, %v12495_v62 }
 0x679   : > { %20268 = vst [vmem:[#allocation93_spill] sm:$0xff] %v16548_v48  ;;  %v4836_v47 = vmul.f32 0.01, %v4531_v50  ;;  %vm4772_vm7 = vcmp.gt.f32.partialorder %v4531_v50, 0.0  ;;  %v16554_v49 = vsel %vm4771_vm6, %v4528_v33, %v4835_v59 }
 0x67a   : > { %4971 = vmax.xlane.f32.xlu0 %v16548_v48  ;;  %v16551_v14 = vsel %vm4774_vm5, %v12495_v62, %v4838_v18  ;;  %20270 = vst [vmem:[#allocation95_spill] sm:$0xff] %v16554_v49 }
 0x67b   : > { %20269 = vst [vmem:[#allocation92_spill] sm:$0xff] %v16551_v14  ;;  %4973 = vmax.xlane.f32.xlu1 %v16551_v14  ;;  %v16557_v43 = vsel %vm4772_vm7, %v4531_v50, %v4836_v47 }
 0x67c   : > { %20271 = vst [vmem:[#allocation94_spill] sm:$0xff] %v16557_v43 }
 0x67d   : > { %v12498_v5 = vpop.f32.mrb[152].mxu1 }
 0x67e   : > { %4967 = vmax.xlane.f32.xlu0 %v16554_v49  ;;  %v4544_v3 = vpop.f32.mrb[153].mxu1  ;;  %vm4777_vm8 = vcmp.gt.f32.partialorder %v12498_v5, 0.0  ;;  %v4841_v46 = vmul.f32 0.01, %v12498_v5 }
 0x67f   : > { %4969 = vmax.xlane.f32.xlu1 %v16557_v43  ;;  %v12499_v38 = vpop.f32.mrb[154].mxu1  ;;  %v4839_v32 = vmul.f32 0.01, %v4544_v3  ;;  %vm4775_vm10 = vcmp.gt.f32.partialorder %v4544_v3, 0.0 }
 0x680   : > { %v4547_v62 = vpop.f32.mrb[155].mxu1  ;;  %v16560_v18 = vsel %vm4777_vm8, %v12498_v5, %v4841_v46  ;;  %vm4778_vm9 = vcmp.gt.f32.partialorder %v12499_v38, 0.0  ;;  %v4842_v54 = vmul.f32 0.01, %v12499_v38 }
 0x681   : > { %20272 = vst [vmem:[#allocation97_spill] sm:$0xff] %v16560_v18  ;;  %v4840_v59 = vmul.f32 0.01, %v4547_v62  ;;  %vm4776_vm11 = vcmp.gt.f32.partialorder %v4547_v62, 0.0  ;;  %v16566_v47 = vsel %vm4775_vm10, %v4544_v3, %v4839_v32 }
 0x682   : > { %4979 = vmax.xlane.f32.xlu0 %v16560_v18  ;;  %v16563_v33 = vsel %vm4778_vm9, %v12499_v38, %v4842_v54  ;;  %20274 = vst [vmem:[#allocation99_spill] sm:$0xff] %v16566_v47 }
 0x683   : > { %20273 = vst [vmem:[#allocation96_spill] sm:$0xff] %v16563_v33  ;;  %4981 = vmax.xlane.f32.xlu1 %v16563_v33  ;;  %v16569_v5 = vsel %vm4776_vm11, %v4547_v62, %v4840_v59 }
 0x684   : > { %20275 = vst [vmem:[#allocation98_spill] sm:$0xff] %v16569_v5 }
 0x685   : > { %v12502_v50 = vpop.f32.mrb[156].mxu1 }
 0x686   : > { %4975 = vmax.xlane.f32.xlu0 %v16566_v47  ;;  %v4560_v1 = vpop.f32.mrb[157].mxu1  ;;  %vm4781_vm12 = vcmp.gt.f32.partialorder %v12502_v50, 0.0  ;;  %v4845_v46 = vmul.f32 0.01, %v12502_v50 }
 0x687   : > { %4977 = vmax.xlane.f32.xlu1 %v16569_v5  ;;  %v12503_v0 = vpop.f32.mrb[158].mxu1  ;;  %v4843_v58 = vmul.f32 0.01, %v4560_v1  ;;  %vm4779_vm14 = vcmp.gt.f32.partialorder %v4560_v1, 0.0 }
 0x688   : > { %v4563_v54 = vpop.f32.mrb[159].mxu1  ;;  %v16572_v38 = vsel %vm4781_vm12, %v12502_v50, %v4845_v46  ;;  %vm4782_vm13 = vcmp.gt.f32.partialorder %v12503_v0, 0.0  ;;  %v4846_v12 = vmul.f32 0.01, %v12503_v0 }
 0x689   : > { %20276 = vst [vmem:[#allocation101_spill] sm:$0xff] %v16572_v38  ;;  %v4844_v3 = vmul.f32 0.01, %v4563_v54  ;;  %vm4780_vm15 = vcmp.gt.f32.partialorder %v4563_v54, 0.0  ;;  %v16578_v59 = vsel %vm4779_vm14, %v4560_v1, %v4843_v58 }
 0x68a   : > { %4987 = vmax.xlane.f32.xlu0 %v16572_v38  ;;  %v16575_v32 = vsel %vm4782_vm13, %v12503_v0, %v4846_v12  ;;  %20278 = vst [vmem:[#allocation103_spill] sm:$0xff] %v16578_v59 }
 0x68b   : > { %20277 = vst [vmem:[#allocation100_spill] sm:$0xff] %v16575_v32  ;;  %4989 = vmax.xlane.f32.xlu1 %v16575_v32  ;;  %v16581_v50 = vsel %vm4780_vm15, %v4563_v54, %v4844_v3 }
 0x68c   : > { %20279 = vst [vmem:[#allocation102_spill] sm:$0xff] %v16581_v50 }
 0x68d   : > { %v12506_v62 = vpop.f32.mrb[160].mxu1 }
 0x68e   : > { %4983 = vmax.xlane.f32.xlu0 %v16578_v59  ;;  %v4576_v25 = vpop.f32.mrb[161].mxu1  ;;  %vm4785_vm0 = vcmp.gt.f32.partialorder %v12506_v62, 0.0  ;;  %v4849_v46 = vmul.f32 0.01, %v12506_v62 }
 0x68f   : > { %4985 = vmax.xlane.f32.xlu1 %v16581_v50  ;;  %v12507_v36 = vpop.f32.mrb[162].mxu1  ;;  %v4847_v6 = vmul.f32 0.01, %v4576_v25  ;;  %vm4783_vm2 = vcmp.gt.f32.partialorder %v4576_v25, 0.0 }
 0x690   : > { %v4579_v0 = vpop.f32.mrb[163].mxu1  ;;  %v16584_v12 = vsel %vm4785_vm0, %v12506_v62, %v4849_v46  ;;  %vm4786_vm1 = vcmp.gt.f32.partialorder %v12507_v36, 0.0  ;;  %v4850_v16 = vmul.f32 0.01, %v12507_v36 }
 0x691   : > { %20280 = vst [vmem:[#allocation105_spill] sm:$0xff] %v16584_v12  ;;  %v4848_v58 = vmul.f32 0.01, %v4579_v0  ;;  %vm4784_vm3 = vcmp.gt.f32.partialorder %v4579_v0, 0.0  ;;  %v16590_v3 = vsel %vm4783_vm2, %v4576_v25, %v4847_v6 }
 0x692   : > { %4995 = vmax.xlane.f32.xlu0 %v16584_v12  ;;  %v16587_v1 = vsel %vm4786_vm1, %v12507_v36, %v4850_v16  ;;  %20282 = vst [vmem:[#allocation107_spill] sm:$0xff] %v16590_v3 }
 0x693   : > { %20281 = vst [vmem:[#allocation104_spill] sm:$0xff] %v16587_v1  ;;  %4997 = vmax.xlane.f32.xlu1 %v16587_v1  ;;  %v16593_v62 = vsel %vm4784_vm3, %v4579_v0, %v4848_v58 }
 0x694   : > { %20283 = vst [vmem:[#allocation106_spill] sm:$0xff] %v16593_v62 }
 0x695   : > { %v12510_v54 = vpop.f32.mrb[164].mxu1 }
 0x696   : > { %4991 = vmax.xlane.f32.xlu0 %v16590_v3  ;;  %v4592_v42 = vpop.f32.mrb[165].mxu1  ;;  %vm4789_vm4 = vcmp.gt.f32.partialorder %v12510_v54, 0.0  ;;  %v4853_v46 = vmul.f32 0.01, %v12510_v54 }
 0x697   : > { %4993 = vmax.xlane.f32.xlu1 %v16593_v62  ;;  %v12511_v19 = vpop.f32.mrb[166].mxu1  ;;  %v4851_v2 = vmul.f32 0.01, %v4592_v42  ;;  %vm4787_vm6 = vcmp.gt.f32.partialorder %v4592_v42, 0.0 }
 0x698   : > { %v4595_v36 = vpop.f32.mrb[167].mxu1  ;;  %v16596_v16 = vsel %vm4789_vm4, %v12510_v54, %v4853_v46  ;;  %vm4790_vm5 = vcmp.gt.f32.partialorder %v12511_v19, 0.0  ;;  %v4854_v15 = vmul.f32 0.01, %v12511_v19 }
 0x699   : > { %20284 = vst [vmem:[#allocation109_spill] sm:$0xff] %v16596_v16  ;;  %v4852_v6 = vmul.f32 0.01, %v4595_v36  ;;  %vm4788_vm7 = vcmp.gt.f32.partialorder %v4595_v36, 0.0  ;;  %v16602_v58 = vsel %vm4787_vm6, %v4592_v42, %v4851_v2 }
 0x69a   : > { %5003 = vmax.xlane.f32.xlu0 %v16596_v16  ;;  %v16599_v25 = vsel %vm4790_vm5, %v12511_v19, %v4854_v15  ;;  %20286 = vst [vmem:[#allocation111_spill] sm:$0xff] %v16602_v58 }
 0x69b   : > { %20285 = vst [vmem:[#allocation108_spill] sm:$0xff] %v16599_v25  ;;  %5005 = vmax.xlane.f32.xlu1 %v16599_v25  ;;  %v16605_v54 = vsel %vm4788_vm7, %v4595_v36, %v4852_v6 }
 0x69c   : > { %20287 = vst [vmem:[#allocation110_spill] sm:$0xff] %v16605_v54 }
 0x69d   : > { %v12514_v0 = vpop.f32.mrb[168].mxu1 }
 0x69e   : > { %4999 = vmax.xlane.f32.xlu0 %v16602_v58  ;;  %v4608_v52 = vpop.f32.mrb[169].mxu1  ;;  %vm4793_vm8 = vcmp.gt.f32.partialorder %v12514_v0, 0.0  ;;  %v4857_v46 = vmul.f32 0.01, %v12514_v0 }
 0x69f   : > { %5001 = vmax.xlane.f32.xlu1 %v16605_v54  ;;  %v12515_v23 = vpop.f32.mrb[170].mxu1  ;;  %v4855_v63 = vmul.f32 0.01, %v4608_v52  ;;  %vm4791_vm10 = vcmp.gt.f32.partialorder %v4608_v52, 0.0 }
 0x6a0   : > { %v4611_v19 = vpop.f32.mrb[171].mxu1  ;;  %v16608_v15 = vsel %vm4793_vm8, %v12514_v0, %v4857_v46  ;;  %vm4794_vm9 = vcmp.gt.f32.partialorder %v12515_v23, 0.0  ;;  %v4858_v9 = vmul.f32 0.01, %v12515_v23 }
 0x6a1   : > { %20288 = vst [vmem:[#allocation113_spill] sm:$0xff] %v16608_v15  ;;  %v4856_v2 = vmul.f32 0.01, %v4611_v19  ;;  %vm4792_vm11 = vcmp.gt.f32.partialorder %v4611_v19, 0.0  ;;  %v16614_v6 = vsel %vm4791_vm10, %v4608_v52, %v4855_v63 }
 0x6a2   : > { %5011 = vmax.xlane.f32.xlu0 %v16608_v15  ;;  %v16611_v42 = vsel %vm4794_vm9, %v12515_v23, %v4858_v9  ;;  %20290 = vst [vmem:[#allocation115_spill] sm:$0xff] %v16614_v6 }
 0x6a3   : > { %20289 = vst [vmem:[#allocation112_spill] sm:$0xff] %v16611_v42  ;;  %5013 = vmax.xlane.f32.xlu1 %v16611_v42  ;;  %v16617_v0 = vsel %vm4792_vm11, %v4611_v19, %v4856_v2 }
 0x6a4   : > { %20291 = vst [vmem:[#allocation114_spill] sm:$0xff] %v16617_v0 }
 0x6a5   : > { %v12518_v36 = vpop.f32.mrb[172].mxu1 }
 0x6a6   : > { %5007 = vmax.xlane.f32.xlu0 %v16614_v6  ;;  %v4624_v35 = vpop.f32.mrb[173].mxu1  ;;  %vm4797_vm12 = vcmp.gt.f32.partialorder %v12518_v36, 0.0  ;;  %v4861_v46 = vmul.f32 0.01, %v12518_v36 }
 0x6a7   : > { %5009 = vmax.xlane.f32.xlu1 %v16617_v0  ;;  %v12519_v57 = vpop.f32.mrb[174].mxu1  ;;  %v4859_v39 = vmul.f32 0.01, %v4624_v35  ;;  %vm4795_vm14 = vcmp.gt.f32.partialorder %v4624_v35, 0.0 }
 0x6a8   : > { %v4627_v23 = vpop.f32.mrb[175].mxu1  ;;  %v16620_v9 = vsel %vm4797_vm12, %v12518_v36, %v4861_v46  ;;  %vm4798_vm13 = vcmp.gt.f32.partialorder %v12519_v57, 0.0  ;;  %v4862_v51 = vmul.f32 0.01, %v12519_v57 }
 0x6a9   : > { %20292 = vst [vmem:[#allocation116_spill] sm:$0xff] %v16620_v9  ;;  %v4860_v63 = vmul.f32 0.01, %v4627_v23  ;;  %vm4796_vm15 = vcmp.gt.f32.partialorder %v4627_v23, 0.0  ;;  %v16626_v2 = vsel %vm4795_vm14, %v4624_v35, %v4859_v39 }
 0x6aa   : > { %5019 = vmax.xlane.f32.xlu0 %v16620_v9  ;;  %v16623_v52 = vsel %vm4798_vm13, %v12519_v57, %v4862_v51  ;;  %20294 = vst [vmem:[#allocation182_spill] sm:$0xff] %v16626_v2 }
 0x6ab   : > { %20293 = vst [vmem:[#allocation181_spill] sm:$0xff] %v16623_v52  ;;  %5021 = vmax.xlane.f32.xlu1 %v16623_v52  ;;  %v16629_v36 = vsel %vm4796_vm15, %v4627_v23, %v4860_v63 }
 0x6ac   : > { %20295 = vst [vmem:[#allocation183_spill] sm:$0xff] %v16629_v36 }
 0x6ad   : > { %v12522_v19 = vpop.f32.mrb[176].mxu1 }
 0x6ae   : > { %5015 = vmax.xlane.f32.xlu0 %v16626_v2  ;;  %v4640_v28 = vpop.f32.mrb[177].mxu1  ;;  %vm4801_vm0 = vcmp.gt.f32.partialorder %v12522_v19, 0.0  ;;  %v4865_v46 = vmul.f32 0.01, %v12522_v19 }
 0x6af   : > { %5017 = vmax.xlane.f32.xlu1 %v16629_v36  ;;  %v12523_v29 = vpop.f32.mrb[178].mxu1  ;;  %v4863_v37 = vmul.f32 0.01, %v4640_v28  ;;  %vm4799_vm2 = vcmp.gt.f32.partialorder %v4640_v28, 0.0 }
 0x6b0   : > { %v4866_v57 = vmul.f32 0.01, %v12523_v29  ;;  %v4643_v51 = vpop.f32.mrb[179].mxu1  ;;  %v16632_v13 = vsel %vm4801_vm0, %v12522_v19, %v4865_v46  ;;  %vm4802_vm1 = vcmp.gt.f32.partialorder %v12523_v29, 0.0 }
 0x6b1   : > { %20296 = vst [vmem:[#allocation184_spill] sm:$0xff] %v16632_v13  ;;  %v4864_v7 = vmul.f32 0.01, %v4643_v51  ;;  %vm4800_vm3 = vcmp.gt.f32.partialorder %v4643_v51, 0.0  ;;  %v16638_v23 = vsel %vm4799_vm2, %v4640_v28, %v4863_v37 }
 0x6b2   : > { %5027 = vmax.xlane.f32.xlu0 %v16632_v13  ;;  %v16635_v35 = vsel %vm4802_vm1, %v12523_v29, %v4866_v57  ;;  %20298 = vst [vmem:[#allocation186_spill] sm:$0xff] %v16638_v23 }
 0x6b3   : > { %20297 = vst [vmem:[#allocation185_spill] sm:$0xff] %v16635_v35  ;;  %5029 = vmax.xlane.f32.xlu1 %v16635_v35  ;;  %v16641_v19 = vsel %vm4800_vm3, %v4643_v51, %v4864_v7 }
 0x6b4   : > { %20299 = vst [vmem:[#allocation187_spill] sm:$0xff] %v16641_v19 }
 0x6b5   : > { %v12526_v39 = vpop.f32.mrb[180].mxu1 }
 0x6b6   : > { %v4869_v63 = vmul.f32 0.01, %v12526_v39  ;;  %5023 = vmax.xlane.f32.xlu0 %v16638_v23  ;;  %v4656_v22 = vpop.f32.mrb[181].mxu1  ;;  %vm4805_vm4 = vcmp.gt.f32.partialorder %v12526_v39, 0.0 }
 0x6b7   : > { %5025 = vmax.xlane.f32.xlu1 %v16641_v19  ;;  %v12527_v46 = vpop.f32.mrb[182].mxu1  ;;  %v4867_v20 = vmul.f32 0.01, %v4656_v22  ;;  %vm4803_vm6 = vcmp.gt.f32.partialorder %v4656_v22, 0.0 }
 0x6b8   : > { %v4870_v61 = vmul.f32 0.01, %v12527_v46  ;;  %v4659_v29 = vpop.f32.mrb[183].mxu1  ;;  %v16644_v57 = vsel %vm4805_vm4, %v12526_v39, %v4869_v63  ;;  %vm4806_vm5 = vcmp.gt.f32.partialorder %v12527_v46, 0.0 }
 0x6b9   : > { %20300 = vst [vmem:[#allocation188_spill] sm:$0xff] %v16644_v57  ;;  %v4868_v17 = vmul.f32 0.01, %v4659_v29  ;;  %vm4804_vm7 = vcmp.gt.f32.partialorder %v4659_v29, 0.0  ;;  %v16650_v37 = vsel %vm4803_vm6, %v4656_v22, %v4867_v20 }
 0x6ba   : > { %5035 = vmax.xlane.f32.xlu0 %v16644_v57  ;;  %v16647_v28 = vsel %vm4806_vm5, %v12527_v46, %v4870_v61  ;;  %20302 = vst [vmem:[#allocation190_spill] sm:$0xff] %v16650_v37 }
 0x6bb   : > { %20301 = vst [vmem:[#allocation189_spill] sm:$0xff] %v16647_v28  ;;  %5037 = vmax.xlane.f32.xlu1 %v16647_v28  ;;  %v16653_v39 = vsel %vm4804_vm7, %v4659_v29, %v4868_v17 }
 0x6bc   : > { %20303 = vst [vmem:[#allocation191_spill] sm:$0xff] %v16653_v39 }
 0x6bd   : > { %v12530_v7 = vpop.f32.mrb[184].mxu1 }
 0x6be   : > { %v4873_v51 = vmul.f32 0.01, %v12530_v7  ;;  %5031 = vmax.xlane.f32.xlu0 %v16650_v37  ;;  %v4672_v60 = vpop.f32.mrb[185].mxu1  ;;  %vm4809_vm8 = vcmp.gt.f32.partialorder %v12530_v7, 0.0 }
 0x6bf   : > { %5033 = vmax.xlane.f32.xlu1 %v16653_v39  ;;  %v12531_v63 = vpop.f32.mrb[186].mxu1  ;;  %v4871_v24 = vmul.f32 0.01, %v4672_v60  ;;  %vm4807_vm10 = vcmp.gt.f32.partialorder %v4672_v60, 0.0 }
 0x6c0   : > { %v4874_v4 = vmul.f32 0.01, %v12531_v63  ;;  %v4675_v61 = vpop.f32.mrb[187].mxu1  ;;  %v16656_v46 = vsel %vm4809_vm8, %v12530_v7, %v4873_v51  ;;  %vm4810_vm9 = vcmp.gt.f32.partialorder %v12531_v63, 0.0 }
 0x6c1   : > { %20304 = vst [vmem:[#allocation192_spill] sm:$0xff] %v16656_v46  ;;  %v4872_v44 = vmul.f32 0.01, %v4675_v61  ;;  %vm4808_vm11 = vcmp.gt.f32.partialorder %v4675_v61, 0.0  ;;  %v16662_v20 = vsel %vm4807_vm10, %v4672_v60, %v4871_v24 }
 0x6c2   : > { %5043 = vmax.xlane.f32.xlu0 %v16656_v46  ;;  %v16659_v22 = vsel %vm4810_vm9, %v12531_v63, %v4874_v4  ;;  %20306 = vst [vmem:[#allocation194_spill] sm:$0xff] %v16662_v20 }
 0x6c3   : > { %20305 = vst [vmem:[#allocation193_spill] sm:$0xff] %v16659_v22  ;;  %5045 = vmax.xlane.f32.xlu1 %v16659_v22  ;;  %v16665_v7 = vsel %vm4808_vm11, %v4675_v61, %v4872_v44 }
 0x6c4   : > { %20307 = vst [vmem:[#allocation195_spill] sm:$0xff] %v16665_v7 }
 0x6c5   : > { %v12534_v17 = vpop.f32.mrb[188].mxu1 }
 0x6c6   : > { %v4877_v29 = vmul.f32 0.01, %v12534_v17  ;;  %5039 = vmax.xlane.f32.xlu0 %v16662_v20  ;;  %v4688_v27 = vpop.f32.mrb[189].mxu1  ;;  %vm4813_vm12 = vcmp.gt.f32.partialorder %v12534_v17, 0.0 }
 0x6c7   : > { %5041 = vmax.xlane.f32.xlu1 %v16665_v7  ;;  %v12535_v51 = vpop.f32.mrb[190].mxu1  ;;  %v4875_v41 = vmul.f32 0.01, %v4688_v27  ;;  %vm4811_vm14 = vcmp.gt.f32.partialorder %v4688_v27, 0.0 }
 0x6c8   : > { %v4878_v55 = vmul.f32 0.01, %v12535_v51  ;;  %v4691_v4 = vpop.f32.mrb[191].mxu1  ;;  %v16668_v63 = vsel %vm4813_vm12, %v12534_v17, %v4877_v29  ;;  %vm4814_vm13 = vcmp.gt.f32.partialorder %v12535_v51, 0.0 }
 0x6c9   : > { %20308 = vst [vmem:[#allocation196_spill] sm:$0xff] %v16668_v63  ;;  %v4876_v30 = vmul.f32 0.01, %v4691_v4  ;;  %vm4812_vm15 = vcmp.gt.f32.partialorder %v4691_v4, 0.0  ;;  %v16674_v24 = vsel %vm4811_vm14, %v4688_v27, %v4875_v41 }
 0x6ca   : > { %5051 = vmax.xlane.f32.xlu0 %v16668_v63  ;;  %v16671_v60 = vsel %vm4814_vm13, %v12535_v51, %v4878_v55  ;;  %20310 = vst [vmem:[#allocation198_spill] sm:$0xff] %v16674_v24 }
 0x6cb   : > { %20309 = vst [vmem:[#allocation197_spill] sm:$0xff] %v16671_v60  ;;  %5053 = vmax.xlane.f32.xlu1 %v16671_v60  ;;  %v16677_v17 = vsel %vm4812_vm15, %v4691_v4, %v4876_v30 }
 0x6cc   : > { %20311 = vst [vmem:[#allocation199_spill] sm:$0xff] %v16677_v17 }
 0x6cd   : > { %v12538_v44 = vpop.f32.mrb[192].mxu1 }
 0x6ce   : > { %v4881_v61 = vmul.f32 0.01, %v12538_v44  ;;  %5047 = vmax.xlane.f32.xlu0 %v16674_v24  ;;  %v4704_v40 = vpop.f32.mrb[193].mxu1  ;;  %vm4817_vm0 = vcmp.gt.f32.partialorder %v12538_v44, 0.0 }
 0x6cf   : > { %5049 = vmax.xlane.f32.xlu1 %v16677_v17  ;;  %v12539_v29 = vpop.f32.mrb[194].mxu1  ;;  %v4879_v60 = vmul.f32 0.01, %v4704_v40  ;;  %vm4815_vm2 = vcmp.gt.f32.partialorder %v4704_v40, 0.0 }
 0x6d0   : > { %v4882_v31 = vmul.f32 0.01, %v12539_v29  ;;  %v4707_v55 = vpop.f32.mrb[195].mxu1  ;;  %v16680_v51 = vsel %vm4817_vm0, %v12538_v44, %v4881_v61  ;;  %vm4818_vm1 = vcmp.gt.f32.partialorder %v12539_v29, 0.0 }
 0x6d1   : > { %20312 = vst [vmem:[#allocation200_spill] sm:$0xff] %v16680_v51  ;;  %v4880_v45 = vmul.f32 0.01, %v4707_v55  ;;  %vm4816_vm3 = vcmp.gt.f32.partialorder %v4707_v55, 0.0  ;;  %v16686_v41 = vsel %vm4815_vm2, %v4704_v40, %v4879_v60 }
 0x6d2   : > { %5059 = vmax.xlane.f32.xlu0 %v16680_v51  ;;  %v16683_v27 = vsel %vm4818_vm1, %v12539_v29, %v4882_v31  ;;  %20314 = vst [vmem:[#allocation202_spill] sm:$0xff] %v16686_v41 }
 0x6d3   : > { %20313 = vst [vmem:[#allocation201_spill] sm:$0xff] %v16683_v27  ;;  %5061 = vmax.xlane.f32.xlu1 %v16683_v27  ;;  %v16689_v44 = vsel %vm4816_vm3, %v4707_v55, %v4880_v45 }
 0x6d4   : > { %20315 = vst [vmem:[#allocation203_spill] sm:$0xff] %v16689_v44 }
 0x6d5   : > { %v12542_v30 = vpop.f32.mrb[196].mxu1 }
 0x6d6   : > { %v4885_v4 = vmul.f32 0.01, %v12542_v30  ;;  %5055 = vmax.xlane.f32.xlu0 %v16686_v41  ;;  %v4720_v11 = vpop.f32.mrb[197].mxu1  ;;  %vm4821_vm4 = vcmp.gt.f32.partialorder %v12542_v30, 0.0 }
 0x6d7   : > { %5057 = vmax.xlane.f32.xlu1 %v16689_v44  ;;  %v12543_v61 = vpop.f32.mrb[198].mxu1  ;;  %v4883_v8 = vmul.f32 0.01, %v4720_v11  ;;  %vm4819_vm6 = vcmp.gt.f32.partialorder %v4720_v11, 0.0 }
 0x6d8   : > { %v4886_v56 = vmul.f32 0.01, %v12543_v61  ;;  %v4723_v31 = vpop.f32.mrb[199].mxu1  ;;  %v16692_v29 = vsel %vm4821_vm4, %v12542_v30, %v4885_v4  ;;  %vm4822_vm5 = vcmp.gt.f32.partialorder %v12543_v61, 0.0 }
 0x6d9   : > { %20316 = vst [vmem:[#allocation204_spill] sm:$0xff] %v16692_v29  ;;  %v4884_v26 = vmul.f32 0.01, %v4723_v31  ;;  %vm4820_vm7 = vcmp.gt.f32.partialorder %v4723_v31, 0.0  ;;  %v16698_v60 = vsel %vm4819_vm6, %v4720_v11, %v4883_v8 }
 0x6da   : > { %5067 = vmax.xlane.f32.xlu0 %v16692_v29  ;;  %v16695_v40 = vsel %vm4822_vm5, %v12543_v61, %v4886_v56  ;;  %20318 = vst [vmem:[#allocation206_spill] sm:$0xff] %v16698_v60 }
 0x6db   : > { %20317 = vst [vmem:[#allocation205_spill] sm:$0xff] %v16695_v40  ;;  %5069 = vmax.xlane.f32.xlu1 %v16695_v40  ;;  %v16701_v30 = vsel %vm4820_vm7, %v4723_v31, %v4884_v26 }
 0x6dc   : > { %20319 = vst [vmem:[#allocation207_spill] sm:$0xff] %v16701_v30 }
 0x6dd   : > { %v12546_v45 = vpop.f32.mrb[200].mxu1 }
 0x6de   : > { %v4889_v55 = vmul.f32 0.01, %v12546_v45  ;;  %5063 = vmax.xlane.f32.xlu0 %v16698_v60  ;;  %v4736_v63 = vpop.f32.mrb[201].mxu1  ;;  %vm4825_vm8 = vcmp.gt.f32.partialorder %v12546_v45, 0.0 }
 0x6df   : > { %5065 = vmax.xlane.f32.xlu1 %v16701_v30  ;;  %v12547_v4 = vpop.f32.mrb[202].mxu1  ;;  %v4887_v40 = vmul.f32 0.01, %v4736_v63  ;;  %vm4823_vm10 = vcmp.gt.f32.partialorder %v4736_v63, 0.0 }
 0x6e0   : > { %v4890_v29 = vmul.f32 0.01, %v12547_v4  ;;  %v4739_v56 = vpop.f32.mrb[203].mxu1  ;;  %v16704_v61 = vsel %vm4825_vm8, %v12546_v45, %v4889_v55  ;;  %vm4826_vm9 = vcmp.gt.f32.partialorder %v12547_v4, 0.0 }
 0x6e1   : > { %20320 = vst [vmem:[#allocation208_spill] sm:$0xff] %v16704_v61  ;;  %v4888_v17 = vmul.f32 0.01, %v4739_v56  ;;  %vm4824_vm11 = vcmp.gt.f32.partialorder %v4739_v56, 0.0  ;;  %v16710_v8 = vsel %vm4823_vm10, %v4736_v63, %v4887_v40 }
 0x6e2   : > { %5075 = vmax.xlane.f32.xlu0 %v16704_v61  ;;  %v16707_v11 = vsel %vm4826_vm9, %v12547_v4, %v4890_v29  ;;  %20322 = vst [vmem:[#allocation210_spill] sm:$0xff] %v16710_v8 }
 0x6e3   : > { %20321 = vst [vmem:[#allocation209_spill] sm:$0xff] %v16707_v11  ;;  %5077 = vmax.xlane.f32.xlu1 %v16707_v11  ;;  %v16713_v30 = vsel %vm4824_vm11, %v4739_v56, %v4888_v17 }
 0x6e4   : > { %20323 = vst [vmem:[#allocation211_spill] sm:$0xff] %v16713_v30 }
 0x6e5   : > { %v12550_v26 = vpop.f32.mrb[204].mxu1 }
 0x6e6   : > { %5071 = vmax.xlane.f32.xlu0 %v16710_v8  ;;  %v4752_v31 = vpop.f32.mrb[205].mxu1  ;;  %v4893_v29 = vmul.f32 0.01, %v12550_v26  ;;  %vm4829_vm14 = vcmp.gt.f32.partialorder %v12550_v26, 0.0 }
 0x6e7   : > { %v4891_v45 = vmul.f32 0.01, %v4752_v31  ;;  %5073 = vmax.xlane.f32.xlu1 %v16713_v30  ;;  %v12551_v55 = vpop.f32.mrb[206].mxu1  ;;  %vm4827_vm12 = vcmp.gt.f32.partialorder %v4752_v31, 0.0 }
 0x6e8   : > { %v4755_v61 = vpop.f32.mrb[207].mxu1  ;;  %v4894_v63 = vmul.f32 0.01, %v12551_v55  ;;  %vm4830_vm15 = vcmp.gt.f32.partialorder %v12551_v55, 0.0  ;;  %v16722_v17 = vsel %vm4829_vm14, %v12550_v26, %v4893_v29 }
 0x6e9   : > { %v4892_v4 = vmul.f32 0.01, %v4755_v61  ;;  %v16716_v60 = vsel %vm4827_vm12, %v4752_v31, %v4891_v45  ;;  %vm4828_vm13 = vcmp.gt.f32.partialorder %v4755_v61, 0.0  ;;  %20326 = vst [vmem:[#allocation214_spill] sm:$0xff] %v16722_v17 }
 0x6ea   : > { %20324 = vst [vmem:[#allocation212_spill] sm:$0xff] %v16716_v60  ;;  %5079 = vmax.xlane.f32.xlu0 %v16716_v60  ;;  %v16725_v56 = vsel %vm4830_vm15, %v12551_v55, %v4894_v63 }
 0x6eb   : > { %v16719_v40 = vsel %vm4828_vm13, %v4755_v61, %v4892_v4  ;;  %20327 = vst [vmem:[#allocation215_spill] sm:$0xff] %v16725_v56 }
 0x6ec   : > { %20325 = vst [vmem:[#allocation213_spill] sm:$0xff] %v16719_v40  ;;  %5081 = vmax.xlane.f32.xlu1 %v16719_v40 }
 0x6ee   : > { %5083 = vmax.xlane.f32.xlu0 %v16722_v17 }
 0x6f0   : > { %5085 = vmax.xlane.f32.xlu1 %v16725_v56 }
 0x6fe   : > { %v4964_v31 = vpop.xlane.xlu1 %4963 }
 0x6ff   : > { %v16728_v45 = vpop.xlane.xlu0 %4959 }
 0x702   : > { %v4966_v60 = vpop.xlane.xlu1 %4965 }
 0x703   : > { %v4962_v11 = vpop.xlane.xlu0 %4961 }
 0x707   : > { %v4972_v30 = vpop.xlane.xlu0 %4971 }
 0x708   : > { %v4974_v8 = vpop.xlane.xlu1 %4973  ;;  %v5089_v54 = vmax.f32 %v4964_v31, %v4972_v30 }
 0x709   : > { %v5090_v43 = vmax.f32 %v4966_v60, %v4974_v8 }
 0x70b   : > { %v4968_v61 = vpop.xlane.xlu0 %4967 }
 0x70c   : > { %v4970_v4 = vpop.xlane.xlu1 %4969  ;;  %v5087_v62 = vmax.f32 %v16728_v45, %v4968_v61 }
 0x70d   : > { %v5088_v58 = vmax.f32 %v4962_v11, %v4970_v4 }
 0x70f   : > { %v4980_v24 = vpop.xlane.xlu0 %4979 }
 0x710   : > { %v4982_v40 = vpop.xlane.xlu1 %4981  ;;  %v5093_v3 = vmax.f32 %v5089_v54, %v4980_v24 }
 0x711   : > { %v5094_v1 = vmax.f32 %v5090_v43, %v4982_v40 }
 0x713   : > { %v4976_v27 = vpop.xlane.xlu0 %4975 }
 0x714   : > { %v4978_v26 = vpop.xlane.xlu1 %4977  ;;  %v5091_v10 = vmax.f32 %v5087_v62, %v4976_v27 }
 0x715   : > { %v5092_v53 = vmax.f32 %v5088_v58, %v4978_v26 }
 0x717   : > { %v4988_v29 = vpop.xlane.xlu0 %4987 }
 0x718   : > { %v4990_v22 = vpop.xlane.xlu1 %4989 }
 0x719   : > { %v5098_v21 = vmax.f32 %v5094_v1, %v4990_v22 }
 0x71b   : > { %v4984_v17 = vpop.xlane.xlu0 %4983 }
 0x71c   : > { %v4986_v55 = vpop.xlane.xlu1 %4985 }
 0x71f   : > { %v4996_v63 = vpop.xlane.xlu0 %4995 }
 0x720   : > { %v4998_v51 = vpop.xlane.xlu1 %4997 }
 0x723   : > { %v4992_v56 = vpop.xlane.xlu0 %4991 }
 0x724   : > { %v4994_v44 = vpop.xlane.xlu1 %4993 }
 0x727   : > { %v5004_v41 = vpop.xlane.xlu0 %5003 }
 0x728   : > { %v5006_v46 = vpop.xlane.xlu1 %5005 }
 0x72b   : > { %v5000_v7 = vpop.xlane.xlu0 %4999 }
 0x72c   : > { %v5002_v20 = vpop.xlane.xlu1 %5001 }
 0x72f   : > { %v5012_v28 = vpop.xlane.xlu0 %5011 }
 0x730   : > { %v5014_v57 = vpop.xlane.xlu1 %5013 }
 0x733   : > { %v5008_v39 = vpop.xlane.xlu0 %5007 }
 0x734   : > { %v5010_v37 = vpop.xlane.xlu1 %5009 }
 0x737   : > { %v5020_v35 = vpop.xlane.xlu0 %5019 }
 0x738   : > { %v5022_v13 = vpop.xlane.xlu1 %5021 }
 0x73b   : > { %v16730_v19 = vpop.xlane.xlu0 %5015 }
 0x73c   : > { %v5018_v23 = vpop.xlane.xlu1 %5017 }
 0x73f   : > { %v5028_v52 = vpop.xlane.xlu0 %5027 }
 0x740   : > { %v5030_v9 = vpop.xlane.xlu1 %5029 }
 0x743   : > { %v5024_v32 = vpop.xlane.xlu0 %5023 }
 0x744   : > { %v5026_v38 = vpop.xlane.xlu1 %5025 }
 0x747   : > { %v16732_v50 = vpop.xlane.xlu0 %5035 }
 0x748   : > { %20328 = vst [vmem:[#allocation216_spill] sm:$0xff] %v16732_v50  ;;  %v5038_v36 = vpop.xlane.xlu1 %5037  ;;  %v5095_v50 = vmax.f32 %v5091_v10, %v4984_v17 }
 0x74a   : > { %v5099_v11 = vmax.f32 %v5095_v50, %v4992_v56  ;;  %v13820_v56 = vld [vmem:[#allocation10 + $0x4] ss:$16 sps:$4 sm:$0xff]  }
 0x74b   : > { %v16734_v59 = vpop.xlane.xlu0 %5031  ;;  %5572 = vmatprep.mubr.bf16.mxu1 %v13820_v56 }
 0x74c   : > { %20329 = vst [vmem:[#allocation217_spill] sm:$0xff] %v16734_v59  ;;  %v5034_v2 = vpop.xlane.xlu1 %5033  ;;  %v5102_v59 = vmax.f32 %v5098_v21, %v4998_v51  ;;  %v5103_v54 = vmax.f32 %v5099_v11, %v5000_v7 }
 0x74e   : > { %v5107_v24 = vmax.f32 %v5103_v54, %v5008_v39 }
 0x74f   : > { %v5044_v33 = vpop.xlane.xlu0 %5043 }
 0x750   : > { %v5046_v18 = vpop.xlane.xlu1 %5045  ;;  %v5111_v10 = vmax.f32 %v5107_v24, %v16730_v19 }
 0x752   : > { %v5115_v50 = vmax.f32 %v5111_v10, %v5024_v32  ;;  %v20345_v10 = vld [vmem:[#allocation106_spill] sm:$0xff] }
 0x753   : > { %v5040_v42 = vpop.xlane.xlu0 %5039 }
 0x754   : > { %v5042_v15 = vpop.xlane.xlu1 %5041 }
 0x757   : > { %v16736_v5 = vpop.xlane.xlu0 %5051 }
 0x758   : > { %20330 = vst [vmem:[#allocation218_spill] sm:$0xff] %v16736_v5  ;;  %v5054_v47 = vpop.xlane.xlu1 %5053  ;;  %v5096_v5 = vmax.f32 %v5092_v53, %v4986_v55 }
 0x75a   : > { %v5100_v8 = vmax.f32 %v5096_v5, %v4994_v44 }
 0x75b   : > { %v16738_v0 = vpop.xlane.xlu0 %5047 }
 0x75c   : > { %20331 = vst [vmem:[#allocation219_spill] sm:$0xff] %v16738_v0  ;;  %v5050_v6 = vpop.xlane.xlu1 %5049  ;;  %v5097_v0 = vmax.f32 %v5093_v3, %v4988_v29  ;;  %v5104_v40 = vmax.f32 %v5100_v8, %v5002_v20 }
 0x75e   : > { %v5101_v60 = vmax.f32 %v5097_v0, %v4996_v63  ;;  %v5108_v1 = vmax.f32 %v5104_v40, %v5010_v37 }
 0x75f   : > { %v5060_v14 = vpop.xlane.xlu0 %5059  ;;  %v20336_v27 = vld [vmem:[#allocation218_spill] sm:$0xff] }
 0x760   : > { %v5062_v48 = vpop.xlane.xlu1 %5061  ;;  %v5105_v43 = vmax.f32 %v5101_v60, %v5004_v41  ;;  %v5112_v3 = vmax.f32 %v5108_v1, %v5018_v23 }
 0x762   : > { %v5109_v58 = vmax.f32 %v5105_v43, %v5012_v28  ;;  %v20335_v28 = vld [vmem:[#allocation217_spill] sm:$0xff] }
 0x763   : > { %v16740_v25 = vpop.xlane.xlu0 %5055  ;;  %v5119_v37 = vmax.f32 %v5115_v50, %v20335_v28 }
 0x764   : > { %20332 = vst [vmem:[#allocation220_spill] sm:$0xff] %v16740_v25  ;;  %v5058_v16 = vpop.xlane.xlu1 %5057  ;;  %v5113_v62 = vmax.f32 %v5109_v58, %v5020_v35  ;;  %v20340_v58 = vld [vmem:[#allocation88_spill] sm:$0xff] }
 0x766   : > { %v5117_v5 = vmax.f32 %v5113_v62, %v5028_v52  ;;  %v20337_v52 = vld [vmem:[#allocation219_spill] sm:$0xff] }
 0x767   : > { %v16742_v49 = vpop.xlane.xlu0 %5067  ;;  %v20343_v62 = vld [vmem:[#allocation91_spill] sm:$0xff] }
 0x768   : > { %20333 = vst [vmem:[#allocation221_spill] sm:$0xff] %v16742_v49  ;;  %v5070_v12 = vpop.xlane.xlu1 %5069  ;;  %v5106_v49 = vmax.f32 %v5102_v59, %v5006_v46  ;;  %v5116_v59 = vmax.f32 %v5112_v3, %v5026_v38  ;;  %v20334_v46 = vld [vmem:[#allocation216_spill] sm:$0xff] }
 0x769   : > { %v5121_v20 = vmax.f32 %v5117_v5, %v20334_v46 }
 0x76a   : > { %v5110_v31 = vmax.f32 %v5106_v49, %v5014_v57  ;;  %v5120_v49 = vmax.f32 %v5116_v59, %v5034_v2 }
 0x76b   : > { %v16745_v34 = vpop.xlane.xlu0 %5063  ;;  %v20338_v61 = vld [vmem:[#allocation220_spill] sm:$0xff] }
 0x76c   : > { %v5066_v25 = vpop.xlane.xlu1 %5065  ;;  %v5114_v22 = vmax.f32 %v5110_v31, %v5022_v13  ;;  %v5125_v13 = vmax.f32 %v5121_v20, %v5044_v33  ;;  %v5124_v39 = vmax.f32 %v5120_v49, %v5042_v15  ;;  %v20347_v20 = vld [vmem:[#allocation104_spill] sm:$0xff] }
 0x76e   : > { %v5118_v53 = vmax.f32 %v5114_v22, %v5030_v9  ;;  %v5123_v9 = vmax.f32 %v5119_v37, %v5040_v42  ;;  %v5129_v41 = vmax.f32 %v5125_v13, %v20336_v27  ;;  %v5128_v44 = vmax.f32 %v5124_v39, %v5050_v6  ;;  %v20342_v22 = vld [vmem:[#allocation89_spill] sm:$0xff]  ;;  %v20349_v13 = vld [vmem:[#allocation110_spill] sm:$0xff] }
 0x76f   : > { %v5076_v30 = vpop.xlane.xlu0 %5075  ;;  %v20339_v26 = vld [vmem:[#allocation221_spill] sm:$0xff] }
 0x770   : > { %v5078_v45 = vpop.xlane.xlu1 %5077  ;;  %v5122_v0 = vmax.f32 %v5118_v53, %v5038_v36  ;;  %v5127_v38 = vmax.f32 %v5123_v9, %v20337_v52  ;;  %v5133_v36 = vmax.f32 %v5129_v41, %v5060_v14  ;;  %v5132_v32 = vmax.f32 %v5128_v44, %v5058_v16  ;;  %v20344_v53 = vld [vmem:[#allocation107_spill] sm:$0xff]  ;;  %v20351_v41 = vld [vmem:[#allocation94_spill] sm:$0xff]  ;;  %v20352_v52 = vld [vmem:[#allocation109_spill] sm:$0xff] }
 0x772   : > { %v5126_v57 = vmax.f32 %v5122_v0, %v5046_v18  ;;  %v13823_v18 = vld [vmem:[#allocation10 + $0xc] ss:$16 sps:$4 sm:$0xff]   ;;  %v5131_v4 = vmax.f32 %v5127_v38, %v20338_v61  ;;  %v5137_v33 = vmax.f32 %v5133_v36, %v20339_v26  ;;  %v5136_v15 = vmax.f32 %v5132_v32, %v5066_v25  ;;  %v20353_v32 = vld [vmem:[#allocation108_spill] sm:$0xff] }
 0x773   : > { %v5072_v51 = vpop.xlane.xlu0 %5071  ;;  %5669 = vmatprep.mubr.bf16.mxu0 %v13823_v18  ;;  %v20346_v0 = vld [vmem:[#allocation105_spill] sm:$0xff] }
 0x774   : > { %v5074_v21 = vpop.xlane.xlu1 %5073  ;;  %v5130_v35 = vmax.f32 %v5126_v57, %v5054_v47  ;;  %v5135_v6 = vmax.f32 %v5131_v4, %v16745_v34  ;;  %v20355_v4 = vld [vmem:[#allocation92_spill] sm:$0xff] }
 0x775   : > { %v5140_v29 = vmax.f32 %v5136_v15, %v5074_v21  ;;  %v20356_v15 = vld [vmem:[#allocation115_spill] sm:$0xff] }
 0x776   : > { %v5134_v19 = vmax.f32 %v5130_v35, %v5062_v48  ;;  %v5141_v48 = vmax.f32 %v5137_v33, %v5076_v30  ;;  %v5139_v14 = vmax.f32 %v5135_v6, %v5072_v51  ;;  %v20341_v30 = vld [vmem:[#allocation90_spill] sm:$0xff] }
 0x777   : > { %v5080_v23 = vpop.xlane.xlu0 %5079  ;;  %v20357_v6 = vld [vmem:[#allocation114_spill] sm:$0xff] }
 0x778   : > { %v5138_v17 = vmax.f32 %v5134_v19, %v5070_v12  ;;  %v5143_v63 = vmax.f32 %v5139_v14, %v5080_v23  ;;  %v20350_v23 = vld [vmem:[#allocation95_spill] sm:$0xff] }
 0x779   : > { %v5082_v7 = vpop.xlane.xlu1 %5081  ;;  %v20358_v14 = vld [vmem:[#allocation99_spill] sm:$0xff] }
 0x77a   : > { %v5142_v47 = vmax.f32 %v5138_v17, %v5078_v45  ;;  %v5144_v16 = vmax.f32 %v5140_v29, %v5082_v7  ;;  %v20348_v7 = vld [vmem:[#allocation111_spill] sm:$0xff] }
 0x77b   : > { %v5084_v42 = vpop.xlane.xlu0 %5083 }
 0x77c   : > { %v5145_v12 = vmax.f32 %v5141_v48, %v5084_v42  ;;  %v5147_v8 = vmax.f32 %v5143_v63, %v5144_v16 }
 0x77d   : > { %v5086_v2 = vpop.xlane.xlu1 %5085 }
 0x77e   : > { %v5146_v55 = vmax.f32 %v5142_v47, %v5086_v2  ;;  %v20354_v2 = vld [vmem:[#allocation93_spill] sm:$0xff] }
 0x780   : > { %v5148_v60 = vmax.f32 %v5145_v12, %v5146_v55 }
 0x782   : > { %v5149_v11 = vmax.f32 %v5147_v8, %v5148_v60  ;;  %v20359_v60 = vld [vmem:[#allocation98_spill] sm:$0xff] }
 0x784   : > { %v5150_v43 = vrot.slane %v5149_v11, 4 }
 0x786   : > { %v5151_v40 = vmax.f32 %v5149_v11, %v5150_v43 }
 0x788   : > { %v5152_v31 = vrot.slane %v5151_v40, 2 }
 0x78a   : > { %v5153_v25 = vmax.f32 %v5151_v40, %v5152_v31  ;;  %v20360_v40 = vld [vmem:[#allocation113_spill] sm:$0xff] }
 0x78c   : > { %v5154_v45 = vrot.slane %v5153_v25, 1 }
 0x78e   : > { %v16755_v54 = vmax.f32 %v5153_v25, %v5154_v45 }
 0x790   : > { %v5156_v34 = vsub.f32 %v20340_v58, %v16755_v54  ;;  %v5157_v1 = vsub.f32 %v20341_v30, %v16755_v54  ;;  %v5158_v24 = vsub.f32 %v20342_v22, %v16755_v54  ;;  %v5159_v3 = vsub.f32 %v20343_v62, %v16755_v54  ;;  %v20361_v58 = vld [vmem:[#allocation112_spill] sm:$0xff]  ;;  %v20362_v22 = vld [vmem:[#allocation97_spill] sm:$0xff] }
 0x791   : > { %v5172_v21 = vsub.f32 %v20344_v53, %v16755_v54  ;;  %v5173_v5 = vsub.f32 %v20345_v10, %v16755_v54  ;;  %v5174_v50 = vsub.f32 %v20346_v0, %v16755_v54  ;;  %v5175_v49 = vsub.f32 %v20347_v20, %v16755_v54  ;;  %v20363_v53 = vld [vmem:[#allocation96_spill] sm:$0xff] }
 0x792   : > { %v5220_v51 = vmul.f32 1.442695, %v5156_v34  ;;  %v5222_v59 = vmul.f32 1.442695, %v5157_v1  ;;  %v5224_v46 = vmul.f32 1.442695, %v5158_v24  ;;  %v5176_v28 = vsub.f32 %v20348_v7, %v16755_v54 }
 0x793   : > { %v5226_v57 = vmul.f32 1.442695, %v5159_v3  ;;  %v5252_v37 = vmul.f32 1.442695, %v5172_v21  ;;  %v5177_v39 = vsub.f32 %v20349_v13, %v16755_v54  ;;  %v5254_v35 = vmul.f32 1.442695, %v5173_v5 }
 0x794   : > { %13906 = vpow2.f32 %v5220_v51  ;;  %v5160_v9 = vsub.f32 %v20350_v23, %v16755_v54  ;;  %v5256_v27 = vmul.f32 1.442695, %v5174_v50  ;;  %v5161_v44 = vsub.f32 %v20351_v41, %v16755_v54  ;;  %v20366_v7 = vld [vmem:[#allocation183_spill] sm:$0xff]  ;;  %v20368_v41 = vld [vmem:[#allocation101_spill] sm:$0xff] }
 0x795   : > { %13908 = vpow2.f32 %v5222_v59  ;;  %v5258_v19 = vmul.f32 1.442695, %v5175_v49  ;;  %v5178_v38 = vsub.f32 %v20352_v52, %v16755_v54  ;;  %v5260_v36 = vmul.f32 1.442695, %v5176_v28  ;;  %v20364_v59 = vld [vmem:[#allocation182_spill] sm:$0xff]  ;;  %v20365_v49 = vld [vmem:[#allocation103_spill] sm:$0xff] }
 0x796   : > { %13910 = vpow2.f32 %v5224_v46  ;;  %v5179_v17 = vsub.f32 %v20353_v32, %v16755_v54  ;;  %v5262_v56 = vmul.f32 1.442695, %v5177_v39  ;;  %v5162_v18 = vsub.f32 %v20354_v2, %v16755_v54  ;;  %v20367_v39 = vld [vmem:[#allocation102_spill] sm:$0xff]  ;;  %v20370_v32 = vld [vmem:[#allocation116_spill] sm:$0xff] }
 0x797   : > { %13912 = vpow2.f32 %v5226_v57  ;;  %v5228_v61 = vmul.f32 1.442695, %v5160_v9  ;;  %v5163_v26 = vsub.f32 %v20355_v4, %v16755_v54  ;;  %v5230_v33 = vmul.f32 1.442695, %v5161_v44  ;;  %v20372_v4 = vld [vmem:[#allocation186_spill] sm:$0xff] }
 0x798   : > { %13914 = vpow2.f32 %v5252_v37  ;;  %v5180_v47 = vsub.f32 %v20356_v15, %v16755_v54  ;;  %v5264_v42 = vmul.f32 1.442695, %v5178_v38  ;;  %v5181_v48 = vsub.f32 %v20357_v6, %v16755_v54 }
 0x799   : > { %13916 = vpow2.f32 %v5254_v35  ;;  %v5266_v29 = vmul.f32 1.442695, %v5179_v17  ;;  %v5164_v16 = vsub.f32 %v20358_v14, %v16755_v54  ;;  %v5232_v12 = vmul.f32 1.442695, %v5162_v18 }
 0x79a   : > { %13918 = vpow2.f32 %v5256_v27  ;;  %v5165_v8 = vsub.f32 %v20359_v60, %v16755_v54  ;;  %v5234_v11 = vmul.f32 1.442695, %v5163_v26  ;;  %v5182_v31 = vsub.f32 %v20360_v40, %v16755_v54  ;;  %v20375_v60 = vld [vmem:[#allocation185_spill] sm:$0xff] }
 0x79b   : > { %13920 = vpow2.f32 %v5258_v19  ;;  %v5268_v25 = vmul.f32 1.442695, %v5180_v47  ;;  %v5183_v34 = vsub.f32 %v20361_v58, %v16755_v54  ;;  %v5270_v30 = vmul.f32 1.442695, %v5181_v48  ;;  %v20369_v19 = vld [vmem:[#allocation100_spill] sm:$0xff]  ;;  %v20377_v58 = vld [vmem:[#allocation191_spill] sm:$0xff] }
 0x79c   : > { %13922 = vpow2.f32 %v5260_v36  ;;  %v5166_v24 = vsub.f32 %v20362_v22, %v16755_v54  ;;  %v5236_v62 = vmul.f32 1.442695, %v5164_v16  ;;  %v5167_v21 = vsub.f32 %v20363_v53, %v16755_v54  ;;  %v20374_v16 = vld [vmem:[#allocation184_spill] sm:$0xff] }
 0x79d   : > { %13924 = vpow2.f32 %v5262_v56  ;;  %v5238_v51 = vmul.f32 1.442695, %v5165_v8  ;;  %v5184_v0 = vsub.f32 %v20364_v59, %v16755_v54  ;;  %v5272_v50 = vmul.f32 1.442695, %v5182_v31  ;;  %v20371_v56 = vld [vmem:[#allocation181_spill] sm:$0xff]  ;;  %v20376_v31 = vld [vmem:[#allocation190_spill] sm:$0xff] }
 0x79e   : > { %v16793_v55 = vpop.eup %13906  ;;  %13926 = vpow2.f32 %v5228_v61  ;;  %v5168_v57 = vsub.f32 %v20365_v49, %v16755_v54  ;;  %v5185_v28 = vsub.f32 %v20366_v7, %v16755_v54  ;;  %v5274_v37 = vmul.f32 1.442695, %v5183_v34  ;;  %v20380_v49 = vld [vmem:[#allocation194_spill] sm:$0xff]  ;;  %v20381_v7 = vld [vmem:[#allocation195_spill] sm:$0xff] }
 0x79f   : > { %v16797_v63 = vpop.eup %13908  ;;  %13928 = vpow2.f32 %v5230_v33  ;;  %v5169_v35 = vsub.f32 %v20367_v39, %v16755_v54  ;;  %v5240_v23 = vmul.f32 1.442695, %v5166_v24  ;;  %v5170_v44 = vsub.f32 %v20368_v41, %v16755_v54  ;;  %v20378_v24 = vld [vmem:[#allocation188_spill] sm:$0xff] }
 0x7a0   : > { %v16801_v43 = vpop.eup %13910  ;;  %13930 = vpow2.f32 %v5264_v42  ;;  %v5348_v10 = vpack.c.bf16 %v16797_v63, %v16793_v55  ;;  %v5171_v52 = vsub.f32 %v20369_v19, %v16755_v54  ;;  %v5242_v38 = vmul.f32 1.442695, %v5167_v21  ;;  %v20373_v42 = vld [vmem:[#allocation187_spill] sm:$0xff] }
 0x7a1   : > { %v16805_v45 = vpop.eup %13912  ;;  %13932 = vpow2.f32 %v5266_v29  ;;  %v5186_v17 = vsub.f32 %v20370_v32, %v16755_v54  ;;  %v5187_v2 = vsub.f32 %v20371_v56, %v16755_v54  ;;  %v5276_v18 = vmul.f32 1.442695, %v5184_v0 }
 0x7a2   : > { %v16809_v1 = vpop.eup %13914  ;;  %13934 = vpow2.f32 %v5232_v12  ;;  %v5188_v26 = vsub.f32 %v20372_v4, %v16755_v54  ;;  %v5278_v33 = vmul.f32 1.442695, %v5185_v28  ;;  %v5349_v15 = vpack.c.bf16 %v16805_v45, %v16801_v43 }
 0x7a3   : > { %v16813_v3 = vpop.eup %13916  ;;  %13936 = vpow2.f32 %v5234_v11  ;;  %v5189_v6 = vsub.f32 %v20373_v42, %v16755_v54  ;;  %v5244_v48 = vmul.f32 1.442695, %v5168_v57  ;;  %v5190_v12 = vsub.f32 %v20374_v16, %v16755_v54  ;;  %v20404_v57 = vld [vmem:[#allocation214_spill] sm:$0xff] }
 0x7a4   : > { %v16819_v5 = vpop.eup %13918  ;;  %13938 = vpow2.f32 %v5268_v25  ;;  %v5356_v46 = vpack.c.bf16 %v16813_v3, %v16809_v1  ;;  %v5191_v8 = vsub.f32 %v20375_v60, %v16755_v54  ;;  %v5246_v11 = vmul.f32 1.442695, %v5169_v35  ;;  %v20382_v35 = vld [vmem:[#allocation192_spill] sm:$0xff]  ;;  %v20388_v60 = vld [vmem:[#allocation198_spill] sm:$0xff] }
 0x7a5   : > { %v16825_v20 = vpop.eup %13920  ;;  %13940 = vpow2.f32 %v5270_v30  ;;  %v5192_v25 = vsub.f32 %v20376_v31, %v16755_v54  ;;  %v5193_v34 = vsub.f32 %v20377_v58, %v16755_v54  ;;  %v5280_v30 = vmul.f32 1.442695, %v5186_v17 }
 0x7a6   : > { %v16831_v13 = vpop.eup %13922  ;;  %13942 = vpow2.f32 %v5236_v62  ;;  %11062 = vmatprep.subr.bf16.mxu1 %v5356_v46  ;;  %v5357_v9 = vpack.c.bf16 %v16825_v20, %v16819_v5  ;;  %v5282_v53 = vmul.f32 1.442695, %v5187_v2  ;;  %v5248_v0 = vmul.f32 1.442695, %v5170_v44  ;;  %v20385_v2 = vld [vmem:[#allocation200_spill] sm:$0xff] }
 0x7a7   : > { %v16837_v27 = vpop.eup %13924  ;;  %13944 = vpow2.f32 %v5238_v51  ;;  %11063 = vmatpush3.bf16.msra.mxu1 %v5348_v10  ;;  %v20379_v10 = vld [vmem:[#allocation189_spill] sm:$0xff]  ;;  %v5284_v44 = vmul.f32 1.442695, %v5188_v26  ;;  %v5286_v17 = vmul.f32 1.442695, %v5189_v6 }
 0x7a8   : > { %v16843_v36 = vpop.eup %13926  ;;  %13946 = vpow2.f32 %v5272_v50  ;;  %11064 = vmatprep.subr.bf16.mxu1 %v5357_v9  ;;  %v5358_v29 = vpack.c.bf16 %v16837_v27, %v16831_v13  ;;  %v20383_v9 = vld [vmem:[#allocation202_spill] sm:$0xff]  ;;  %v5288_v4 = vmul.f32 1.442695, %v5190_v12  ;;  %v20387_v6 = vld [vmem:[#allocation201_spill] sm:$0xff] }
 0x7a9   : > { %v16849_v61 = vpop.eup %13928  ;;  %13948 = vpow2.f32 %v5274_v37  ;;  %v5250_v37 = vmul.f32 1.442695, %v5171_v52  ;;  %v5204_v41 = vsub.f32 %v20383_v9, %v16755_v54  ;;  %v20389_v12 = vld [vmem:[#allocation206_spill] sm:$0xff] }
 0x7aa   : > { %v16855_v47 = vpop.eup %13930  ;;  %13950 = vpow2.f32 %v5240_v23  ;;  %v5350_v21 = vpack.c.bf16 %v16849_v61, %v16843_v36 }
 0x7ab   : > { %v16861_v14 = vpop.eup %13932  ;;  %13952 = vpow2.f32 %v5242_v38  ;;  %11065 = vmatpush3.bf16.msra.mxu1 %v5349_v15  ;;  %v20384_v38 = vld [vmem:[#allocation203_spill] sm:$0xff]  ;;  %v20386_v15 = vld [vmem:[#allocation193_spill] sm:$0xff] }
 0x7ac   : > { %v16867_v40 = vpop.eup %13934  ;;  %13954 = vpow2.f32 %v5276_v18  ;;  %11066 = vmatprep.subr.bf16.mxu1 %v5358_v29  ;;  %v5359_v50 = vpack.c.bf16 %v16861_v14, %v16855_v47  ;;  %v5205_v32 = vsub.f32 %v20384_v38, %v16755_v54  ;;  %v5206_v18 = vsub.f32 %v20385_v2, %v16755_v54  ;;  %v20391_v38 = vld [vmem:[#allocation199_spill] sm:$0xff] }
 0x7ad   : > { %v16873_v22 = vpop.eup %13936  ;;  %13956 = vpow2.f32 %v5278_v33  ;;  %v5290_v29 = vmul.f32 1.442695, %v5191_v8 }
 0x7ae   : > { %v16879_v51 = vpop.eup %13938  ;;  %13958 = vpow2.f32 %v5244_v48  ;;  %v5351_v52 = vpack.c.bf16 %v16873_v22, %v16867_v40  ;;  %v5207_v48 = vsub.f32 %v20387_v6, %v16755_v54  ;;  %v5320_v2 = vmul.f32 1.442695, %v5206_v18  ;;  %v20396_v18 = vld [vmem:[#allocation210_spill] sm:$0xff]  ;;  %v20397_v6 = vld [vmem:[#allocation211_spill] sm:$0xff] }
 0x7af   : > { %v16885_v46 = vpop.eup %13940  ;;  %13960 = vpow2.f32 %v5246_v11  ;;  %11067 = vmatpush3.bf16.msra.mxu1 %v5350_v21  ;;  %v5212_v11 = vsub.f32 %v20396_v18, %v16755_v54  ;;  %v5213_v28 = vsub.f32 %v20397_v6, %v16755_v54  ;;  %v20402_v6 = vld [vmem:[#allocation212_spill] sm:$0xff]  ;;  %v20405_v18 = vsub.f32 %v20378_v24, %v16755_v54  ;;  %v20408_v24 = vld [vmem:[#allocation215_spill] sm:$0xff] }
 0x7b0   : > { %v16891_v39 = vpop.eup %13942  ;;  %13962 = vpow2.f32 %v5280_v30  ;;  %11068 = vmatprep.subr.bf16.mxu1 %v5359_v50  ;;  %v5360_v26 = vpack.c.bf16 %v16885_v46, %v16879_v51  ;;  %v5208_v30 = vsub.f32 %v20389_v12, %v16755_v54  ;;  %v5322_v12 = vmul.f32 1.442695, %v5207_v48 }
 0x7b1   : > { %v16897_v19 = vpop.eup %13944  ;;  %13964 = vpow2.f32 %v5282_v53  ;;  %v5316_v53 = vmul.f32 1.442695, %v5204_v41  ;;  %v5296_v58 = vmul.f32 1.442695, %v20405_v18 }
 0x7b2   : > { %v16903_v56 = vpop.eup %13946  ;;  %13966 = vpow2.f32 %v5248_v0  ;;  %v20390_v0 = vld [vmem:[#allocation207_spill] sm:$0xff]  ;;  %v5352_v8 = vpack.c.bf16 %v16897_v19, %v16891_v39  ;;  %v5324_v42 = vmul.f32 1.442695, %v5208_v30  ;;  %v5292_v30 = vmul.f32 1.442695, %v5192_v25  ;;  %v20403_v25 = vld [vmem:[#allocation213_spill] sm:$0xff] }
 0x7b3   : > { %v16909_v33 = vpop.eup %13948  ;;  %13968 = vpow2.f32 %v5250_v37  ;;  %11069 = vmatpush3.bf16.msra.mxu1 %v5351_v52  ;;  %v5209_v50 = vsub.f32 %v20390_v0, %v16755_v54  ;;  %v5318_v37 = vmul.f32 1.442695, %v5205_v32  ;;  %v20394_v32 = vld [vmem:[#allocation204_spill] sm:$0xff]  ;;  %v20395_v52 = vld [vmem:[#allocation205_spill] sm:$0xff] }
 0x7b4   : > { %v16915_v16 = vpop.eup %13950  ;;  %13970 = vpow2.f32 %v5284_v44  ;;  %11070 = vmatprep.subr.bf16.mxu1 %v5360_v26  ;;  %v5361_v41 = vpack.c.bf16 %v16909_v33, %v16903_v56  ;;  %v20393_v26 = vld [vmem:[#allocation196_spill] sm:$0xff] }
 0x7b5   : > { %v16921_v21 = vpop.eup %13952  ;;  %13972 = vpow2.f32 %v5286_v17  ;;  %v5210_v17 = vsub.f32 %v20394_v32, %v16755_v54 }
 0x7b6   : > { %v16927_v9 = vpop.eup %13954  ;;  %13974 = vpow2.f32 %v5288_v4  ;;  %v5211_v4 = vsub.f32 %v20395_v52, %v16755_v54  ;;  %v5353_v48 = vpack.c.bf16 %v16921_v21, %v16915_v16  ;;  %v20399_v52 = vld [vmem:[#allocation208_spill] sm:$0xff] }
 0x7b7   : > { %v16933_v44 = vpop.eup %13956  ;;  %13976 = vpow2.f32 %v5290_v29  ;;  %11071 = vmatpush3.bf16.msra.mxu1 %v5352_v8  ;;  %v5326_v29 = vmul.f32 1.442695, %v5209_v50  ;;  %v5214_v32 = vsub.f32 %v20399_v52, %v16755_v54  ;;  %v20401_v50 = vld [vmem:[#allocation209_spill] sm:$0xff]  ;;  %v5294_v52 = vmul.f32 1.442695, %v5193_v34 }
 0x7b8   : > { %20392 = vst [vmem:[#allocation216_spill] sm:$0xff] %v16933_v44  ;;  %v16939_v0 = vpop.eup %13958  ;;  %13978 = vpow2.f32 %v5316_v53  ;;  %11072 = vmatprep.subr.bf16.mxu1 %v5361_v41  ;;  %v5362_v53 = vpack.c.bf16 %v16933_v44, %v16927_v9  ;;  %v5328_v62 = vmul.f32 1.442695, %v5210_v17  ;;  %v5330_v34 = vmul.f32 1.442695, %v5211_v4 }
 0x7b9   : > { %v16945_v23 = vpop.eup %13960  ;;  %13980 = vpow2.f32 %v5318_v37  ;;  %v5215_v37 = vsub.f32 %v20401_v50, %v16755_v54 }
 0x7ba   : > { %v16951_v8 = vpop.eup %13962  ;;  %13982 = vpow2.f32 %v5320_v2 }
 0x7bb   : > { %20398 = vst [vmem:[#allocation217_spill] sm:$0xff] %v16951_v8  ;;  %v16960_v41 = vpop.eup %13964  ;;  %13984 = vpow2.f32 %v5322_v12  ;;  %11073 = vmatpush3.bf16.msra.mxu1 %v5353_v48  ;;  %v5354_v12 = vpack.c.bf16 %v16945_v23, %v16939_v0 }
 0x7bc   : > { %20400 = vst [vmem:[#allocation218_spill] sm:$0xff] %v16960_v41  ;;  %v16969_v31 = vpop.eup %13966  ;;  %13986 = vpow2.f32 %v5324_v42  ;;  %11074 = vmatprep.subr.bf16.mxu1 %v5362_v53  ;;  %v5363_v59 = vpack.c.bf16 %v16960_v41, %v16951_v8  ;;  %v20406_v42 = vld [vmem:[#allocation133_spill] sm:$0xff]  ;;  %v20407_v53 = vld [vmem:[#allocation136_spill] sm:$0xff] }
 0x7bd   : > { %v16975_v50 = vpop.eup %13968  ;;  %13988 = vpow2.f32 %v5326_v29  ;;  %v5750_v17 = vmul.f32 %v16809_v1, %v20406_v42  ;;  %v5751_v2 = vmul.f32 %v16813_v3, %v20407_v53  ;;  %v20409_v29 = vsub.f32 %v20379_v10, %v16755_v54 }
 0x7be   : > { %v16982_v48 = vpop.eup %13970  ;;  %13990 = vpow2.f32 %v5292_v30  ;;  %v20410_v30 = vsub.f32 %v20380_v49, %v16755_v54  ;;  %v20411_v1 = vsub.f32 %v20381_v7, %v16755_v54  ;;  %v5332_v42 = vmul.f32 1.442695, %v5212_v11  ;;  %v20415_v11 = vld [vmem:[#allocation135_spill] sm:$0xff] }
 0x7bf   : > { %v16990_v44 = vpop.eup %13972  ;;  %13992 = vpow2.f32 %v5294_v52  ;;  %v5298_v18 = vmul.f32 1.442695, %v20409_v29  ;;  %11075 = vmatpush3.bf16.msra.mxu1 %v5354_v12  ;;  %v5334_v53 = vmul.f32 1.442695, %v5213_v28  ;;  %v5355_v10 = vpack.c.bf16 %v16975_v50, %v16969_v31  ;;  %v20412_v29 = vld [vmem:[#allocation118_spill] sm:$0xff]  ;;  %v20413_v12 = vld [vmem:[#allocation121_spill] sm:$0xff] }
 0x7c0   : > { %v5300_v41 = vmul.f32 1.442695, %v20410_v30  ;;  %v17000_v8 = vpop.eup %13974  ;;  %v5302_v3 = vmul.f32 1.442695, %v20411_v1  ;;  %13994 = vpow2.f32 %v5328_v62  ;;  %11076 = vmatprep.subr.bf16.mxu1 %v5363_v59  ;;  %v5734_v49 = vmul.f32 %v16793_v55, %v20412_v29  ;;  %v17015_v62 = vld [vmem:[#allocation10] ss:$16 sps:$4 sm:$0xff]  }
 0x7c1   : > { %v17005_v52 = vpop.eup %13976  ;;  %13996 = vpow2.f32 %v5330_v34  ;;  %v5735_v30 = vmul.f32 %v16797_v63, %v20413_v12  ;;  %v5806_v7 = vpack.c.bf16 %v5751_v2, %v5750_v17  ;;  %v20414_v28 = vld [vmem:[#allocation134_spill] sm:$0xff]  ;;  %v5753_v34 = vmul.f32 %v16825_v20, %v20415_v11  ;;  %v20417_v20 = vld [vmem:[#allocation117_spill] sm:$0xff] }
 0x7c2   : > { %v17013_v4 = vpop.eup %13978  ;;  %13998 = vpow2.f32 %v5296_v58  ;;  %v5752_v59 = vmul.f32 %v16819_v5, %v20414_v28  ;;  %v20416_v55 = vsub.f32 %v20382_v35, %v16755_v54  ;;  %v5336_v63 = vmul.f32 1.442695, %v5214_v32  ;;  %v20418_v32 = vld [vmem:[#allocation120_spill] sm:$0xff]  ;;  %v20419_v11 = vld [vmem:[#allocation137_spill] sm:$0xff] }
 0x7c3   : > { %v17021_v1 = vpop.eup %13980  ;;  %14000 = vpow2.f32 %v5298_v18  ;;  %v5364_v58 = vpack.c.bf16 %v16990_v44, %v16982_v48  ;;  %11077 = vmatpush3.bf16.msra.mxu1 %v5355_v10  ;;  %v5338_v17 = vmul.f32 1.442695, %v5215_v37  ;;  %v5736_v18 = vmul.f32 %v16801_v43, %v20417_v20 }
 0x7c4   : > { %v5304_v29 = vmul.f32 1.442695, %v20416_v55  ;;  %v17028_v2 = vpop.eup %13982  ;;  %14002 = vpow2.f32 %v5332_v42  ;;  %v5372_v5 = vpack.c.bf16 %v17021_v1, %v17013_v4  ;;  %11190 = vmatprep.subr.bf16.mxu1 %v5806_v7  ;;  %v5798_v35 = vpack.c.bf16 %v5735_v30, %v5734_v49  ;;  %v17040_v55 = vld [vmem:[#allocation10 + $0x24] ss:$16 sps:$4 sm:$0xff]  }
 0x7c5   : > { %v17034_v12 = vpop.eup %13984  ;;  %14004 = vpow2.f32 %v5334_v53  ;;  %v5737_v28 = vmul.f32 %v16805_v45, %v20418_v32  ;;  %v5754_v10 = vmul.f32 %v16831_v13, %v20419_v11  ;;  %v5807_v43 = vpack.c.bf16 %v5753_v34, %v5752_v59  ;;  %v20420_v53 = vld [vmem:[#allocation140_spill] sm:$0xff] }
 0x7c6   : > { %v17042_v37 = vpop.eup %13986  ;;  %14006 = vpow2.f32 %v5300_v41  ;;  %11126 = vmatprep.subr.bf16.mxu0 %v5372_v5  ;;  %v5373_v42 = vpack.c.bf16 %v17034_v12, %v17028_v2  ;;  %5573 = vmatmul.mubr.bf16.vlgmr.msra.gmra.mrb[208].mxu1 %v17015_v62  ;;  %v5755_v49 = vmul.f32 %v16837_v27, %v20420_v53  ;;  %v20421_v45 = vsub.f32 %v20386_v15, %v16755_v54  ;;  %v20425_v15 = vld [vmem:[#allocation119_spill] sm:$0xff] }
 0x7c7   : > { %v17049_v30 = vpop.eup %13988  ;;  %14008 = vpow2.f32 %v5302_v3  ;;  %v20422_v41 = vsub.f32 %v20388_v60, %v16755_v54  ;;  %v20423_v5 = vsub.f32 %v20402_v6, %v16755_v54  ;;  %11127 = vmatpush3.bf16.msra.mxu0 %v5364_v58  ;;  %11191 = vmatpush3.bf16.msra.mxu1 %v5798_v35  ;;  %v20424_v27 = vsub.f32 %v20403_v25, %v16755_v54  ;;  %v20426_v60 = vld [vmem:[#allocation124_spill] sm:$0xff] }
 0x7c8   : > { %v5306_v13 = vmul.f32 1.442695, %v20421_v45  ;;  %v17060_v59 = vpop.eup %13990  ;;  %14010 = vpow2.f32 %v5336_v63  ;;  %11128 = vmatprep.subr.bf16.mxu0 %v5373_v42  ;;  %11192 = vmatprep.subr.bf16.mxu1 %v5807_v43  ;;  %v5738_v34 = vmul.f32 %v16843_v36, %v20425_v15  ;;  %v5739_v32 = vmul.f32 %v16849_v61, %v20426_v60  ;;  %v20427_v63 = vld [vmem:[#allocation138_spill] sm:$0xff]  ;;  %v20428_v43 = vld [vmem:[#allocation139_spill] sm:$0xff] }
 0x7c9   : > { %v5308_v7 = vmul.f32 1.442695, %v20422_v41  ;;  %v5340_v20 = vmul.f32 1.442695, %v20423_v5  ;;  %v5342_v3 = vmul.f32 1.442695, %v20424_v27  ;;  %v17069_v11 = vpop.eup %13992  ;;  %14012 = vpow2.f32 %v5338_v17  ;;  %5580 = vmatprep.mubr.bf16.mxu1 %v17040_v55 }
 0x7ca   : > { %v5365_v6 = vpack.c.bf16 %v17005_v52, %v17000_v8  ;;  %v5799_v58 = vpack.c.bf16 %v5737_v28, %v5736_v18  ;;  %v5756_v25 = vmul.f32 %v16855_v47, %v20427_v63  ;;  %v17076_v35 = vpop.eup %13994  ;;  %14014 = vpow2.f32 %v5304_v29  ;;  %v17080_v61 = vld [vmem:[#allocation10 + $0x20] ss:$16 sps:$4 sm:$0xff]   ;;  %v20429_v18 = vld [vmem:[#allocation197_spill] sm:$0xff] }
 0x7cb   : > { %v5374_v36 = vpack.c.bf16 %v17049_v30, %v17042_v37  ;;  %v5808_v42 = vpack.c.bf16 %v5755_v49, %v5754_v10  ;;  %v5757_v17 = vmul.f32 %v16861_v14, %v20428_v43  ;;  %v17084_v53 = vpop.eup %13996  ;;  %v5203_v28 = vsub.f32 %v20429_v18, %v16755_v54  ;;  %v20436_v63 = vld [vmem:[#allocation144_spill] sm:$0xff] }
 0x7cc   : > { %14016 = vpow2.f32 %v5306_v13  ;;  %v20430_v47 = vsub.f32 %v20391_v38, %v16755_v54  ;;  %v20431_v29 = vsub.f32 %v20404_v57, %v16755_v54  ;;  %11129 = vmatpush3.bf16.msra.mxu0 %v5365_v6  ;;  %11193 = vmatpush3.bf16.msra.mxu1 %v5799_v58  ;;  %v17094_v10 = vpop.eup %13998  ;;  %v20432_v14 = vsub.f32 %v20408_v24, %v16755_v54  ;;  %v20433_v13 = vld [vmem:[#allocation125_spill] sm:$0xff]  ;;  %v20434_v38 = vld [vmem:[#allocation123_spill] sm:$0xff]  ;;  %v17109_v24 = vld [vmem:[#allocation10 + $0x44] ss:$16 sps:$4 sm:$0xff]  }
 0x7cd   : > { %14018 = vpow2.f32 %v5340_v20  ;;  %11130 = vmatprep.subr.bf16.mxu0 %v5374_v36  ;;  %11194 = vmatprep.subr.bf16.mxu1 %v5808_v42  ;;  %v5740_v5 = vmul.f32 %v16867_v40, %v20433_v13  ;;  %v5741_v27 = vmul.f32 %v16873_v22, %v20434_v38  ;;  %v17103_v15 = vpop.eup %14000  ;;  %v5366_v57 = vpack.c.bf16 %v17069_v11, %v17060_v59  ;;  %v20435_v20 = vld [vmem:[#allocation141_spill] sm:$0xff]  ;;  %v20438_v42 = vld [vmem:[#allocation122_spill] sm:$0xff] }
 0x7ce   : > { %v5310_v45 = vmul.f32 1.442695, %v20430_v47  ;;  %v5344_v41 = vmul.f32 1.442695, %v20431_v29  ;;  %v5346_v49 = vmul.f32 1.442695, %v20432_v14  ;;  %14020 = vpow2.f32 %v5342_v3  ;;  %v17111_v58 = vpop.eup %14002  ;;  %5581 = vmatmul.mubr.bf16.gmra.mrb[212].mxu1 %v17080_v61 }
 0x7cf   : > { %v5800_v60 = vpack.c.bf16 %v5739_v32, %v5738_v34  ;;  %v5758_v6 = vmul.f32 %v16879_v51, %v20435_v20  ;;  %14022 = vpow2.f32 %v5308_v7  ;;  %v5375_v40 = vpack.c.bf16 %v17084_v53, %v17076_v35  ;;  %v17118_v36 = vpop.eup %14004  ;;  %5588 = vmatprep.mubr.bf16.mxu1 %v17109_v24 }
 0x7d0   : > { %v5809_v22 = vpack.c.bf16 %v5757_v17, %v5756_v25  ;;  %v5759_v3 = vmul.f32 %v16885_v46, %v20436_v63  ;;  %14024 = vpow2.f32 %v5310_v45  ;;  %v20437_v51 = vsub.f32 %v20393_v26, %v16755_v54  ;;  %11131 = vmatpush3.bf16.msra.mxu0 %v5366_v57  ;;  %v17123_v32 = vpop.eup %14006  ;;  %v20439_v54 = vld [vmem:[#allocation128_spill] sm:$0xff] }
 0x7d1   : > { %11195 = vmatpush3.bf16.msra.mxu1 %v5800_v60  ;;  %v5314_v7 = vmul.f32 1.442695, %v5203_v28  ;;  %14026 = vpow2.f32 %v5344_v41  ;;  %11132 = vmatprep.subr.bf16.mxu0 %v5375_v40  ;;  %v5742_v25 = vmul.f32 %v16891_v39, %v20438_v42  ;;  %v17127_v43 = vpop.eup %14008  ;;  %v5367_v46 = vpack.c.bf16 %v17103_v15, %v17094_v10  ;;  %v17138_v45 = vld [vmem:[#allocation10 + $0x40] ss:$16 sps:$4 sm:$0xff]   ;;  %v20441_v41 = vld [vmem:[#allocation143_spill] sm:$0xff] }
 0x7d2   : > { %v5312_v34 = vmul.f32 1.442695, %v20437_v51  ;;  %11196 = vmatprep.subr.bf16.mxu1 %v5809_v22  ;;  %14028 = vpow2.f32 %v5346_v49  ;;  %v5801_v17 = vpack.c.bf16 %v5741_v27, %v5740_v5  ;;  %v5743_v26 = vmul.f32 %v16897_v19, %v20439_v54  ;;  %v17134_v18 = vpop.eup %14010  ;;  %v20440_v39 = vld [vmem:[#allocation142_spill] sm:$0xff]  ;;  %v20444_v22 = vld [vmem:[#allocation145_spill] sm:$0xff]  ;;  %v20446_v51 = vld [vmem:[#allocation216_spill] sm:$0xff] }
 0x7d3   : > { %v5376_v28 = vpack.c.bf16 %v17118_v36, %v17111_v58  ;;  %v5810_v47 = vpack.c.bf16 %v5759_v3, %v5758_v6  ;;  %v5760_v29 = vmul.f32 %v16903_v56, %v20440_v39  ;;  %v5761_v14 = vmul.f32 %v16909_v33, %v20441_v41  ;;  %v17144_v49 = vpop.eup %14012  ;;  %v20442_v56 = vld [vmem:[#allocation126_spill] sm:$0xff]  ;;  %v20443_v33 = vld [vmem:[#allocation127_spill] sm:$0xff]  ;;  %v20445_v3 = vld [vmem:[#allocation148_spill] sm:$0xff] }
 0x7d4   : > { %14030 = vpow2.f32 %v5312_v34  ;;  %11133 = vmatpush3.bf16.msra.mxu0 %v5367_v46  ;;  %v17146_v19 = vpop.eup %14014  ;;  %v5368_v5 = vpack.c.bf16 %v17127_v43, %v17123_v32  ;;  %v5802_v38 = vpack.c.bf16 %v5743_v26, %v5742_v25  ;;  %v5744_v27 = vmul.f32 %v16915_v16, %v20442_v56  ;;  %v17156_v60 = vld [vmem:[#allocation10 + $0x64] ss:$16 sps:$4 sm:$0xff]   ;;  %v17184_v39 = vld [vmem:[#allocation10 + $0x60] ss:$16 sps:$4 sm:$0xff]   ;;  %v20450_v41 = vld [vmem:[#allocation217_spill] sm:$0xff] }
 0x7d5   : > { %11197 = vmatpush3.bf16.msra.mxu1 %v5801_v17  ;;  %14032 = vpow2.f32 %v5314_v7  ;;  %11134 = vmatprep.subr.bf16.mxu0 %v5376_v28  ;;  %v5745_v57 = vmul.f32 %v16921_v21, %v20443_v33  ;;  %v5377_v6 = vpack.c.bf16 %v17144_v49, %v17134_v18  ;;  %v5811_v40 = vpack.c.bf16 %v5761_v14, %v5760_v29  ;;  %v20448_v17 = vld [vmem:[#allocation132_spill] sm:$0xff]  ;;  %v20449_v29 = vld [vmem:[#allocation146_spill] sm:$0xff] }
 0x7d6   : > { %11198 = vmatprep.subr.bf16.mxu1 %v5810_v47  ;;  %v17148_v13 = vpop.eup %14016  ;;  %5589 = vmatmul.mubr.bf16.gmra.mrb[216].mxu1 %v17138_v45  ;;  %v5762_v63 = vmul.f32 %v16927_v9, %v20444_v22  ;;  %v5763_v34 = vmul.f32 %v20446_v51, %v20445_v3  ;;  %v20447_v9 = vld [vmem:[#allocation129_spill] sm:$0xff]  ;;  %v5747_v54 = vmul.f32 %v16945_v23, %v20448_v17 }
 0x7d7   : > { %v17158_v20 = vpop.eup %14018  ;;  %v5369_v42 = vpack.c.bf16 %v17148_v13, %v17146_v19  ;;  %v5803_v25 = vpack.c.bf16 %v5745_v57, %v5744_v27  ;;  %5596 = vmatprep.mubr.bf16.mxu1 %v17156_v60  ;;  %v5746_v46 = vmul.f32 %v16939_v0, %v20447_v9  ;;  %v5764_v14 = vmul.f32 %v20450_v41, %v20449_v29  ;;  %v20453_v57 = vld [vmem:[#allocation130_spill] sm:$0xff] }
 0x7d8   : > { %v17167_v16 = vpop.eup %14020  ;;  %11135 = vmatpush3.bf16.msra.mxu0 %v5368_v5  ;;  %v5812_v47 = vpack.c.bf16 %v5763_v34, %v5762_v63  ;;  %v20451_v5 = vld [vmem:[#allocation147_spill] sm:$0xff]  ;;  %v17200_v63 = vld [vmem:[#allocation10 + $0x84] ss:$16 sps:$4 sm:$0xff]   ;;  %v20455_v34 = vld [vmem:[#allocation165_spill] sm:$0xff] }
 0x7d9   : > { %11199 = vmatpush3.bf16.msra.mxu1 %v5802_v38  ;;  %v17169_v21 = vpop.eup %14022  ;;  %11136 = vmatprep.subr.bf16.mxu0 %v5377_v6  ;;  %v5378_v28 = vpack.c.bf16 %v17167_v16, %v17158_v20  ;;  %v20452_v38 = vld [vmem:[#allocation218_spill] sm:$0xff]  ;;  %v5804_v33 = vpack.c.bf16 %v5747_v54, %v5746_v46  ;;  %v5748_v6 = vmul.f32 %v16969_v31, %v20453_v57  ;;  %v20458_v54 = vld [vmem:[#allocation152_spill] sm:$0xff]  ;;  %v20462_v57 = vld [vmem:[#allocation151_spill] sm:$0xff] }
 0x7da   : > { %11200 = vmatprep.subr.bf16.mxu1 %v5811_v40  ;;  %v17171_v7 = vpop.eup %14024  ;;  %v5765_v56 = vmul.f32 %v20452_v38, %v20451_v5  ;;  %v20454_v40 = vld [vmem:[#allocation131_spill] sm:$0xff]  ;;  %v20459_v29 = vld [vmem:[#allocation166_spill] sm:$0xff] }
 0x7db   : > { %v17180_v26 = vpop.eup %14026  ;;  %v5370_v0 = vpack.c.bf16 %v17171_v7, %v17169_v21  ;;  %v5749_v22 = vmul.f32 %v16975_v50, %v20454_v40  ;;  %v20457_v50 = vld [vmem:[#allocation149_spill] sm:$0xff]  ;;  %v5784_v41 = vmul.f32 %v17028_v2, %v20459_v29  ;;  %v17224_v38 = vld [vmem:[#allocation10 + $0x80] ss:$16 sps:$4 sm:$0xff]  }
 0x7dc   : > { %v17190_v27 = vpop.eup %14028  ;;  %11137 = vmatpush3.bf16.msra.mxu0 %v5369_v42  ;;  %v5782_v42 = vmul.f32 %v17013_v4, %v20455_v34  ;;  %v5813_v46 = vpack.c.bf16 %v5765_v56, %v5764_v14  ;;  %v5766_v17 = vmul.f32 %v16982_v48, %v20457_v50  ;;  %v20460_v14 = vld [vmem:[#allocation167_spill] sm:$0xff]  ;;  %v20465_v34 = vld [vmem:[#allocation153_spill] sm:$0xff] }
 0x7dd   : > { %11201 = vmatpush3.bf16.msra.mxu1 %v5803_v25  ;;  %11138 = vmatprep.subr.bf16.mxu0 %v5378_v28  ;;  %v5379_v51 = vpack.c.bf16 %v17190_v27, %v17180_v26  ;;  %v20456_v25 = vld [vmem:[#allocation168_spill] sm:$0xff]  ;;  %v5767_v28 = vmul.f32 %v16990_v44, %v20458_v54  ;;  %v5805_v4 = vpack.c.bf16 %v5749_v22, %v5748_v6  ;;  %v17226_v56 = vld [vmem:[#allocation10 + $0x2c] ss:$16 sps:$4 sm:$0xff]  }
 0x7de   : > { %11202 = vmatprep.subr.bf16.mxu1 %v5812_v47  ;;  %v17192_v23 = vpop.eup %14030  ;;  %v5783_v9 = vmul.f32 %v17021_v1, %v20456_v25  ;;  %5597 = vmatmul.mubr.bf16.gmra.mrb[220].mxu1 %v17184_v39  ;;  %v17218_v47 = vld [vmem:[#allocation10 + $0x8] ss:$16 sps:$4 sm:$0xff]   ;;  %v5785_v5 = vmul.f32 %v17034_v12, %v20460_v14  ;;  %v17228_v44 = vld [vmem:[#allocation10 + $0xa4] ss:$16 sps:$4 sm:$0xff]   ;;  %v5769_v6 = vmul.f32 %v17005_v52, %v20462_v57  ;;  %v17254_v54 = vld [vmem:[#allocation10 + $0x4c] ss:$16 sps:$4 sm:$0xff]  }
 0x7df   : > { %v17202_v3 = vpop.eup %14032  ;;  %5604 = vmatprep.mubr.bf16.mxu1 %v17200_v63  ;;  %v5814_v48 = vpack.c.bf16 %v5767_v28, %v5766_v17  ;;  %v20463_v12 = vld [vmem:[#allocation169_spill] sm:$0xff]  ;;  %v20464_v22 = vld [vmem:[#allocation172_spill] sm:$0xff]  ;;  %v5770_v52 = vmul.f32 %v17060_v59, %v20465_v34  ;;  %v20478_v34 = vld [vmem:[#allocation159_spill] sm:$0xff] }
 0x7e0   : > { %11139 = vmatpush3.bf16.msra.mxu0 %v5370_v0  ;;  %v5371_v31 = vpack.c.bf16 %v17202_v3, %v17192_v23  ;;  %v5822_v1 = vpack.c.bf16 %v5783_v9, %v5782_v42  ;;  %v20461_v0 = vld [vmem:[#allocation150_spill] sm:$0xff]  ;;  %v5823_v2 = vpack.c.bf16 %v5785_v5, %v5784_v41  ;;  %v5786_v40 = vmul.f32 %v17042_v37, %v20463_v12  ;;  %v20466_v42 = vld [vmem:[#allocation156_spill] sm:$0xff]  ;;  %v17246_v37 = vld [vmem:[#allocation10 + $0x28] ss:$16 sps:$4 sm:$0xff]  }
 0x7e1   : > { %11203 = vmatpush3.bf16.msra.mxu1 %v5804_v33  ;;  %11140 = vmatprep.subr.bf16.mxu0 %v5379_v51  ;;  %v5768_v33 = vmul.f32 %v17000_v8, %v20461_v0  ;;  %v5787_v51 = vmul.f32 %v17049_v30, %v20464_v22  ;;  %v5771_v25 = vmul.f32 %v17069_v11, %v20466_v42  ;;  %v17252_v17 = vld [vmem:[#allocation10 + $0xa0] ss:$16 sps:$4 sm:$0xff]   ;;  %v17256_v28 = vld [vmem:[#allocation10 + $0xc4] ss:$16 sps:$4 sm:$0xff]   ;;  %v20471_v41 = vld [vmem:[#allocation173_spill] sm:$0xff] }
 0x7e2   : > { %11204 = vmatprep.subr.bf16.mxu1 %v5813_v46  ;;  %v20467_v46 = vld [vmem:[#allocation170_spill] sm:$0xff]  ;;  %v20472_v14 = vld [vmem:[#allocation176_spill] sm:$0xff]  ;;  %v17282_v22 = vld [vmem:[#allocation10 + $0x6c] ss:$16 sps:$4 sm:$0xff]  }
 0x7e3   : > { %v5815_v8 = vpack.c.bf16 %v5769_v6, %v5768_v33  ;;  %v5824_v9 = vpack.c.bf16 %v5787_v51, %v5786_v40  ;;  %v5788_v30 = vmul.f32 %v17076_v35, %v20467_v46  ;;  %v5816_v59 = vpack.c.bf16 %v5771_v25, %v5770_v52  ;;  %v20474_v0 = vld [vmem:[#allocation160_spill] sm:$0xff]  ;;  %v20475_v6 = vld [vmem:[#allocation174_spill] sm:$0xff]  ;;  %v20479_v42 = vld [vmem:[#allocation177_spill] sm:$0xff] }
 0x7e4   : > { %11141 = vmatpush3.bf16.msra.mxu0 %v5371_v31  ;;  %v20468_v31 = vld [vmem:[#allocation171_spill] sm:$0xff]  ;;  %v5791_v5 = vmul.f32 %v17118_v36, %v20472_v14  ;;  %v5775_v33 = vmul.f32 %v17127_v43, %v20474_v0  ;;  %v5792_v36 = vmul.f32 %v17134_v18, %v20475_v6  ;;  %v17280_v40 = vld [vmem:[#allocation10 + $0xc0] ss:$16 sps:$4 sm:$0xff]   ;;  %v17284_v51 = vld [vmem:[#allocation10 + $0xe4] ss:$16 sps:$4 sm:$0xff]   ;;  %v5777_v52 = vmul.f32 %v17148_v13, %v20478_v34 }
 0x7e5   : > { %11205 = vmatpush3.bf16.msra.mxu1 %v5805_v4  ;;  %11254 = vmatprep.subr.bf16.mxu0 %v5822_v1  ;;  %v5789_v50 = vmul.f32 %v17084_v53, %v20468_v31  ;;  %v20469_v4 = vld [vmem:[#allocation154_spill] sm:$0xff]  ;;  %v20470_v1 = vld [vmem:[#allocation155_spill] sm:$0xff]  ;;  %v5790_v53 = vmul.f32 %v17111_v58, %v20471_v41  ;;  %v20480_v25 = vld [vmem:[#allocation180_spill] sm:$0xff] }
 0x7e6   : > { %5605 = vmatmul.mubr.bf16.gmra.mrb[224].mxu1 %v17224_v38  ;;  %v5772_v11 = vmul.f32 %v17094_v10, %v20469_v4  ;;  %v5773_v29 = vmul.f32 %v17103_v15, %v20470_v1  ;;  %v17274_v58 = vld [vmem:[#allocation10 + $0x48] ss:$16 sps:$4 sm:$0xff]   ;;  %v13864_v1 = vld [vmem:[#allocation10 + $0xe0] ss:$16 sps:$4 sm:$0xff]  }
 0x7e7   : > { %5670 = vmatmul.mubr.bf16.vlgmr.msra.gmra.mrb[128].mxu0 %v17218_v47  ;;  %5612 = vmatprep.mubr.bf16.mxu1 %v17228_v44  ;;  %v5825_v35 = vpack.c.bf16 %v5789_v50, %v5788_v30  ;;  %v5826_v57 = vpack.c.bf16 %v5791_v5, %v5790_v53  ;;  %v20481_v46 = vld [vmem:[#allocation161_spill] sm:$0xff]  ;;  %v20482_v30 = vld [vmem:[#allocation164_spill] sm:$0xff]  ;;  %v20484_v4 = vld [vmem:[#allocation179_spill] sm:$0xff] }
 0x7e8   : > { %11255 = vmatpush3.bf16.msra.mxu0 %v5814_v48  ;;  %5677 = vmatprep.mubr.bf16.mxu0 %v17226_v56  ;;  %v5817_v10 = vpack.c.bf16 %v5773_v29, %v5772_v11  ;;  %v20473_v48 = vld [vmem:[#allocation157_spill] sm:$0xff]  ;;  %v5778_v13 = vmul.f32 %v17169_v21, %v20481_v46  ;;  %v5779_v31 = vmul.f32 %v17171_v7, %v20482_v30  ;;  %v20485_v41 = vld [vmem:[#allocation162_spill] sm:$0xff]  ;;  %v20486_v21 = vld [vmem:[#allocation163_spill] sm:$0xff] }
 0x7e9   : > { %11256 = vmatprep.subr.bf16.mxu0 %v5823_v2  ;;  %v5774_v15 = vmul.f32 %v17123_v32, %v20473_v48  ;;  %v20476_v2 = vld [vmem:[#allocation175_spill] sm:$0xff]  ;;  %v5797_v11 = vmul.f32 %v17190_v27, %v20484_v4  ;;  %v5780_v53 = vmul.f32 %v17192_v23, %v20485_v41  ;;  %v5781_v14 = vmul.f32 %v17202_v3, %v20486_v21 }
 0x7ea   : > { %v5793_v12 = vmul.f32 %v17144_v49, %v20476_v2  ;;  %v5794_v49 = vmul.f32 %v17158_v20, %v20479_v42  ;;  %v13841_v20 = vld [vmem:[#allocation10 + $0x68] ss:$16 sps:$4 sm:$0xff]   ;;  %v13844_v29 = vld [vmem:[#allocation10 + $0x8c] ss:$16 sps:$4 sm:$0xff]  }
 0x7eb   : > { %v5818_v32 = vpack.c.bf16 %v5775_v33, %v5774_v15  ;;  %v5821_v27 = vpack.c.bf16 %v5781_v14, %v5780_v53  ;;  %v13847_v5 = vld [vmem:[#allocation10 + $0x88] ss:$16 sps:$4 sm:$0xff]   ;;  %v13856_v3 = vld [vmem:[#allocation10 + $0xcc] ss:$16 sps:$4 sm:$0xff]  }
 0x7ec   : > { %11257 = vmatpush3.bf16.msra.mxu0 %v5815_v8  ;;  %v20477_v8 = vld [vmem:[#allocation158_spill] sm:$0xff]  ;;  %v5827_v18 = vpack.c.bf16 %v5793_v12, %v5792_v36  ;;  %v13853_v23 = vld [vmem:[#allocation10 + $0xa8] ss:$16 sps:$4 sm:$0xff]   ;;  %v13862_v15 = vld [vmem:[#allocation10 + $0xec] ss:$16 sps:$4 sm:$0xff]  }
 0x7ed   : > { %11258 = vmatprep.subr.bf16.mxu0 %v5824_v9  ;;  %v5776_v43 = vmul.f32 %v17146_v19, %v20477_v8  ;;  %v5795_v9 = vmul.f32 %v17167_v16, %v20480_v25  ;;  %v13859_v48 = vld [vmem:[#allocation10 + $0xc8] ss:$16 sps:$4 sm:$0xff]  }
 0x7ee   : > { %5613 = vmatmul.mubr.bf16.gmra.mrb[228].mxu1 %v17252_v17 }
 0x7ef   : > { %5678 = vmatmul.mubr.bf16.gmra.mrb[132].mxu0 %v17246_v37  ;;  %5620 = vmatprep.mubr.bf16.mxu1 %v17256_v28  ;;  %v5819_v19 = vpack.c.bf16 %v5777_v52, %v5776_v43  ;;  %v5828_v50 = vpack.c.bf16 %v5795_v9, %v5794_v49 }
 0x7f0   : > { %11259 = vmatpush3.bf16.msra.mxu0 %v5816_v59  ;;  %5685 = vmatprep.mubr.bf16.mxu0 %v17254_v54  ;;  %v20483_v59 = vld [vmem:[#allocation178_spill] sm:$0xff] }
 0x7f1   : > { %11260 = vmatprep.subr.bf16.mxu0 %v5825_v35  ;;  %v5796_v16 = vmul.f32 %v17180_v26, %v20483_v59  ;;  %v5820_v35 = vpack.c.bf16 %v5779_v31, %v5778_v13  ;;  %v14228_v26 = vld [vmem:[#allocation10 + $0x4] ss:$16 sps:$4 sm:$0xff]  }
 0x7f3   : > { %v5829_v7 = vpack.c.bf16 %v5797_v11, %v5796_v16 }
 0x7f4   : > { %11261 = vmatpush3.bf16.msra.mxu0 %v5817_v10  ;;  %v13850_v10 = vld [vmem:[#allocation10 + $0xac] ss:$16 sps:$4 sm:$0xff]  }
 0x7f5   : > { %11262 = vmatprep.subr.bf16.mxu0 %v5826_v57 }
 0x7f6   : > { %5621 = vmatmul.mubr.bf16.gmra.mrb[232].mxu1 %v17280_v40 }
 0x7f7   : > { %5686 = vmatmul.mubr.bf16.gmra.mrb[136].mxu0 %v17274_v58  ;;  %5628 = vmatprep.mubr.bf16.mxu1 %v17284_v51 }
 0x7f8   : > { %11263 = vmatpush3.bf16.msra.mxu0 %v5818_v32  ;;  %5693 = vmatprep.mubr.bf16.mxu0 %v17282_v22 }
 0x7f9   : > { %11264 = vmatprep.subr.bf16.mxu0 %v5827_v18 }
 0x7fc   : > { %11265 = vmatpush3.bf16.msra.mxu0 %v5819_v19 }
 0x7fd   : > { %11266 = vmatprep.subr.bf16.mxu0 %v5828_v50 }
 0x7fe   : > { %5629 = vmatmul.mubr.bf16.gmra.mrb[236].mxu1 %v13864_v1 }
 0x7ff   : > { %5694 = vmatmul.mubr.bf16.gmra.mrb[140].mxu0 %v13841_v20  ;;  %5862 = vmatprep.mubr.bf16.mxu1 %v14228_v26 }
 0x800   : > { %11267 = vmatpush3.bf16.msra.mxu0 %v5820_v35  ;;  %5701 = vmatprep.mubr.bf16.mxu0 %v13844_v29 }
 0x801   : > { %11268 = vmatprep.subr.bf16.mxu0 %v5829_v7 }
 0x804   : > { %11269 = vmatpush3.bf16.msra.mxu0 %v5821_v27 }
 0x806   : > { %5863 = vmatmul.mubr.bf16.vlgmr.msra.gmra.mrb[240].mxu1 %v17015_v62  ;;  %v13865_v62 = vld [vmem:[#allocation10 + $0xe8] ss:$16 sps:$4 sm:$0xff]  }
 0x807   : > { %5702 = vmatmul.mubr.bf16.gmra.mrb[144].mxu0 %v13847_v5  ;;  %5870 = vmatprep.mubr.bf16.mxu1 %v17040_v55  ;;  %v14229_v55 = vld [vmem:[#allocation10 + $0xc] ss:$16 sps:$4 sm:$0xff]  }
 0x808   : > { %5709 = vmatprep.mubr.bf16.mxu0 %v13850_v10 }
 0x80e   : > { %5871 = vmatmul.mubr.bf16.gmra.mrb[244].mxu1 %v17080_v61  ;;  %v14230_v61 = vld [vmem:[#allocation7] sm:$0xff]  }
 0x80f   : > { %5710 = vmatmul.mubr.bf16.gmra.mrb[148].mxu0 %v13853_v23  ;;  %5878 = vmatprep.mubr.bf16.mxu1 %v17109_v24  ;;  %v14231_v24 = vld [vmem:[#allocation8] sm:$0xff]  }
 0x810   : > { %5717 = vmatprep.mubr.bf16.mxu0 %v13856_v3 }
 0x816   : > { %5879 = vmatmul.mubr.bf16.gmra.mrb[248].mxu1 %v17138_v45 }
 0x817   : > { %5718 = vmatmul.mubr.bf16.gmra.mrb[152].mxu0 %v13859_v48  ;;  %5886 = vmatprep.mubr.bf16.mxu1 %v17156_v60 }
 0x818   : > { %5725 = vmatprep.mubr.bf16.mxu0 %v13862_v15 }
 0x81e   : > { %5887 = vmatmul.mubr.bf16.gmra.mrb[252].mxu1 %v17184_v39 }
 0x81f   : > { %5726 = vmatmul.mubr.bf16.gmra.mrb[156].mxu0 %v13865_v62  ;;  %5894 = vmatprep.mubr.bf16.mxu1 %v17200_v63 }
 0x820   : > { %5959 = vmatprep.mubr.bf16.mxu0 %v14229_v55 }
 0x826   : > { %5895 = vmatmul.mubr.bf16.gmra.mrb[0].mxu1 %v17224_v38 }
 0x827   : > { %5960 = vmatmul.mubr.bf16.vlgmr.msra.gmra.mrb[160].mxu0 %v17218_v47  ;;  %5902 = vmatprep.mubr.bf16.mxu1 %v17228_v44 }
 0x828   : > { %5967 = vmatprep.mubr.bf16.mxu0 %v17226_v56 }
 0x82e   : > { %5903 = vmatmul.mubr.bf16.gmra.mrb[4].mxu1 %v17252_v17 }
 0x82f   : > { %5968 = vmatmul.mubr.bf16.gmra.mrb[164].mxu0 %v17246_v37  ;;  %5910 = vmatprep.mubr.bf16.mxu1 %v17256_v28 }
 0x830   : > { %5975 = vmatprep.mubr.bf16.mxu0 %v17254_v54 }
 0x836   : > { %5911 = vmatmul.mubr.bf16.gmra.mrb[8].mxu1 %v17280_v40 }
 0x837   : > { %5976 = vmatmul.mubr.bf16.gmra.mrb[168].mxu0 %v17274_v58  ;;  %5918 = vmatprep.mubr.bf16.mxu1 %v17284_v51 }
 0x838   : > { %5983 = vmatprep.mubr.bf16.mxu0 %v17282_v22 }
 0x83e   : > { %5919 = vmatmul.mubr.bf16.gmra.mrb[12].mxu1 %v13864_v1 }
 0x83f   : > { %5984 = vmatmul.mubr.bf16.gmra.mrb[172].mxu0 %v13841_v20  ;;  %12568 = vmatprep.mubr.bf16.mxu1 %v14230_v61 }
 0x840   : > { %5991 = vmatprep.mubr.bf16.mxu0 %v13844_v29 }
 0x847   : > { %5992 = vmatmul.mubr.bf16.gmra.mrb[176].mxu0 %v13847_v5 }
 0x848   : > { %5999 = vmatprep.mubr.bf16.mxu0 %v13850_v10 }
 0x84f   : > { %6000 = vmatmul.mubr.bf16.gmra.mrb[180].mxu0 %v13853_v23 }
 0x850   : > { %6007 = vmatprep.mubr.bf16.mxu0 %v13856_v3 }
 0x857   : > { %6008 = vmatmul.mubr.bf16.gmra.mrb[184].mxu0 %v13859_v48 }
 0x858   : > { %6015 = vmatprep.mubr.bf16.mxu0 %v13862_v15 }
 0x85f   : > { %6016 = vmatmul.mubr.bf16.gmra.mrb[188].mxu0 %v13865_v62 }
 0x860   : > { %12648 = vmatprep.mubr.bf16.mxu0 %v14231_v24 }
 0x899   : > { %v11078_v45 = vpop.f32.mrb[208].mxu1 }
 0x89a   : > { %v11079_v60 = vpop.f32.mrb[209].mxu1 }
 0x89b   : > { %v11080_v39 = vadd.f32 %v11079_v60, %v11078_v45  ;;  %v11081_v63 = vpop.f32.mrb[210].mxu1 }
 0x89c   : > { %v11082_v47 = vpop.f32.mrb[211].mxu1 }
 0x89d   : > { %v11083_v38 = vadd.f32 %v11082_v47, %v11081_v63 }
 0x8a1   : > { %v11084_v56 = vpop.f32.mrb[212].mxu1 }
 0x8a2   : > { %v11085_v44 = vpop.f32.mrb[213].mxu1 }
 0x8a3   : > { %v11086_v37 = vadd.f32 %v11085_v44, %v11084_v56  ;;  %v11087_v17 = vpop.f32.mrb[214].mxu1 }
 0x8a4   : > { %v11088_v54 = vpop.f32.mrb[215].mxu1 }
 0x8a5   : > { %v11089_v28 = vadd.f32 %v11088_v54, %v11087_v17 }
 0x8a9   : > { %v11090_v0 = vpop.f32.mrb[216].mxu1 }
 0x8aa   : > { %v11091_v33 = vpop.f32.mrb[217].mxu1 }
 0x8ab   : > { %v11092_v57 = vadd.f32 %v11091_v33, %v11090_v0  ;;  %v11093_v58 = vpop.f32.mrb[218].mxu1 }
 0x8ac   : > { %v11094_v6 = vpop.f32.mrb[219].mxu1 }
 0x8ad   : > { %v11095_v36 = vadd.f32 %v11094_v6, %v11093_v58 }
 0x8b1   : > { %v11096_v2 = vpop.f32.mrb[220].mxu1 }
 0x8b2   : > { %v11097_v12 = vpop.f32.mrb[221].mxu1 }
 0x8b3   : > { %v11098_v40 = vadd.f32 %v11097_v12, %v11096_v2  ;;  %v11099_v22 = vpop.f32.mrb[222].mxu1 }
 0x8b4   : > { %v11100_v51 = vpop.f32.mrb[223].mxu1 }
 0x8b5   : > { %v11101_v32 = vadd.f32 %v11100_v51, %v11099_v22 }
 0x8b9   : > { %v11102_v43 = vpop.f32.mrb[224].mxu1 }
 0x8ba   : > { %v11142_v8 = vpop.f32.mrb[128].mxu0  ;;  %v11103_v52 = vpop.f32.mrb[225].mxu1 }
 0x8bb   : > { %v11143_v34 = vpop.f32.mrb[129].mxu0  ;;  %v11104_v49 = vadd.f32 %v11103_v52, %v11102_v43  ;;  %v11105_v25 = vpop.f32.mrb[226].mxu1 }
 0x8bc   : > { %v11144_v18 = vadd.f32 %v11143_v34, %v11142_v8  ;;  %v11145_v42 = vpop.f32.mrb[130].mxu0  ;;  %v11106_v19 = vpop.f32.mrb[227].mxu1 }
 0x8bd   : > { %v11146_v9 = vpop.f32.mrb[131].mxu0  ;;  %v11107_v30 = vadd.f32 %v11106_v19, %v11105_v25 }
 0x8be   : > { %v17330_v46 = vadd.f32 %v11144_v18, %v11080_v39  ;;  %v11147_v13 = vadd.f32 %v11146_v9, %v11145_v42 }
 0x8c0   : > { %v17332_v31 = vadd.f32 %v11147_v13, %v11083_v38  ;;  %vm6024_vm0 = vcmp.gt.f32.partialorder %v17330_v46, 0.0 }
 0x8c1   : > { %v11108_v20 = vpop.f32.mrb[228].mxu1 }
 0x8c2   : > { %v11148_v50 = vpop.f32.mrb[132].mxu0  ;;  %v11109_v16 = vpop.f32.mrb[229].mxu1  ;;  %vm6025_vm1 = vcmp.gt.f32.partialorder %v17332_v31, 0.0 }
 0x8c3   : > { %v11149_v59 = vpop.f32.mrb[133].mxu0  ;;  %v11110_v1 = vadd.f32 %v11109_v16, %v11108_v20  ;;  %v11111_v29 = vpop.f32.mrb[230].mxu1 }
 0x8c4   : > { %v11150_v4 = vadd.f32 %v11149_v59, %v11148_v50  ;;  %v11151_v11 = vpop.f32.mrb[134].mxu0  ;;  %v11112_v41 = vpop.f32.mrb[231].mxu1 }
 0x8c5   : > { %v11152_v35 = vpop.f32.mrb[135].mxu0  ;;  %v11113_v14 = vadd.f32 %v11112_v41, %v11111_v29 }
 0x8c6   : > { %v17334_v53 = vadd.f32 %v11150_v4, %v11086_v37  ;;  %v11153_v21 = vadd.f32 %v11152_v35, %v11151_v11 }
 0x8c8   : > { %v17336_v7 = vadd.f32 %v11153_v21, %v11089_v28  ;;  %vm6026_vm2 = vcmp.gt.f32.partialorder %v17334_v53, 0.0 }
 0x8c9   : > { %v11114_v27 = vpop.f32.mrb[232].mxu1 }
 0x8ca   : > { %v11154_v26 = vpop.f32.mrb[136].mxu0  ;;  %v11115_v10 = vpop.f32.mrb[233].mxu1  ;;  %vm6027_vm3 = vcmp.gt.f32.partialorder %v17336_v7, 0.0 }
 0x8cb   : > { %v11155_v5 = vpop.f32.mrb[137].mxu0  ;;  %v11116_v48 = vadd.f32 %v11115_v10, %v11114_v27  ;;  %v11117_v15 = vpop.f32.mrb[234].mxu1 }
 0x8cc   : > { %v11156_v23 = vadd.f32 %v11155_v5, %v11154_v26  ;;  %v11157_v3 = vpop.f32.mrb[138].mxu0  ;;  %v11118_v55 = vpop.f32.mrb[235].mxu1 }
 0x8cd   : > { %v11158_v62 = vpop.f32.mrb[139].mxu0  ;;  %v11119_v45 = vadd.f32 %v11118_v55, %v11117_v15 }
 0x8ce   : > { %v17338_v61 = vadd.f32 %v11156_v23, %v11092_v57  ;;  %v11159_v24 = vadd.f32 %v11158_v62, %v11157_v3 }
 0x8d0   : > { %v17340_v60 = vadd.f32 %v11159_v24, %v11095_v36  ;;  %vm6028_vm4 = vcmp.gt.f32.partialorder %v17338_v61, 0.0 }
 0x8d1   : > { %v11120_v63 = vpop.f32.mrb[236].mxu1 }
 0x8d2   : > { %v11160_v39 = vpop.f32.mrb[140].mxu0  ;;  %v11121_v38 = vpop.f32.mrb[237].mxu1  ;;  %vm6029_vm5 = vcmp.gt.f32.partialorder %v17340_v60, 0.0 }
 0x8d3   : > { %v11161_v47 = vpop.f32.mrb[141].mxu0  ;;  %v17342_v37 = vadd.f32 %v11121_v38, %v11120_v63  ;;  %v11123_v17 = vpop.f32.mrb[238].mxu1 }
 0x8d4   : > { %v11162_v56 = vadd.f32 %v11161_v47, %v11160_v39  ;;  %v11163_v44 = vpop.f32.mrb[142].mxu0  ;;  %v11124_v28 = vpop.f32.mrb[239].mxu1  ;;  %v6040_v39 = vsel %vm6024_vm0, %v17330_v46, 1.0 }
 0x8d5   : > { %v11164_v54 = vpop.f32.mrb[143].mxu0  ;;  %v17346_v57 = vadd.f32 %v11124_v28, %v11123_v17  ;;  %14034 = vrcp.f32 %v6040_v39 }
 0x8d6   : > { %v17344_v0 = vadd.f32 %v11162_v56, %v11098_v40  ;;  %v11165_v33 = vadd.f32 %v11164_v54, %v11163_v44  ;;  %v6041_v44 = vsel %vm6025_vm1, %v17332_v31, 1.0  ;;  %v6042_v31 = vsel %vm6026_vm2, %v17334_v53, 1.0 }
 0x8d7   : > { %14036 = vrcp.f32 %v6041_v44 }
 0x8d8   : > { %v17348_v58 = vadd.f32 %v11165_v33, %v11101_v32  ;;  %14038 = vrcp.f32 %v6042_v31  ;;  %vm6030_vm6 = vcmp.gt.f32.partialorder %v17344_v0, 0.0 }
 0x8d9   : > { %v11206_v36 = vpop.f32.mrb[240].mxu1 }
 0x8da   : > { %v11166_v6 = vpop.f32.mrb[144].mxu0  ;;  %v11207_v12 = vpop.f32.mrb[241].mxu1  ;;  %vm6031_vm7 = vcmp.gt.f32.partialorder %v17348_v58, 0.0 }
 0x8db   : > { %v11167_v2 = vpop.f32.mrb[145].mxu0  ;;  %v17350_v8 = vadd.f32 %v11207_v12, %v11206_v36  ;;  %v11209_v43 = vpop.f32.mrb[242].mxu1 }
 0x8dc   : > { %v11168_v22 = vadd.f32 %v11167_v2, %v11166_v6  ;;  %v11169_v51 = vpop.f32.mrb[146].mxu0  ;;  %v11210_v52 = vpop.f32.mrb[243].mxu1 }
 0x8dd   : > { %v11170_v34 = vpop.f32.mrb[147].mxu0  ;;  %v17354_v42 = vadd.f32 %v11210_v52, %v11209_v43 }
 0x8de   : > { %v17352_v18 = vadd.f32 %v11168_v22, %v11104_v49  ;;  %v11171_v40 = vadd.f32 %v11170_v34, %v11169_v51 }
 0x8df   : > { %v14035_v53 = vpop.eup %14034 }
 0x8e0   : > { %v17356_v25 = vadd.f32 %v11171_v40, %v11107_v30  ;;  %vm6032_vm8 = vcmp.gt.f32.partialorder %v17352_v18, 0.0 }
 0x8e1   : > { %v11212_v9 = vpop.f32.mrb[244].mxu1 }
 0x8e2   : > { %v11172_v32 = vpop.f32.mrb[148].mxu0  ;;  %v11213_v13 = vpop.f32.mrb[245].mxu1  ;;  %vm6033_vm9 = vcmp.gt.f32.partialorder %v17356_v25, 0.0 }
 0x8e3   : > { %v11173_v19 = vpop.f32.mrb[149].mxu0  ;;  %v17358_v59 = vadd.f32 %v11213_v13, %v11212_v9  ;;  %v11215_v16 = vpop.f32.mrb[246].mxu1 }
 0x8e4   : > { %v11174_v50 = vadd.f32 %v11173_v19, %v11172_v32  ;;  %v11175_v20 = vpop.f32.mrb[150].mxu0  ;;  %v11216_v11 = vpop.f32.mrb[247].mxu1 }
 0x8e5   : > { %v11176_v4 = vpop.f32.mrb[151].mxu0  ;;  %v17362_v35 = vadd.f32 %v11216_v11, %v11215_v16  ;;  %v14037_v16 = vpop.eup %14036  ;;  %v20487_v11 = vld [vmem:[#allocation40_spill] sm:$0xff] }
 0x8e6   : > { %v17360_v29 = vadd.f32 %v11174_v50, %v11110_v1  ;;  %v11177_v49 = vadd.f32 %v11176_v4, %v11175_v20  ;;  %v6044_v4 = vsel %vm6028_vm4, %v17338_v61, 1.0 }
 0x8e8   : > { %v17364_v41 = vadd.f32 %v11177_v49, %v11113_v14  ;;  %vm6034_vm10 = vcmp.gt.f32.partialorder %v17360_v29, 0.0 }
 0x8e9   : > { %v11218_v21 = vpop.f32.mrb[248].mxu1 }
 0x8ea   : > { %v11178_v30 = vpop.f32.mrb[152].mxu0  ;;  %v11219_v27 = vpop.f32.mrb[249].mxu1  ;;  %vm6035_vm11 = vcmp.gt.f32.partialorder %v17364_v41, 0.0 }
 0x8eb   : > { %v11179_v26 = vpop.f32.mrb[153].mxu0  ;;  %v17366_v23 = vadd.f32 %v11219_v27, %v11218_v21  ;;  %v11221_v3 = vpop.f32.mrb[250].mxu1 }
 0x8ec   : > { %v11180_v5 = vadd.f32 %v11179_v26, %v11178_v30  ;;  %v11181_v10 = vpop.f32.mrb[154].mxu0  ;;  %v11222_v62 = vpop.f32.mrb[251].mxu1 }
 0x8ed   : > { %v11182_v15 = vpop.f32.mrb[155].mxu0  ;;  %v17370_v24 = vadd.f32 %v11222_v62, %v11221_v3 }
 0x8ee   : > { %v17368_v55 = vadd.f32 %v11180_v5, %v11116_v48  ;;  %v11183_v1 = vadd.f32 %v11182_v15, %v11181_v10  ;;  %v6045_v5 = vsel %vm6029_vm5, %v17340_v60, 1.0  ;;  %v20489_v10 = vld [vmem:[#allocation42_spill] sm:$0xff]  ;;  %v14039_v60 = vpop.eup %14038 }
 0x8f0   : > { %v17373_v14 = vadd.f32 %v11183_v1, %v11119_v45  ;;  %vm6036_vm12 = vcmp.gt.f32.partialorder %v17368_v55, 0.0 }
 0x8f1   : > { %v11224_v47 = vpop.f32.mrb[252].mxu1 }
 0x8f2   : > { %v11184_v63 = vpop.f32.mrb[156].mxu0  ;;  %v11225_v56 = vpop.f32.mrb[253].mxu1  ;;  %vm6037_vm13 = vcmp.gt.f32.partialorder %v17373_v14, 0.0 }
 0x8f3   : > { %v11185_v38 = vpop.f32.mrb[157].mxu0  ;;  %v17378_v54 = vadd.f32 %v11225_v56, %v11224_v47  ;;  %v11227_v28 = vpop.f32.mrb[254].mxu1 }
 0x8f4   : > { %v11186_v17 = vadd.f32 %v11185_v38, %v11184_v63  ;;  %v11187_v48 = vpop.f32.mrb[158].mxu0  ;;  %v11228_v6 = vpop.f32.mrb[255].mxu1 }
 0x8f5   : > { %v11188_v33 = vpop.f32.mrb[159].mxu0  ;;  %v17383_v2 = vadd.f32 %v11228_v6, %v11227_v28  ;;  %v20491_v6 = vld [vmem:[#allocation43_spill] sm:$0xff] }
 0x8f6   : > { %v17381_v45 = vadd.f32 %v11186_v17, %v17342_v37  ;;  %v11189_v36 = vadd.f32 %v11188_v33, %v11187_v48  ;;  %v6043_v37 = vsel %vm6027_vm3, %v17336_v7, 1.0 }
 0x8f7   : > { %14040 = vrcp.f32 %v6043_v37  ;;  %v20493_v37 = vld [vmem:[#allocation41_spill] sm:$0xff] }
 0x8f8   : > { %v17387_v46 = vadd.f32 %v11189_v36, %v17346_v57  ;;  %14042 = vrcp.f32 %v6044_v4  ;;  %vm6038_vm14 = vcmp.gt.f32.partialorder %v17381_v45, 0.0 }
 0x8f9   : > { %v11230_v22 = vpop.f32.mrb[0].mxu1  ;;  %14044 = vrcp.f32 %v6045_v5 }
 0x8fa   : > { %v11270_v12 = vpop.f32.mrb[160].mxu0  ;;  %v11231_v43 = vpop.f32.mrb[1].mxu1  ;;  %vm6039_vm15 = vcmp.gt.f32.partialorder %v17387_v46, 0.0 }
 0x8fb   : > { %v11271_v51 = vpop.f32.mrb[161].mxu0  ;;  %v17392_v40 = vadd.f32 %v11231_v43, %v11230_v22  ;;  %v11233_v32 = vpop.f32.mrb[2].mxu1  ;;  %v6047_v43 = vsel %vm6031_vm7, %v17348_v58, 1.0 }
 0x8fc   : > { %v11272_v34 = vadd.f32 %v11271_v51, %v11270_v12  ;;  %v11273_v52 = vpop.f32.mrb[162].mxu0  ;;  %v11234_v19 = vpop.f32.mrb[3].mxu1 }
 0x8fd   : > { %v11274_v9 = vpop.f32.mrb[163].mxu0  ;;  %v17395_v50 = vadd.f32 %v11234_v19, %v11233_v32 }
 0x8fe   : > { %v5962_v57 = vadd.f32 %v11272_v34, %v17350_v8  ;;  %v11275_v13 = vadd.f32 %v11274_v9, %v11273_v52 }
 0x900   : > { %v6072_v20 = vmul.f32 %v14035_v53, %v5962_v57  ;;  %v5965_v7 = vadd.f32 %v11275_v13, %v17354_v42 }
 0x901   : > { %v11236_v21 = vpop.f32.mrb[4].mxu1  ;;  %v14041_v33 = vpop.eup %14040 }
 0x902   : > { %v17402_v49 = vadd.f32 %v6072_v20, %v20487_v11  ;;  %v6073_v30 = vmul.f32 %v14037_v16, %v5965_v7  ;;  %v11276_v8 = vpop.f32.mrb[164].mxu0  ;;  %v11237_v27 = vpop.f32.mrb[5].mxu1 }
 0x903   : > { %v11277_v26 = vpop.f32.mrb[165].mxu0  ;;  %v17408_v62 = vadd.f32 %v11237_v27, %v11236_v21  ;;  %v11239_v1 = vpop.f32.mrb[6].mxu1  ;;  %v20495_v21 = vld [vmem:[#allocation44_spill] sm:$0xff] }
 0x904   : > { %20488 = vst [vmem:[#allocation219_spill] sm:$0xff] %v17402_v49  ;;  %v17406_v3 = vadd.f32 %v6073_v30, %v20489_v10  ;;  %v11278_v15 = vadd.f32 %v11277_v26, %v11276_v8  ;;  %v11279_v42 = vpop.f32.mrb[166].mxu0  ;;  %v19765_v39 = vmax.f32 %v17402_v49, 0.0  ;;  %v11240_v63 = vpop.f32.mrb[7].mxu1 }
 0x905   : > { %v11280_v61 = vpop.f32.mrb[167].mxu0  ;;  %v17413_v44 = vadd.f32 %v11240_v63, %v11239_v1  ;;  %v14043_v58 = vpop.eup %14042  ;;  %v20497_v1 = vld [vmem:[#allocation46_spill] sm:$0xff] }
 0x906   : > { %20490 = vst [vmem:[#allocation220_spill] sm:$0xff] %v17406_v3  ;;  %v5970_v47 = vadd.f32 %v11278_v15, %v17358_v59  ;;  %v11281_v38 = vadd.f32 %v11280_v61, %v11279_v42  ;;  %v19764_v56 = vmax.f32 %v17406_v3, 0.0  ;;  %v6046_v59 = vsel %vm6030_vm6, %v17344_v0, 1.0  ;;  %v14045_v8 = vpop.eup %14044 }
 0x907   : > { %14046 = vrcp.f32 %v6046_v59  ;;  %v6049_v42 = vsel %vm6033_vm9, %v17356_v25, 1.0 }
 0x908   : > { %v6074_v17 = vmul.f32 %v14039_v60, %v5970_v47  ;;  %v5973_v48 = vadd.f32 %v11281_v38, %v17362_v35  ;;  %v6120_v28 = vpack.c.bf16 %v19764_v56, %v19765_v39  ;;  %14048 = vrcp.f32 %v6047_v43  ;;  %v13889_v56 = vld [vmem:[%s15424_s1 + $0x78] sm:$0xff]  }
 0x909   : > { %v11242_v22 = vpop.f32.mrb[8].mxu1 }
 0x90a   : > { %v17424_v36 = vadd.f32 %v6074_v17, %v20491_v6  ;;  %v6075_v31 = vmul.f32 %v14041_v33, %v5973_v48  ;;  %v11282_v12 = vpop.f32.mrb[168].mxu0  ;;  %12552 = vmatprep.subr.bf16.mxu1 %v6120_v28  ;;  %12632 = vmatprep.subr.bf16.mxu0 %v6120_v28  ;;  %v11243_v35 = vpop.f32.mrb[9].mxu1 }
 0x90b   : > { %v11283_v51 = vpop.f32.mrb[169].mxu0  ;;  %12553 = vmatpush3.bf16.msra.mxu1 %v6120_v28  ;;  %12633 = vmatpush3.bf16.msra.mxu0 %v6120_v28  ;;  %v17430_v0 = vadd.f32 %v11243_v35, %v11242_v22  ;;  %v11245_v9 = vpop.f32.mrb[10].mxu1  ;;  %v20499_v35 = vld [vmem:[#allocation47_spill] sm:$0xff] }
 0x90c   : > { %20492 = vst [vmem:[#allocation221_spill] sm:$0xff] %v17424_v36  ;;  %v17428_v34 = vadd.f32 %v6075_v31, %v20493_v37  ;;  %v11284_v52 = vadd.f32 %v11283_v51, %v11282_v12  ;;  %v11285_v32 = vpop.f32.mrb[170].mxu0  ;;  %v19763_v19 = vmax.f32 %v17424_v36, 0.0  ;;  %v11246_v13 = vpop.f32.mrb[11].mxu1 }
 0x90d   : > { %v11286_v57 = vpop.f32.mrb[171].mxu0  ;;  %v17435_v16 = vadd.f32 %v11246_v13, %v11245_v9  ;;  %v20501_v9 = vld [vmem:[#allocation45_spill] sm:$0xff] }
 0x90e   : > { %20494 = vst [vmem:[#allocation88_spill] sm:$0xff] %v17428_v34  ;;  %v19762_v53 = vmax.f32 %v17428_v34, 0.0  ;;  %v5978_v20 = vadd.f32 %v11284_v52, %v17366_v23  ;;  %v11287_v7 = vadd.f32 %v11286_v57, %v11285_v32  ;;  %v6048_v23 = vsel %vm6032_vm8, %v17352_v18, 1.0 }
 0x90f   : > { %14050 = vrcp.f32 %v6048_v23 }
 0x910   : > { %v6076_v4 = vmul.f32 %v14043_v58, %v5978_v20  ;;  %v5981_v11 = vadd.f32 %v11287_v7, %v17370_v24  ;;  %v6121_v30 = vpack.c.bf16 %v19762_v53, %v19763_v19  ;;  %14052 = vrcp.f32 %v6049_v42  ;;  %v20505_v42 = vld [vmem:[#allocation50_spill] sm:$0xff] }
 0x911   : > { %v11248_v10 = vpop.f32.mrb[12].mxu1  ;;  %v14047_v25 = vpop.eup %14046 }
 0x912   : > { %v17446_v26 = vadd.f32 %v6076_v4, %v20495_v21  ;;  %v6077_v27 = vmul.f32 %v14045_v8, %v5981_v11  ;;  %v11288_v5 = vpop.f32.mrb[172].mxu0  ;;  %12554 = vmatprep.subr.bf16.mxu1 %v6121_v30  ;;  %12634 = vmatprep.subr.bf16.mxu0 %v6121_v30  ;;  %v11249_v24 = vpop.f32.mrb[13].mxu1 }
 0x913   : > { %v11289_v15 = vpop.f32.mrb[173].mxu0  ;;  %12555 = vmatpush3.bf16.msra.mxu1 %v6121_v30  ;;  %12635 = vmatpush3.bf16.msra.mxu0 %v6121_v30  ;;  %v17452_v18 = vadd.f32 %v11249_v24, %v11248_v10  ;;  %v11251_v38 = vpop.f32.mrb[14].mxu1 }
 0x914   : > { %20496 = vst [vmem:[#allocation90_spill] sm:$0xff] %v17446_v26  ;;  %v17450_v61 = vadd.f32 %v6077_v27, %v20497_v1  ;;  %v11290_v63 = vadd.f32 %v11289_v15, %v11288_v5  ;;  %v11291_v47 = vpop.f32.mrb[174].mxu0  ;;  %v19761_v60 = vmax.f32 %v17446_v26, 0.0  ;;  %v11252_v48 = vpop.f32.mrb[15].mxu1  ;;  %v6052_v27 = vsel %vm6036_vm12, %v17368_v55, 1.0  ;;  %v20503_v5 = vld [vmem:[#allocation48_spill] sm:$0xff] }
 0x915   : > { %v11292_v17 = vpop.f32.mrb[175].mxu0  ;;  %v17457_v6 = vadd.f32 %v11252_v48, %v11251_v38  ;;  %v14049_v51 = vpop.eup %14048 }
 0x916   : > { %20498 = vst [vmem:[#allocation89_spill] sm:$0xff] %v17450_v61  ;;  %v19760_v28 = vmax.f32 %v17450_v61, 0.0  ;;  %v5986_v33 = vadd.f32 %v11290_v63, %v17378_v54  ;;  %v11293_v59 = vadd.f32 %v11292_v17, %v11291_v47  ;;  %v6050_v54 = vsel %vm6034_vm10, %v17360_v29, 1.0 }
 0x917   : > { %14054 = vrcp.f32 %v6050_v54 }
 0x918   : > { %v6078_v31 = vmul.f32 %v14047_v25, %v5986_v33  ;;  %v5989_v12 = vadd.f32 %v11293_v59, %v17383_v2  ;;  %v6122_v22 = vpack.c.bf16 %v19760_v28, %v19761_v60  ;;  %v6051_v2 = vsel %vm6035_vm11, %v17364_v41, 1.0  ;;  %v13887_v60 = vld [vmem:[%s15424_s1 + $0x68] sm:$0xff]  }
 0x919   : > { %v14051_v30 = vpop.eup %14050  ;;  %14056 = vrcp.f32 %v6051_v2 }
 0x91a   : > { %v17468_v43 = vadd.f32 %v6078_v31, %v20499_v35  ;;  %v6079_v37 = vmul.f32 %v14049_v51, %v5989_v12  ;;  %v11294_v52 = vpop.f32.mrb[176].mxu0  ;;  %12556 = vmatprep.subr.bf16.mxu1 %v6122_v22  ;;  %12636 = vmatprep.subr.bf16.mxu0 %v6122_v22  ;;  %v14053_v21 = vpop.eup %14052  ;;  %14058 = vrcp.f32 %v6052_v27  ;;  %v20507_v51 = vld [vmem:[#allocation51_spill] sm:$0xff] }
 0x91b   : > { %v11295_v32 = vpop.f32.mrb[177].mxu0  ;;  %12557 = vmatpush3.bf16.msra.mxu1 %v6122_v22  ;;  %12637 = vmatpush3.bf16.msra.mxu0 %v6122_v22  ;;  %v6054_v22 = vsel %vm6038_vm14, %v17381_v45, 1.0 }
 0x91c   : > { %20500 = vst [vmem:[#allocation91_spill] sm:$0xff] %v17468_v43  ;;  %v17472_v57 = vadd.f32 %v6079_v37, %v20501_v9  ;;  %v11296_v13 = vadd.f32 %v11295_v32, %v11294_v52  ;;  %v11297_v20 = vpop.f32.mrb[178].mxu0  ;;  %v19759_v29 = vmax.f32 %v17468_v43, 0.0  ;;  %v20509_v52 = vld [vmem:[#allocation49_spill] sm:$0xff] }
 0x91d   : > { %v11298_v7 = vpop.f32.mrb[179].mxu0 }
 0x91e   : > { %20502 = vst [vmem:[#allocation107_spill] sm:$0xff] %v17472_v57  ;;  %v19758_v58 = vmax.f32 %v17472_v57, 0.0  ;;  %v5994_v4 = vadd.f32 %v11296_v13, %v17392_v40  ;;  %v11299_v11 = vadd.f32 %v11298_v7, %v11297_v20 }
 0x920   : > { %v6080_v8 = vmul.f32 %v14051_v30, %v5994_v4  ;;  %v5997_v41 = vadd.f32 %v11299_v11, %v17395_v50  ;;  %v6123_v23 = vpack.c.bf16 %v19758_v58, %v19759_v29  ;;  %v6053_v50 = vsel %vm6037_vm13, %v17373_v14, 1.0 }
 0x921   : > { %v14055_v59 = vpop.eup %14054  ;;  %14060 = vrcp.f32 %v6053_v50 }
 0x922   : > { %v17486_v40 = vadd.f32 %v6080_v8, %v20503_v5  ;;  %v6081_v10 = vmul.f32 %v14053_v21, %v5997_v41  ;;  %v11300_v15 = vpop.f32.mrb[180].mxu0  ;;  %12558 = vmatprep.subr.bf16.mxu1 %v6123_v23  ;;  %12638 = vmatprep.subr.bf16.mxu0 %v6123_v23  ;;  %14062 = vrcp.f32 %v6054_v22 }
 0x923   : > { %v11301_v24 = vpop.f32.mrb[181].mxu0  ;;  %12559 = vmatpush3.bf16.msra.mxu1 %v6123_v23  ;;  %12639 = vmatpush3.bf16.msra.mxu0 %v6123_v23  ;;  %v14057_v12 = vpop.eup %14056  ;;  %v20511_v23 = vld [vmem:[#allocation52_spill] sm:$0xff] }
 0x924   : > { %20504 = vst [vmem:[#allocation106_spill] sm:$0xff] %v17486_v40  ;;  %v17490_v1 = vadd.f32 %v6081_v10, %v20505_v42  ;;  %v11302_v63 = vadd.f32 %v11301_v24, %v11300_v15  ;;  %v11303_v47 = vpop.f32.mrb[182].mxu0  ;;  %v19757_v55 = vmax.f32 %v17486_v40, 0.0  ;;  %v14059_v11 = vpop.eup %14058  ;;  %v20513_v10 = vld [vmem:[#allocation54_spill] sm:$0xff] }
 0x925   : > { %v11304_v38 = vpop.f32.mrb[183].mxu0 }
 0x926   : > { %20506 = vst [vmem:[#allocation105_spill] sm:$0xff] %v17490_v1  ;;  %v19756_v17 = vmax.f32 %v17490_v1, 0.0  ;;  %v6002_v48 = vadd.f32 %v11302_v63, %v17408_v62  ;;  %v11305_v33 = vadd.f32 %v11304_v38, %v11303_v47 }
 0x928   : > { %v6082_v25 = vmul.f32 %v14055_v59, %v6002_v48  ;;  %v6005_v14 = vadd.f32 %v11305_v33, %v17413_v44  ;;  %v6124_v31 = vpack.c.bf16 %v19756_v17, %v19757_v55  ;;  %v6055_v44 = vsel %vm6039_vm15, %v17387_v46, 1.0 }
 0x929   : > { %14064 = vrcp.f32 %v6055_v44  ;;  %v13867_v44 = vld [vmem:[%s15418_s30 + $0x48] sm:$0xff]  }
 0x92a   : > { %v17504_v62 = vadd.f32 %v6082_v25, %v20507_v51  ;;  %v6083_v54 = vmul.f32 %v14057_v12, %v6005_v14  ;;  %v11306_v35 = vpop.f32.mrb[184].mxu0  ;;  %12560 = vmatprep.subr.bf16.mxu1 %v6124_v31  ;;  %12640 = vmatprep.subr.bf16.mxu0 %v6124_v31 }
 0x92b   : > { %v11307_v37 = vpop.f32.mrb[185].mxu0  ;;  %12561 = vmatpush3.bf16.msra.mxu1 %v6124_v31  ;;  %12641 = vmatpush3.bf16.msra.mxu0 %v6124_v31  ;;  %v14061_v41 = vpop.eup %14060  ;;  %v20515_v31 = vld [vmem:[#allocation55_spill] sm:$0xff] }
 0x92c   : > { %20508 = vst [vmem:[#allocation104_spill] sm:$0xff] %v17504_v62  ;;  %v17508_v32 = vadd.f32 %v6083_v54, %v20509_v52  ;;  %v11308_v2 = vadd.f32 %v11307_v37, %v11306_v35  ;;  %v11309_v9 = vpop.f32.mrb[186].mxu0  ;;  %v19755_v45 = vmax.f32 %v17504_v62, 0.0  ;;  %v14063_v48 = vpop.eup %14062  ;;  %v13866_v37 = vld [vmem:[%s15418_s30 + $0x40] sm:$0xff]  }
 0x92d   : > { %v11310_v13 = vpop.f32.mrb[187].mxu0  ;;  %v14232_v52 = vld [vmem:[#allocation19] sm:$0xff]  }
 0x92e   : > { %20510 = vst [vmem:[#allocation111_spill] sm:$0xff] %v17508_v32  ;;  %v19754_v20 = vmax.f32 %v17508_v32, 0.0  ;;  %v6010_v7 = vadd.f32 %v11308_v2, %v17430_v0  ;;  %v11311_v4 = vadd.f32 %v11310_v13, %v11309_v9  ;;  %v14233_v2 = vld [vmem:[#allocation7 + $0x8] sm:$0xff]   ;;  %v14235_v13 = vld [vmem:[#allocation7 + $0x10] sm:$0xff]  }
 0x92f   : > { %v14234_v9 = vld [vmem:[#allocation8 + $0x8] sm:$0xff]  }
 0x930   : > { %v6084_v30 = vmul.f32 %v14059_v11, %v6010_v7  ;;  %v6013_v8 = vadd.f32 %v11311_v4, %v17435_v16  ;;  %v6125_v46 = vpack.c.bf16 %v19754_v20, %v19755_v45  ;;  %v13868_v7 = vld [vmem:[%s15418_s30 + $0x50] sm:$0xff]   ;;  %v14237_v11 = vld [vmem:[#allocation19 + $0x8] sm:$0xff]  }
 0x931   : > { %v14236_v4 = vld [vmem:[#allocation8 + $0x10] sm:$0xff]  }
 0x932   : > { %v17519_v21 = vadd.f32 %v6084_v30, %v20511_v23  ;;  %v6085_v27 = vmul.f32 %v14061_v41, %v6013_v8  ;;  %v11312_v5 = vpop.f32.mrb[188].mxu0  ;;  %12562 = vmatprep.subr.bf16.mxu1 %v6125_v46  ;;  %12642 = vmatprep.subr.bf16.mxu0 %v6125_v46  ;;  %v13869_v30 = vld [vmem:[%s15418_s30 + $0x58] sm:$0xff]   ;;  %v14240_v41 = vld [vmem:[#allocation7 + $0x20] sm:$0xff]  }
 0x933   : > { %v11313_v0 = vpop.f32.mrb[189].mxu0  ;;  %12563 = vmatpush3.bf16.msra.mxu1 %v6125_v46  ;;  %12643 = vmatpush3.bf16.msra.mxu0 %v6125_v46  ;;  %v14065_v14 = vpop.eup %14064  ;;  %v14238_v8 = vld [vmem:[#allocation7 + $0x18] sm:$0xff]   ;;  %v13870_v23 = vld [vmem:[%s15418_s30 + $0x60] sm:$0xff]  }
 0x934   : > { %20512 = vst [vmem:[#allocation110_spill] sm:$0xff] %v17519_v21  ;;  %v17522_v15 = vadd.f32 %v6085_v27, %v20513_v10  ;;  %v11314_v16 = vadd.f32 %v11313_v0, %v11312_v5  ;;  %v11315_v24 = vpop.f32.mrb[190].mxu0  ;;  %v19753_v42 = vmax.f32 %v17519_v21, 0.0  ;;  %v14239_v46 = vld [vmem:[#allocation8 + $0x18] sm:$0xff]   ;;  %v14241_v27 = vld [vmem:[#allocation8 + $0x20] sm:$0xff]   ;;  %v14242_v5 = vld [vmem:[#allocation19 + $0x10] sm:$0xff]  }
 0x935   : > { %v11316_v50 = vpop.f32.mrb[191].mxu0  ;;  %v14243_v0 = vld [vmem:[#allocation19 + $0x18] sm:$0xff]   ;;  %v13871_v10 = vld [vmem:[%s15418_s30 + $0x68] sm:$0xff]  }
 0x936   : > { %20514 = vst [vmem:[#allocation95_spill] sm:$0xff] %v17522_v15  ;;  %v19752_v63 = vmax.f32 %v17522_v15, 0.0  ;;  %v6018_v47 = vadd.f32 %v11314_v16, %v17452_v18  ;;  %v11317_v38 = vadd.f32 %v11316_v50, %v11315_v24  ;;  %v20517_v18 = vld [vmem:[#allocation53_spill] sm:$0xff]  ;;  %v14244_v16 = vld [vmem:[#allocation7 + $0x28] sm:$0xff]   ;;  %v14246_v50 = vld [vmem:[#allocation7 + $0x30] sm:$0xff]  }
 0x937   : > { %v14245_v24 = vld [vmem:[#allocation8 + $0x28] sm:$0xff]  }
 0x938   : > { %v6086_v33 = vmul.f32 %v14063_v48, %v6018_v47  ;;  %v6021_v59 = vadd.f32 %v11317_v38, %v17457_v6  ;;  %v6126_v25 = vpack.c.bf16 %v19752_v63, %v19753_v42  ;;  %v13872_v47 = vld [vmem:[%s15418_s30 + $0x70] sm:$0xff]   ;;  %v14248_v48 = vld [vmem:[#allocation19 + $0x20] sm:$0xff]   ;;  %v13885_v42 = vld [vmem:[%s15424_s1 + $0x58] sm:$0xff]  }
 0x939   : > { %v14247_v38 = vld [vmem:[#allocation8 + $0x30] sm:$0xff]  }
 0x93a   : > { %v17533_v12 = vadd.f32 %v6086_v33, %v20515_v31  ;;  %v6087_v22 = vmul.f32 %v14065_v14, %v6021_v59  ;;  %12564 = vmatprep.subr.bf16.mxu1 %v6126_v25  ;;  %12644 = vmatprep.subr.bf16.mxu0 %v6126_v25  ;;  %v13873_v33 = vld [vmem:[%s15418_s30 + $0x78] sm:$0xff]   ;;  %v14251_v14 = vld [vmem:[#allocation7 + $0x40] sm:$0xff]   ;;  %s20967_s30 = sld [smem:[#allocation227_spill]] }
 0x93b   : > { %12565 = vmatpush3.bf16.msra.mxu1 %v6126_v25  ;;  %12645 = vmatpush3.bf16.msra.mxu0 %v6126_v25  ;;  %v14249_v59 = vld [vmem:[#allocation7 + $0x38] sm:$0xff]   ;;  %v14252_v31 = vld [vmem:[#allocation8 + $0x40] sm:$0xff]  }
 0x93c   : > { %20516 = vst [vmem:[#allocation94_spill] sm:$0xff] %v17533_v12  ;;  %v17536_v51 = vadd.f32 %v6087_v22, %v20517_v18  ;;  %v19751_v6 = vmax.f32 %v17533_v12, 0.0  ;;  %v14250_v25 = vld [vmem:[#allocation8 + $0x38] sm:$0xff]   ;;  %v14253_v22 = vld [vmem:[#allocation19 + $0x28] sm:$0xff]   ;;  %v14254_v18 = vld [vmem:[#allocation19 + $0x30] sm:$0xff]  }
 0x93e   : > { %20518 = vst [vmem:[#allocation109_spill] sm:$0xff] %v17536_v51  ;;  %v19750_v54 = vmax.f32 %v17536_v51, 0.0 }
 0x940   : > { %v6127_v35 = vpack.c.bf16 %v19750_v54, %v19751_v6 }
 0x942   : > { %12566 = vmatprep.subr.bf16.mxu1 %v6127_v35  ;;  %12646 = vmatprep.subr.bf16.mxu0 %v6127_v35 }
 0x943   : > { %12567 = vmatpush3.bf16.msra.mxu1 %v6127_v35  ;;  %12647 = vmatpush3.bf16.msra.mxu0 %v6127_v35  ;;  %v14255_v35 = vld [vmem:[#allocation7 + $0x48] sm:$0xff]  }
 0x944   : > { %12712 = vmatprep.subr.bf16.mxu1 %v13866_v37  ;;  %12952 = vmatprep.subr.bf16.mxu0 %v14232_v52 }
 0x946   : > { %12569 = vmatmul.mubr.bf16.vlgmr.msra.gmra.mrb[16].mxu1 %v14233_v2  ;;  %12649 = vmatmul.mubr.bf16.vlgmr.msra.gmra.mrb[192].mxu0 %v14234_v9  ;;  %v14259_v2 = vld [vmem:[#allocation19 + $0x38] sm:$0xff]  }
 0x947   : > { %12572 = vmatprep.mubr.bf16.mxu1 %v14235_v13  ;;  %12713 = vmatpush3.bf16.msra.mxu1 %v13866_v37  ;;  %v14256_v37 = vld [vmem:[#allocation8 + $0x48] sm:$0xff]   ;;  %v14260_v9 = vld [vmem:[#allocation7 + $0x58] sm:$0xff]  }
 0x948   : > { %12714 = vmatprep.subr.bf16.mxu1 %v13867_v44  ;;  %12652 = vmatprep.mubr.bf16.mxu0 %v14236_v4  ;;  %v14261_v13 = vld [vmem:[#allocation8 + $0x58] sm:$0xff]   ;;  %v14263_v4 = vld [vmem:[#allocation8 + $0x60] sm:$0xff]  }
 0x949   : > { %12953 = vmatpush3.bf16.msra.mxu0 %v14232_v52  ;;  %v14258_v52 = vld [vmem:[#allocation8 + $0x50] sm:$0xff]  }
 0x94a   : > { %12954 = vmatprep.subr.bf16.mxu0 %v14237_v11 }
 0x94b   : > { %12715 = vmatpush3.bf16.msra.mxu1 %v13867_v44  ;;  %v14257_v44 = vld [vmem:[#allocation7 + $0x50] sm:$0xff]  }
 0x94c   : > { %12716 = vmatprep.subr.bf16.mxu1 %v13868_v7 }
 0x94d   : > { %12955 = vmatpush3.bf16.msra.mxu0 %v14237_v11  ;;  %v14264_v11 = vld [vmem:[#allocation7 + $0x68] sm:$0xff]  }
 0x94e   : > { %12573 = vmatmul.mubr.bf16.gmra.mrb[20].mxu1 %v14238_v8  ;;  %12653 = vmatmul.mubr.bf16.gmra.mrb[196].mxu0 %v14239_v46  ;;  %v14266_v8 = vld [vmem:[#allocation7 + $0x70] sm:$0xff]  }
 0x94f   : > { %12576 = vmatprep.mubr.bf16.mxu1 %v14240_v41  ;;  %12717 = vmatpush3.bf16.msra.mxu1 %v13868_v7  ;;  %v14262_v7 = vld [vmem:[#allocation7 + $0x60] sm:$0xff]   ;;  %v14267_v46 = vld [vmem:[#allocation8 + $0x70] sm:$0xff]   ;;  %v14268_v41 = vld [vmem:[#allocation7 + $0x78] sm:$0xff]  }
 0x950   : > { %12718 = vmatprep.subr.bf16.mxu1 %v13869_v30  ;;  %12656 = vmatprep.mubr.bf16.mxu0 %v14241_v27  ;;  %v14270_v27 = vld [vmem:[#allocation7 + $0x80] sm:$0xff]  }
 0x951   : > { %12956 = vmatprep.subr.bf16.mxu0 %v14242_v5 }
 0x952   : > { %12957 = vmatpush3.bf16.msra.mxu0 %v14242_v5  ;;  %v14271_v5 = vld [vmem:[#allocation8 + $0x80] sm:$0xff]  }
 0x953   : > { %12719 = vmatpush3.bf16.msra.mxu1 %v13869_v30  ;;  %12958 = vmatprep.subr.bf16.mxu0 %v14243_v0  ;;  %v14265_v30 = vld [vmem:[#allocation8 + $0x68] sm:$0xff]  }
 0x954   : > { %12720 = vmatprep.subr.bf16.mxu1 %v13870_v23 }
 0x956   : > { %12577 = vmatmul.mubr.bf16.gmra.mrb[24].mxu1 %v14244_v16  ;;  %12657 = vmatmul.mubr.bf16.gmra.mrb[200].mxu0 %v14245_v24  ;;  %v14274_v16 = vld [vmem:[#allocation7 + $0x90] sm:$0xff]  }
 0x957   : > { %12580 = vmatprep.mubr.bf16.mxu1 %v14246_v50  ;;  %12721 = vmatpush3.bf16.msra.mxu1 %v13870_v23  ;;  %v14269_v23 = vld [vmem:[#allocation8 + $0x78] sm:$0xff]   ;;  %v14275_v24 = vld [vmem:[#allocation8 + $0x90] sm:$0xff]  }
 0x958   : > { %12722 = vmatprep.subr.bf16.mxu1 %v13871_v10  ;;  %12660 = vmatprep.mubr.bf16.mxu0 %v14247_v38  ;;  %v14276_v50 = vld [vmem:[#allocation7 + $0x98] sm:$0xff]   ;;  %v14278_v38 = vld [vmem:[#allocation7 + $0xa0] sm:$0xff]  }
 0x959   : > { %12959 = vmatpush3.bf16.msra.mxu0 %v14243_v0  ;;  %v14272_v0 = vld [vmem:[#allocation7 + $0x88] sm:$0xff]  }
 0x95a   : > { %12960 = vmatprep.subr.bf16.mxu0 %v14248_v48 }
 0x95b   : > { %12723 = vmatpush3.bf16.msra.mxu1 %v13871_v10  ;;  %v14273_v10 = vld [vmem:[#allocation8 + $0x88] sm:$0xff]  }
 0x95c   : > { %12724 = vmatprep.subr.bf16.mxu1 %v13872_v47 }
 0x95d   : > { %12961 = vmatpush3.bf16.msra.mxu0 %v14248_v48  ;;  %v14279_v48 = vld [vmem:[#allocation8 + $0xa0] sm:$0xff]  }
 0x95e   : > { %12581 = vmatmul.mubr.bf16.gmra.mrb[28].mxu1 %v14249_v59  ;;  %12661 = vmatmul.mubr.bf16.gmra.mrb[204].mxu0 %v14250_v25  ;;  %v14281_v59 = vld [vmem:[#allocation8 + $0xa8] sm:$0xff]   ;;  %v14282_v25 = vld [vmem:[#allocation7 + $0xb0] sm:$0xff]  }
 0x95f   : > { %12584 = vmatprep.mubr.bf16.mxu1 %v14251_v14  ;;  %12725 = vmatpush3.bf16.msra.mxu1 %v13872_v47  ;;  %v14277_v47 = vld [vmem:[#allocation8 + $0x98] sm:$0xff]   ;;  %v14283_v14 = vld [vmem:[#allocation8 + $0xb0] sm:$0xff]  }
 0x960   : > { %12726 = vmatprep.subr.bf16.mxu1 %v13873_v33  ;;  %12664 = vmatprep.mubr.bf16.mxu0 %v14252_v31  ;;  %v14284_v31 = vld [vmem:[#allocation7 + $0xb8] sm:$0xff]  }
 0x961   : > { %12962 = vmatprep.subr.bf16.mxu0 %v14253_v22 }
 0x962   : > { %12963 = vmatpush3.bf16.msra.mxu0 %v14253_v22  ;;  %v14285_v22 = vld [vmem:[#allocation8 + $0xb8] sm:$0xff]  }
 0x963   : > { %12727 = vmatpush3.bf16.msra.mxu1 %v13873_v33  ;;  %12964 = vmatprep.subr.bf16.mxu0 %v14254_v18  ;;  %v14280_v33 = vld [vmem:[#allocation7 + $0xa8] sm:$0xff]  }
 0x966   : > { %12585 = vmatmul.mubr.bf16.gmra.mrb[32].mxu1 %v14255_v35  ;;  %12665 = vmatmul.mubr.bf16.gmra.mrb[208].mxu0 %v14256_v37  ;;  %v14287_v35 = vld [vmem:[#allocation8 + $0xc0] sm:$0xff]   ;;  %v14288_v37 = vld [vmem:[#allocation7 + $0xc8] sm:$0xff]  }
 0x967   : > { %12588 = vmatprep.mubr.bf16.mxu1 %v14257_v44  ;;  %12668 = vmatprep.mubr.bf16.mxu0 %v14258_v52  ;;  %v13874_v44 = vld [vmem:[%s15416_s17 + $0x40] sm:$0xff]   ;;  %v14289_v52 = vld [vmem:[#allocation8 + $0xc8] sm:$0xff]  }
 0x968   : > { %12965 = vmatpush3.bf16.msra.mxu0 %v14254_v18  ;;  %v14286_v18 = vld [vmem:[#allocation7 + $0xc0] sm:$0xff]   ;;  %12792 = vmatprep.subr.bf16.mxu1 %v13874_v44 }
 0x969   : > { %12966 = vmatprep.subr.bf16.mxu0 %v14259_v2 }
 0x96c   : > { %12967 = vmatpush3.bf16.msra.mxu0 %v14259_v2  ;;  %v14290_v2 = vld [vmem:[#allocation7 + $0xd0] sm:$0xff]  }
 0x96e   : > { %12589 = vmatmul.mubr.bf16.gmra.mrb[36].mxu1 %v14260_v9  ;;  %12669 = vmatmul.mubr.bf16.gmra.mrb[212].mxu0 %v14261_v13  ;;  %v14291_v9 = vld [vmem:[#allocation8 + $0xd0] sm:$0xff]   ;;  %v14292_v13 = vld [vmem:[#allocation7 + $0xd8] sm:$0xff]  }
 0x96f   : > { %12592 = vmatprep.mubr.bf16.mxu1 %v14262_v7  ;;  %12672 = vmatprep.mubr.bf16.mxu0 %v14263_v4  ;;  %v14293_v7 = vld [vmem:[#allocation8 + $0xd8] sm:$0xff]   ;;  %v14294_v4 = vld [vmem:[#allocation7 + $0xe0] sm:$0xff]  }
 0x976   : > { %12593 = vmatmul.mubr.bf16.gmra.mrb[40].mxu1 %v14264_v11  ;;  %12673 = vmatmul.mubr.bf16.gmra.mrb[216].mxu0 %v14265_v30  ;;  %v14295_v11 = vld [vmem:[#allocation8 + $0xe0] sm:$0xff]   ;;  %v14296_v30 = vld [vmem:[#allocation7 + $0xe8] sm:$0xff]  }
 0x977   : > { %12596 = vmatprep.mubr.bf16.mxu1 %v14266_v8  ;;  %12676 = vmatprep.mubr.bf16.mxu0 %v14267_v46  ;;  %v14297_v8 = vld [vmem:[#allocation8 + $0xe8] sm:$0xff]   ;;  %v14298_v46 = vld [vmem:[#allocation7 + $0xf0] sm:$0xff]  }
 0x97e   : > { %12597 = vmatmul.mubr.bf16.gmra.mrb[44].mxu1 %v14268_v41  ;;  %12677 = vmatmul.mubr.bf16.gmra.mrb[220].mxu0 %v14269_v23  ;;  %v14299_v41 = vld [vmem:[#allocation8 + $0xf0] sm:$0xff]   ;;  %v14300_v23 = vld [vmem:[#allocation7 + $0xf8] sm:$0xff]  }
 0x97f   : > { %12600 = vmatprep.mubr.bf16.mxu1 %v14270_v27  ;;  %12680 = vmatprep.mubr.bf16.mxu0 %v14271_v5  ;;  %v14301_v27 = vld [vmem:[#allocation8 + $0xf8] sm:$0xff]  }
 0x980   : > { %v20519_v5 = vld [vmem:[#allocation57_spill] sm:$0xff] }
 0x986   : > { %12601 = vmatmul.mubr.bf16.gmra.mrb[48].mxu1 %v14272_v0  ;;  %12681 = vmatmul.mubr.bf16.gmra.mrb[224].mxu0 %v14273_v10  ;;  %v13875_v0 = vld [vmem:[%s15416_s17 + $0x48] sm:$0xff]   ;;  %v20520_v10 = vld [vmem:[#allocation56_spill] sm:$0xff] }
 0x987   : > { %12604 = vmatprep.mubr.bf16.mxu1 %v14274_v16  ;;  %12684 = vmatprep.mubr.bf16.mxu0 %v14275_v24  ;;  %v20521_v16 = vld [vmem:[#allocation59_spill] sm:$0xff]  ;;  %v13876_v24 = vld [vmem:[%s15416_s17 + $0x50] sm:$0xff]  }
 0x98e   : > { %12605 = vmatmul.mubr.bf16.gmra.mrb[52].mxu1 %v14276_v50  ;;  %12685 = vmatmul.mubr.bf16.gmra.mrb[228].mxu0 %v14277_v47  ;;  %v13877_v50 = vld [vmem:[%s15416_s17 + $0x58] sm:$0xff]   ;;  %v20522_v47 = vld [vmem:[#allocation58_spill] sm:$0xff] }
 0x98f   : > { %12608 = vmatprep.mubr.bf16.mxu1 %v14278_v38  ;;  %12688 = vmatprep.mubr.bf16.mxu0 %v14279_v48  ;;  %v20523_v38 = vld [vmem:[#allocation61_spill] sm:$0xff]  ;;  %v13878_v48 = vld [vmem:[%s15416_s17 + $0x60] sm:$0xff]  }
 0x996   : > { %12609 = vmatmul.mubr.bf16.gmra.mrb[56].mxu1 %v14280_v33  ;;  %12689 = vmatmul.mubr.bf16.gmra.mrb[232].mxu0 %v14281_v59  ;;  %v13879_v33 = vld [vmem:[%s15416_s17 + $0x68] sm:$0xff]   ;;  %v20524_v59 = vld [vmem:[#allocation60_spill] sm:$0xff] }
 0x997   : > { %12612 = vmatprep.mubr.bf16.mxu1 %v14282_v25  ;;  %12692 = vmatprep.mubr.bf16.mxu0 %v14283_v14  ;;  %v20525_v25 = vld [vmem:[#allocation63_spill] sm:$0xff]  ;;  %v13880_v14 = vld [vmem:[%s15416_s17 + $0x70] sm:$0xff]  }
 0x99e   : > { %12613 = vmatmul.mubr.bf16.gmra.mrb[60].mxu1 %v14284_v31  ;;  %12693 = vmatmul.mubr.bf16.gmra.mrb[236].mxu0 %v14285_v22  ;;  %v13881_v31 = vld [vmem:[%s15416_s17 + $0x78] sm:$0xff]   ;;  %v20526_v22 = vld [vmem:[#allocation62_spill] sm:$0xff] }
 0x99f   : > { %12616 = vmatprep.mubr.bf16.mxu1 %v14286_v18  ;;  %12696 = vmatprep.mubr.bf16.mxu0 %v14287_v35  ;;  %v20527_v18 = vld [vmem:[#allocation65_spill] sm:$0xff]  ;;  %v20528_v35 = vld [vmem:[#allocation64_spill] sm:$0xff] }
 0x9a6   : > { %12617 = vmatmul.mubr.bf16.gmra.mrb[64].mxu1 %v14288_v37  ;;  %12697 = vmatmul.mubr.bf16.gmra.mrb[240].mxu0 %v14289_v52  ;;  %v20529_v37 = vld [vmem:[#allocation67_spill] sm:$0xff]  ;;  %v20531_v52 = vld [vmem:[#allocation69_spill] sm:$0xff] }
 0x9a7   : > { %12620 = vmatprep.mubr.bf16.mxu1 %v14290_v2  ;;  %12700 = vmatprep.mubr.bf16.mxu0 %v14291_v9  ;;  %v20532_v2 = vld [vmem:[#allocation68_spill] sm:$0xff]  ;;  %v20533_v9 = vld [vmem:[#allocation71_spill] sm:$0xff] }
 0x9ae   : > { %12621 = vmatmul.mubr.bf16.gmra.mrb[68].mxu1 %v14292_v13  ;;  %12701 = vmatmul.mubr.bf16.gmra.mrb[244].mxu0 %v14293_v7  ;;  %v20534_v13 = vld [vmem:[#allocation70_spill] sm:$0xff]  ;;  %v20535_v7 = vld [vmem:[#allocation73_spill] sm:$0xff] }
 0x9af   : > { %12624 = vmatprep.mubr.bf16.mxu1 %v14294_v4  ;;  %12704 = vmatprep.mubr.bf16.mxu0 %v14295_v11  ;;  %v20536_v4 = vld [vmem:[#allocation72_spill] sm:$0xff]  ;;  %v20537_v11 = vld [vmem:[#allocation75_spill] sm:$0xff] }
 0x9b6   : > { %12625 = vmatmul.mubr.bf16.gmra.mrb[72].mxu1 %v14296_v30  ;;  %12705 = vmatmul.mubr.bf16.gmra.mrb[248].mxu0 %v14297_v8  ;;  %v20538_v30 = vld [vmem:[#allocation74_spill] sm:$0xff]  ;;  %v20539_v8 = vld [vmem:[#allocation77_spill] sm:$0xff] }
 0x9b7   : > { %12628 = vmatprep.mubr.bf16.mxu1 %v14298_v46  ;;  %12708 = vmatprep.mubr.bf16.mxu0 %v14299_v41  ;;  %v20540_v46 = vld [vmem:[#allocation76_spill] sm:$0xff]  ;;  %v20541_v41 = vld [vmem:[#allocation79_spill] sm:$0xff] }
 0x9be   : > { %12629 = vmatmul.mubr.bf16.gmra.mrb[76].mxu1 %v14300_v23  ;;  %12709 = vmatmul.mubr.bf16.gmra.mrb[252].mxu0 %v14301_v27 }
 0x9bf   : > { %12728 = vmatprep.mubr.bf16.mxu1 %v20519_v5 }
 0x9c6   : > { %12729 = vmatmul.mubr.bf16.vlgmr.msra.gmra.mrb[80].mxu1 %v20520_v10 }
 0x9c7   : > { %12732 = vmatprep.mubr.bf16.mxu1 %v20521_v16  ;;  %12793 = vmatpush3.bf16.msra.mxu1 %v13874_v44  ;;  %v20530_v44 = vld [vmem:[#allocation66_spill] sm:$0xff] }
 0x9c8   : > { %12794 = vmatprep.subr.bf16.mxu1 %v13875_v0 }
 0x9cb   : > { %12795 = vmatpush3.bf16.msra.mxu1 %v13875_v0 }
 0x9cc   : > { %12796 = vmatprep.subr.bf16.mxu1 %v13876_v24 }
 0x9ce   : > { %12733 = vmatmul.mubr.bf16.gmra.mrb[84].mxu1 %v20522_v47 }
 0x9cf   : > { %12736 = vmatprep.mubr.bf16.mxu1 %v20523_v38  ;;  %12797 = vmatpush3.bf16.msra.mxu1 %v13876_v24  ;;  %v20544_v24 = vld [vmem:[#allocation78_spill] sm:$0xff] }
 0x9d0   : > { %12798 = vmatprep.subr.bf16.mxu1 %v13877_v50 }
 0x9d3   : > { %12799 = vmatpush3.bf16.msra.mxu1 %v13877_v50  ;;  %v20545_v50 = vld [vmem:[#allocation81_spill] sm:$0xff] }
 0x9d4   : > { %12800 = vmatprep.subr.bf16.mxu1 %v13878_v48 }
 0x9d6   : > { %12737 = vmatmul.mubr.bf16.gmra.mrb[88].mxu1 %v20524_v59 }
 0x9d7   : > { %12740 = vmatprep.mubr.bf16.mxu1 %v20525_v25  ;;  %12801 = vmatpush3.bf16.msra.mxu1 %v13878_v48 }
 0x9d8   : > { %12802 = vmatprep.subr.bf16.mxu1 %v13879_v33 }
 0x9db   : > { %12803 = vmatpush3.bf16.msra.mxu1 %v13879_v33 }
 0x9dc   : > { %12804 = vmatprep.subr.bf16.mxu1 %v13880_v14 }
 0x9de   : > { %12741 = vmatmul.mubr.bf16.gmra.mrb[92].mxu1 %v20526_v22  ;;  %v20549_v22 = vld [vmem:[#allocation83_spill] sm:$0xff] }
 0x9df   : > { %12744 = vmatprep.mubr.bf16.mxu1 %v20527_v18  ;;  %12805 = vmatpush3.bf16.msra.mxu1 %v13880_v14  ;;  %v20548_v14 = vld [vmem:[#allocation80_spill] sm:$0xff] }
 0x9e0   : > { %12806 = vmatprep.subr.bf16.mxu1 %v13881_v31 }
 0x9e3   : > { %12807 = vmatpush3.bf16.msra.mxu1 %v13881_v31  ;;  %v13882_v31 = vld [vmem:[%s15424_s1 + $0x40] sm:$0xff]  }
 0x9e4   : > { %12872 = vmatprep.subr.bf16.mxu1 %v13882_v31 }
 0x9e6   : > { %12745 = vmatmul.mubr.bf16.gmra.mrb[96].mxu1 %v20528_v35 }
 0x9e7   : > { %12748 = vmatprep.mubr.bf16.mxu1 %v20529_v37 }
 0x9ee   : > { %12749 = vmatmul.mubr.bf16.gmra.mrb[100].mxu1 %v20530_v44 }
 0x9ef   : > { %12752 = vmatprep.mubr.bf16.mxu1 %v20531_v52 }
 0x9f6   : > { %12753 = vmatmul.mubr.bf16.gmra.mrb[104].mxu1 %v20532_v2 }
 0x9f7   : > { %12756 = vmatprep.mubr.bf16.mxu1 %v20533_v9  ;;  %v20552_v9 = vld [vmem:[#allocation82_spill] sm:$0xff] }
 0x9fe   : > { %12757 = vmatmul.mubr.bf16.gmra.mrb[108].mxu1 %v20534_v13  ;;  %v20553_v13 = vld [vmem:[#allocation85_spill] sm:$0xff] }
 0x9ff   : > { %12760 = vmatprep.mubr.bf16.mxu1 %v20535_v7 }
 0xa06   : > { %12761 = vmatmul.mubr.bf16.gmra.mrb[112].mxu1 %v20536_v4 }
 0xa07   : > { %12764 = vmatprep.mubr.bf16.mxu1 %v20537_v11 }
 0xa0e   : > { %12765 = vmatmul.mubr.bf16.gmra.mrb[116].mxu1 %v20538_v30 }
 0xa0f   : > { %12768 = vmatprep.mubr.bf16.mxu1 %v20539_v8 }
 0xa16   : > { %12769 = vmatmul.mubr.bf16.gmra.mrb[120].mxu1 %v20540_v46 }
 0xa17   : > { %12772 = vmatprep.mubr.bf16.mxu1 %v20541_v41  ;;  %v20556_v41 = vld [vmem:[#allocation84_spill] sm:$0xff] }
 0xa19   : > { %v12570_v23 = vpop.f32.mrb[16].mxu1 }
 0xa1a   : > { %v6162_v27 = vpop.f32.mrb[17].mxu1 }
 0xa1b   : > { %v12571_v5 = vpop.f32.mrb[18].mxu1 }
 0xa1c   : > { %v17583_v0 = vpack.c.bf16 %v12571_v5, %v12570_v23  ;;  %v6165_v10 = vpop.f32.mrb[19].mxu1  ;;  %v20557_v23 = vld [vmem:[#allocation87_spill] sm:$0xff] }
 0xa1d   : > { %v17585_v16 = vpack.c.bf16 %v6165_v10, %v6162_v27  ;;  %v17608_v27 = vpop.f32.mrb[192].mxu0 }
 0xa1e   : > { %20542 = vst [vmem:[#allocation108_spill] sm:$0xff] %v17583_v0  ;;  %12773 = vmatmul.mubr.bf16.gmra.mrb[124].mxu1 %v20544_v24  ;;  %v17610_v5 = vpop.f32.mrb[193].mxu0 }
 0xa1f   : > { %20543 = vst [vmem:[#allocation93_spill] sm:$0xff] %v17585_v16  ;;  %12776 = vmatprep.mubr.bf16.mxu1 %v20545_v50  ;;  %v17612_v24 = vpop.f32.mrb[194].mxu0 }
 0xa21   : > { %v12574_v47 = vpop.f32.mrb[20].mxu1 }
 0xa22   : > { %v6178_v38 = vpop.f32.mrb[21].mxu1 }
 0xa23   : > { %v12575_v48 = vpop.f32.mrb[22].mxu1 }
 0xa24   : > { %v17589_v33 = vpack.c.bf16 %v12575_v48, %v12574_v47  ;;  %v6181_v59 = vpop.f32.mrb[23].mxu1 }
 0xa25   : > { %v17591_v25 = vpack.c.bf16 %v6181_v59, %v6178_v38 }
 0xa26   : > { %20546 = vst [vmem:[#allocation92_spill] sm:$0xff] %v17589_v33  ;;  %12777 = vmatmul.mubr.bf16.gmra.mrb[128].mxu1 %v20548_v14 }
 0xa27   : > { %20547 = vst [vmem:[#allocation115_spill] sm:$0xff] %v17591_v25  ;;  %12780 = vmatprep.mubr.bf16.mxu1 %v20549_v22  ;;  %v20560_v22 = vld [vmem:[#allocation86_spill] sm:$0xff] }
 0xa29   : > { %v12578_v18 = vpop.f32.mrb[24].mxu1 }
 0xa2a   : > { %v6194_v35 = vpop.f32.mrb[25].mxu1 }
 0xa2b   : > { %v12579_v37 = vpop.f32.mrb[26].mxu1 }
 0xa2c   : > { %v17596_v44 = vpack.c.bf16 %v12579_v37, %v12578_v18  ;;  %v6197_v52 = vpop.f32.mrb[27].mxu1  ;;  %v17621_v18 = vpop.f32.mrb[195].mxu0 }
 0xa2d   : > { %v17598_v2 = vpack.c.bf16 %v6197_v52, %v6194_v35  ;;  %v17626_v37 = vpop.f32.mrb[196].mxu0 }
 0xa2e   : > { %20550 = vst [vmem:[#allocation114_spill] sm:$0xff] %v17596_v44  ;;  %12781 = vmatmul.mubr.bf16.gmra.mrb[132].mxu1 %v20552_v9  ;;  %v17628_v52 = vpop.f32.mrb[197].mxu0 }
 0xa2f   : > { %20551 = vst [vmem:[#allocation99_spill] sm:$0xff] %v17598_v2  ;;  %12784 = vmatprep.mubr.bf16.mxu1 %v20553_v13  ;;  %v17630_v13 = vpop.f32.mrb[198].mxu0 }
 0xa31   : > { %v12582_v7 = vpop.f32.mrb[28].mxu1 }
 0xa32   : > { %v6210_v4 = vpop.f32.mrb[29].mxu1 }
 0xa33   : > { %v12583_v11 = vpop.f32.mrb[30].mxu1 }
 0xa34   : > { %v17602_v30 = vpack.c.bf16 %v12583_v11, %v12582_v7  ;;  %v6213_v8 = vpop.f32.mrb[31].mxu1 }
 0xa35   : > { %v17604_v46 = vpack.c.bf16 %v6213_v8, %v6210_v4 }
 0xa36   : > { %20554 = vst [vmem:[#allocation98_spill] sm:$0xff] %v17602_v30  ;;  %12785 = vmatmul.mubr.bf16.gmra.mrb[136].mxu1 %v20556_v41 }
 0xa37   : > { %20555 = vst [vmem:[#allocation113_spill] sm:$0xff] %v17604_v46  ;;  %12788 = vmatprep.mubr.bf16.mxu1 %v20557_v23  ;;  %v13883_v23 = vld [vmem:[%s15424_s1 + $0x48] sm:$0xff]  }
 0xa39   : > { %v12586_v10 = vpop.f32.mrb[32].mxu1 }
 0xa3a   : > { %v6226_v50 = vpop.f32.mrb[33].mxu1 }
 0xa3b   : > { %v12587_v38 = vpop.f32.mrb[34].mxu1 }
 0xa3c   : > { %v17616_v48 = vpack.c.bf16 %v12587_v38, %v12586_v10  ;;  %v6229_v59 = vpop.f32.mrb[35].mxu1 }
 0xa3d   : > { %v17618_v14 = vpack.c.bf16 %v6229_v59, %v6226_v50  ;;  %v17640_v50 = vpop.f32.mrb[199].mxu0 }
 0xa3e   : > { %20558 = vst [vmem:[#allocation112_spill] sm:$0xff] %v17616_v48  ;;  %12789 = vmatmul.mubr.bf16.gmra.mrb[140].mxu1 %v20560_v22  ;;  %v17645_v59 = vpop.f32.mrb[200].mxu0  ;;  %v13884_v22 = vld [vmem:[%s15424_s1 + $0x50] sm:$0xff]  }
 0xa3f   : > { %20559 = vst [vmem:[#allocation97_spill] sm:$0xff] %v17618_v14  ;;  %12808 = vmatprep.mubr.bf16.mxu1 %v17585_v16 }
 0xa41   : > { %v12590_v9 = vpop.f32.mrb[36].mxu1 }
 0xa42   : > { %v6242_v7 = vpop.f32.mrb[37].mxu1 }
 0xa43   : > { %v12591_v11 = vpop.f32.mrb[38].mxu1 }
 0xa44   : > { %v17634_v8 = vpack.c.bf16 %v12591_v11, %v12590_v9  ;;  %v6245_v41 = vpop.f32.mrb[39].mxu1  ;;  %v17648_v9 = vpop.f32.mrb[201].mxu0 }
 0xa45   : > { %v17637_v10 = vpack.c.bf16 %v6245_v41, %v6242_v7  ;;  %v17650_v7 = vpop.f32.mrb[202].mxu0 }
 0xa46   : > { %20561 = vst [vmem:[#allocation96_spill] sm:$0xff] %v17634_v8  ;;  %12809 = vmatmul.mubr.bf16.vlgmr.msra.gmra.mrb[80].mxu1 %v17583_v0  ;;  %v17660_v45 = vpop.f32.mrb[203].mxu0 }
 0xa47   : > { %20562 = vst [vmem:[#allocation182_spill] sm:$0xff] %v17637_v10  ;;  %12812 = vmatprep.mubr.bf16.mxu1 %v17591_v25  ;;  %12873 = vmatpush3.bf16.msra.mxu1 %v13882_v31  ;;  %v17665_v55 = vpop.f32.mrb[204].mxu0 }
 0xa48   : > { %12874 = vmatprep.subr.bf16.mxu1 %v13883_v23 }
 0xa49   : > { %v12594_v11 = vpop.f32.mrb[40].mxu1 }
 0xa4a   : > { %v6258_v41 = vpop.f32.mrb[41].mxu1 }
 0xa4b   : > { %v12595_v6 = vpop.f32.mrb[42].mxu1  ;;  %12875 = vmatpush3.bf16.msra.mxu1 %v13883_v23  ;;  %v17668_v23 = vpop.f32.mrb[205].mxu0 }
 0xa4c   : > { %v17654_v31 = vpack.c.bf16 %v12595_v6, %v12594_v11  ;;  %v6261_v63 = vpop.f32.mrb[43].mxu1  ;;  %12876 = vmatprep.subr.bf16.mxu1 %v13884_v22  ;;  %v13886_v6 = vld [vmem:[%s15424_s1 + $0x60] sm:$0xff]  }
 0xa4d   : > { %v17657_v20 = vpack.c.bf16 %v6261_v63, %v6258_v41  ;;  %v17670_v63 = vpop.f32.mrb[206].mxu0 }
 0xa4e   : > { %20563 = vst [vmem:[#allocation103_spill] sm:$0xff] %v17654_v31  ;;  %12813 = vmatmul.mubr.bf16.gmra.mrb[84].mxu1 %v17589_v33  ;;  %v17680_v19 = vpop.f32.mrb[207].mxu0 }
 0xa4f   : > { %20564 = vst [vmem:[#allocation183_spill] sm:$0xff] %v17657_v20  ;;  %12816 = vmatprep.mubr.bf16.mxu1 %v17598_v2  ;;  %12877 = vmatpush3.bf16.msra.mxu1 %v13884_v22  ;;  %v17685_v39 = vpop.f32.mrb[208].mxu0 }
 0xa50   : > { %12878 = vmatprep.subr.bf16.mxu1 %v13885_v42 }
 0xa51   : > { %v12598_v11 = vpop.f32.mrb[44].mxu1 }
 0xa52   : > { %v6274_v41 = vpop.f32.mrb[45].mxu1 }
 0xa53   : > { %v12599_v29 = vpop.f32.mrb[46].mxu1  ;;  %12879 = vmatpush3.bf16.msra.mxu1 %v13885_v42  ;;  %v17688_v42 = vpop.f32.mrb[209].mxu0 }
 0xa54   : > { %v17674_v22 = vpack.c.bf16 %v12599_v29, %v12598_v11  ;;  %v6277_v28 = vpop.f32.mrb[47].mxu1  ;;  %12880 = vmatprep.subr.bf16.mxu1 %v13886_v6  ;;  %v13888_v29 = vld [vmem:[%s15424_s1 + $0x70] sm:$0xff]   ;;  %s10455_s1 = sshll.u32 %s15383_s16, 3 }
 0xa55   : > { %v17677_v53 = vpack.c.bf16 %v6277_v28, %v6274_v41  ;;  %v17690_v28 = vpop.f32.mrb[210].mxu0  ;;  %s945_s14 = scalar_lea.vmem [#allocation22], %s10455_s1 }
 0xa56   : > { %20565 = vst [vmem:[#allocation102_spill] sm:$0xff] %v17674_v22  ;;  %12817 = vmatmul.mubr.bf16.gmra.mrb[88].mxu1 %v17596_v44  ;;  %v17700_v38 = vpop.f32.mrb[211].mxu0 }
 0xa57   : > { %20566 = vst [vmem:[#allocation101_spill] sm:$0xff] %v17677_v53  ;;  %12820 = vmatprep.mubr.bf16.mxu1 %v17604_v46  ;;  %12881 = vmatpush3.bf16.msra.mxu1 %v13886_v6  ;;  %v17705_v58 = vpop.f32.mrb[212].mxu0 }
 0xa58   : > { %12882 = vmatprep.subr.bf16.mxu1 %v13887_v60 }
 0xa59   : > { %v12602_v11 = vpop.f32.mrb[48].mxu1 }
 0xa5a   : > { %v6290_v41 = vpop.f32.mrb[49].mxu1 }
 0xa5b   : > { %v12603_v54 = vpop.f32.mrb[50].mxu1  ;;  %12883 = vmatpush3.bf16.msra.mxu1 %v13887_v60  ;;  %v17707_v60 = vpop.f32.mrb[213].mxu0 }
 0xa5c   : > { %v17694_v17 = vpack.c.bf16 %v12603_v54, %v12602_v11  ;;  %v6293_v6 = vpop.f32.mrb[51].mxu1  ;;  %12884 = vmatprep.subr.bf16.mxu1 %v13888_v29  ;;  %v17709_v11 = vpop.f32.mrb[214].mxu0 }
 0xa5d   : > { %v17697_v4 = vpack.c.bf16 %v6293_v6, %v6290_v41  ;;  %v17718_v47 = vpop.f32.mrb[215].mxu0 }
 0xa5e   : > { %20567 = vst [vmem:[#allocation100_spill] sm:$0xff] %v17694_v17  ;;  %12821 = vmatmul.mubr.bf16.gmra.mrb[92].mxu1 %v17602_v30  ;;  %v17723_v21 = vpop.f32.mrb[216].mxu0 }
 0xa5f   : > { %20568 = vst [vmem:[#allocation116_spill] sm:$0xff] %v17697_v4  ;;  %12824 = vmatprep.mubr.bf16.mxu1 %v17618_v14  ;;  %12885 = vmatpush3.bf16.msra.mxu1 %v13888_v29  ;;  %v17725_v32 = vpop.f32.mrb[217].mxu0 }
 0xa60   : > { %12886 = vmatprep.subr.bf16.mxu1 %v13889_v56 }
 0xa61   : > { %v12606_v54 = vpop.f32.mrb[52].mxu1 }
 0xa62   : > { %v6306_v41 = vpop.f32.mrb[53].mxu1 }
 0xa63   : > { %v12607_v35 = vpop.f32.mrb[54].mxu1  ;;  %12887 = vmatpush3.bf16.msra.mxu1 %v13889_v56  ;;  %v17727_v56 = vpop.f32.mrb[218].mxu0 }
 0xa64   : > { %v17713_v51 = vpack.c.bf16 %v12607_v35, %v12606_v54  ;;  %v6309_v29 = vpop.f32.mrb[55].mxu1  ;;  %v17736_v15 = vpop.f32.mrb[219].mxu0 }
 0xa65   : > { %v17715_v12 = vpack.c.bf16 %v6309_v29, %v6306_v41  ;;  %v17741_v57 = vpop.f32.mrb[220].mxu0 }
 0xa66   : > { %20569 = vst [vmem:[#allocation181_spill] sm:$0xff] %v17713_v51  ;;  %12825 = vmatmul.mubr.bf16.gmra.mrb[96].mxu1 %v17616_v48  ;;  %v17743_v43 = vpop.f32.mrb[221].mxu0 }
 0xa67   : > { %20570 = vst [vmem:[#allocation186_spill] sm:$0xff] %v17715_v12  ;;  %12828 = vmatprep.mubr.bf16.mxu1 %v17637_v10  ;;  %v17745_v61 = vpop.f32.mrb[222].mxu0 }
 0xa68   : > { %v17754_v40 = vpop.f32.mrb[223].mxu0 }
 0xa69   : > { %v12610_v6 = vpop.f32.mrb[56].mxu1  ;;  %v17759_v3 = vpop.f32.mrb[224].mxu0 }
 0xa6a   : > { %v6322_v35 = vpop.f32.mrb[57].mxu1  ;;  %v17761_v49 = vpop.f32.mrb[225].mxu0 }
 0xa6b   : > { %v12611_v41 = vpop.f32.mrb[58].mxu1 }
 0xa6c   : > { %v17731_v29 = vpack.c.bf16 %v12611_v41, %v12610_v6  ;;  %v6325_v62 = vpop.f32.mrb[59].mxu1 }
 0xa6d   : > { %v17733_v1 = vpack.c.bf16 %v6325_v62, %v6322_v35 }
 0xa6e   : > { %20571 = vst [vmem:[#allocation187_spill] sm:$0xff] %v17731_v29  ;;  %12829 = vmatmul.mubr.bf16.gmra.mrb[100].mxu1 %v17634_v8 }
 0xa6f   : > { %20572 = vst [vmem:[#allocation184_spill] sm:$0xff] %v17733_v1  ;;  %12832 = vmatprep.mubr.bf16.mxu1 %v17657_v20  ;;  %v17763_v20 = vpop.f32.mrb[226].mxu0 }
 0xa70   : > { %v17772_v36 = vpop.f32.mrb[227].mxu0 }
 0xa71   : > { %v12614_v54 = vpop.f32.mrb[60].mxu1  ;;  %v17777_v10 = vpop.f32.mrb[228].mxu0 }
 0xa72   : > { %v6338_v6 = vpop.f32.mrb[61].mxu1  ;;  %20576 = vst [vmem:[#allocation188_spill] sm:$0xff] %v17777_v10  ;;  %v17779_v48 = vpop.f32.mrb[229].mxu0 }
 0xa73   : > { %v12615_v35 = vpop.f32.mrb[62].mxu1  ;;  %v17781_v14 = vpop.f32.mrb[230].mxu0 }
 0xa74   : > { %v17749_v41 = vpack.c.bf16 %v12615_v35, %v12614_v54  ;;  %v6341_v26 = vpop.f32.mrb[63].mxu1 }
 0xa75   : > { %v17751_v34 = vpack.c.bf16 %v6341_v26, %v6338_v6 }
 0xa76   : > { %20573 = vst [vmem:[#allocation185_spill] sm:$0xff] %v17749_v41  ;;  %12833 = vmatmul.mubr.bf16.gmra.mrb[104].mxu1 %v17654_v31 }
 0xa77   : > { %20574 = vst [vmem:[#allocation190_spill] sm:$0xff] %v17751_v34  ;;  %12836 = vmatprep.mubr.bf16.mxu1 %v17677_v53  ;;  %v17790_v53 = vpop.f32.mrb[231].mxu0 }
 0xa78   : > { %v17795_v46 = vpop.f32.mrb[232].mxu0 }
 0xa79   : > { %v12618_v62 = vpop.f32.mrb[64].mxu1  ;;  %20577 = vst [vmem:[#allocation189_spill] sm:$0xff] %v17795_v46  ;;  %v17797_v44 = vpop.f32.mrb[233].mxu0 }
 0xa7a   : > { %v6354_v54 = vpop.f32.mrb[65].mxu1  ;;  %20578 = vst [vmem:[#allocation194_spill] sm:$0xff] %v17797_v44  ;;  %v17799_v2 = vpop.f32.mrb[234].mxu0 }
 0xa7b   : > { %v12619_v6 = vpop.f32.mrb[66].mxu1  ;;  %20579 = vst [vmem:[#allocation195_spill] sm:$0xff] %v17799_v2 }
 0xa7c   : > { %v17767_v35 = vpack.c.bf16 %v12619_v6, %v12618_v62  ;;  %v6357_v31 = vpop.f32.mrb[67].mxu1 }
 0xa7d   : > { %v17769_v8 = vpack.c.bf16 %v6357_v31, %v6354_v54 }
 0xa7e   : > { %12837 = vmatmul.mubr.bf16.gmra.mrb[108].mxu1 %v17674_v22 }
 0xa7f   : > { %20575 = vst [vmem:[#allocation191_spill] sm:$0xff] %v17769_v8  ;;  %12840 = vmatprep.mubr.bf16.mxu1 %v17697_v4  ;;  %v17808_v4 = vpop.f32.mrb[235].mxu0 }
 0xa80   : > { %20580 = vst [vmem:[#allocation192_spill] sm:$0xff] %v17808_v4  ;;  %v17813_v25 = vpop.f32.mrb[236].mxu0 }
 0xa81   : > { %v12622_v26 = vpop.f32.mrb[68].mxu1  ;;  %20581 = vst [vmem:[#allocation202_spill] sm:$0xff] %v17813_v25  ;;  %v17815_v0 = vpop.f32.mrb[237].mxu0 }
 0xa82   : > { %v6370_v62 = vpop.f32.mrb[69].mxu1  ;;  %v17817_v16 = vpop.f32.mrb[238].mxu0 }
 0xa83   : > { %v12623_v54 = vpop.f32.mrb[70].mxu1  ;;  %20582 = vst [vmem:[#allocation203_spill] sm:$0xff] %v17817_v16 }
 0xa84   : > { %v17785_v6 = vpack.c.bf16 %v12623_v54, %v12622_v26  ;;  %v6373_v22 = vpop.f32.mrb[71].mxu1 }
 0xa85   : > { %v17787_v30 = vpack.c.bf16 %v6373_v22, %v6370_v62 }
 0xa86   : > { %12841 = vmatmul.mubr.bf16.gmra.mrb[112].mxu1 %v17694_v17 }
 0xa87   : > { %12844 = vmatprep.mubr.bf16.mxu1 %v17715_v12  ;;  %v6630_v12 = vpop.f32.mrb[239].mxu0 }
 0xa88   : > { %v12698_v2 = vpop.f32.mrb[240].mxu0 }
 0xa89   : > { %v12626_v31 = vpop.f32.mrb[72].mxu1  ;;  %v6643_v44 = vpop.f32.mrb[241].mxu0 }
 0xa8a   : > { %v6386_v26 = vpop.f32.mrb[73].mxu1  ;;  %v12699_v4 = vpop.f32.mrb[242].mxu0 }
 0xa8b   : > { %v12627_v62 = vpop.f32.mrb[74].mxu1  ;;  %v7471_v10 = vpack.c.bf16 %v12699_v4, %v12698_v2 }
 0xa8c   : > { %v17803_v54 = vpack.c.bf16 %v12627_v62, %v12626_v31  ;;  %v6389_v17 = vpop.f32.mrb[75].mxu1 }
 0xa8d   : > { %v17805_v33 = vpack.c.bf16 %v6389_v17, %v6386_v26  ;;  %v6646_v17 = vpop.f32.mrb[243].mxu0 }
 0xa8e   : > { %12845 = vmatmul.mubr.bf16.gmra.mrb[116].mxu1 %v17713_v51 }
 0xa8f   : > { %12848 = vmatprep.mubr.bf16.mxu1 %v17733_v1  ;;  %v7468_v1 = vpack.c.bf16 %v6630_v12, %v17815_v0 }
 0xa91   : > { %v12630_v22 = vpop.f32.mrb[76].mxu1 }
 0xa92   : > { %v6402_v31 = vpop.f32.mrb[77].mxu1 }
 0xa93   : > { %v12631_v26 = vpop.f32.mrb[78].mxu1 }
 0xa94   : > { %v17821_v62 = vpack.c.bf16 %v12631_v26, %v12630_v22  ;;  %v6405_v51 = vpop.f32.mrb[79].mxu1  ;;  %v7470_v22 = vpack.c.bf16 %v6646_v17, %v6643_v44  ;;  %v12702_v26 = vpop.f32.mrb[244].mxu0 }
 0xa95   : > { %v17823_v46 = vpack.c.bf16 %v6405_v51, %v6402_v31  ;;  %v6659_v51 = vpop.f32.mrb[245].mxu0 }
 0xa96   : > { %12849 = vmatmul.mubr.bf16.gmra.mrb[120].mxu1 %v17731_v29  ;;  %v12703_v31 = vpop.f32.mrb[246].mxu0 }
 0xa97   : > { %12852 = vmatprep.mubr.bf16.mxu1 %v17751_v34  ;;  %v7473_v25 = vpack.c.bf16 %v12703_v31, %v12702_v26  ;;  %v6662_v29 = vpop.f32.mrb[247].mxu0 }
 0xa98   : > { %v7472_v12 = vpack.c.bf16 %v6662_v29, %v6659_v51  ;;  %v12706_v0 = vpop.f32.mrb[248].mxu0  ;;  %v20584_v51 = vpack.c.bf16 %v17612_v24, %v17608_v27  ;;  %v20589_v27 = vpack.c.bf16 %v17680_v19, %v17668_v23  ;;  %v20590_v24 = vpack.c.bf16 %v17670_v63, %v17665_v55 }
 0xa99   : > { %v6675_v34 = vpop.f32.mrb[249].mxu0  ;;  %v20594_v19 = vpack.c.bf16 %v17709_v11, %v17705_v58  ;;  %v20595_v55 = vpack.c.bf16 %v17736_v15, %v17725_v32  ;;  %v20599_v58 = vpack.c.bf16 %v17772_v36, %v17761_v49  ;;  %v20600_v32 = vpack.c.bf16 %v17763_v20, %v17759_v3  ;;  %v20602_v15 = vld [vmem:[#allocation188_spill] sm:$0xff]  ;;  %v20608_v49 = vld [vmem:[#allocation189_spill] sm:$0xff]  ;;  %v20610_v3 = vld [vmem:[#allocation203_spill] sm:$0xff] }
 0xa9a   : > { %v12707_v16 = vpop.f32.mrb[250].mxu0  ;;  %v20611_v20 = vld [vmem:[#allocation202_spill] sm:$0xff] }
 0xa9b   : > { %v7475_v2 = vpack.c.bf16 %v12707_v16, %v12706_v0  ;;  %v6678_v4 = vpop.f32.mrb[251].mxu0  ;;  %v20583_v16 = vpack.c.bf16 %v17621_v18, %v17610_v5  ;;  %v20588_v5 = vpack.c.bf16 %v17650_v7, %v17645_v59  ;;  %v20591_v18 = vpack.c.bf16 %v17700_v38, %v17688_v42 }
 0xa9c   : > { %v7474_v44 = vpack.c.bf16 %v6678_v4, %v6675_v34  ;;  %v12710_v17 = vpop.f32.mrb[252].mxu0  ;;  %v20585_v34 = vpack.c.bf16 %v17640_v50, %v17628_v52  ;;  %v20596_v52 = vpack.c.bf16 %v17727_v56, %v17723_v21  ;;  %v20601_v21 = vpack.c.bf16 %v17790_v53, %v17779_v48  ;;  %v17906_v53 = vld [vmem:[#allocation10 + $0x4] ss:$16 sps:$4 sm:$0xff]  }
 0xa9d   : > { %v20612_v50 = vpack.c.bf16 %v20610_v3, %v20611_v20  ;;  %v13890_v48 = vld [vmem:[%s15426_s6 + $0x40] sm:$0xff]  }
 0xa9e   : > { %12853 = vmatmul.mubr.bf16.gmra.mrb[124].mxu1 %v17749_v41  ;;  %13032 = vmatprep.subr.bf16.mxu0 %v13890_v48 }
 0xa9f   : > { %12856 = vmatprep.mubr.bf16.mxu1 %v17769_v8  ;;  %v6691_v8 = vpop.f32.mrb[253].mxu0 }
 0xaa0   : > { %v12711_v41 = vpop.f32.mrb[254].mxu0 }
 0xaa1   : > { %v7477_v26 = vpack.c.bf16 %v12711_v41, %v12710_v17  ;;  %v6694_v31 = vpop.f32.mrb[255].mxu0  ;;  %v20586_v41 = vpack.c.bf16 %v17630_v13, %v17626_v37  ;;  %v20593_v37 = vpack.c.bf16 %v17718_v47, %v17707_v60  ;;  %v20598_v47 = vpack.c.bf16 %v17745_v61, %v17741_v57  ;;  %v20605_v61 = vld [vmem:[#allocation194_spill] sm:$0xff]  ;;  %v20607_v13 = vld [vmem:[#allocation195_spill] sm:$0xff] }
 0xaa2   : > { %v7476_v29 = vpack.c.bf16 %v6694_v31, %v6691_v8  ;;  %v20587_v8 = vpack.c.bf16 %v17660_v45, %v17648_v9  ;;  %v20592_v45 = vpack.c.bf16 %v17690_v28, %v17685_v39  ;;  %v20597_v39 = vpack.c.bf16 %v17754_v40, %v17743_v43  ;;  %v20604_v40 = vld [vmem:[#allocation192_spill] sm:$0xff]  ;;  %v17920_v9 = vld [vmem:[%s16172_s24 + $0x1] ss:$0 sm:$0xff] }
 0xaa3   : > { %v20603_v43 = vpack.c.bf16 %v17781_v14, %v20602_v15  ;;  %v20606_v57 = vpack.c.bf16 %v20604_v40, %v20605_v61  ;;  %v20609_v36 = vpack.c.bf16 %v20607_v13, %v20608_v49  ;;  %v13895_v49 = vld [vmem:[%s15426_s6 + $0x68] sm:$0xff]  }
 0xaa6   : > { %12857 = vmatmul.mubr.bf16.gmra.mrb[128].mxu1 %v17767_v35 }
 0xaa7   : > { %12860 = vmatprep.mubr.bf16.mxu1 %v17787_v30 }
 0xaae   : > { %12861 = vmatmul.mubr.bf16.gmra.mrb[132].mxu1 %v17785_v6 }
 0xaaf   : > { %12864 = vmatprep.mubr.bf16.mxu1 %v17805_v33 }
 0xab6   : > { %12865 = vmatmul.mubr.bf16.gmra.mrb[136].mxu1 %v17803_v54 }
 0xab7   : > { %12868 = vmatprep.mubr.bf16.mxu1 %v17823_v46 }
 0xabe   : > { %12869 = vmatmul.mubr.bf16.gmra.mrb[140].mxu1 %v17821_v62 }
 0xabf   : > { %12888 = vmatprep.mubr.bf16.mxu1 %v20583_v16 }
 0xac6   : > { %12889 = vmatmul.mubr.bf16.vlgmr.msra.gmra.mrb[80].mxu1 %v20584_v51  ;;  %v13892_v51 = vld [vmem:[%s15426_s6 + $0x50] sm:$0xff]  }
 0xac7   : > { %12892 = vmatprep.mubr.bf16.mxu1 %v20585_v34 }
 0xace   : > { %12893 = vmatmul.mubr.bf16.gmra.mrb[84].mxu1 %v20586_v41 }
 0xacf   : > { %12896 = vmatprep.mubr.bf16.mxu1 %v20587_v8 }
 0xad6   : > { %12897 = vmatmul.mubr.bf16.gmra.mrb[88].mxu1 %v20588_v5 }
 0xad7   : > { %12900 = vmatprep.mubr.bf16.mxu1 %v20589_v27 }
 0xade   : > { %12901 = vmatmul.mubr.bf16.gmra.mrb[92].mxu1 %v20590_v24 }
 0xadf   : > { %12904 = vmatprep.mubr.bf16.mxu1 %v20591_v18 }
 0xae6   : > { %12905 = vmatmul.mubr.bf16.gmra.mrb[96].mxu1 %v20592_v45  ;;  %v13893_v45 = vld [vmem:[%s15426_s6 + $0x58] sm:$0xff]  }
 0xae7   : > { %12908 = vmatprep.mubr.bf16.mxu1 %v20593_v37 }
 0xaee   : > { %12909 = vmatmul.mubr.bf16.gmra.mrb[100].mxu1 %v20594_v19 }
 0xaef   : > { %12912 = vmatprep.mubr.bf16.mxu1 %v20595_v55 }
 0xaf6   : > { %12913 = vmatmul.mubr.bf16.gmra.mrb[104].mxu1 %v20596_v52 }
 0xaf7   : > { %12916 = vmatprep.mubr.bf16.mxu1 %v20597_v39 }
 0xafe   : > { %12917 = vmatmul.mubr.bf16.gmra.mrb[108].mxu1 %v20598_v47 }
 0xaff   : > { %12920 = vmatprep.mubr.bf16.mxu1 %v20599_v58 }
 0xb06   : > { %12921 = vmatmul.mubr.bf16.gmra.mrb[112].mxu1 %v20600_v32  ;;  %v13894_v32 = vld [vmem:[%s15426_s6 + $0x60] sm:$0xff]  }
 0xb07   : > { %12924 = vmatprep.mubr.bf16.mxu1 %v20601_v21 }
 0xb0e   : > { %12925 = vmatmul.mubr.bf16.gmra.mrb[116].mxu1 %v20603_v43 }
 0xb0f   : > { %12928 = vmatprep.mubr.bf16.mxu1 %v20606_v57 }
 0xb16   : > { %12929 = vmatmul.mubr.bf16.gmra.mrb[120].mxu1 %v20609_v36 }
 0xb17   : > { %12932 = vmatprep.mubr.bf16.mxu1 %v7468_v1  ;;  %v17911_v1 = vld [vmem:[%s16164_s5 + $0x1] ss:$0 sm:$0xff]  ;;  %s14807_s5 = smov [#allocation22]  }
 0xb18   : > { %s14690_s18 = sshll.u32 %s14807_s5, 4  ;;  %s14691_s18 = int_to_ptr.vmem [resolvable:$false] %s14690_s18 }
 0xb19   : > { %s14692_s11 = scalar_lea.vmem %s14691_s18, 256 }
 0xb1e   : > { %12933 = vmatmul.mubr.bf16.gmra.mrb[124].mxu1 %v20612_v50 }
 0xb1f   : > { %12936 = vmatprep.mubr.bf16.mxu1 %v7470_v22 }
 0xb26   : > { %12937 = vmatmul.mubr.bf16.gmra.mrb[128].mxu1 %v7471_v10 }
 0xb27   : > { %12940 = vmatprep.mubr.bf16.mxu1 %v7472_v12 }
 0xb2e   : > { %12941 = vmatmul.mubr.bf16.gmra.mrb[132].mxu1 %v7473_v25 }
 0xb2f   : > { %12944 = vmatprep.mubr.bf16.mxu1 %v7474_v44 }
 0xb36   : > { %12945 = vmatmul.mubr.bf16.gmra.mrb[136].mxu1 %v7475_v2  ;;  %v13891_v2 = vld [vmem:[%s15426_s6 + $0x48] sm:$0xff]  }
 0xb37   : > { %12948 = vmatprep.mubr.bf16.mxu1 %v7476_v29 }
 0xb3e   : > { %12949 = vmatmul.mubr.bf16.gmra.mrb[140].mxu1 %v7477_v26 }
 0xb3f   : > { %9650 = vmatprep.mubr.bf16.mxu1 %v17906_v53 }
 0xb99   : > { %v12890_v14 = vpop.f32.mrb[80].mxu1 }
 0xb9a   : > { %v7577_v38 = vpop.f32.mrb[81].mxu1  ;;  %v17917_v25 = vadd.f32 %v12890_v14, %v17911_v1 }
 0xb9b   : > { %v17914_v10 = vadd.f32 %v17911_v1, %v7577_v38  ;;  %v12891_v59 = vpop.f32.mrb[82].mxu1 }
 0xb9c   : > { %20614 = vst [vmem:[#allocation193_spill] sm:$0xff] %v17917_v25  ;;  %v17923_v7 = vadd.f32 %v12891_v59, %v17911_v1  ;;  %v7580_v23 = vpop.f32.mrb[83].mxu1  ;;  %v7995_v11 = vmul.f32 %v17920_v9, %v17917_v25  ;;  %v13896_v59 = vld [vmem:[%s15426_s6 + $0x70] sm:$0xff]  }
 0xb9d   : > { %20613 = vst [vmem:[#allocation200_spill] sm:$0xff] %v17914_v10  ;;  %v17926_v63 = vadd.f32 %v17911_v1, %v7580_v23  ;;  %v7993_v28 = vmul.f32 %v17920_v9, %v17914_v10 }
 0xb9e   : > { %20615 = vst [vmem:[#allocation201_spill] sm:$0xff] %v17923_v7  ;;  %v7996_v42 = vmul.f32 %v17920_v9, %v17923_v7 }
 0xb9f   : > { %20616 = vst [vmem:[#allocation198_spill] sm:$0xff] %v17926_v63  ;;  %v7994_v60 = vmul.f32 %v17920_v9, %v17926_v63 }
 0xba0   : > { %v8058_v12 = vpack.c.bf16 %v7996_v42, %v7995_v11 }
 0xba1   : > { %v12894_v56 = vpop.f32.mrb[84].mxu1  ;;  %v8057_v22 = vpack.c.bf16 %v7994_v60, %v7993_v28 }
 0xba2   : > { %v7593_v0 = vpop.f32.mrb[85].mxu1  ;;  %v17941_v17 = vadd.f32 %v12894_v56, %v17911_v1 }
 0xba3   : > { %v17938_v4 = vadd.f32 %v17911_v1, %v7593_v0  ;;  %v12895_v44 = vpop.f32.mrb[86].mxu1  ;;  %12968 = vmatprep.mubr.bf16.mxu0 %v8057_v22 }
 0xba4   : > { %20618 = vst [vmem:[#allocation207_spill] sm:$0xff] %v17941_v17  ;;  %v17944_v26 = vadd.f32 %v12895_v44, %v17911_v1  ;;  %v7596_v31 = vpop.f32.mrb[87].mxu1  ;;  %12969 = vmatmul.mubr.bf16.vlgmr.msra.gmra.mrb[0].mxu0 %v8058_v12  ;;  %v7999_v8 = vmul.f32 %v17920_v9, %v17941_v17  ;;  %v13897_v12 = vld [vmem:[%s15426_s6 + $0x78] sm:$0xff]  }
 0xba5   : > { %20617 = vst [vmem:[#allocation206_spill] sm:$0xff] %v17938_v4  ;;  %v17947_v29 = vadd.f32 %v17911_v1, %v7596_v31  ;;  %13033 = vmatpush3.bf16.msra.mxu0 %v13890_v48  ;;  %v7997_v34 = vmul.f32 %v17920_v9, %v17938_v4 }
 0xba6   : > { %20619 = vst [vmem:[#allocation199_spill] sm:$0xff] %v17944_v26  ;;  %v8000_v16 = vmul.f32 %v17920_v9, %v17944_v26  ;;  %13034 = vmatprep.subr.bf16.mxu0 %v13891_v2 }
 0xba7   : > { %20620 = vst [vmem:[#allocation196_spill] sm:$0xff] %v17947_v29  ;;  %v7998_v41 = vmul.f32 %v17920_v9, %v17947_v29 }
 0xba8   : > { %v8060_v24 = vpack.c.bf16 %v8000_v16, %v7999_v8 }
 0xba9   : > { %v12898_v5 = vpop.f32.mrb[88].mxu1  ;;  %v8059_v27 = vpack.c.bf16 %v7998_v41, %v7997_v34  ;;  %13035 = vmatpush3.bf16.msra.mxu0 %v13891_v2 }
 0xbaa   : > { %v7609_v18 = vpop.f32.mrb[89].mxu1  ;;  %13036 = vmatprep.subr.bf16.mxu0 %v13892_v51  ;;  %v17963_v55 = vadd.f32 %v12898_v5, %v17911_v1 }
 0xbab   : > { %v17960_v37 = vadd.f32 %v17911_v1, %v7609_v18  ;;  %v12899_v19 = vpop.f32.mrb[90].mxu1  ;;  %12972 = vmatprep.mubr.bf16.mxu0 %v8059_v27 }
 0xbac   : > { %20622 = vst [vmem:[#allocation205_spill] sm:$0xff] %v17963_v55  ;;  %v17966_v52 = vadd.f32 %v12899_v19, %v17911_v1  ;;  %v7612_v39 = vpop.f32.mrb[91].mxu1  ;;  %12973 = vmatmul.mubr.bf16.gmra.mrb[4].mxu0 %v8060_v24  ;;  %v8003_v43 = vmul.f32 %v17920_v9, %v17963_v55 }
 0xbad   : > { %20621 = vst [vmem:[#allocation204_spill] sm:$0xff] %v17960_v37  ;;  %v17969_v47 = vadd.f32 %v17911_v1, %v7612_v39  ;;  %13037 = vmatpush3.bf16.msra.mxu0 %v13892_v51  ;;  %v8001_v21 = vmul.f32 %v17920_v9, %v17960_v37 }
 0xbae   : > { %20623 = vst [vmem:[#allocation210_spill] sm:$0xff] %v17966_v52  ;;  %v8004_v58 = vmul.f32 %v17920_v9, %v17966_v52  ;;  %13038 = vmatprep.subr.bf16.mxu0 %v13893_v45 }
 0xbaf   : > { %20624 = vst [vmem:[#allocation211_spill] sm:$0xff] %v17969_v47  ;;  %v8002_v15 = vmul.f32 %v17920_v9, %v17969_v47 }
 0xbb0   : > { %v8062_v57 = vpack.c.bf16 %v8004_v58, %v8003_v43 }
 0xbb1   : > { %v12902_v40 = vpop.f32.mrb[92].mxu1  ;;  %v8061_v61 = vpack.c.bf16 %v8002_v15, %v8001_v21  ;;  %13039 = vmatpush3.bf16.msra.mxu0 %v13893_v45 }
 0xbb2   : > { %v7625_v13 = vpop.f32.mrb[93].mxu1  ;;  %13040 = vmatprep.subr.bf16.mxu0 %v13894_v32  ;;  %v17985_v20 = vadd.f32 %v12902_v40, %v17911_v1 }
 0xbb3   : > { %v17982_v36 = vadd.f32 %v17911_v1, %v7625_v13  ;;  %v12903_v3 = vpop.f32.mrb[94].mxu1  ;;  %12976 = vmatprep.mubr.bf16.mxu0 %v8061_v61 }
 0xbb4   : > { %20626 = vst [vmem:[#allocation209_spill] sm:$0xff] %v17985_v20  ;;  %v17988_v50 = vadd.f32 %v12903_v3, %v17911_v1  ;;  %v7628_v48 = vpop.f32.mrb[95].mxu1  ;;  %12977 = vmatmul.mubr.bf16.gmra.mrb[8].mxu0 %v8062_v57  ;;  %v8007_v28 = vmul.f32 %v17920_v9, %v17985_v20 }
 0xbb5   : > { %20625 = vst [vmem:[#allocation208_spill] sm:$0xff] %v17982_v36  ;;  %v17991_v14 = vadd.f32 %v17911_v1, %v7628_v48  ;;  %13041 = vmatpush3.bf16.msra.mxu0 %v13894_v32  ;;  %v8005_v23 = vmul.f32 %v17920_v9, %v17982_v36 }
 0xbb6   : > { %20627 = vst [vmem:[#allocation212_spill] sm:$0xff] %v17988_v50  ;;  %v8008_v38 = vmul.f32 %v17920_v9, %v17988_v50  ;;  %13042 = vmatprep.subr.bf16.mxu0 %v13895_v49 }
 0xbb7   : > { %20628 = vst [vmem:[#allocation213_spill] sm:$0xff] %v17991_v14  ;;  %v8006_v42 = vmul.f32 %v17920_v9, %v17991_v14 }
 0xbb8   : > { %v8064_v56 = vpack.c.bf16 %v8008_v38, %v8007_v28 }
 0xbb9   : > { %v12906_v60 = vpop.f32.mrb[96].mxu1  ;;  %v8063_v11 = vpack.c.bf16 %v8006_v42, %v8005_v23  ;;  %13043 = vmatpush3.bf16.msra.mxu0 %v13895_v49 }
 0xbba   : > { %v7641_v22 = vpop.f32.mrb[97].mxu1  ;;  %13044 = vmatprep.subr.bf16.mxu0 %v13896_v59  ;;  %v18007_v44 = vadd.f32 %v12906_v60, %v17911_v1 }
 0xbbb   : > { %v18004_v0 = vadd.f32 %v17911_v1, %v7641_v22  ;;  %v12907_v2 = vpop.f32.mrb[98].mxu1  ;;  %12980 = vmatprep.mubr.bf16.mxu0 %v8063_v11 }
 0xbbc   : > { %20630 = vst [vmem:[#allocation133_spill] sm:$0xff] %v18007_v44  ;;  %v18010_v31 = vadd.f32 %v12907_v2, %v17911_v1  ;;  %v7644_v16 = vpop.f32.mrb[99].mxu1  ;;  %12981 = vmatmul.mubr.bf16.gmra.mrb[12].mxu0 %v8064_v56  ;;  %v8011_v5 = vmul.f32 %v17920_v9, %v18007_v44 }
 0xbbd   : > { %20629 = vst [vmem:[#allocation214_spill] sm:$0xff] %v18004_v0  ;;  %v18013_v51 = vadd.f32 %v17911_v1, %v7644_v16  ;;  %13045 = vmatpush3.bf16.msra.mxu0 %v13896_v59  ;;  %v8009_v41 = vmul.f32 %v17920_v9, %v18004_v0 }
 0xbbe   : > { %20631 = vst [vmem:[#allocation136_spill] sm:$0xff] %v18010_v31  ;;  %v8012_v34 = vmul.f32 %v17920_v9, %v18010_v31  ;;  %13046 = vmatprep.subr.bf16.mxu0 %v13897_v12 }
 0xbbf   : > { %20632 = vst [vmem:[#allocation215_spill] sm:$0xff] %v18013_v51  ;;  %v8010_v8 = vmul.f32 %v17920_v9, %v18013_v51 }
 0xbc0   : > { %v8066_v18 = vpack.c.bf16 %v8012_v34, %v8011_v5 }
 0xbc1   : > { %v12910_v27 = vpop.f32.mrb[100].mxu1  ;;  %v8065_v24 = vpack.c.bf16 %v8010_v8, %v8009_v41  ;;  %13047 = vmatpush3.bf16.msra.mxu0 %v13897_v12 }
 0xbc2   : > { %v7657_v45 = vpop.f32.mrb[101].mxu1  ;;  %v18027_v58 = vadd.f32 %v12910_v27, %v17911_v1 }
 0xbc3   : > { %v18024_v19 = vadd.f32 %v17911_v1, %v7657_v45  ;;  %v12911_v39 = vpop.f32.mrb[102].mxu1  ;;  %12984 = vmatprep.mubr.bf16.mxu0 %v8065_v24 }
 0xbc4   : > { %20634 = vst [vmem:[#allocation121_spill] sm:$0xff] %v18027_v58  ;;  %v18030_v32 = vadd.f32 %v12911_v39, %v17911_v1  ;;  %v7660_v21 = vpop.f32.mrb[103].mxu1  ;;  %12985 = vmatmul.mubr.bf16.gmra.mrb[16].mxu0 %v8066_v18  ;;  %v8015_v57 = vmul.f32 %v17920_v9, %v18027_v58 }
 0xbc5   : > { %20633 = vst [vmem:[#allocation118_spill] sm:$0xff] %v18024_v19  ;;  %v18033_v15 = vadd.f32 %v17911_v1, %v7660_v21  ;;  %v8013_v40 = vmul.f32 %v17920_v9, %v18024_v19 }
 0xbc6   : > { %20635 = vst [vmem:[#allocation134_spill] sm:$0xff] %v18030_v32  ;;  %v8016_v43 = vmul.f32 %v17920_v9, %v18030_v32 }
 0xbc7   : > { %20636 = vst [vmem:[#allocation135_spill] sm:$0xff] %v18033_v15  ;;  %v8014_v61 = vmul.f32 %v17920_v9, %v18033_v15 }
 0xbc8   : > { %v8068_v3 = vpack.c.bf16 %v8016_v43, %v8015_v57 }
 0xbc9   : > { %v12914_v13 = vpop.f32.mrb[104].mxu1  ;;  %v8067_v49 = vpack.c.bf16 %v8014_v61, %v8013_v40 }
 0xbca   : > { %v7673_v48 = vpop.f32.mrb[105].mxu1  ;;  %v18047_v23 = vadd.f32 %v12914_v13, %v17911_v1 }
 0xbcb   : > { %v18044_v38 = vadd.f32 %v17911_v1, %v7673_v48  ;;  %v12915_v59 = vpop.f32.mrb[106].mxu1  ;;  %12988 = vmatprep.mubr.bf16.mxu0 %v8067_v49 }
 0xbcc   : > { %20638 = vst [vmem:[#allocation120_spill] sm:$0xff] %v18047_v23  ;;  %v18050_v42 = vadd.f32 %v12915_v59, %v17911_v1  ;;  %v7676_v28 = vpop.f32.mrb[107].mxu1  ;;  %12989 = vmatmul.mubr.bf16.gmra.mrb[20].mxu0 %v8068_v3  ;;  %v8019_v12 = vmul.f32 %v17920_v9, %v18047_v23 }
 0xbcd   : > { %20637 = vst [vmem:[#allocation117_spill] sm:$0xff] %v18044_v38  ;;  %v18053_v60 = vadd.f32 %v17911_v1, %v7676_v28  ;;  %v8017_v56 = vmul.f32 %v17920_v9, %v18044_v38 }
 0xbce   : > { %20639 = vst [vmem:[#allocation137_spill] sm:$0xff] %v18050_v42  ;;  %v8020_v11 = vmul.f32 %v17920_v9, %v18050_v42 }
 0xbcf   : > { %20640 = vst [vmem:[#allocation140_spill] sm:$0xff] %v18053_v60  ;;  %v8018_v22 = vmul.f32 %v17920_v9, %v18053_v60 }
 0xbd0   : > { %v8070_v34 = vpack.c.bf16 %v8020_v11, %v8019_v12 }
 0xbd1   : > { %v12918_v2 = vpop.f32.mrb[108].mxu1  ;;  %v8069_v16 = vpack.c.bf16 %v8018_v22, %v8017_v56 }
 0xbd2   : > { %v7689_v41 = vpop.f32.mrb[109].mxu1  ;;  %v18067_v27 = vadd.f32 %v12918_v2, %v17911_v1 }
 0xbd3   : > { %v18064_v8 = vadd.f32 %v17911_v1, %v7689_v41  ;;  %v12919_v5 = vpop.f32.mrb[110].mxu1  ;;  %12992 = vmatprep.mubr.bf16.mxu0 %v8069_v16 }
 0xbd4   : > { %20642 = vst [vmem:[#allocation124_spill] sm:$0xff] %v18067_v27  ;;  %v18070_v24 = vadd.f32 %v12919_v5, %v17911_v1  ;;  %v7692_v18 = vpop.f32.mrb[111].mxu1  ;;  %12993 = vmatmul.mubr.bf16.gmra.mrb[24].mxu0 %v8070_v34  ;;  %v8023_v40 = vmul.f32 %v17920_v9, %v18067_v27 }
 0xbd5   : > { %20641 = vst [vmem:[#allocation119_spill] sm:$0xff] %v18064_v8  ;;  %v18073_v45 = vadd.f32 %v17911_v1, %v7692_v18  ;;  %v8021_v21 = vmul.f32 %v17920_v9, %v18064_v8 }
 0xbd6   : > { %20643 = vst [vmem:[#allocation138_spill] sm:$0xff] %v18070_v24  ;;  %v8024_v39 = vmul.f32 %v17920_v9, %v18070_v24 }
 0xbd7   : > { %20644 = vst [vmem:[#allocation139_spill] sm:$0xff] %v18073_v45  ;;  %v8022_v43 = vmul.f32 %v17920_v9, %v18073_v45 }
 0xbd8   : > { %v8072_v13 = vpack.c.bf16 %v8024_v39, %v8023_v40 }
 0xbd9   : > { %v12922_v61 = vpop.f32.mrb[112].mxu1  ;;  %v8071_v57 = vpack.c.bf16 %v8022_v43, %v8021_v21 }
 0xbda   : > { %v7705_v49 = vpop.f32.mrb[113].mxu1  ;;  %v18087_v59 = vadd.f32 %v12922_v61, %v17911_v1 }
 0xbdb   : > { %v18084_v3 = vadd.f32 %v17911_v1, %v7705_v49  ;;  %v12923_v48 = vpop.f32.mrb[114].mxu1  ;;  %12996 = vmatprep.mubr.bf16.mxu0 %v8071_v57 }
 0xbdc   : > { %20646 = vst [vmem:[#allocation125_spill] sm:$0xff] %v18087_v59  ;;  %v18090_v28 = vadd.f32 %v12923_v48, %v17911_v1  ;;  %v7708_v11 = vpop.f32.mrb[115].mxu1  ;;  %12997 = vmatmul.mubr.bf16.gmra.mrb[28].mxu0 %v8072_v13  ;;  %v8027_v16 = vmul.f32 %v17920_v9, %v18087_v59 }
 0xbdd   : > { %20645 = vst [vmem:[#allocation197_spill] sm:$0xff] %v18084_v3  ;;  %v18093_v56 = vadd.f32 %v17911_v1, %v7708_v11  ;;  %v8025_v12 = vmul.f32 %v17920_v9, %v18084_v3 }
 0xbde   : > { %20647 = vst [vmem:[#allocation123_spill] sm:$0xff] %v18090_v28  ;;  %v8028_v22 = vmul.f32 %v17920_v9, %v18090_v28 }
 0xbdf   : > { %20648 = vst [vmem:[#allocation141_spill] sm:$0xff] %v18093_v56  ;;  %v8026_v2 = vmul.f32 %v17920_v9, %v18093_v56 }
 0xbe0   : > { %v8074_v5 = vpack.c.bf16 %v8028_v22, %v8027_v16 }
 0xbe1   : > { %v12926_v34 = vpop.f32.mrb[116].mxu1  ;;  %v8073_v41 = vpack.c.bf16 %v8026_v2, %v8025_v12 }
 0xbe2   : > { %v7721_v18 = vpop.f32.mrb[117].mxu1  ;;  %v18107_v43 = vadd.f32 %v12926_v34, %v17911_v1 }
 0xbe3   : > { %v18104_v39 = vadd.f32 %v17911_v1, %v7721_v18  ;;  %v12927_v21 = vpop.f32.mrb[118].mxu1  ;;  %13000 = vmatprep.mubr.bf16.mxu0 %v8073_v41 }
 0xbe4   : > { %20650 = vst [vmem:[#allocation122_spill] sm:$0xff] %v18107_v43  ;;  %v18110_v40 = vadd.f32 %v12927_v21, %v17911_v1  ;;  %v7724_v61 = vpop.f32.mrb[119].mxu1  ;;  %13001 = vmatmul.mubr.bf16.gmra.mrb[32].mxu0 %v8074_v5  ;;  %v8031_v11 = vmul.f32 %v17920_v9, %v18107_v43 }
 0xbe5   : > { %20649 = vst [vmem:[#allocation144_spill] sm:$0xff] %v18104_v39  ;;  %v18113_v57 = vadd.f32 %v17911_v1, %v7724_v61  ;;  %v8029_v49 = vmul.f32 %v17920_v9, %v18104_v39 }
 0xbe6   : > { %20651 = vst [vmem:[#allocation128_spill] sm:$0xff] %v18110_v40  ;;  %v8032_v13 = vmul.f32 %v17920_v9, %v18110_v40 }
 0xbe7   : > { %20652 = vst [vmem:[#allocation142_spill] sm:$0xff] %v18113_v57  ;;  %v8030_v48 = vmul.f32 %v17920_v9, %v18113_v57 }
 0xbe8   : > { %v8076_v2 = vpack.c.bf16 %v8032_v13, %v8031_v11 }
 0xbe9   : > { %v12930_v22 = vpop.f32.mrb[120].mxu1  ;;  %v8075_v12 = vpack.c.bf16 %v8030_v48, %v8029_v49 }
 0xbea   : > { %v7737_v16 = vpop.f32.mrb[121].mxu1  ;;  %v18127_v5 = vadd.f32 %v12930_v22, %v17911_v1 }
 0xbeb   : > { %v18124_v34 = vadd.f32 %v17911_v1, %v7737_v16  ;;  %v12931_v41 = vpop.f32.mrb[122].mxu1  ;;  %13004 = vmatprep.mubr.bf16.mxu0 %v8075_v12 }
 0xbec   : > { %20654 = vst [vmem:[#allocation126_spill] sm:$0xff] %v18127_v5  ;;  %v18130_v18 = vadd.f32 %v12931_v41, %v17911_v1  ;;  %v7740_v21 = vpop.f32.mrb[123].mxu1  ;;  %13005 = vmatmul.mubr.bf16.gmra.mrb[36].mxu0 %v8076_v2  ;;  %v8035_v11 = vmul.f32 %v17920_v9, %v18127_v5 }
 0xbed   : > { %20653 = vst [vmem:[#allocation143_spill] sm:$0xff] %v18124_v34  ;;  %v18133_v61 = vadd.f32 %v17911_v1, %v7740_v21  ;;  %v8033_v49 = vmul.f32 %v17920_v9, %v18124_v34 }
 0xbee   : > { %20655 = vst [vmem:[#allocation127_spill] sm:$0xff] %v18130_v18  ;;  %v8036_v13 = vmul.f32 %v17920_v9, %v18130_v18 }
 0xbef   : > { %20656 = vst [vmem:[#allocation145_spill] sm:$0xff] %v18133_v61  ;;  %v8034_v48 = vmul.f32 %v17920_v9, %v18133_v61 }
 0xbf0   : > { %v8078_v16 = vpack.c.bf16 %v8036_v13, %v8035_v11 }
 0xbf1   : > { %v12934_v22 = vpop.f32.mrb[124].mxu1  ;;  %v8077_v12 = vpack.c.bf16 %v8034_v48, %v8033_v49 }
 0xbf2   : > { %v7753_v41 = vpop.f32.mrb[125].mxu1  ;;  %v18147_v50 = vadd.f32 %v12934_v22, %v17911_v1 }
 0xbf3   : > { %v18144_v2 = vadd.f32 %v17911_v1, %v7753_v41  ;;  %v12935_v21 = vpop.f32.mrb[126].mxu1  ;;  %13008 = vmatprep.mubr.bf16.mxu0 %v8077_v12 }
 0xbf4   : > { %20658 = vst [vmem:[#allocation216_spill] sm:$0xff] %v18147_v50  ;;  %v18150_v20 = vadd.f32 %v12935_v21, %v17911_v1  ;;  %v7756_v18 = vpop.f32.mrb[127].mxu1  ;;  %13009 = vmatmul.mubr.bf16.gmra.mrb[40].mxu0 %v8078_v16  ;;  %v8039_v11 = vmul.f32 %v17920_v9, %v18147_v50 }
 0xbf5   : > { %20657 = vst [vmem:[#allocation148_spill] sm:$0xff] %v18144_v2  ;;  %v18153_v61 = vadd.f32 %v17911_v1, %v7756_v18  ;;  %v8037_v49 = vmul.f32 %v17920_v9, %v18144_v2 }
 0xbf6   : > { %20659 = vst [vmem:[#allocation129_spill] sm:$0xff] %v18150_v20  ;;  %v8040_v13 = vmul.f32 %v17920_v9, %v18150_v20 }
 0xbf7   : > { %20660 = vst [vmem:[#allocation132_spill] sm:$0xff] %v18153_v61  ;;  %v8038_v48 = vmul.f32 %v17920_v9, %v18153_v61 }
 0xbf8   : > { %v8080_v41 = vpack.c.bf16 %v8040_v13, %v8039_v11 }
 0xbf9   : > { %v12938_v22 = vpop.f32.mrb[128].mxu1  ;;  %v8079_v12 = vpack.c.bf16 %v8038_v48, %v8037_v49 }
 0xbfa   : > { %v7769_v21 = vpop.f32.mrb[129].mxu1  ;;  %v18167_v20 = vadd.f32 %v12938_v22, %v17911_v1 }
 0xbfb   : > { %v18164_v16 = vadd.f32 %v17911_v1, %v7769_v21  ;;  %v12939_v18 = vpop.f32.mrb[130].mxu1  ;;  %13012 = vmatprep.mubr.bf16.mxu0 %v8079_v12 }
 0xbfc   : > { %20662 = vst [vmem:[#allocation217_spill] sm:$0xff] %v18167_v20  ;;  %v18170_v2 = vadd.f32 %v12939_v18, %v17911_v1  ;;  %v7772_v5 = vpop.f32.mrb[131].mxu1  ;;  %13013 = vmatmul.mubr.bf16.gmra.mrb[44].mxu0 %v8080_v41  ;;  %v8043_v11 = vmul.f32 %v17920_v9, %v18167_v20 }
 0xbfd   : > { %20661 = vst [vmem:[#allocation146_spill] sm:$0xff] %v18164_v16  ;;  %v18173_v61 = vadd.f32 %v17911_v1, %v7772_v5  ;;  %v8041_v49 = vmul.f32 %v17920_v9, %v18164_v16 }
 0xbfe   : > { %20663 = vst [vmem:[#allocation147_spill] sm:$0xff] %v18170_v2  ;;  %v8044_v13 = vmul.f32 %v17920_v9, %v18170_v2 }
 0xbff   : > { %20664 = vst [vmem:[#allocation218_spill] sm:$0xff] %v18173_v61  ;;  %v8042_v48 = vmul.f32 %v17920_v9, %v18173_v61 }
 0xc00   : > { %v8082_v21 = vpack.c.bf16 %v8044_v13, %v8043_v11 }
 0xc01   : > { %v12942_v22 = vpop.f32.mrb[132].mxu1  ;;  %v8081_v12 = vpack.c.bf16 %v8042_v48, %v8041_v49 }
 0xc02   : > { %v7785_v18 = vpop.f32.mrb[133].mxu1  ;;  %v18187_v2 = vadd.f32 %v12942_v22, %v17911_v1 }
 0xc03   : > { %v18184_v41 = vadd.f32 %v17911_v1, %v7785_v18  ;;  %v12943_v5 = vpop.f32.mrb[134].mxu1  ;;  %13016 = vmatprep.mubr.bf16.mxu0 %v8081_v12 }
 0xc04   : > { %20666 = vst [vmem:[#allocation131_spill] sm:$0xff] %v18187_v2  ;;  %v18190_v16 = vadd.f32 %v12943_v5, %v17911_v1  ;;  %v7788_v50 = vpop.f32.mrb[135].mxu1  ;;  %13017 = vmatmul.mubr.bf16.gmra.mrb[48].mxu0 %v8082_v21  ;;  %v8047_v11 = vmul.f32 %v17920_v9, %v18187_v2 }
 0xc05   : > { %20665 = vst [vmem:[#allocation130_spill] sm:$0xff] %v18184_v41  ;;  %v18193_v61 = vadd.f32 %v17911_v1, %v7788_v50  ;;  %v8045_v49 = vmul.f32 %v17920_v9, %v18184_v41 }
 0xc06   : > { %20667 = vst [vmem:[#allocation165_spill] sm:$0xff] %v18190_v16  ;;  %v8048_v13 = vmul.f32 %v17920_v9, %v18190_v16 }
 0xc07   : > { %20668 = vst [vmem:[#allocation168_spill] sm:$0xff] %v18193_v61  ;;  %v8046_v48 = vmul.f32 %v17920_v9, %v18193_v61 }
 0xc08   : > { %v8084_v18 = vpack.c.bf16 %v8048_v13, %v8047_v11 }
 0xc09   : > { %v12946_v22 = vpop.f32.mrb[136].mxu1  ;;  %v8083_v12 = vpack.c.bf16 %v8046_v48, %v8045_v49 }
 0xc0a   : > { %v7801_v5 = vpop.f32.mrb[137].mxu1  ;;  %v18207_v16 = vadd.f32 %v12946_v22, %v17911_v1 }
 0xc0b   : > { %v18204_v21 = vadd.f32 %v17911_v1, %v7801_v5  ;;  %v12947_v50 = vpop.f32.mrb[138].mxu1  ;;  %13020 = vmatprep.mubr.bf16.mxu0 %v8083_v12 }
 0xc0c   : > { %20670 = vst [vmem:[#allocation152_spill] sm:$0xff] %v18207_v16  ;;  %v18210_v41 = vadd.f32 %v12947_v50, %v17911_v1  ;;  %v7804_v20 = vpop.f32.mrb[139].mxu1  ;;  %13021 = vmatmul.mubr.bf16.gmra.mrb[52].mxu0 %v8084_v18  ;;  %v8051_v11 = vmul.f32 %v17920_v9, %v18207_v16 }
 0xc0d   : > { %20669 = vst [vmem:[#allocation149_spill] sm:$0xff] %v18204_v21  ;;  %v18213_v61 = vadd.f32 %v17911_v1, %v7804_v20  ;;  %v8049_v49 = vmul.f32 %v17920_v9, %v18204_v21 }
 0xc0e   : > { %20671 = vst [vmem:[#allocation166_spill] sm:$0xff] %v18210_v41  ;;  %v8052_v13 = vmul.f32 %v17920_v9, %v18210_v41 }
 0xc0f   : > { %20672 = vst [vmem:[#allocation167_spill] sm:$0xff] %v18213_v61  ;;  %v8050_v48 = vmul.f32 %v17920_v9, %v18213_v61 }
 0xc10   : > { %v8086_v5 = vpack.c.bf16 %v8052_v13, %v8051_v11 }
 0xc11   : > { %v12950_v22 = vpop.f32.mrb[140].mxu1  ;;  %v8085_v12 = vpack.c.bf16 %v8050_v48, %v8049_v49 }
 0xc12   : > { %v7817_v50 = vpop.f32.mrb[141].mxu1  ;;  %v18227_v41 = vadd.f32 %v12950_v22, %v17911_v1 }
 0xc13   : > { %v18224_v18 = vadd.f32 %v17911_v1, %v7817_v50  ;;  %v12951_v20 = vpop.f32.mrb[142].mxu1  ;;  %13024 = vmatprep.mubr.bf16.mxu0 %v8085_v12  ;;  %v20680_v50 = vld [vmem:[#allocation92_spill] sm:$0xff] }
 0xc14   : > { %20674 = vst [vmem:[#allocation151_spill] sm:$0xff] %v18227_v41  ;;  %v18230_v21 = vadd.f32 %v12951_v20, %v17911_v1  ;;  %v7820_v2 = vpop.f32.mrb[143].mxu1  ;;  %13025 = vmatmul.mubr.bf16.gmra.mrb[56].mxu0 %v8086_v5  ;;  %v8055_v11 = vmul.f32 %v17920_v9, %v18227_v41  ;;  %v20677_v5 = vld [vmem:[#allocation93_spill] sm:$0xff]  ;;  %v20681_v20 = vld [vmem:[#allocation99_spill] sm:$0xff] }
 0xc15   : > { %20673 = vst [vmem:[#allocation150_spill] sm:$0xff] %v18224_v18  ;;  %v18233_v61 = vadd.f32 %v17911_v1, %v7820_v2  ;;  %v8053_v49 = vmul.f32 %v17920_v9, %v18224_v18  ;;  %v20678_v1 = vld [vmem:[#allocation108_spill] sm:$0xff]  ;;  %v20679_v2 = vld [vmem:[#allocation115_spill] sm:$0xff]  ;;  %v20684_v18 = vld [vmem:[#allocation98_spill] sm:$0xff] }
 0xc16   : > { %20675 = vst [vmem:[#allocation169_spill] sm:$0xff] %v18230_v21  ;;  %v8056_v13 = vmul.f32 %v17920_v9, %v18230_v21  ;;  %v20682_v21 = vld [vmem:[#allocation114_spill] sm:$0xff] }
 0xc17   : > { %20676 = vst [vmem:[#allocation172_spill] sm:$0xff] %v18233_v61  ;;  %v8054_v48 = vmul.f32 %v17920_v9, %v18233_v61  ;;  %v20683_v61 = vld [vmem:[#allocation113_spill] sm:$0xff] }
 0xc18   : > { %v8088_v12 = vpack.c.bf16 %v8056_v13, %v8055_v11  ;;  %v20685_v9 = vld [vmem:[#allocation97_spill] sm:$0xff]  ;;  %v20686_v13 = vld [vmem:[#allocation112_spill] sm:$0xff]  ;;  %v20689_v11 = vld [vmem:[#allocation183_spill] sm:$0xff] }
 0xc19   : > { %v8087_v22 = vpack.c.bf16 %v8054_v48, %v8053_v49  ;;  %v20687_v49 = vld [vmem:[#allocation182_spill] sm:$0xff]  ;;  %v20688_v48 = vld [vmem:[#allocation96_spill] sm:$0xff] }
 0xc1b   : > { %13028 = vmatprep.mubr.bf16.mxu0 %v8087_v22  ;;  %v20690_v22 = vld [vmem:[#allocation103_spill] sm:$0xff] }
 0xc1c   : > { %13029 = vmatmul.mubr.bf16.gmra.mrb[60].mxu0 %v8088_v12  ;;  %v20691_v12 = vld [vmem:[#allocation101_spill] sm:$0xff] }
 0xc1d   : > { %13048 = vmatprep.mubr.bf16.mxu0 %v20677_v5  ;;  %v20692_v5 = vld [vmem:[#allocation102_spill] sm:$0xff] }
 0xc24   : > { %13049 = vmatmul.mubr.bf16.vlgmr.msra.gmra.mrb[0].mxu0 %v20678_v1  ;;  %v20696_v1 = vld [vmem:[#allocation181_spill] sm:$0xff] }
 0xc25   : > { %13052 = vmatprep.mubr.bf16.mxu0 %v20679_v2  ;;  %v20697_v2 = vld [vmem:[#allocation184_spill] sm:$0xff] }
 0xc2c   : > { %13053 = vmatmul.mubr.bf16.gmra.mrb[4].mxu0 %v20680_v50  ;;  %v20698_v50 = vld [vmem:[#allocation187_spill] sm:$0xff] }
 0xc2d   : > { %13056 = vmatprep.mubr.bf16.mxu0 %v20681_v20  ;;  %v20699_v20 = vld [vmem:[#allocation190_spill] sm:$0xff] }
 0xc34   : > { %13057 = vmatmul.mubr.bf16.gmra.mrb[8].mxu0 %v20682_v21  ;;  %v20693_v21 = vld [vmem:[#allocation116_spill] sm:$0xff] }
 0xc35   : > { %13060 = vmatprep.mubr.bf16.mxu0 %v20683_v61  ;;  %v20694_v61 = vld [vmem:[#allocation100_spill] sm:$0xff] }
 0xc3c   : > { %13061 = vmatmul.mubr.bf16.gmra.mrb[12].mxu0 %v20684_v18  ;;  %v20695_v18 = vld [vmem:[#allocation186_spill] sm:$0xff] }
 0xc3d   : > { %13064 = vmatprep.mubr.bf16.mxu0 %v20685_v9  ;;  %v20700_v9 = vld [vmem:[#allocation185_spill] sm:$0xff] }
 0xc44   : > { %13065 = vmatmul.mubr.bf16.gmra.mrb[16].mxu0 %v20686_v13  ;;  %v20701_v13 = vld [vmem:[#allocation191_spill] sm:$0xff] }
 0xc45   : > { %13068 = vmatprep.mubr.bf16.mxu0 %v20687_v49 }
 0xc4c   : > { %13069 = vmatmul.mubr.bf16.gmra.mrb[20].mxu0 %v20688_v48 }
 0xc4d   : > { %13072 = vmatprep.mubr.bf16.mxu0 %v20689_v11 }
 0xc54   : > { %13073 = vmatmul.mubr.bf16.gmra.mrb[24].mxu0 %v20690_v22 }
 0xc55   : > { %13076 = vmatprep.mubr.bf16.mxu0 %v20691_v12 }
 0xc5c   : > { %13077 = vmatmul.mubr.bf16.gmra.mrb[28].mxu0 %v20692_v5 }
 0xc5d   : > { %13080 = vmatprep.mubr.bf16.mxu0 %v20693_v21 }
 0xc64   : > { %13081 = vmatmul.mubr.bf16.gmra.mrb[32].mxu0 %v20694_v61 }
 0xc65   : > { %13084 = vmatprep.mubr.bf16.mxu0 %v20695_v18 }
 0xc6c   : > { %13085 = vmatmul.mubr.bf16.gmra.mrb[36].mxu0 %v20696_v1 }
 0xc6d   : > { %13088 = vmatprep.mubr.bf16.mxu0 %v20697_v2 }
 0xc74   : > { %13089 = vmatmul.mubr.bf16.gmra.mrb[40].mxu0 %v20698_v50 }
 0xc75   : > { %13092 = vmatprep.mubr.bf16.mxu0 %v20699_v20 }
 0xc7c   : > { %13093 = vmatmul.mubr.bf16.gmra.mrb[44].mxu0 %v20700_v9 }
 0xc7d   : > { %13096 = vmatprep.mubr.bf16.mxu0 %v20701_v13 }
 0xc84   : > { %13097 = vmatmul.mubr.bf16.gmra.mrb[48].mxu0 %v17767_v35 }
 0xc85   : > { %13100 = vmatprep.mubr.bf16.mxu0 %v17787_v30 }
 0xc8c   : > { %13101 = vmatmul.mubr.bf16.gmra.mrb[52].mxu0 %v17785_v6 }
 0xc8d   : > { %13104 = vmatprep.mubr.bf16.mxu0 %v17805_v33 }
 0xc94   : > { %13105 = vmatmul.mubr.bf16.gmra.mrb[56].mxu0 %v17803_v54 }
 0xc95   : > { %13108 = vmatprep.mubr.bf16.mxu0 %v17823_v46 }
 0xc9c   : > { %13109 = vmatmul.mubr.bf16.gmra.mrb[60].mxu0 %v17821_v62 }
 0xc9d   : > { %9360 = vmatprep.mubr.bf16.mxu0 %v17906_v53 }
 0xcf7   : > { %v13050_v49 = vpop.f32.mrb[0].mxu0 }
 0xcf8   : > { %v8781_v48 = vmul.f32 0.01, %v13050_v49  ;;  %v8460_v11 = vpop.f32.mrb[1].mxu0  ;;  %vm8717_vm0 = vcmp.gt.f32.partialorder %v13050_v49, 0.0 }
 0xcf9   : > { %v13051_v22 = vpop.f32.mrb[2].mxu0  ;;  %v8779_v35 = vmul.f32 0.01, %v8460_v11  ;;  %vm8715_vm2 = vcmp.gt.f32.partialorder %v8460_v11, 0.0 }
 0xcfa   : > { %v8782_v12 = vmul.f32 0.01, %v13051_v22  ;;  %v8463_v30 = vpop.f32.mrb[3].mxu0  ;;  %v18276_v5 = vsel %vm8717_vm0, %v13050_v49, %v8781_v48  ;;  %vm8718_vm1 = vcmp.gt.f32.partialorder %v13051_v22, 0.0 }
 0xcfb   : > { %8911 = vmax.xlane.f32.xlu0 %v18276_v5  ;;  %v8780_v33 = vmul.f32 0.01, %v8463_v30  ;;  %vm8716_vm3 = vcmp.gt.f32.partialorder %v8463_v30, 0.0  ;;  %v18282_v6 = vsel %vm8715_vm2, %v8460_v11, %v8779_v35 }
 0xcfc   : > { %v18279_v46 = vsel %vm8718_vm1, %v13051_v22, %v8782_v12 }
 0xcfd   : > { %8913 = vmax.xlane.f32.xlu1 %v18279_v46  ;;  %v18285_v21 = vsel %vm8716_vm3, %v8463_v30, %v8780_v33 }
 0xcff   : > { %8907 = vmax.xlane.f32.xlu0 %v18282_v6  ;;  %v13054_v54 = vpop.f32.mrb[4].mxu0 }
 0xd00   : > { %v8785_v62 = vmul.f32 0.01, %v13054_v54  ;;  %v8476_v53 = vpop.f32.mrb[5].mxu0  ;;  %vm8721_vm4 = vcmp.gt.f32.partialorder %v13054_v54, 0.0 }
 0xd01   : > { %8909 = vmax.xlane.f32.xlu1 %v18285_v21  ;;  %v13055_v61 = vpop.f32.mrb[6].mxu0  ;;  %v8783_v18 = vmul.f32 0.01, %v8476_v53  ;;  %vm8719_vm6 = vcmp.gt.f32.partialorder %v8476_v53, 0.0 }
 0xd02   : > { %v8786_v1 = vmul.f32 0.01, %v13055_v61  ;;  %v8479_v2 = vpop.f32.mrb[7].mxu0  ;;  %v18288_v50 = vsel %vm8721_vm4, %v13054_v54, %v8785_v62  ;;  %vm8722_vm5 = vcmp.gt.f32.partialorder %v13055_v61, 0.0 }
 0xd03   : > { %8919 = vmax.xlane.f32.xlu0 %v18288_v50  ;;  %v8784_v20 = vmul.f32 0.01, %v8479_v2  ;;  %vm8720_vm7 = vcmp.gt.f32.partialorder %v8479_v2, 0.0  ;;  %v18294_v13 = vsel %vm8719_vm6, %v8476_v53, %v8783_v18 }
 0xd04   : > { %v18291_v9 = vsel %vm8722_vm5, %v13055_v61, %v8786_v1 }
 0xd05   : > { %8921 = vmax.xlane.f32.xlu1 %v18291_v9  ;;  %v18297_v22 = vsel %vm8720_vm7, %v8479_v2, %v8784_v20 }
 0xd07   : > { %8915 = vmax.xlane.f32.xlu0 %v18294_v13  ;;  %v13058_v49 = vpop.f32.mrb[8].mxu0 }
 0xd08   : > { %v8789_v48 = vmul.f32 0.01, %v13058_v49  ;;  %v8492_v11 = vpop.f32.mrb[9].mxu0  ;;  %vm8725_vm8 = vcmp.gt.f32.partialorder %v13058_v49, 0.0 }
 0xd09   : > { %8917 = vmax.xlane.f32.xlu1 %v18297_v22  ;;  %v13059_v35 = vpop.f32.mrb[10].mxu0  ;;  %v8787_v12 = vmul.f32 0.01, %v8492_v11  ;;  %vm8723_vm10 = vcmp.gt.f32.partialorder %v8492_v11, 0.0 }
 0xd0a   : > { %v8790_v30 = vmul.f32 0.01, %v13059_v35  ;;  %v8495_v33 = vpop.f32.mrb[11].mxu0  ;;  %v18300_v54 = vsel %vm8725_vm8, %v13058_v49, %v8789_v48  ;;  %vm8726_vm9 = vcmp.gt.f32.partialorder %v13059_v35, 0.0 }
 0xd0b   : > { %20702 = vst [vmem:[#allocation153_spill] sm:$0xff] %v18300_v54  ;;  %8927 = vmax.xlane.f32.xlu0 %v18300_v54  ;;  %v8788_v62 = vmul.f32 0.01, %v8495_v33  ;;  %vm8724_vm11 = vcmp.gt.f32.partialorder %v8495_v33, 0.0  ;;  %v18306_v61 = vsel %vm8723_vm10, %v8492_v11, %v8787_v12 }
 0xd0c   : > { %v18303_v53 = vsel %vm8726_vm9, %v13059_v35, %v8790_v30 }
 0xd0d   : > { %20703 = vst [vmem:[#allocation156_spill] sm:$0xff] %v18303_v53  ;;  %8929 = vmax.xlane.f32.xlu1 %v18303_v53  ;;  %v18309_v20 = vsel %vm8724_vm11, %v8495_v33, %v8788_v62 }
 0xd0f   : > { %8923 = vmax.xlane.f32.xlu0 %v18306_v61  ;;  %v13062_v18 = vpop.f32.mrb[12].mxu0 }
 0xd10   : > { %v8793_v1 = vmul.f32 0.01, %v13062_v18  ;;  %v8508_v2 = vpop.f32.mrb[13].mxu0  ;;  %vm8729_vm12 = vcmp.gt.f32.partialorder %v13062_v18, 0.0 }
 0xd11   : > { %8925 = vmax.xlane.f32.xlu1 %v18309_v20  ;;  %v13063_v49 = vpop.f32.mrb[14].mxu0  ;;  %v8791_v48 = vmul.f32 0.01, %v8508_v2  ;;  %vm8727_vm14 = vcmp.gt.f32.partialorder %v8508_v2, 0.0 }
 0xd12   : > { %v8794_v41 = vmul.f32 0.01, %v13063_v49  ;;  %v8511_v35 = vpop.f32.mrb[15].mxu0  ;;  %v18312_v30 = vsel %vm8729_vm12, %v13062_v18, %v8793_v1  ;;  %vm8730_vm13 = vcmp.gt.f32.partialorder %v13063_v49, 0.0 }
 0xd13   : > { %20704 = vst [vmem:[#allocation170_spill] sm:$0xff] %v18312_v30  ;;  %8935 = vmax.xlane.f32.xlu0 %v18312_v30  ;;  %v8792_v11 = vmul.f32 0.01, %v8511_v35  ;;  %vm8728_vm15 = vcmp.gt.f32.partialorder %v8511_v35, 0.0  ;;  %v18318_v33 = vsel %vm8727_vm14, %v8508_v2, %v8791_v48 }
 0xd14   : > { %v18315_v12 = vsel %vm8730_vm13, %v13063_v49, %v8794_v41  ;;  %20706 = vst [vmem:[#allocation154_spill] sm:$0xff] %v18318_v33 }
 0xd15   : > { %20705 = vst [vmem:[#allocation171_spill] sm:$0xff] %v18315_v12  ;;  %8937 = vmax.xlane.f32.xlu1 %v18315_v12  ;;  %v18321_v34 = vsel %vm8728_vm15, %v8511_v35, %v8792_v11 }
 0xd16   : > { %20707 = vst [vmem:[#allocation155_spill] sm:$0xff] %v18321_v34 }
 0xd17   : > { %8931 = vmax.xlane.f32.xlu0 %v18318_v33  ;;  %v13066_v62 = vpop.f32.mrb[16].mxu0 }
 0xd18   : > { %v8797_v16 = vmul.f32 0.01, %v13066_v62  ;;  %v8524_v24 = vpop.f32.mrb[17].mxu0  ;;  %vm8733_vm0 = vcmp.gt.f32.partialorder %v13066_v62, 0.0 }
 0xd19   : > { %8933 = vmax.xlane.f32.xlu1 %v18321_v34  ;;  %v13067_v18 = vpop.f32.mrb[18].mxu0  ;;  %v8795_v1 = vmul.f32 0.01, %v8524_v24  ;;  %vm8731_vm2 = vcmp.gt.f32.partialorder %v8524_v24, 0.0 }
 0xd1a   : > { %v8798_v27 = vmul.f32 0.01, %v13067_v18  ;;  %v8527_v41 = vpop.f32.mrb[19].mxu0  ;;  %v18324_v49 = vsel %vm8733_vm0, %v13066_v62, %v8797_v16  ;;  %vm8734_vm1 = vcmp.gt.f32.partialorder %v13067_v18, 0.0 }
 0xd1b   : > { %20708 = vst [vmem:[#allocation173_spill] sm:$0xff] %v18324_v49  ;;  %8943 = vmax.xlane.f32.xlu0 %v18324_v49  ;;  %v8796_v2 = vmul.f32 0.01, %v8527_v41  ;;  %vm8732_vm3 = vcmp.gt.f32.partialorder %v8527_v41, 0.0  ;;  %v18330_v35 = vsel %vm8731_vm2, %v8524_v24, %v8795_v1 }
 0xd1c   : > { %v18327_v48 = vsel %vm8734_vm1, %v13067_v18, %v8798_v27  ;;  %20710 = vst [vmem:[#allocation157_spill] sm:$0xff] %v18330_v35 }
 0xd1d   : > { %20709 = vst [vmem:[#allocation176_spill] sm:$0xff] %v18327_v48  ;;  %8945 = vmax.xlane.f32.xlu1 %v18327_v48  ;;  %v18333_v14 = vsel %vm8732_vm3, %v8527_v41, %v8796_v2 }
 0xd1e   : > { %20711 = vst [vmem:[#allocation160_spill] sm:$0xff] %v18333_v14 }
 0xd1f   : > { %8939 = vmax.xlane.f32.xlu0 %v18330_v35  ;;  %v13070_v11 = vpop.f32.mrb[20].mxu0 }
 0xd20   : > { %v8801_v40 = vmul.f32 0.01, %v13070_v11  ;;  %v8540_v43 = vpop.f32.mrb[21].mxu0  ;;  %vm8737_vm4 = vcmp.gt.f32.partialorder %v13070_v11, 0.0 }
 0xd21   : > { %8941 = vmax.xlane.f32.xlu1 %v18333_v14  ;;  %v13071_v16 = vpop.f32.mrb[22].mxu0  ;;  %v8799_v62 = vmul.f32 0.01, %v8540_v43  ;;  %vm8735_vm6 = vcmp.gt.f32.partialorder %v8540_v43, 0.0 }
 0xd22   : > { %v8802_v57 = vmul.f32 0.01, %v13071_v16  ;;  %v8543_v27 = vpop.f32.mrb[23].mxu0  ;;  %v18336_v18 = vsel %vm8737_vm4, %v13070_v11, %v8801_v40  ;;  %vm8738_vm5 = vcmp.gt.f32.partialorder %v13071_v16, 0.0 }
 0xd23   : > { %20712 = vst [vmem:[#allocation174_spill] sm:$0xff] %v18336_v18  ;;  %8951 = vmax.xlane.f32.xlu0 %v18336_v18  ;;  %v8800_v24 = vmul.f32 0.01, %v8543_v27  ;;  %vm8736_vm7 = vcmp.gt.f32.partialorder %v8543_v27, 0.0  ;;  %v18342_v41 = vsel %vm8735_vm6, %v8540_v43, %v8799_v62 }
 0xd24   : > { %v18339_v1 = vsel %vm8738_vm5, %v13071_v16, %v8802_v57  ;;  %20714 = vst [vmem:[#allocation158_spill] sm:$0xff] %v18342_v41 }
 0xd25   : > { %20713 = vst [vmem:[#allocation175_spill] sm:$0xff] %v18339_v1  ;;  %8953 = vmax.xlane.f32.xlu1 %v18339_v1  ;;  %v18345_v8 = vsel %vm8736_vm7, %v8543_v27, %v8800_v24 }
 0xd26   : > { %20715 = vst [vmem:[#allocation159_spill] sm:$0xff] %v18345_v8 }
 0xd27   : > { %8947 = vmax.xlane.f32.xlu0 %v18342_v41  ;;  %v13074_v2 = vpop.f32.mrb[24].mxu0 }
 0xd28   : > { %v8805_v39 = vmul.f32 0.01, %v13074_v2  ;;  %v8556_v45 = vpop.f32.mrb[25].mxu0  ;;  %vm8741_vm8 = vcmp.gt.f32.partialorder %v13074_v2, 0.0 }
 0xd29   : > { %8949 = vmax.xlane.f32.xlu1 %v18345_v8  ;;  %v13075_v40 = vpop.f32.mrb[26].mxu0  ;;  %v8803_v11 = vmul.f32 0.01, %v8556_v45  ;;  %vm8739_vm10 = vcmp.gt.f32.partialorder %v8556_v45, 0.0 }
 0xd2a   : > { %v8806_v28 = vmul.f32 0.01, %v13075_v40  ;;  %v8559_v57 = vpop.f32.mrb[27].mxu0  ;;  %v18348_v16 = vsel %vm8741_vm8, %v13074_v2, %v8805_v39  ;;  %vm8742_vm9 = vcmp.gt.f32.partialorder %v13075_v40, 0.0 }
 0xd2b   : > { %20716 = vst [vmem:[#allocation177_spill] sm:$0xff] %v18348_v16  ;;  %8959 = vmax.xlane.f32.xlu0 %v18348_v16  ;;  %v8804_v43 = vmul.f32 0.01, %v8559_v57  ;;  %vm8740_vm11 = vcmp.gt.f32.partialorder %v8559_v57, 0.0  ;;  %v18354_v27 = vsel %vm8739_vm10, %v8556_v45, %v8803_v11 }
 0xd2c   : > { %v18351_v62 = vsel %vm8742_vm9, %v13075_v40, %v8806_v28  ;;  %20718 = vst [vmem:[#allocation161_spill] sm:$0xff] %v18354_v27 }
 0xd2d   : > { %20717 = vst [vmem:[#allocation180_spill] sm:$0xff] %v18351_v62  ;;  %8961 = vmax.xlane.f32.xlu1 %v18351_v62  ;;  %v18357_v56 = vsel %vm8740_vm11, %v8559_v57, %v8804_v43 }
 0xd2e   : > { %20719 = vst [vmem:[#allocation164_spill] sm:$0xff] %v18357_v56 }
 0xd2f   : > { %8955 = vmax.xlane.f32.xlu0 %v18354_v27  ;;  %v13078_v24 = vpop.f32.mrb[28].mxu0 }
 0xd30   : > { %v8809_v59 = vmul.f32 0.01, %v13078_v24  ;;  %v8572_v36 = vpop.f32.mrb[29].mxu0  ;;  %vm8745_vm12 = vcmp.gt.f32.partialorder %v13078_v24, 0.0 }
 0xd31   : > { %8957 = vmax.xlane.f32.xlu1 %v18357_v56  ;;  %v13079_v39 = vpop.f32.mrb[30].mxu0  ;;  %v8807_v2 = vmul.f32 0.01, %v8572_v36  ;;  %vm8743_vm14 = vcmp.gt.f32.partialorder %v8572_v36, 0.0 }
 0xd32   : > { %v8810_v42 = vmul.f32 0.01, %v13079_v39  ;;  %v8575_v28 = vpop.f32.mrb[31].mxu0  ;;  %v18360_v40 = vsel %vm8745_vm12, %v13078_v24, %v8809_v59  ;;  %vm8746_vm13 = vcmp.gt.f32.partialorder %v13079_v39, 0.0 }
 0xd33   : > { %20720 = vst [vmem:[#allocation178_spill] sm:$0xff] %v18360_v40  ;;  %8967 = vmax.xlane.f32.xlu0 %v18360_v40  ;;  %v8808_v45 = vmul.f32 0.01, %v8575_v28  ;;  %vm8744_vm15 = vcmp.gt.f32.partialorder %v8575_v28, 0.0  ;;  %v18366_v57 = vsel %vm8743_vm14, %v8572_v36, %v8807_v2 }
 0xd34   : > { %v18363_v11 = vsel %vm8746_vm13, %v13079_v39, %v8810_v42  ;;  %20722 = vst [vmem:[#allocation162_spill] sm:$0xff] %v18366_v57 }
 0xd35   : > { %20721 = vst [vmem:[#allocation179_spill] sm:$0xff] %v18363_v11  ;;  %8969 = vmax.xlane.f32.xlu1 %v18363_v11  ;;  %v18369_v23 = vsel %vm8744_vm15, %v8575_v28, %v8808_v45 }
 0xd36   : > { %20723 = vst [vmem:[#allocation163_spill] sm:$0xff] %v18369_v23 }
 0xd37   : > { %8963 = vmax.xlane.f32.xlu0 %v18366_v57  ;;  %v13082_v43 = vpop.f32.mrb[32].mxu0 }
 0xd38   : > { %v8813_v3 = vmul.f32 0.01, %v13082_v43  ;;  %v8588_v52 = vpop.f32.mrb[33].mxu0  ;;  %vm8749_vm0 = vcmp.gt.f32.partialorder %v13082_v43, 0.0 }
 0xd39   : > { %8965 = vmax.xlane.f32.xlu1 %v18369_v23  ;;  %v13083_v59 = vpop.f32.mrb[34].mxu0  ;;  %v8811_v24 = vmul.f32 0.01, %v8588_v52  ;;  %vm8747_vm2 = vcmp.gt.f32.partialorder %v8588_v52, 0.0 }
 0xd3a   : > { %v8814_v55 = vmul.f32 0.01, %v13083_v59  ;;  %v8591_v42 = vpop.f32.mrb[35].mxu0  ;;  %v18372_v39 = vsel %vm8749_vm0, %v13082_v43, %v8813_v3  ;;  %vm8750_vm1 = vcmp.gt.f32.partialorder %v13083_v59, 0.0 }
 0xd3b   : > { %20724 = vst [vmem:[#allocation40_spill] sm:$0xff] %v18372_v39  ;;  %8975 = vmax.xlane.f32.xlu0 %v18372_v39  ;;  %v8812_v36 = vmul.f32 0.01, %v8591_v42  ;;  %vm8748_vm3 = vcmp.gt.f32.partialorder %v8591_v42, 0.0  ;;  %v18378_v28 = vsel %vm8747_vm2, %v8588_v52, %v8811_v24 }
 0xd3c   : > { %v18375_v2 = vsel %vm8750_vm1, %v13083_v59, %v8814_v55  ;;  %20726 = vst [vmem:[#allocation43_spill] sm:$0xff] %v18378_v28 }
 0xd3d   : > { %20725 = vst [vmem:[#allocation42_spill] sm:$0xff] %v18375_v2  ;;  %8977 = vmax.xlane.f32.xlu1 %v18375_v2  ;;  %v18381_v3 = vsel %vm8748_vm3, %v8591_v42, %v8812_v36 }
 0xd3e   : > { %20727 = vst [vmem:[#allocation41_spill] sm:$0xff] %v18381_v3 }
 0xd3f   : > { %8971 = vmax.xlane.f32.xlu0 %v18378_v28  ;;  %v13086_v45 = vpop.f32.mrb[36].mxu0 }
 0xd40   : > { %vm8753_vm4 = vcmp.gt.f32.partialorder %v13086_v45, 0.0  ;;  %v8817_v47 = vmul.f32 0.01, %v13086_v45  ;;  %v8604_v37 = vpop.f32.mrb[37].mxu0 }
 0xd41   : > { %8973 = vmax.xlane.f32.xlu1 %v18381_v3  ;;  %v13087_v43 = vpop.f32.mrb[38].mxu0  ;;  %v8815_v60 = vmul.f32 0.01, %v8604_v37  ;;  %vm8751_vm6 = vcmp.gt.f32.partialorder %v8604_v37, 0.0 }
 0xd42   : > { %vm8754_vm5 = vcmp.gt.f32.partialorder %v13087_v43, 0.0  ;;  %v8818_v55 = vmul.f32 0.01, %v13087_v43  ;;  %v8607_v59 = vpop.f32.mrb[39].mxu0  ;;  %v18384_v38 = vsel %vm8753_vm4, %v13086_v45, %v8817_v47 }
 0xd43   : > { %20728 = vst [vmem:[#allocation44_spill] sm:$0xff] %v18384_v38  ;;  %8983 = vmax.xlane.f32.xlu0 %v18384_v38  ;;  %v8816_v52 = vmul.f32 0.01, %v8607_v59  ;;  %vm8752_vm7 = vcmp.gt.f32.partialorder %v8607_v59, 0.0  ;;  %v18390_v42 = vsel %vm8751_vm6, %v8604_v37, %v8815_v60 }
 0xd44   : > { %v18387_v24 = vsel %vm8754_vm5, %v13087_v43, %v8818_v55  ;;  %20730 = vst [vmem:[#allocation47_spill] sm:$0xff] %v18390_v42 }
 0xd45   : > { %20729 = vst [vmem:[#allocation46_spill] sm:$0xff] %v18387_v24  ;;  %8985 = vmax.xlane.f32.xlu1 %v18387_v24  ;;  %v18393_v32 = vsel %vm8752_vm7, %v8607_v59, %v8816_v52 }
 0xd46   : > { %20731 = vst [vmem:[#allocation45_spill] sm:$0xff] %v18393_v32 }
 0xd47   : > { %8979 = vmax.xlane.f32.xlu0 %v18390_v42  ;;  %v13090_v36 = vpop.f32.mrb[40].mxu0 }
 0xd48   : > { %vm8757_vm8 = vcmp.gt.f32.partialorder %v13090_v36, 0.0  ;;  %v8821_v26 = vmul.f32 0.01, %v13090_v36  ;;  %v8620_v17 = vpop.f32.mrb[41].mxu0 }
 0xd49   : > { %8981 = vmax.xlane.f32.xlu1 %v18393_v32  ;;  %v13091_v47 = vpop.f32.mrb[42].mxu0  ;;  %v8819_v45 = vmul.f32 0.01, %v8620_v17  ;;  %vm8755_vm10 = vcmp.gt.f32.partialorder %v8620_v17, 0.0 }
 0xd4a   : > { %vm8758_vm9 = vcmp.gt.f32.partialorder %v13091_v47, 0.0  ;;  %v8822_v43 = vmul.f32 0.01, %v13091_v47  ;;  %v8623_v55 = vpop.f32.mrb[43].mxu0  ;;  %v18396_v58 = vsel %vm8757_vm8, %v13090_v36, %v8821_v26 }
 0xd4b   : > { %20732 = vst [vmem:[#allocation48_spill] sm:$0xff] %v18396_v58  ;;  %8991 = vmax.xlane.f32.xlu0 %v18396_v58  ;;  %v8820_v37 = vmul.f32 0.01, %v8623_v55  ;;  %vm8756_vm11 = vcmp.gt.f32.partialorder %v8623_v55, 0.0  ;;  %v18402_v59 = vsel %vm8755_vm10, %v8620_v17, %v8819_v45 }
 0xd4c   : > { %v18399_v60 = vsel %vm8758_vm9, %v13091_v47, %v8822_v43  ;;  %20734 = vst [vmem:[#allocation51_spill] sm:$0xff] %v18402_v59 }
 0xd4d   : > { %20733 = vst [vmem:[#allocation50_spill] sm:$0xff] %v18399_v60  ;;  %8993 = vmax.xlane.f32.xlu1 %v18399_v60  ;;  %v18405_v15 = vsel %vm8756_vm11, %v8623_v55, %v8820_v37 }
 0xd4e   : > { %20735 = vst [vmem:[#allocation49_spill] sm:$0xff] %v18405_v15 }
 0xd4f   : > { %8987 = vmax.xlane.f32.xlu0 %v18402_v59  ;;  %v13094_v52 = vpop.f32.mrb[44].mxu0 }
 0xd50   : > { %vm8761_vm12 = vcmp.gt.f32.partialorder %v13094_v52, 0.0  ;;  %v8825_v29 = vmul.f32 0.01, %v13094_v52  ;;  %v8636_v4 = vpop.f32.mrb[45].mxu0 }
 0xd51   : > { %8989 = vmax.xlane.f32.xlu1 %v18405_v15  ;;  %v13095_v26 = vpop.f32.mrb[46].mxu0  ;;  %v8823_v36 = vmul.f32 0.01, %v8636_v4  ;;  %vm8759_vm14 = vcmp.gt.f32.partialorder %v8636_v4, 0.0 }
 0xd52   : > { %vm8762_vm13 = vcmp.gt.f32.partialorder %v13095_v26, 0.0  ;;  %v8826_v47 = vmul.f32 0.01, %v13095_v26  ;;  %v8639_v43 = vpop.f32.mrb[47].mxu0  ;;  %v18408_v19 = vsel %vm8761_vm12, %v13094_v52, %v8825_v29 }
 0xd53   : > { %20736 = vst [vmem:[#allocation52_spill] sm:$0xff] %v18408_v19  ;;  %8999 = vmax.xlane.f32.xlu0 %v18408_v19  ;;  %v8824_v17 = vmul.f32 0.01, %v8639_v43  ;;  %vm8760_vm15 = vcmp.gt.f32.partialorder %v8639_v43, 0.0  ;;  %v18414_v55 = vsel %vm8759_vm14, %v8636_v4, %v8823_v36 }
 0xd54   : > { %v18411_v45 = vsel %vm8762_vm13, %v13095_v26, %v8826_v47  ;;  %20738 = vst [vmem:[#allocation55_spill] sm:$0xff] %v18414_v55 }
 0xd55   : > { %20737 = vst [vmem:[#allocation54_spill] sm:$0xff] %v18411_v45  ;;  %9001 = vmax.xlane.f32.xlu1 %v18411_v45  ;;  %v18417_v31 = vsel %vm8760_vm15, %v8639_v43, %v8824_v17 }
 0xd56   : > { %20739 = vst [vmem:[#allocation53_spill] sm:$0xff] %v18417_v31 }
 0xd57   : > { %8995 = vmax.xlane.f32.xlu0 %v18414_v55  ;;  %v13098_v37 = vpop.f32.mrb[48].mxu0 }
 0xd58   : > { %vm8765_vm0 = vcmp.gt.f32.partialorder %v13098_v37, 0.0  ;;  %v8829_v7 = vmul.f32 0.01, %v13098_v37  ;;  %v8652_v25 = vpop.f32.mrb[49].mxu0 }
 0xd59   : > { %8997 = vmax.xlane.f32.xlu1 %v18417_v31  ;;  %v13099_v29 = vpop.f32.mrb[50].mxu0  ;;  %v8827_v52 = vmul.f32 0.01, %v8652_v25  ;;  %vm8763_vm2 = vcmp.gt.f32.partialorder %v8652_v25, 0.0 }
 0xd5a   : > { %vm8766_vm1 = vcmp.gt.f32.partialorder %v13099_v29, 0.0  ;;  %v8830_v26 = vmul.f32 0.01, %v13099_v29  ;;  %v8655_v47 = vpop.f32.mrb[51].mxu0  ;;  %v18420_v44 = vsel %vm8765_vm0, %v13098_v37, %v8829_v7  ;;  %vm14805_vm0 = vmmov 0  }
 0xd5b   : > { %20740 = vst [vmem:[#allocation57_spill] sm:$0xff] %v18420_v44  ;;  %9007 = vmax.xlane.f32.xlu0 %v18420_v44  ;;  %v8828_v4 = vmul.f32 0.01, %v8655_v47  ;;  %vm8764_vm3 = vcmp.gt.f32.partialorder %v8655_v47, 0.0  ;;  %v18426_v43 = vsel %vm8763_vm2, %v8652_v25, %v8827_v52 }
 0xd5c   : > { %v18423_v36 = vsel %vm8766_vm1, %v13099_v29, %v8830_v26  ;;  %20742 = vst [vmem:[#allocation59_spill] sm:$0xff] %v18426_v43 }
 0xd5d   : > { %20741 = vst [vmem:[#allocation56_spill] sm:$0xff] %v18423_v36  ;;  %9009 = vmax.xlane.f32.xlu1 %v18423_v36  ;;  %v18429_v63 = vsel %vm8764_vm3, %v8655_v47, %v8828_v4 }
 0xd5e   : > { %20743 = vst [vmem:[#allocation58_spill] sm:$0xff] %v18429_v63 }
 0xd5f   : > { %9003 = vmax.xlane.f32.xlu0 %v18426_v43  ;;  %v13102_v17 = vpop.f32.mrb[52].mxu0 }
 0xd60   : > { %vm8769_vm4 = vcmp.gt.f32.partialorder %v13102_v17, 0.0  ;;  %v8833_v51 = vmul.f32 0.01, %v13102_v17  ;;  %v8668_v0 = vpop.f32.mrb[53].mxu0 }
 0xd61   : > { %9005 = vmax.xlane.f32.xlu1 %v18429_v63  ;;  %v13103_v7 = vpop.f32.mrb[54].mxu0  ;;  %v8831_v37 = vmul.f32 0.01, %v8668_v0  ;;  %vm8767_vm6 = vcmp.gt.f32.partialorder %v8668_v0, 0.0 }
 0xd62   : > { %vm8770_vm5 = vcmp.gt.f32.partialorder %v13103_v7, 0.0  ;;  %v8834_v29 = vmul.f32 0.01, %v13103_v7  ;;  %v8671_v26 = vpop.f32.mrb[55].mxu0  ;;  %v18432_v10 = vsel %vm8769_vm4, %v13102_v17, %v8833_v51 }
 0xd63   : > { %20744 = vst [vmem:[#allocation61_spill] sm:$0xff] %v18432_v10  ;;  %9015 = vmax.xlane.f32.xlu0 %v18432_v10  ;;  %v8832_v25 = vmul.f32 0.01, %v8671_v26  ;;  %vm8768_vm7 = vcmp.gt.f32.partialorder %v8671_v26, 0.0  ;;  %v18438_v47 = vsel %vm8767_vm6, %v8668_v0, %v8831_v37 }
 0xd64   : > { %v18435_v52 = vsel %vm8770_vm5, %v13103_v7, %v8834_v29  ;;  %20746 = vst [vmem:[#allocation63_spill] sm:$0xff] %v18438_v47 }
 0xd65   : > { %20745 = vst [vmem:[#allocation60_spill] sm:$0xff] %v18435_v52  ;;  %9017 = vmax.xlane.f32.xlu1 %v18435_v52  ;;  %v18441_v63 = vsel %vm8768_vm7, %v8671_v26, %v8832_v25 }
 0xd66   : > { %20747 = vst [vmem:[#allocation62_spill] sm:$0xff] %v18441_v63 }
 0xd67   : > { %9011 = vmax.xlane.f32.xlu0 %v18438_v47  ;;  %v13106_v4 = vpop.f32.mrb[56].mxu0 }
 0xd68   : > { %vm8773_vm8 = vcmp.gt.f32.partialorder %v13106_v4, 0.0  ;;  %v8837_v36 = vmul.f32 0.01, %v13106_v4  ;;  %v8684_v44 = vpop.f32.mrb[57].mxu0 }
 0xd69   : > { %9013 = vmax.xlane.f32.xlu1 %v18441_v63  ;;  %v13107_v51 = vpop.f32.mrb[58].mxu0  ;;  %v8835_v17 = vmul.f32 0.01, %v8684_v44  ;;  %vm8771_vm10 = vcmp.gt.f32.partialorder %v8684_v44, 0.0 }
 0xd6a   : > { %vm8774_vm9 = vcmp.gt.f32.partialorder %v13107_v51, 0.0  ;;  %v8838_v7 = vmul.f32 0.01, %v13107_v51  ;;  %v8687_v29 = vpop.f32.mrb[59].mxu0  ;;  %v18444_v10 = vsel %vm8773_vm8, %v13106_v4, %v8837_v36 }
 0xd6b   : > { %20748 = vst [vmem:[#allocation65_spill] sm:$0xff] %v18444_v10  ;;  %9023 = vmax.xlane.f32.xlu0 %v18444_v10  ;;  %v8836_v0 = vmul.f32 0.01, %v8687_v29  ;;  %vm8772_vm11 = vcmp.gt.f32.partialorder %v8687_v29, 0.0  ;;  %v18450_v26 = vsel %vm8771_vm10, %v8684_v44, %v8835_v17 }
 0xd6c   : > { %v18447_v37 = vsel %vm8774_vm9, %v13107_v51, %v8838_v7  ;;  %20750 = vst [vmem:[#allocation67_spill] sm:$0xff] %v18450_v26 }
 0xd6d   : > { %20749 = vst [vmem:[#allocation64_spill] sm:$0xff] %v18447_v37  ;;  %9025 = vmax.xlane.f32.xlu1 %v18447_v37  ;;  %v18453_v63 = vsel %vm8772_vm11, %v8687_v29, %v8836_v0 }
 0xd6e   : > { %20751 = vst [vmem:[#allocation66_spill] sm:$0xff] %v18453_v63 }
 0xd6f   : > { %9019 = vmax.xlane.f32.xlu0 %v18450_v26  ;;  %v13110_v25 = vpop.f32.mrb[60].mxu0 }
 0xd70   : > { %v8700_v52 = vpop.f32.mrb[61].mxu0  ;;  %v8841_v47 = vmul.f32 0.01, %v13110_v25  ;;  %vm8777_vm14 = vcmp.gt.f32.partialorder %v13110_v25, 0.0 }
 0xd71   : > { %vm8775_vm12 = vcmp.gt.f32.partialorder %v8700_v52, 0.0  ;;  %v8839_v36 = vmul.f32 0.01, %v8700_v52  ;;  %9021 = vmax.xlane.f32.xlu1 %v18453_v63  ;;  %v13111_v4 = vpop.f32.mrb[62].mxu0 }
 0xd72   : > { %v8703_v10 = vpop.f32.mrb[63].mxu0  ;;  %v8842_v44 = vmul.f32 0.01, %v13111_v4  ;;  %vm8778_vm15 = vcmp.gt.f32.partialorder %v13111_v4, 0.0  ;;  %v18462_v29 = vsel %vm8777_vm14, %v13110_v25, %v8841_v47 }
 0xd73   : > { %vm8776_vm13 = vcmp.gt.f32.partialorder %v8703_v10, 0.0  ;;  %v8840_v51 = vmul.f32 0.01, %v8703_v10  ;;  %v18456_v7 = vsel %vm8775_vm12, %v8700_v52, %v8839_v36  ;;  %20754 = vst [vmem:[#allocation71_spill] sm:$0xff] %v18462_v29 }
 0xd74   : > { %20752 = vst [vmem:[#allocation69_spill] sm:$0xff] %v18456_v7  ;;  %9027 = vmax.xlane.f32.xlu0 %v18456_v7  ;;  %v18465_v0 = vsel %vm8778_vm15, %v13111_v4, %v8842_v44 }
 0xd75   : > { %v18459_v17 = vsel %vm8776_vm13, %v8703_v10, %v8840_v51  ;;  %20755 = vst [vmem:[#allocation70_spill] sm:$0xff] %v18465_v0 }
 0xd76   : > { %20753 = vst [vmem:[#allocation68_spill] sm:$0xff] %v18459_v17  ;;  %9029 = vmax.xlane.f32.xlu1 %v18459_v17 }
 0xd78   : > { %9031 = vmax.xlane.f32.xlu0 %v18462_v29 }
 0xd7a   : > { %9033 = vmax.xlane.f32.xlu1 %v18465_v0 }
 0xd88   : > { %v8912_v37 = vpop.xlane.xlu0 %8911 }
 0xd8a   : > { %v8914_v52 = vpop.xlane.xlu1 %8913 }
 0xd8c   : > { %v8908_v36 = vpop.xlane.xlu0 %8907 }
 0xd8e   : > { %v8910_v63 = vpop.xlane.xlu1 %8909 }
 0xd90   : > { %v8920_v26 = vpop.xlane.xlu0 %8919 }
 0xd91   : > { %v9037_v7 = vmax.f32 %v8912_v37, %v8920_v26 }
 0xd92   : > { %v8922_v43 = vpop.xlane.xlu1 %8921 }
 0xd93   : > { %v9038_v10 = vmax.f32 %v8914_v52, %v8922_v43 }
 0xd94   : > { %v8916_v51 = vpop.xlane.xlu0 %8915 }
 0xd95   : > { %v9035_v45 = vmax.f32 %v8908_v36, %v8916_v51 }
 0xd96   : > { %v8918_v19 = vpop.xlane.xlu1 %8917 }
 0xd97   : > { %v9036_v17 = vmax.f32 %v8910_v63, %v8918_v19 }
 0xd98   : > { %v8928_v47 = vpop.xlane.xlu0 %8927 }
 0xd99   : > { %v9041_v25 = vmax.f32 %v9037_v7, %v8928_v47 }
 0xd9a   : > { %v8930_v31 = vpop.xlane.xlu1 %8929 }
 0xd9b   : > { %v9042_v29 = vmax.f32 %v9038_v10, %v8930_v31 }
 0xd9c   : > { %v8924_v4 = vpop.xlane.xlu0 %8923 }
 0xd9d   : > { %v9039_v44 = vmax.f32 %v9035_v45, %v8924_v4 }
 0xd9e   : > { %v8926_v55 = vpop.xlane.xlu1 %8925 }
 0xd9f   : > { %v9040_v0 = vmax.f32 %v9036_v17, %v8926_v55 }
 0xda0   : > { %v8936_v60 = vpop.xlane.xlu0 %8935 }
 0xda1   : > { %v9045_v58 = vmax.f32 %v9041_v25, %v8936_v60 }
 0xda2   : > { %v8938_v15 = vpop.xlane.xlu1 %8937 }
 0xda3   : > { %v9046_v59 = vmax.f32 %v9042_v29, %v8938_v15 }
 0xda4   : > { %v8932_v24 = vpop.xlane.xlu0 %8931 }
 0xda5   : > { %v9043_v37 = vmax.f32 %v9039_v44, %v8932_v24 }
 0xda6   : > { %v8934_v26 = vpop.xlane.xlu1 %8933 }
 0xda7   : > { %v9044_v43 = vmax.f32 %v9040_v0, %v8934_v26 }
 0xda8   : > { %v8944_v52 = vpop.xlane.xlu0 %8943 }
 0xda9   : > { %v9049_v36 = vmax.f32 %v9045_v58, %v8944_v52 }
 0xdaa   : > { %v8946_v51 = vpop.xlane.xlu1 %8945 }
 0xdab   : > { %v9050_v63 = vmax.f32 %v9046_v59, %v8946_v51 }
 0xdac   : > { %v8940_v19 = vpop.xlane.xlu0 %8939 }
 0xdad   : > { %v9047_v7 = vmax.f32 %v9043_v37, %v8940_v19 }
 0xdae   : > { %v8942_v47 = vpop.xlane.xlu1 %8941 }
 0xdaf   : > { %v9048_v31 = vmax.f32 %v9044_v43, %v8942_v47 }
 0xdb0   : > { %v8952_v10 = vpop.xlane.xlu0 %8951 }
 0xdb1   : > { %v9053_v45 = vmax.f32 %v9049_v36, %v8952_v10 }
 0xdb2   : > { %v8954_v4 = vpop.xlane.xlu1 %8953 }
 0xdb3   : > { %v9054_v55 = vmax.f32 %v9050_v63, %v8954_v4 }
 0xdb4   : > { %v8948_v17 = vpop.xlane.xlu0 %8947 }
 0xdb5   : > { %v9051_v23 = vmax.f32 %v9047_v7, %v8948_v17 }
 0xdb6   : > { %v8950_v60 = vpop.xlane.xlu1 %8949 }
 0xdb7   : > { %v9052_v57 = vmax.f32 %v9048_v31, %v8950_v60 }
 0xdb8   : > { %v8960_v25 = vpop.xlane.xlu0 %8959 }
 0xdb9   : > { %v9057_v41 = vmax.f32 %v9053_v45, %v8960_v25 }
 0xdba   : > { %v8962_v15 = vpop.xlane.xlu1 %8961 }
 0xdbb   : > { %v9058_v48 = vmax.f32 %v9054_v55, %v8962_v15 }
 0xdbc   : > { %v8956_v29 = vpop.xlane.xlu0 %8955 }
 0xdbd   : > { %v9055_v16 = vmax.f32 %v9051_v23, %v8956_v29 }
 0xdbe   : > { %v8958_v24 = vpop.xlane.xlu1 %8957 }
 0xdbf   : > { %v9056_v56 = vmax.f32 %v9052_v57, %v8958_v24 }
 0xdc0   : > { %v8968_v44 = vpop.xlane.xlu0 %8967 }
 0xdc1   : > { %v9061_v12 = vmax.f32 %v9057_v41, %v8968_v44 }
 0xdc2   : > { %v8970_v0 = vpop.xlane.xlu1 %8969 }
 0xdc3   : > { %v9062_v30 = vmax.f32 %v9058_v48, %v8970_v0 }
 0xdc4   : > { %v8964_v26 = vpop.xlane.xlu0 %8963 }
 0xdc5   : > { %v9059_v1 = vmax.f32 %v9055_v16, %v8964_v26 }
 0xdc6   : > { %v8966_v58 = vpop.xlane.xlu1 %8965 }
 0xdc7   : > { %v9060_v18 = vmax.f32 %v9056_v56, %v8966_v58 }
 0xdc8   : > { %v8976_v52 = vpop.xlane.xlu0 %8975 }
 0xdc9   : > { %v9065_v54 = vmax.f32 %v9061_v12, %v8976_v52 }
 0xdca   : > { %v8978_v59 = vpop.xlane.xlu1 %8977 }
 0xdcb   : > { %v9066_v7 = vmax.f32 %v9062_v30, %v8978_v59 }
 0xdcc   : > { %v8972_v51 = vpop.xlane.xlu0 %8971 }
 0xdcd   : > { %v9063_v49 = vmax.f32 %v9059_v1, %v8972_v51 }
 0xdce   : > { %v8974_v37 = vpop.xlane.xlu1 %8973 }
 0xdcf   : > { %v9064_v14 = vmax.f32 %v9060_v18, %v8974_v37 }
 0xdd0   : > { %v8984_v19 = vpop.xlane.xlu0 %8983 }
 0xdd1   : > { %v9069_v57 = vmax.f32 %v9065_v54, %v8984_v19 }
 0xdd2   : > { %v8986_v43 = vpop.xlane.xlu1 %8985 }
 0xdd3   : > { %v9070_v60 = vmax.f32 %v9066_v7, %v8986_v43 }
 0xdd4   : > { %v8980_v47 = vpop.xlane.xlu0 %8979 }
 0xdd5   : > { %v9067_v34 = vmax.f32 %v9063_v49, %v8980_v47 }
 0xdd6   : > { %v8982_v36 = vpop.xlane.xlu1 %8981 }
 0xdd7   : > { %v9068_v33 = vmax.f32 %v9064_v14, %v8982_v36 }
 0xdd8   : > { %v8992_v10 = vpop.xlane.xlu0 %8991 }
 0xdd9   : > { %v9073_v45 = vmax.f32 %v9069_v57, %v8992_v10 }
 0xdda   : > { %v8994_v63 = vpop.xlane.xlu1 %8993 }
 0xddb   : > { %v9074_v55 = vmax.f32 %v9070_v60, %v8994_v63  ;;  %v20764_v60 = vld [vmem:[#allocation173_spill] sm:$0xff] }
 0xddc   : > { %v8988_v4 = vpop.xlane.xlu0 %8987 }
 0xddd   : > { %v9071_v31 = vmax.f32 %v9067_v34, %v8988_v4 }
 0xdde   : > { %v8990_v38 = vpop.xlane.xlu1 %8989 }
 0xddf   : > { %v9072_v17 = vmax.f32 %v9068_v33, %v8990_v38 }
 0xde0   : > { %v9000_v32 = vpop.xlane.xlu0 %8999 }
 0xde1   : > { %v9077_v41 = vmax.f32 %v9073_v45, %v9000_v32  ;;  %v20766_v45 = vld [vmem:[#allocation158_spill] sm:$0xff] }
 0xde2   : > { %v9002_v42 = vpop.xlane.xlu1 %9001 }
 0xde3   : > { %v9078_v48 = vmax.f32 %v9074_v55, %v9002_v42 }
 0xde4   : > { %v8996_v2 = vpop.xlane.xlu0 %8995 }
 0xde5   : > { %v9075_v16 = vmax.f32 %v9071_v31, %v8996_v2 }
 0xde6   : > { %v8998_v39 = vpop.xlane.xlu1 %8997 }
 0xde7   : > { %v9076_v56 = vmax.f32 %v9072_v17, %v8998_v39 }
 0xde8   : > { %v9008_v3 = vpop.xlane.xlu0 %9007 }
 0xde9   : > { %v9081_v12 = vmax.f32 %v9077_v41, %v9008_v3 }
 0xdea   : > { %v9010_v28 = vpop.xlane.xlu1 %9009 }
 0xdeb   : > { %v9082_v30 = vmax.f32 %v9078_v48, %v9010_v28  ;;  %v20769_v48 = vld [vmem:[#allocation175_spill] sm:$0xff] }
 0xdec   : > { %v9004_v11 = vpop.xlane.xlu0 %9003 }
 0xded   : > { %v9079_v1 = vmax.f32 %v9075_v16, %v9004_v11 }
 0xdee   : > { %v9006_v40 = vpop.xlane.xlu1 %9005 }
 0xdef   : > { %v9080_v18 = vmax.f32 %v9076_v56, %v9006_v40  ;;  %v20765_v56 = vld [vmem:[#allocation176_spill] sm:$0xff] }
 0xdf0   : > { %v9016_v62 = vpop.xlane.xlu0 %9015 }
 0xdf1   : > { %v9085_v54 = vmax.f32 %v9081_v12, %v9016_v62  ;;  %v20771_v12 = vld [vmem:[#allocation164_spill] sm:$0xff] }
 0xdf2   : > { %v9018_v27 = vpop.xlane.xlu1 %9017 }
 0xdf3   : > { %v9086_v24 = vmax.f32 %v9082_v30, %v9018_v27 }
 0xdf4   : > { %v9012_v8 = vpop.xlane.xlu0 %9011 }
 0xdf5   : > { %v9083_v49 = vmax.f32 %v9079_v1, %v9012_v8  ;;  %v20767_v1 = vld [vmem:[#allocation159_spill] sm:$0xff] }
 0xdf6   : > { %v9014_v35 = vpop.xlane.xlu1 %9013 }
 0xdf7   : > { %v9084_v14 = vmax.f32 %v9080_v18, %v9014_v35 }
 0xdf8   : > { %v9024_v53 = vpop.xlane.xlu0 %9023 }
 0xdf9   : > { %v9089_v0 = vmax.f32 %v9085_v54, %v9024_v53  ;;  %v20796_v54 = vld [vmem:[#allocation57_spill] sm:$0xff] }
 0xdfa   : > { %v9026_v23 = vpop.xlane.xlu1 %9025 }
 0xdfb   : > { %v9090_v26 = vmax.f32 %v9086_v24, %v9026_v23  ;;  %v20763_v23 = vld [vmem:[#allocation160_spill] sm:$0xff]  ;;  %v20774_v24 = vld [vmem:[#allocation162_spill] sm:$0xff] }
 0xdfc   : > { %v9020_v29 = vpop.xlane.xlu0 %9019 }
 0xdfd   : > { %v9087_v34 = vmax.f32 %v9083_v49, %v9020_v29 }
 0xdfe   : > { %v9022_v25 = vpop.xlane.xlu1 %9021 }
 0xdff   : > { %v9088_v38 = vmax.f32 %v9084_v14, %v9022_v25  ;;  %v20768_v25 = vld [vmem:[#allocation174_spill] sm:$0xff]  ;;  %v20770_v14 = vld [vmem:[#allocation161_spill] sm:$0xff] }
 0xe01   : > { %v9028_v15 = vpop.xlane.xlu0 %9027 }
 0xe02   : > { %v9091_v2 = vmax.f32 %v9087_v34, %v9028_v15  ;;  %v20772_v34 = vld [vmem:[#allocation177_spill] sm:$0xff] }
 0xe03   : > { %v9030_v33 = vpop.xlane.xlu1 %9029 }
 0xe04   : > { %v9092_v39 = vmax.f32 %v9088_v38, %v9030_v33  ;;  %v20773_v33 = vld [vmem:[#allocation180_spill] sm:$0xff] }
 0xe05   : > { %v9032_v44 = vpop.xlane.xlu0 %9031 }
 0xe06   : > { %v9095_v11 = vmax.f32 %v9091_v2, %v9092_v39  ;;  %v9093_v58 = vmax.f32 %v9089_v0, %v9032_v44  ;;  %v20794_v2 = vld [vmem:[#allocation59_spill] sm:$0xff] }
 0xe07   : > { %v9034_v40 = vpop.xlane.xlu1 %9033 }
 0xe08   : > { %v9094_v32 = vmax.f32 %v9090_v26, %v9034_v40  ;;  %v20775_v26 = vld [vmem:[#allocation163_spill] sm:$0xff]  ;;  %v20776_v40 = vld [vmem:[#allocation178_spill] sm:$0xff] }
 0xe0a   : > { %v9096_v42 = vmax.f32 %v9093_v58, %v9094_v32  ;;  %v20777_v32 = vld [vmem:[#allocation179_spill] sm:$0xff] }
 0xe0b   : > { %v20790_v58 = vld [vmem:[#allocation55_spill] sm:$0xff] }
 0xe0c   : > { %v9097_v8 = vmax.f32 %v9095_v11, %v9096_v42  ;;  %v20788_v42 = vld [vmem:[#allocation48_spill] sm:$0xff] }
 0xe0d   : > { %v20792_v11 = vld [vmem:[#allocation52_spill] sm:$0xff] }
 0xe0e   : > { %v9098_v35 = vrot.slane %v9097_v8, 4 }
 0xe10   : > { %v9099_v52 = vmax.f32 %v9097_v8, %v9098_v35  ;;  %v20778_v35 = vld [vmem:[#allocation43_spill] sm:$0xff] }
 0xe12   : > { %v9100_v3 = vrot.slane %v9099_v52, 2 }
 0xe14   : > { %v9101_v28 = vmax.f32 %v9099_v52, %v9100_v3  ;;  %v20779_v3 = vld [vmem:[#allocation41_spill] sm:$0xff] }
 0xe16   : > { %v9102_v59 = vrot.slane %v9101_v28, 1 }
 0xe18   : > { %v18468_v51 = vmax.f32 %v9101_v28, %v9102_v59  ;;  %v20784_v28 = vld [vmem:[#allocation44_spill] sm:$0xff] }
 0xe1a   : > { %v9104_v62 = vsub.f32 %v18282_v6, %v18468_v51  ;;  %v9105_v53 = vsub.f32 %v18285_v21, %v18468_v51  ;;  %v9106_v27 = vsub.f32 %v18276_v5, %v18468_v51  ;;  %v9107_v37 = vsub.f32 %v18279_v46, %v18468_v51  ;;  %v20756_v46 = vld [vmem:[#allocation153_spill] sm:$0xff] }
 0xe1b   : > { %v9108_v19 = vsub.f32 %v18294_v13, %v18468_v51  ;;  %v9109_v43 = vsub.f32 %v18297_v22, %v18468_v51  ;;  %v9110_v47 = vsub.f32 %v18288_v50, %v18468_v51  ;;  %v9111_v6 = vsub.f32 %v18291_v9, %v18468_v51  ;;  %v20757_v13 = vld [vmem:[#allocation156_spill] sm:$0xff]  ;;  %v20758_v22 = vld [vmem:[#allocation154_spill] sm:$0xff]  ;;  %v20759_v50 = vld [vmem:[#allocation155_spill] sm:$0xff] }
 0xe1c   : > { %v9112_v21 = vsub.f32 %v18306_v61, %v18468_v51  ;;  %v9113_v5 = vsub.f32 %v18309_v20, %v18468_v51  ;;  %v9114_v36 = vsub.f32 %v20756_v46, %v18468_v51  ;;  %v9115_v10 = vsub.f32 %v20757_v13, %v18468_v51  ;;  %v20760_v9 = vld [vmem:[#allocation170_spill] sm:$0xff]  ;;  %v20761_v61 = vld [vmem:[#allocation171_spill] sm:$0xff]  ;;  %v20762_v20 = vld [vmem:[#allocation157_spill] sm:$0xff] }
 0xe1d   : > { %v9116_v63 = vsub.f32 %v20758_v22, %v18468_v51  ;;  %v9117_v4 = vsub.f32 %v20759_v50, %v18468_v51  ;;  %v9118_v7 = vsub.f32 %v20760_v9, %v18468_v51  ;;  %v9119_v31 = vsub.f32 %v20761_v61, %v18468_v51  ;;  %v20782_v22 = vld [vmem:[#allocation47_spill] sm:$0xff]  ;;  %v20803_v9 = vld [vmem:[#allocation66_spill] sm:$0xff]  ;;  %v20805_v61 = vld [vmem:[#allocation64_spill] sm:$0xff] }
 0xe1e   : > { %v9120_v17 = vsub.f32 %v20762_v20, %v18468_v51  ;;  %v9121_v57 = vsub.f32 %v20763_v23, %v18468_v51  ;;  %v9122_v16 = vsub.f32 %v20764_v60, %v18468_v51  ;;  %v9123_v29 = vsub.f32 %v20765_v56, %v18468_v51  ;;  %v20786_v46 = vld [vmem:[#allocation51_spill] sm:$0xff] }
 0xe1f   : > { %v9168_v39 = vmul.f32 1.442695, %v9104_v62  ;;  %v9170_v44 = vmul.f32 1.442695, %v9105_v53  ;;  %v9172_v0 = vmul.f32 1.442695, %v9106_v27  ;;  %v20810_v60 = vsub.f32 %v20766_v45, %v18468_v51 }
 0xe20   : > { %v9174_v8 = vmul.f32 1.442695, %v9107_v37  ;;  %v9176_v59 = vmul.f32 1.442695, %v9108_v19  ;;  %v20780_v62 = vld [vmem:[#allocation40_spill] sm:$0xff]  ;;  %v20781_v27 = vld [vmem:[#allocation42_spill] sm:$0xff]  ;;  %v20813_v56 = vsub.f32 %v20769_v48, %v18468_v51 }
 0xe21   : > { %14066 = vpow2.f32 %v9168_v39  ;;  %v9178_v13 = vmul.f32 1.442695, %v9109_v43  ;;  %v20783_v37 = vld [vmem:[#allocation45_spill] sm:$0xff]  ;;  %v9180_v52 = vmul.f32 1.442695, %v9110_v47  ;;  %v20785_v19 = vld [vmem:[#allocation46_spill] sm:$0xff] }
 0xe22   : > { %14068 = vpow2.f32 %v9170_v44  ;;  %v9182_v53 = vmul.f32 1.442695, %v9111_v6  ;;  %v20787_v43 = vld [vmem:[#allocation49_spill] sm:$0xff]  ;;  %v9184_v50 = vmul.f32 1.442695, %v9112_v21  ;;  %v20789_v47 = vld [vmem:[#allocation50_spill] sm:$0xff] }
 0xe23   : > { %14070 = vpow2.f32 %v9172_v0  ;;  %v9186_v39 = vmul.f32 1.442695, %v9113_v5  ;;  %v20791_v6 = vld [vmem:[#allocation53_spill] sm:$0xff]  ;;  %v9188_v44 = vmul.f32 1.442695, %v9114_v36  ;;  %v20793_v21 = vld [vmem:[#allocation54_spill] sm:$0xff] }
 0xe24   : > { %14072 = vpow2.f32 %v9174_v8  ;;  %v9190_v0 = vmul.f32 1.442695, %v9115_v10  ;;  %v20795_v5 = vld [vmem:[#allocation58_spill] sm:$0xff]  ;;  %v9192_v8 = vmul.f32 1.442695, %v9116_v63  ;;  %v20797_v36 = vld [vmem:[#allocation56_spill] sm:$0xff] }
 0xe25   : > { %14074 = vpow2.f32 %v9176_v59  ;;  %v9194_v59 = vmul.f32 1.442695, %v9117_v4  ;;  %v20798_v10 = vld [vmem:[#allocation63_spill] sm:$0xff]  ;;  %v9196_v63 = vmul.f32 1.442695, %v9118_v7  ;;  %v20801_v4 = vld [vmem:[#allocation60_spill] sm:$0xff] }
 0xe26   : > { %14076 = vpow2.f32 %v9178_v13  ;;  %v20799_v13 = vld [vmem:[#allocation62_spill] sm:$0xff]  ;;  %v9200_v15 = vmul.f32 1.442695, %v9120_v17  ;;  %v9202_v38 = vmul.f32 1.442695, %v9121_v57  ;;  %v20849_v20 = vld [vmem:[#allocation215_spill] sm:$0xff] }
 0xe27   : > { %14078 = vpow2.f32 %v9180_v52  ;;  %v20800_v52 = vld [vmem:[#allocation61_spill] sm:$0xff]  ;;  %v9206_v7 = vmul.f32 1.442695, %v9123_v29  ;;  %v9214_v29 = vmul.f32 1.442695, %v20813_v56  ;;  %v20818_v56 = vsub.f32 %v20774_v24, %v18468_v51 }
 0xe28   : > { %14080 = vpow2.f32 %v9182_v53  ;;  %v9198_v53 = vmul.f32 1.442695, %v9119_v31  ;;  %v20812_v31 = vsub.f32 %v20768_v25, %v18468_v51  ;;  %v20816_v25 = vsub.f32 %v20772_v34, %v18468_v51 }
 0xe29   : > { %14082 = vpow2.f32 %v9184_v50  ;;  %v20822_v24 = vsub.f32 %v20778_v35, %v18468_v51  ;;  %v20826_v35 = vsub.f32 %v20782_v22, %v18468_v51  ;;  %v20830_v22 = vsub.f32 %v20786_v46, %v18468_v51 }
 0xe2a   : > { %14084 = vpow2.f32 %v9186_v39  ;;  %v9204_v39 = vmul.f32 1.442695, %v9122_v16  ;;  %v9208_v16 = vmul.f32 1.442695, %v20810_v60  ;;  %v9212_v57 = vmul.f32 1.442695, %v20812_v31 }
 0xe2b   : > { %v18574_v49 = vpop.eup %14066  ;;  %14086 = vpow2.f32 %v9188_v44  ;;  %v20802_v44 = vld [vmem:[#allocation67_spill] sm:$0xff]  ;;  %v20815_v60 = vsub.f32 %v20771_v12, %v18468_v51  ;;  %v9220_v31 = vmul.f32 1.442695, %v20816_v25  ;;  %v20819_v12 = vsub.f32 %v20775_v26, %v18468_v51 }
 0xe2c   : > { %v18583_v50 = vpop.eup %14068  ;;  %14088 = vpow2.f32 %v9190_v0  ;;  %v20804_v0 = vld [vmem:[#allocation65_spill] sm:$0xff]  ;;  %v20821_v25 = vsub.f32 %v20777_v32, %v18468_v51  ;;  %v20825_v32 = vsub.f32 %v20781_v27, %v18468_v51  ;;  %v20829_v27 = vsub.f32 %v20785_v19, %v18468_v51 }
 0xe2d   : > { %v18592_v30 = vpop.eup %14070  ;;  %14090 = vpow2.f32 %v9192_v8  ;;  %v20833_v19 = vsub.f32 %v20789_v47, %v18468_v51 }
 0xe2e   : > { %v18601_v41 = vpop.eup %14072  ;;  %14092 = vpow2.f32 %v9194_v59 }
 0xe2f   : > { %v18610_v18 = vpop.eup %14074  ;;  %14094 = vpow2.f32 %v9196_v63  ;;  %v20811_v63 = vsub.f32 %v20767_v1, %v18468_v51  ;;  %v9218_v1 = vmul.f32 1.442695, %v20815_v60  ;;  %v9226_v60 = vmul.f32 1.442695, %v20819_v12 }
 0xe30   : > { %v18619_v55 = vpop.eup %14076  ;;  %14096 = vpow2.f32 %v9198_v53 }
 0xe31   : > { %v18628_v8 = vpop.eup %14078  ;;  %14098 = vpow2.f32 %v9200_v15  ;;  %v9210_v17 = vmul.f32 1.442695, %v20811_v63  ;;  %v20814_v15 = vsub.f32 %v20770_v14, %v18468_v51  ;;  %v9224_v14 = vmul.f32 1.442695, %v20818_v56 }
 0xe32   : > { %v18639_v53 = vpop.eup %14080  ;;  %14100 = vpow2.f32 %v9202_v38  ;;  %v20817_v38 = vsub.f32 %v20773_v33, %v18468_v51  ;;  %v9230_v33 = vmul.f32 1.442695, %v20821_v25  ;;  %v9232_v56 = vmul.f32 1.442695, %v20822_v24 }
 0xe33   : > { %v9216_v45 = vmul.f32 1.442695, %v20814_v15  ;;  %v18650_v63 = vpop.eup %14082  ;;  %14102 = vpow2.f32 %v9204_v39  ;;  %v20820_v39 = vsub.f32 %v20776_v40, %v18468_v51  ;;  %v20824_v40 = vsub.f32 %v20780_v62, %v18468_v51 }
 0xe34   : > { %v9222_v48 = vmul.f32 1.442695, %v20817_v38  ;;  %v18661_v15 = vpop.eup %14084  ;;  %14104 = vpow2.f32 %v9206_v7  ;;  %v20823_v7 = vsub.f32 %v20779_v3, %v18468_v51  ;;  %v18697_v25 = vmul.f32 1.442695, %v20826_v35 }
 0xe35   : > { %v9228_v34 = vmul.f32 1.442695, %v20820_v39  ;;  %v18672_v38 = vpop.eup %14086  ;;  %14106 = vpow2.f32 %v9208_v16  ;;  %v18685_v12 = vmul.f32 1.442695, %v20824_v40  ;;  %v18692_v16 = vmul.f32 1.442695, %v20825_v32 }
 0xe36   : > { %v18680_v26 = vmul.f32 1.442695, %v20823_v7  ;;  %v18687_v39 = vpop.eup %14088  ;;  %14108 = vpow2.f32 %v9210_v17  ;;  %v20827_v3 = vsub.f32 %v20783_v37, %v18468_v51  ;;  %v20828_v17 = vsub.f32 %v20784_v28, %v18468_v51 }
 0xe37   : > { %v18704_v62 = vpop.eup %14090  ;;  %14110 = vpow2.f32 %v9212_v57  ;;  %v18714_v40 = vmul.f32 1.442695, %v20829_v27  ;;  %v18719_v32 = vmul.f32 1.442695, %v20830_v22  ;;  %v20831_v57 = vsub.f32 %v20787_v43, %v18468_v51 }
 0xe38   : > { %v18702_v24 = vmul.f32 1.442695, %v20827_v3  ;;  %v18709_v7 = vmul.f32 1.442695, %v20828_v17  ;;  %v18721_v37 = vpop.eup %14092  ;;  %14112 = vpow2.f32 %v9214_v29  ;;  %v20832_v28 = vsub.f32 %v20788_v42, %v18468_v51 }
 0xe39   : > { %v18726_v35 = vmul.f32 1.442695, %v20831_v57  ;;  %v18736_v17 = vmul.f32 1.442695, %v20833_v19  ;;  %v18738_v46 = vpop.eup %14094  ;;  %14114 = vpow2.f32 %v9216_v45  ;;  %v20835_v29 = vsub.f32 %v20790_v58, %v18468_v51  ;;  %v20840_v58 = vld [vmem:[#allocation200_spill] sm:$0xff] }
 0xe3a   : > { %v18731_v3 = vmul.f32 1.442695, %v20832_v28  ;;  %20834 = vst [vmem:[#allocation73_spill] sm:$0xff] %v18738_v46  ;;  %v20836_v43 = vsub.f32 %v20791_v6, %v18468_v51  ;;  %v20837_v42 = vsub.f32 %v20792_v11, %v18468_v51  ;;  %v18755_v47 = vpop.eup %14096  ;;  %14116 = vpow2.f32 %v9218_v1 }
 0xe3b   : > { %v18743_v27 = vmul.f32 1.442695, %v20835_v29  ;;  %20838 = vst [vmem:[#allocation72_spill] sm:$0xff] %v18755_v47  ;;  %v20839_v45 = vsub.f32 %v20793_v21, %v18468_v51  ;;  %v9522_v19 = vmul.f32 %v18574_v49, %v20840_v58  ;;  %v20841_v29 = vld [vmem:[#allocation198_spill] sm:$0xff]  ;;  %14118 = vpow2.f32 %v9220_v31 }
 0xe3c   : > { %v18748_v22 = vmul.f32 1.442695, %v20836_v43  ;;  %v18753_v57 = vmul.f32 1.442695, %v20837_v42  ;;  %v9523_v6 = vmul.f32 %v18583_v50, %v20841_v29  ;;  %v14099_v43 = vpop.eup %14098  ;;  %v20842_v11 = vsub.f32 %v20794_v2, %v18468_v51 }
 0xe3d   : > { %v18760_v28 = vmul.f32 1.442695, %v20839_v45  ;;  %v20843_v1 = vsub.f32 %v20795_v5, %v18468_v51  ;;  %v20844_v21 = vsub.f32 %v20796_v54, %v18468_v51  ;;  %v14101_v58 = vpop.eup %14100  ;;  %14120 = vpow2.f32 %v9222_v48 }
 0xe3e   : > { %v18769_v42 = vmul.f32 1.442695, %v20842_v11  ;;  %v20845_v31 = vsub.f32 %v20797_v36, %v18468_v51  ;;  %v9296_v2 = vpack.c.bf16 %v18583_v50, %v18574_v49  ;;  %v20846_v11 = vld [vmem:[#allocation214_spill] sm:$0xff]  ;;  %v14103_v5 = vpop.eup %14102  ;;  %14122 = vpow2.f32 %v9224_v14  ;;  %v20851_v50 = vld [vmem:[#allocation133_spill] sm:$0xff] }
 0xe3f   : > { %v18774_v23 = vmul.f32 1.442695, %v20843_v1  ;;  %v18779_v45 = vmul.f32 1.442695, %v20844_v21  ;;  %v9538_v59 = vmul.f32 %v14099_v43, %v20846_v11  ;;  %v20847_v1 = vsub.f32 %v20798_v10, %v18468_v51  ;;  %v14105_v47 = vpop.eup %14104 }
 0xe40   : > { %v18784_v29 = vmul.f32 1.442695, %v20845_v31  ;;  %v9304_v21 = vpack.c.bf16 %v14101_v58, %v14099_v43  ;;  %v9539_v48 = vmul.f32 %v14101_v58, %v20849_v20  ;;  %14124 = vpow2.f32 %v9226_v60  ;;  %v14107_v46 = vpop.eup %14106 }
 0xe41   : > { %v18792_v54 = vmul.f32 1.442695, %v20847_v1  ;;  %v20850_v36 = vsub.f32 %v20799_v13, %v18468_v51  ;;  %v9586_v49 = vpack.c.bf16 %v9523_v6, %v9522_v19  ;;  %v9540_v11 = vmul.f32 %v14103_v5, %v20851_v50  ;;  %v20852_v1 = vld [vmem:[#allocation136_spill] sm:$0xff]  ;;  %v14109_v43 = vpop.eup %14108  ;;  %v20854_v13 = vld [vmem:[#allocation193_spill] sm:$0xff] }
 0xe42   : > { %14126 = vpow2.f32 %v9228_v34  ;;  %11598 = vmatprep.subr.bf16.mxu0 %v9304_v21  ;;  %v9305_v14 = vpack.c.bf16 %v14105_v47, %v14103_v5  ;;  %v9594_v10 = vpack.c.bf16 %v9539_v48, %v9538_v59  ;;  %v20853_v20 = vsub.f32 %v20800_v52, %v18468_v51  ;;  %v20855_v6 = vld [vmem:[#allocation201_spill] sm:$0xff]  ;;  %v14111_v34 = vpop.eup %14110 }
 0xe43   : > { %20848 = vst [vmem:[#allocation75_spill] sm:$0xff] %v18792_v54  ;;  %v18798_v31 = vmul.f32 1.442695, %v20850_v36  ;;  %v9541_v54 = vmul.f32 %v14105_v47, %v20852_v1  ;;  %14128 = vpow2.f32 %v9230_v33  ;;  %11599 = vmatpush3.bf16.msra.mxu0 %v9296_v2  ;;  %v9524_v19 = vmul.f32 %v18592_v30, %v20854_v13  ;;  %v20856_v47 = vld [vmem:[#allocation118_spill] sm:$0xff]  ;;  %v20857_v33 = vld [vmem:[#allocation135_spill] sm:$0xff]  ;;  %v14113_v48 = vpop.eup %14112 }
 0xe44   : > { %v18805_v60 = vmul.f32 1.442695, %v20853_v20  ;;  %v9525_v58 = vmul.f32 %v18601_v41, %v20855_v6  ;;  %14130 = vpow2.f32 %v9232_v56  ;;  %11600 = vmatprep.subr.bf16.mxu0 %v9305_v14  ;;  %11726 = vmatprep.subr.bf16.mxu1 %v9594_v10  ;;  %v9542_v5 = vmul.f32 %v14107_v46, %v20856_v47  ;;  %v20864_v20 = vld [vmem:[#allocation121_spill] sm:$0xff] }
 0xe45   : > { %v9595_v59 = vpack.c.bf16 %v9541_v54, %v9540_v11  ;;  %v9543_v21 = vmul.f32 %v14109_v43, %v20857_v33  ;;  %14132 = vpow2.f32 %v18680_v26  ;;  %v20858_v52 = vsub.f32 %v20801_v4, %v18468_v51  ;;  %11727 = vmatpush3.bf16.msra.mxu1 %v9586_v49  ;;  %v14115_v54 = vpop.eup %14114  ;;  %v20863_v49 = vld [vmem:[#allocation196_spill] sm:$0xff] }
 0xe46   : > { %v20859_v36 = vsub.f32 %v20802_v44, %v18468_v51  ;;  %v9297_v56 = vpack.c.bf16 %v18601_v41, %v18592_v30  ;;  %14134 = vpow2.f32 %v18685_v12  ;;  %v20860_v26 = vsub.f32 %v20803_v9, %v18468_v51  ;;  %v14117_v10 = vpop.eup %14116  ;;  %v20862_v30 = vld [vmem:[#allocation206_spill] sm:$0xff] }
 0xe47   : > { %v18817_v2 = vmul.f32 1.442695, %v20858_v52  ;;  %v20861_v4 = vsub.f32 %v20804_v0, %v18468_v51  ;;  %11728 = vmatprep.subr.bf16.mxu1 %v9595_v59  ;;  %v9306_v44 = vpack.c.bf16 %v14109_v43, %v14107_v46  ;;  %14136 = vpow2.f32 %v18692_v16  ;;  %v18842_v1 = vpop.eup %14118  ;;  %v20865_v46 = vld [vmem:[#allocation134_spill] sm:$0xff]  ;;  %v20867_v59 = vld [vmem:[#allocation199_spill] sm:$0xff] }
 0xe48   : > { %v18822_v50 = vmul.f32 1.442695, %v20859_v36  ;;  %v18830_v11 = vmul.f32 1.442695, %v20860_v26  ;;  %11601 = vmatpush3.bf16.msra.mxu0 %v9297_v56  ;;  %v9587_v41 = vpack.c.bf16 %v9525_v58, %v9524_v19  ;;  %v9526_v12 = vmul.f32 %v18610_v18, %v20862_v30  ;;  %v18847_v6 = vpop.eup %14120  ;;  %v20866_v19 = vld [vmem:[#allocation207_spill] sm:$0xff] }
 0xe49   : > { %v18835_v14 = vmul.f32 1.442695, %v20861_v4  ;;  %v9527_v9 = vmul.f32 %v18619_v55, %v20863_v49  ;;  %14138 = vpow2.f32 %v18697_v25  ;;  %11602 = vmatprep.subr.bf16.mxu0 %v9306_v44  ;;  %v9596_v0 = vpack.c.bf16 %v9543_v21, %v9542_v5  ;;  %v18856_v47 = vpop.eup %14122  ;;  %v20871_v4 = vld [vmem:[#allocation117_spill] sm:$0xff]  ;;  %v20874_v30 = vld [vmem:[#allocation211_spill] sm:$0xff] }
 0xe4a   : > { %v9544_v13 = vmul.f32 %v14111_v34, %v20864_v20  ;;  %v9545_v43 = vmul.f32 %v14113_v48, %v20865_v46  ;;  %14140 = vpow2.f32 %v18702_v24  ;;  %11729 = vmatpush3.bf16.msra.mxu1 %v9587_v41  ;;  %v9298_v16 = vpack.c.bf16 %v18619_v55, %v18610_v18  ;;  %v20869_v24 = vld [vmem:[#allocation69_spill] sm:$0xff]  ;;  %v18869_v18 = vpop.eup %14124 }
 0xe4b   : > { %v9528_v58 = vmul.f32 %v18628_v8, %v20866_v19  ;;  %v9529_v25 = vmul.f32 %v18639_v53, %v20867_v59  ;;  %14142 = vpow2.f32 %v18709_v7  ;;  %v20868_v5 = vsub.f32 %v20805_v61, %v18468_v51  ;;  %11730 = vmatprep.subr.bf16.mxu1 %v9596_v0  ;;  %v20875_v0 = vld [vmem:[#allocation205_spill] sm:$0xff]  ;;  %v20881_v59 = vld [vmem:[#allocation208_spill] sm:$0xff] }
 0xe4c   : > { %v20870_v21 = vsub.f32 %v20869_v24, %v18468_v51  ;;  %v9307_v55 = vpack.c.bf16 %v14113_v48, %v14111_v34  ;;  %14144 = vpow2.f32 %v18714_v40  ;;  %11603 = vmatpush3.bf16.msra.mxu0 %v9298_v16  ;;  %v9588_v36 = vpack.c.bf16 %v9527_v9, %v9526_v12  ;;  %v18876_v56 = vpop.eup %14126  ;;  %v20872_v48 = vld [vmem:[#allocation140_spill] sm:$0xff]  ;;  %v20878_v46 = vld [vmem:[#allocation197_spill] sm:$0xff] }
 0xe4d   : > { %v18862_v33 = vmul.f32 1.442695, %v20868_v5  ;;  %v9299_v7 = vpack.c.bf16 %v18639_v53, %v18628_v8  ;;  %v9300_v61 = vpack.c.bf16 %v18661_v15, %v18650_v63  ;;  %14146 = vpow2.f32 %v18719_v32  ;;  %v18881_v41 = vpop.eup %14128  ;;  %v20873_v8 = vld [vmem:[#allocation204_spill] sm:$0xff]  ;;  %v20880_v16 = vld [vmem:[#allocation141_spill] sm:$0xff] }
 0xe4e   : > { %v18867_v52 = vmul.f32 1.442695, %v20870_v21  ;;  %11604 = vmatprep.subr.bf16.mxu0 %v9307_v55  ;;  %v9597_v26 = vpack.c.bf16 %v9545_v43, %v9544_v13  ;;  %v9546_v34 = vmul.f32 %v14115_v54, %v20871_v4  ;;  %v9547_v44 = vmul.f32 %v14117_v10, %v20872_v48  ;;  %11731 = vmatpush3.bf16.msra.mxu1 %v9588_v36  ;;  %v18888_v49 = vpop.eup %14130  ;;  %v20877_v13 = vld [vmem:[#allocation210_spill] sm:$0xff]  ;;  %v20879_v43 = vld [vmem:[#allocation137_spill] sm:$0xff]  ;;  %v20883_v55 = vld [vmem:[#allocation123_spill] sm:$0xff] }
 0xe4f   : > { %14148 = vpow2.f32 %v18726_v35  ;;  %v9589_v40 = vpack.c.bf16 %v9529_v25, %v9528_v58  ;;  %v9530_v53 = vmul.f32 %v18650_v63, %v20873_v8  ;;  %v9531_v12 = vmul.f32 %v18661_v15, %v20874_v30  ;;  %v18897_v20 = vpop.eup %14132  ;;  %v20876_v63 = vld [vmem:[#allocation120_spill] sm:$0xff]  ;;  %v20888_v30 = vld [vmem:[#allocation213_spill] sm:$0xff] }
 0xe50   : > { %14150 = vpow2.f32 %v18731_v3  ;;  %11732 = vmatprep.subr.bf16.mxu1 %v9597_v26  ;;  %v9308_v32 = vpack.c.bf16 %v14117_v10, %v14115_v54  ;;  %v9301_v9 = vpack.c.bf16 %v18687_v39, %v18672_v38  ;;  %v18895_v35 = vmul.f32 %v18672_v38, %v20875_v0  ;;  %11605 = vmatpush3.bf16.msra.mxu0 %v9299_v7  ;;  %v18908_v10 = vpop.eup %14134  ;;  %v20884_v26 = vld [vmem:[#allocation119_spill] sm:$0xff]  ;;  %v20886_v48 = vld [vmem:[#allocation144_spill] sm:$0xff] }
 0xe51   : > { %14152 = vpow2.f32 %v18736_v17  ;;  %v9548_v15 = vmul.f32 %v18842_v1, %v20876_v63  ;;  %v9533_v3 = vmul.f32 %v18687_v39, %v20877_v13  ;;  %v18906_v54 = vmul.f32 %v18888_v49, %v20878_v46  ;;  %v18917_v58 = vpop.eup %14136  ;;  %v20891_v46 = vld [vmem:[#allocation124_spill] sm:$0xff] }
 0xe52   : > { %14154 = vpow2.f32 %v18743_v27  ;;  %11606 = vmatprep.subr.bf16.mxu0 %v9308_v32  ;;  %v9598_v38 = vpack.c.bf16 %v9547_v44, %v9546_v34  ;;  %v9549_v17 = vmul.f32 %v18847_v6, %v20879_v43  ;;  %v18915_v19 = vmul.f32 %v18897_v20, %v20880_v16  ;;  %11733 = vmatpush3.bf16.msra.mxu1 %v9589_v40  ;;  %v20882_v27 = vld [vmem:[#allocation125_spill] sm:$0xff] }
 0xe53   : > { %14156 = vpow2.f32 %v18748_v22  ;;  %v9590_v39 = vpack.c.bf16 %v9531_v12, %v9530_v53  ;;  %v18922_v25 = vmul.f32 %v18704_v62, %v20881_v59  ;;  %v18926_v5 = vmul.f32 %v18908_v10, %v20882_v27  ;;  %v18928_v24 = vpop.eup %14138 }
 0xe54   : > { %14158 = vpow2.f32 %v18753_v57  ;;  %11734 = vmatprep.subr.bf16.mxu1 %v9598_v38  ;;  %v9309_v21 = vpack.c.bf16 %v18847_v6, %v18842_v1  ;;  %v9602_v22 = vpack.c.bf16 %v18915_v19, %v18906_v54  ;;  %v18937_v36 = vmul.f32 %v18917_v58, %v20883_v55  ;;  %v18939_v7 = vpop.eup %14140  ;;  %11607 = vmatpush3.bf16.msra.mxu0 %v9300_v61  ;;  %v20885_v57 = vld [vmem:[#allocation139_spill] sm:$0xff]  ;;  %v20887_v61 = vld [vmem:[#allocation142_spill] sm:$0xff] }
 0xe55   : > { %14160 = vpow2.f32 %v18760_v28  ;;  %v9550_v4 = vmul.f32 %v18856_v47, %v20884_v26  ;;  %v9551_v34 = vmul.f32 %v18869_v18, %v20885_v57  ;;  %v18948_v1 = vmul.f32 %v18928_v24, %v20886_v48  ;;  %v18950_v6 = vpop.eup %14142  ;;  %v20892_v38 = vld [vmem:[#allocation143_spill] sm:$0xff]  ;;  %v20896_v55 = vld [vmem:[#allocation126_spill] sm:$0xff]  ;;  %v20899_v48 = vld [vmem:[#allocation73_spill] sm:$0xff] }
 0xe56   : > { %14162 = vpow2.f32 %v18769_v42  ;;  %11608 = vmatprep.subr.bf16.mxu0 %v9309_v21  ;;  %v9599_v44 = vpack.c.bf16 %v9549_v17, %v9548_v15  ;;  %v9603_v28 = vpack.c.bf16 %v18937_v36, %v18926_v5  ;;  %v18957_v40 = vmul.f32 %v18939_v7, %v20887_v61  ;;  %v18959_v8 = vpop.eup %14144  ;;  %11735 = vmatpush3.bf16.msra.mxu1 %v9590_v39  ;;  %v20889_v42 = vld [vmem:[#allocation122_spill] sm:$0xff]  ;;  %v20890_v15 = vld [vmem:[#allocation128_spill] sm:$0xff]  ;;  %v14322_v54 = vld [vmem:[#allocation10 + $0x4c] ss:$16 sps:$4 sm:$0xff]  }
 0xe57   : > { %14164 = vpow2.f32 %v18774_v23  ;;  %v9591_v53 = vpack.c.bf16 %v9533_v3, %v18895_v35  ;;  %v9535_v12 = vmul.f32 %v18721_v37, %v20888_v30  ;;  %v18967_v32 = vmul.f32 %v18950_v6, %v20889_v42  ;;  %v18969_v0 = vpop.eup %14146  ;;  %v20894_v17 = vld [vmem:[#allocation138_spill] sm:$0xff]  ;;  %v20901_v61 = vld [vmem:[#allocation72_spill] sm:$0xff]  ;;  %v14323_v36 = vld [vmem:[#allocation10 + $0x48] ss:$16 sps:$4 sm:$0xff]  }
 0xe58   : > { %14166 = vpow2.f32 %v18779_v45  ;;  %11736 = vmatprep.subr.bf16.mxu1 %v9599_v44  ;;  %v9310_v63 = vpack.c.bf16 %v18869_v18, %v18856_v47  ;;  %v9604_v23 = vpack.c.bf16 %v18957_v40, %v18948_v1  ;;  %v18978_v35 = vmul.f32 %v18959_v8, %v20890_v15  ;;  %11609 = vmatpush3.bf16.msra.mxu0 %v9301_v9  ;;  %v20893_v18 = vld [vmem:[#allocation75_spill] sm:$0xff]  ;;  %v20895_v9 = vld [vmem:[#allocation145_spill] sm:$0xff]  ;;  %v20902_v30 = vld [vmem:[#allocation148_spill] sm:$0xff] }
 0xe59   : > { %v18980_v13 = vpop.eup %14148  ;;  %14168 = vpow2.f32 %v18784_v29  ;;  %v9600_v3 = vpack.c.bf16 %v9551_v34, %v9550_v4  ;;  %v9552_v45 = vmul.f32 %v18876_v56, %v20891_v46  ;;  %v18987_v43 = vmul.f32 %v18969_v0, %v20892_v38  ;;  %v20897_v34 = vld [vmem:[#allocation127_spill] sm:$0xff]  ;;  %v20903_v42 = vld [vmem:[#allocation132_spill] sm:$0xff] }
 0xe5a   : > { %v18989_v47 = vpop.eup %14150  ;;  %14170 = vpow2.f32 %v20893_v18  ;;  %11610 = vmatprep.subr.bf16.mxu0 %v9310_v63  ;;  %v9553_v16 = vmul.f32 %v18881_v41, %v20894_v17  ;;  %v18998_v39 = vmul.f32 %v18980_v13, %v20895_v9  ;;  %11737 = vmatpush3.bf16.msra.mxu1 %v9591_v53  ;;  %v9302_v27 = vpack.c.bf16 %v18721_v37, %v18704_v62 }
 0xe5b   : > { %v19000_v59 = vpop.eup %14152  ;;  %14172 = vpow2.f32 %v18798_v31  ;;  %v9592_v21 = vpack.c.bf16 %v9535_v12, %v18922_v25  ;;  %v19008_v26 = vmul.f32 %v18989_v47, %v20896_v55  ;;  %11738 = vmatprep.subr.bf16.mxu1 %v9600_v3  ;;  %v9311_v57 = vpack.c.bf16 %v18881_v41, %v18876_v56  ;;  %v20898_v25 = vld [vmem:[#allocation209_spill] sm:$0xff]  ;;  %v20904_v3 = vld [vmem:[#allocation68_spill] sm:$0xff] }
 0xe5c   : > { %v19010_v4 = vpop.eup %14154  ;;  %14174 = vpow2.f32 %v18805_v60  ;;  %v19019_v62 = vmul.f32 %v19000_v59, %v20897_v34  ;;  %11611 = vmatpush3.bf16.msra.mxu0 %v9302_v27  ;;  %v9536_v44 = vmul.f32 %v20899_v48, %v20898_v25  ;;  %v20900_v60 = vld [vmem:[#allocation212_spill] sm:$0xff]  ;;  %v9601_v12 = vpack.c.bf16 %v9553_v16, %v9552_v45  ;;  %v20907_v16 = vld [vmem:[#allocation71_spill] sm:$0xff]  ;;  %v20910_v34 = vld [vmem:[#allocation70_spill] sm:$0xff] }
 0xe5d   : > { %v19021_v37 = vpop.eup %14156  ;;  %14176 = vpow2.f32 %v18817_v2  ;;  %v9537_v53 = vmul.f32 %v20901_v61, %v20900_v60  ;;  %v19030_v56 = vmul.f32 %v19010_v4, %v20902_v30  ;;  %11612 = vmatprep.subr.bf16.mxu0 %v9311_v57  ;;  %v20905_v46 = vsub.f32 %v20904_v3, %v18468_v51  ;;  %v20906_v45 = vld [vmem:[#allocation216_spill] sm:$0xff]  ;;  %v20922_v2 = vld [vmem:[#allocation150_spill] sm:$0xff] }
 0xe5e   : > { %v19032_v41 = vpop.eup %14158  ;;  %14178 = vpow2.f32 %v18822_v50  ;;  %v19039_v63 = vmul.f32 %v19021_v37, %v20903_v42  ;;  %11739 = vmatpush3.bf16.msra.mxu1 %v9592_v21  ;;  %v9303_v50 = vpack.c.bf16 %v20901_v61, %v20899_v48  ;;  %v20908_v9 = vsub.f32 %v20907_v16, %v18468_v51  ;;  %v20909_v21 = vld [vmem:[#allocation129_spill] sm:$0xff] }
 0xe5f   : > { %v19041_v15 = vpop.eup %14160  ;;  %14180 = vpow2.f32 %v18830_v11  ;;  %v9290_v38 = vmul.f32 1.442695, %v20905_v46  ;;  %v19051_v18 = vmul.f32 %v19032_v41, %v20906_v45  ;;  %11740 = vmatprep.subr.bf16.mxu1 %v9601_v12  ;;  %v20911_v25 = vsub.f32 %v20910_v34, %v18468_v51  ;;  %v20912_v42 = vld [vmem:[#allocation217_spill] sm:$0xff]  ;;  %v20914_v45 = vld [vmem:[#allocation130_spill] sm:$0xff] }
 0xe60   : > { %v19053_v17 = vpop.eup %14162  ;;  %14182 = vpow2.f32 %v18835_v14  ;;  %v9292_v11 = vmul.f32 1.442695, %v20908_v9  ;;  %v19063_v55 = vmul.f32 %v19041_v15, %v20909_v21  ;;  %11613 = vmatpush3.bf16.msra.mxu0 %v9303_v50  ;;  %v9593_v48 = vpack.c.bf16 %v9537_v53, %v9536_v44  ;;  %v14303_v44 = vld [vmem:[#allocation10] ss:$16 sps:$4 sm:$0xff]   ;;  %v20913_v53 = vld [vmem:[#allocation147_spill] sm:$0xff] }
 0xe61   : > { %v19065_v57 = vpop.eup %14164  ;;  %14184 = vpow2.f32 %v18862_v33  ;;  %v9294_v14 = vmul.f32 1.442695, %v20911_v25  ;;  %v9312_v33 = vpack.c.bf16 %v18897_v20, %v18888_v49  ;;  %v20915_v9 = vld [vmem:[#allocation168_spill] sm:$0xff]  ;;  %v9313_v34 = vpack.c.bf16 %v18917_v58, %v18908_v10  ;;  %v20916_v25 = vld [vmem:[#allocation131_spill] sm:$0xff] }
 0xe62   : > { %v14167_v60 = vpop.eup %14166  ;;  %14186 = vpow2.f32 %v18867_v52  ;;  %v9320_v61 = vpack.c.bf16 %v19065_v57, %v19053_v17  ;;  %11741 = vmatpush3.bf16.msra.mxu1 %v9593_v48  ;;  %v20919_v58 = vld [vmem:[#allocation167_spill] sm:$0xff]  ;;  %v20929_v5 = vpack.c.bf16 %v18978_v35, %v18967_v32  ;;  %v20931_v1 = vpack.c.bf16 %v18998_v39, %v18987_v43 }
 0xe63   : > { %v14169_v12 = vpop.eup %14168  ;;  %14188 = vpow2.f32 %v9290_v38  ;;  %v19079_v51 = vmul.f32 %v14167_v60, %v20912_v42  ;;  %9361 = vmatmul.mubr.bf16.vlgmr.msra.gmra.mrb[64].mxu0 %v14303_v44  ;;  %v14304_v38 = vld [vmem:[#allocation10 + $0x24] ss:$16 sps:$4 sm:$0xff]   ;;  %v20932_v40 = vpack.c.bf16 %v19019_v62, %v19008_v26  ;;  %v14325_v32 = vld [vmem:[#allocation10 + $0x68] ss:$16 sps:$4 sm:$0xff]   ;;  %v14326_v35 = vld [vmem:[#allocation10 + $0x8c] ss:$16 sps:$4 sm:$0xff]   ;;  %v20934_v43 = vpack.c.bf16 %v19063_v55, %v19051_v18 }
 0xe64   : > { %v14171_v3 = vpop.eup %14170  ;;  %14190 = vpow2.f32 %v9292_v11  ;;  %11662 = vmatprep.subr.bf16.mxu0 %v9320_v61  ;;  %v9321_v52 = vpack.c.bf16 %v14169_v12, %v14167_v60  ;;  %v19082_v46 = vmul.f32 %v14169_v12, %v20913_v53  ;;  %9368 = vmatprep.mubr.bf16.mxu0 %v14304_v38  ;;  %v20917_v12 = vld [vmem:[#allocation165_spill] sm:$0xff] }
 0xe65   : > { %v14173_v50 = vpop.eup %14172  ;;  %14192 = vpow2.f32 %v9294_v14  ;;  %11663 = vmatpush3.bf16.msra.mxu0 %v9312_v33  ;;  %v19085_v16 = vmul.f32 %v14171_v3, %v20914_v45  ;;  %9651 = vmatmul.mubr.bf16.vlgmr.msra.gmra.mrb[144].mxu1 %v14303_v44  ;;  %v20920_v45 = vld [vmem:[#allocation152_spill] sm:$0xff]  ;;  %v14327_v39 = vld [vmem:[#allocation10 + $0x88] ss:$16 sps:$4 sm:$0xff]   ;;  %v14328_v26 = vld [vmem:[#allocation10 + $0xac] ss:$16 sps:$4 sm:$0xff]  }
 0xe66   : > { %v14175_v49 = vpop.eup %14174  ;;  %11664 = vmatprep.subr.bf16.mxu0 %v9321_v52  ;;  %v9611_v20 = vpack.c.bf16 %v19082_v46, %v19079_v51  ;;  %v19090_v11 = vmul.f32 %v14173_v50, %v20915_v9  ;;  %9658 = vmatprep.mubr.bf16.mxu1 %v14304_v38  ;;  %v9322_v60 = vpack.c.bf16 %v14173_v50, %v14171_v3  ;;  %v20918_v52 = vld [vmem:[#allocation149_spill] sm:$0xff] }
 0xe67   : > { %v14177_v21 = vpop.eup %14176  ;;  %v19095_v14 = vmul.f32 %v14175_v49, %v20916_v25  ;;  %v9314_v50 = vpack.c.bf16 %v18939_v7, %v18928_v24  ;;  %v14330_v62 = vld [vmem:[#allocation10 + $0xcc] ss:$16 sps:$4 sm:$0xff]  }
 0xe68   : > { %v14179_v48 = vpop.eup %14178  ;;  %v9612_v61 = vpack.c.bf16 %v19090_v11, %v19085_v16  ;;  %v19100_v33 = vmul.f32 %v14177_v21, %v20917_v12  ;;  %v9323_v12 = vpack.c.bf16 %v14177_v21, %v14175_v49 }
 0xe69   : > { %v14181_v42 = vpop.eup %14180  ;;  %11665 = vmatpush3.bf16.msra.mxu0 %v9313_v34  ;;  %v19103_v44 = vmul.f32 %v14179_v48, %v20918_v52  ;;  %v14305_v34 = vld [vmem:[#allocation10 + $0x20] ss:$16 sps:$4 sm:$0xff]  }
 0xe6a   : > { %v14183_v53 = vpop.eup %14182  ;;  %11666 = vmatprep.subr.bf16.mxu0 %v9322_v60  ;;  %v19108_v38 = vmul.f32 %v14181_v42, %v20919_v58  ;;  %v20921_v52 = vld [vmem:[#allocation166_spill] sm:$0xff]  ;;  %v20924_v60 = vld [vmem:[#allocation151_spill] sm:$0xff]  ;;  %v9324_v29 = vpack.c.bf16 %v14181_v42, %v14179_v48  ;;  %v9317_v48 = vpack.c.bf16 %v19000_v59, %v18989_v47  ;;  %v9319_v47 = vpack.c.bf16 %v19041_v15, %v19032_v41 }
 0xe6b   : > { %v14185_v3 = vpop.eup %14184  ;;  %v19113_v9 = vmul.f32 %v14183_v53, %v20920_v45  ;;  %9369 = vmatmul.mubr.bf16.gmra.mrb[68].mxu0 %v14305_v34  ;;  %v14306_v58 = vld [vmem:[#allocation10 + $0x44] ss:$16 sps:$4 sm:$0xff]   ;;  %v14317_v41 = vld [vmem:[#allocation10 + $0xe0] ss:$16 sps:$4 sm:$0xff]   ;;  %v14318_v15 = vld [vmem:[#allocation10 + $0xc] ss:$16 sps:$4 sm:$0xff]   ;;  %v20928_v19 = vpack.c.bf16 %v19100_v33, %v19095_v14 }
 0xe6c   : > { %v14187_v25 = vpop.eup %14186  ;;  %v19118_v30 = vmul.f32 %v14185_v3, %v20921_v52  ;;  %9376 = vmatprep.mubr.bf16.mxu0 %v14306_v58  ;;  %v20923_v45 = vld [vmem:[#allocation172_spill] sm:$0xff]  ;;  %v9315_v52 = vpack.c.bf16 %v18959_v8, %v18950_v6  ;;  %v9325_v8 = vpack.c.bf16 %v14185_v3, %v14183_v53  ;;  %v20927_v3 = vld [vmem:[#allocation218_spill] sm:$0xff] }
 0xe6d   : > { %v14189_v27 = vpop.eup %14188  ;;  %11667 = vmatpush3.bf16.msra.mxu0 %v9314_v50  ;;  %v19121_v31 = vmul.f32 %v14187_v25, %v20922_v2  ;;  %9659 = vmatmul.mubr.bf16.gmra.mrb[148].mxu1 %v14305_v34  ;;  %v14307_v6 = vld [vmem:[#allocation10 + $0x40] ss:$16 sps:$4 sm:$0xff]  }
 0xe6e   : > { %v14191_v24 = vpop.eup %14190  ;;  %11668 = vmatprep.subr.bf16.mxu0 %v9323_v12  ;;  %v9615_v7 = vpack.c.bf16 %v19118_v30, %v19113_v9  ;;  %v19126_v49 = vmul.f32 %v14189_v27, %v20923_v45  ;;  %9666 = vmatprep.mubr.bf16.mxu1 %v14306_v58  ;;  %v20925_v12 = vld [vmem:[#allocation169_spill] sm:$0xff]  ;;  %v9316_v45 = vpack.c.bf16 %v18980_v13, %v18969_v0  ;;  %v14309_v58 = vld [vmem:[#allocation10 + $0x60] ss:$16 sps:$4 sm:$0xff]  }
 0xe6f   : > { %v14193_v21 = vpop.eup %14192  ;;  %v19131_v50 = vmul.f32 %v14191_v24, %v20924_v60  ;;  %v14308_v60 = vld [vmem:[#allocation10 + $0x64] ss:$16 sps:$4 sm:$0xff]   ;;  %v9326_v42 = vpack.c.bf16 %v14189_v27, %v14187_v25  ;;  %v14333_v30 = vld [vmem:[#allocation10 + $0xe8] ss:$16 sps:$4 sm:$0xff]  }
 0xe70   : > { %v9616_v2 = vpack.c.bf16 %v19126_v49, %v19121_v31  ;;  %v19136_v10 = vmul.f32 %v14193_v21, %v20925_v12  ;;  %v9327_v0 = vpack.c.bf16 %v14193_v21, %v14191_v24  ;;  %v20926_v13 = vld [vmem:[#allocation146_spill] sm:$0xff]  ;;  %v14319_v24 = vld [vmem:[#allocation10 + $0x8] ss:$16 sps:$4 sm:$0xff]   ;;  %v14320_v21 = vld [vmem:[#allocation10 + $0x2c] ss:$16 sps:$4 sm:$0xff]  }
 0xe71   : > { %11669 = vmatpush3.bf16.msra.mxu0 %v9315_v52  ;;  %v9570_v53 = vmul.f32 %v19053_v17, %v20926_v13  ;;  %v9571_v52 = vmul.f32 %v19065_v57, %v20927_v3  ;;  %v14310_v12 = vld [vmem:[#allocation10 + $0x84] ss:$16 sps:$4 sm:$0xff]   ;;  %v14313_v17 = vld [vmem:[#allocation10 + $0xa0] ss:$16 sps:$4 sm:$0xff]   ;;  %v14329_v31 = vld [vmem:[#allocation10 + $0xa8] ss:$16 sps:$4 sm:$0xff]  }
 0xe72   : > { %11670 = vmatprep.subr.bf16.mxu0 %v9324_v29  ;;  %v9617_v34 = vpack.c.bf16 %v19136_v10, %v19131_v50  ;;  %v9318_v29 = vpack.c.bf16 %v19021_v37, %v19010_v4  ;;  %v14311_v4 = vld [vmem:[#allocation10 + $0x80] ss:$16 sps:$4 sm:$0xff]   ;;  %v14312_v37 = vld [vmem:[#allocation10 + $0xa4] ss:$16 sps:$4 sm:$0xff]  }
 0xe73   : > { %9377 = vmatmul.mubr.bf16.gmra.mrb[72].mxu0 %v14307_v6  ;;  %v9610_v59 = vpack.c.bf16 %v9571_v52, %v9570_v53  ;;  %v14314_v27 = vld [vmem:[#allocation10 + $0xc4] ss:$16 sps:$4 sm:$0xff]   ;;  %v14315_v57 = vld [vmem:[#allocation10 + $0xc0] ss:$16 sps:$4 sm:$0xff]  }
 0xe74   : > { %9384 = vmatprep.mubr.bf16.mxu0 %v14308_v60  ;;  %v14316_v25 = vld [vmem:[#allocation10 + $0xe4] ss:$16 sps:$4 sm:$0xff]  }
 0xe75   : > { %11671 = vmatpush3.bf16.msra.mxu0 %v9316_v45  ;;  %9667 = vmatmul.mubr.bf16.gmra.mrb[152].mxu1 %v14307_v6  ;;  %v14321_v45 = vld [vmem:[#allocation10 + $0x28] ss:$16 sps:$4 sm:$0xff]  }
 0xe76   : > { %11672 = vmatprep.subr.bf16.mxu0 %v9325_v8  ;;  %9674 = vmatprep.mubr.bf16.mxu1 %v14308_v60 }
 0xe79   : > { %11673 = vmatpush3.bf16.msra.mxu0 %v9317_v48 }
 0xe7a   : > { %11674 = vmatprep.subr.bf16.mxu0 %v9326_v42 }
 0xe7b   : > { %9385 = vmatmul.mubr.bf16.gmra.mrb[76].mxu0 %v14309_v58 }
 0xe7c   : > { %9392 = vmatprep.mubr.bf16.mxu0 %v14310_v12 }
 0xe7d   : > { %11675 = vmatpush3.bf16.msra.mxu0 %v9318_v29  ;;  %9675 = vmatmul.mubr.bf16.gmra.mrb[156].mxu1 %v14309_v58 }
 0xe7e   : > { %11676 = vmatprep.subr.bf16.mxu0 %v9327_v0  ;;  %9682 = vmatprep.mubr.bf16.mxu1 %v14310_v12  ;;  %v14804_v12 = vmov 0.0|0.0  }
 0xe7f   : > { %13167 = vmatprep.subr.bf16.mxu1 %v14804_v12 }
 0xe81   : > { %11677 = vmatpush3.bf16.msra.mxu0 %v9319_v47 }
 0xe82   : > { %11790 = vmatprep.subr.bf16.mxu0 %v9610_v59 }
 0xe83   : > { %9393 = vmatmul.mubr.bf16.gmra.mrb[80].mxu0 %v14311_v4 }
 0xe84   : > { %9400 = vmatprep.mubr.bf16.mxu0 %v14312_v37 }
 0xe85   : > { %9683 = vmatmul.mubr.bf16.gmra.mrb[160].mxu1 %v14311_v4 }
 0xe86   : > { %9690 = vmatprep.mubr.bf16.mxu1 %v14312_v37 }
 0xe8b   : > { %9401 = vmatmul.mubr.bf16.gmra.mrb[84].mxu0 %v14313_v17 }
 0xe8c   : > { %9408 = vmatprep.mubr.bf16.mxu0 %v14314_v27 }
 0xe8d   : > { %9691 = vmatmul.mubr.bf16.gmra.mrb[164].mxu1 %v14313_v17 }
 0xe8e   : > { %9698 = vmatprep.mubr.bf16.mxu1 %v14314_v27 }
 0xe93   : > { %9409 = vmatmul.mubr.bf16.gmra.mrb[88].mxu0 %v14315_v57 }
 0xe94   : > { %9416 = vmatprep.mubr.bf16.mxu0 %v14316_v25 }
 0xe95   : > { %9699 = vmatmul.mubr.bf16.gmra.mrb[168].mxu1 %v14315_v57 }
 0xe96   : > { %9706 = vmatprep.mubr.bf16.mxu1 %v14316_v25 }
 0xe9b   : > { %9417 = vmatmul.mubr.bf16.gmra.mrb[92].mxu0 %v14317_v41 }
 0xe9c   : > { %9457 = vmatprep.mubr.bf16.mxu0 %v14318_v15 }
 0xe9d   : > { %9707 = vmatmul.mubr.bf16.gmra.mrb[172].mxu1 %v14317_v41 }
 0xea3   : > { %9458 = vmatmul.mubr.bf16.vlgmr.msra.gmra.mrb[96].mxu0 %v14319_v24 }
 0xea4   : > { %11791 = vmatpush3.bf16.msra.mxu0 %v9602_v22  ;;  %9465 = vmatprep.mubr.bf16.mxu0 %v14320_v21  ;;  %v20930_v22 = vpack.c.bf16 %v19108_v38, %v19103_v44 }
 0xea5   : > { %11792 = vmatprep.subr.bf16.mxu0 %v9611_v20 }
 0xea8   : > { %11793 = vmatpush3.bf16.msra.mxu0 %v9603_v28  ;;  %v14324_v28 = vld [vmem:[#allocation10 + $0x6c] ss:$16 sps:$4 sm:$0xff]  }
 0xea9   : > { %11794 = vmatprep.subr.bf16.mxu0 %v9612_v61 }
 0xeab   : > { %9466 = vmatmul.mubr.bf16.gmra.mrb[100].mxu0 %v14321_v45 }
 0xeac   : > { %11795 = vmatpush3.bf16.msra.mxu0 %v9604_v23  ;;  %9473 = vmatprep.mubr.bf16.mxu0 %v14322_v54  ;;  %v20933_v23 = vpack.c.bf16 %v19039_v63, %v19030_v56  ;;  %v14331_v56 = vld [vmem:[#allocation10 + $0xc8] ss:$16 sps:$4 sm:$0xff]   ;;  %v14332_v63 = vld [vmem:[#allocation10 + $0xec] ss:$16 sps:$4 sm:$0xff]  }
 0xead   : > { %11796 = vmatprep.subr.bf16.mxu0 %v20928_v19 }
 0xeb0   : > { %11797 = vmatpush3.bf16.msra.mxu0 %v20929_v5 }
 0xeb1   : > { %11798 = vmatprep.subr.bf16.mxu0 %v20930_v22 }
 0xeb3   : > { %9474 = vmatmul.mubr.bf16.gmra.mrb[104].mxu0 %v14323_v36 }
 0xeb4   : > { %11799 = vmatpush3.bf16.msra.mxu0 %v20931_v1  ;;  %9481 = vmatprep.mubr.bf16.mxu0 %v14324_v28 }
 0xeb5   : > { %11800 = vmatprep.subr.bf16.mxu0 %v9615_v7 }
 0xeb8   : > { %11801 = vmatpush3.bf16.msra.mxu0 %v20932_v40 }
 0xeb9   : > { %11802 = vmatprep.subr.bf16.mxu0 %v9616_v2 }
 0xebb   : > { %9482 = vmatmul.mubr.bf16.gmra.mrb[108].mxu0 %v14325_v32 }
 0xebc   : > { %11803 = vmatpush3.bf16.msra.mxu0 %v20933_v23  ;;  %9489 = vmatprep.mubr.bf16.mxu0 %v14326_v35 }
 0xebd   : > { %11804 = vmatprep.subr.bf16.mxu0 %v9617_v34 }
 0xec0   : > { %11805 = vmatpush3.bf16.msra.mxu0 %v20934_v43 }
 0xec3   : > { %9490 = vmatmul.mubr.bf16.gmra.mrb[112].mxu0 %v14327_v39 }
 0xec4   : > { %9497 = vmatprep.mubr.bf16.mxu0 %v14328_v26 }
 0xecb   : > { %9498 = vmatmul.mubr.bf16.gmra.mrb[116].mxu0 %v14329_v31 }
 0xecc   : > { %9505 = vmatprep.mubr.bf16.mxu0 %v14330_v62 }
 0xed3   : > { %9506 = vmatmul.mubr.bf16.gmra.mrb[120].mxu0 %v14331_v56 }
 0xed4   : > { %9513 = vmatprep.mubr.bf16.mxu0 %v14332_v63 }
 0xedb   : > { %9514 = vmatmul.mubr.bf16.gmra.mrb[124].mxu0 %v14333_v30 }
 0xedc   : > { %9747 = vmatprep.mubr.bf16.mxu0 %v14318_v15 }
 0xee3   : > { %9748 = vmatmul.mubr.bf16.vlgmr.msra.gmra.mrb[128].mxu0 %v14319_v24 }
 0xee4   : > { %9755 = vmatprep.mubr.bf16.mxu0 %v14320_v21 }
 0xeeb   : > { %9756 = vmatmul.mubr.bf16.gmra.mrb[132].mxu0 %v14321_v45 }
 0xeec   : > { %9763 = vmatprep.mubr.bf16.mxu0 %v14322_v54 }
 0xef3   : > { %9764 = vmatmul.mubr.bf16.gmra.mrb[136].mxu0 %v14323_v36 }
 0xef4   : > { %9771 = vmatprep.mubr.bf16.mxu0 %v14324_v28 }
 0xefb   : > { %9772 = vmatmul.mubr.bf16.gmra.mrb[140].mxu0 %v14325_v32 }
 0xefc   : > { %9779 = vmatprep.mubr.bf16.mxu0 %v14326_v35 }
 0xf03   : > { %9780 = vmatmul.mubr.bf16.gmra.mrb[144].mxu0 %v14327_v39 }
 0xf04   : > { %9787 = vmatprep.mubr.bf16.mxu0 %v14328_v26 }
 0xf0b   : > { %9788 = vmatmul.mubr.bf16.gmra.mrb[148].mxu0 %v14329_v31 }
 0xf0c   : > { %9795 = vmatprep.mubr.bf16.mxu0 %v14330_v62 }
 0xf13   : > { %9796 = vmatmul.mubr.bf16.gmra.mrb[152].mxu0 %v14331_v56 }
 0xf14   : > { %9803 = vmatprep.mubr.bf16.mxu0 %v14332_v63 }
 0xf1b   : > { %9804 = vmatmul.mubr.bf16.gmra.mrb[156].mxu0 %v14333_v30 }
 0xf36   : > { %v11614_v18 = vpop.f32.mrb[64].mxu0 }
 0xf37   : > { %v11615_v55 = vpop.f32.mrb[65].mxu0 }
 0xf38   : > { %v19197_v51 = vadd.f32 %v11615_v55, %v11614_v18  ;;  %v11617_v46 = vpop.f32.mrb[66].mxu0  ;;  %v11742_v16 = vpop.f32.mrb[144].mxu1 }
 0xf39   : > { %v11618_v20 = vpop.f32.mrb[67].mxu0  ;;  %v11743_v11 = vpop.f32.mrb[145].mxu1 }
 0xf3a   : > { %v19199_v14 = vadd.f32 %v11618_v20, %v11617_v46  ;;  %v19201_v61 = vadd.f32 %v11743_v11, %v11742_v16  ;;  %v11745_v9 = vpop.f32.mrb[146].mxu1 }
 0xf3b   : > { %v11746_v49 = vpop.f32.mrb[147].mxu1 }
 0xf3c   : > { %v19207_v2 = vadd.f32 %v11746_v49, %v11745_v9 }
 0xf3e   : > { %v11620_v33 = vpop.f32.mrb[68].mxu0 }
 0xf3f   : > { %v11621_v44 = vpop.f32.mrb[69].mxu0 }
 0xf40   : > { %v19203_v10 = vadd.f32 %v11621_v44, %v11620_v33  ;;  %v11623_v38 = vpop.f32.mrb[70].mxu0  ;;  %v11748_v34 = vpop.f32.mrb[148].mxu1 }
 0xf41   : > { %v11624_v7 = vpop.f32.mrb[71].mxu0  ;;  %v11749_v6 = vpop.f32.mrb[149].mxu1 }
 0xf42   : > { %v19205_v50 = vadd.f32 %v11624_v7, %v11623_v38  ;;  %v19209_v8 = vadd.f32 %v11749_v6, %v11748_v34  ;;  %v11751_v58 = vpop.f32.mrb[150].mxu1 }
 0xf43   : > { %v11752_v13 = vpop.f32.mrb[151].mxu1 }
 0xf44   : > { %v19215_v3 = vadd.f32 %v11752_v13, %v11751_v58 }
 0xf46   : > { %v11626_v60 = vpop.f32.mrb[72].mxu0 }
 0xf47   : > { %v11627_v48 = vpop.f32.mrb[73].mxu0 }
 0xf48   : > { %v19211_v42 = vadd.f32 %v11627_v48, %v11626_v60  ;;  %v11629_v29 = vpop.f32.mrb[74].mxu0  ;;  %v11754_v52 = vpop.f32.mrb[152].mxu1 }
 0xf49   : > { %v11630_v0 = vpop.f32.mrb[75].mxu0  ;;  %v11755_v47 = vpop.f32.mrb[153].mxu1 }
 0xf4a   : > { %v19213_v53 = vadd.f32 %v11630_v0, %v11629_v29  ;;  %v19218_v59 = vadd.f32 %v11755_v47, %v11754_v52  ;;  %v11757_v57 = vpop.f32.mrb[154].mxu1 }
 0xf4b   : > { %v11758_v41 = vpop.f32.mrb[155].mxu1 }
 0xf4c   : > { %v19224_v24 = vadd.f32 %v11758_v41, %v11757_v57 }
 0xf4e   : > { %v11632_v4 = vpop.f32.mrb[76].mxu0 }
 0xf4f   : > { %v11633_v37 = vpop.f32.mrb[77].mxu0 }
 0xf50   : > { %v19220_v17 = vadd.f32 %v11633_v37, %v11632_v4  ;;  %v11635_v27 = vpop.f32.mrb[78].mxu0  ;;  %v11760_v21 = vpop.f32.mrb[156].mxu1 }
 0xf51   : > { %v11636_v25 = vpop.f32.mrb[79].mxu0  ;;  %v11761_v45 = vpop.f32.mrb[157].mxu1 }
 0xf52   : > { %v19222_v15 = vadd.f32 %v11636_v25, %v11635_v27  ;;  %v19226_v54 = vadd.f32 %v11761_v45, %v11760_v21  ;;  %v11763_v1 = vpop.f32.mrb[158].mxu1 }
 0xf53   : > { %v11764_v40 = vpop.f32.mrb[159].mxu1 }
 0xf54   : > { %v19232_v23 = vadd.f32 %v11764_v40, %v11763_v1 }
 0xf56   : > { %v11638_v19 = vpop.f32.mrb[80].mxu0 }
 0xf57   : > { %v11639_v5 = vpop.f32.mrb[81].mxu0 }
 0xf58   : > { %v19228_v22 = vadd.f32 %v11639_v5, %v11638_v19  ;;  %v11641_v36 = vpop.f32.mrb[82].mxu0  ;;  %v11766_v35 = vpop.f32.mrb[160].mxu1 }
 0xf59   : > { %v11642_v28 = vpop.f32.mrb[83].mxu0  ;;  %v11767_v43 = vpop.f32.mrb[161].mxu1 }
 0xf5a   : > { %v19230_v32 = vadd.f32 %v11642_v28, %v11641_v36  ;;  %v19234_v39 = vadd.f32 %v11767_v43, %v11766_v35  ;;  %v11769_v63 = vpop.f32.mrb[162].mxu1 }
 0xf5b   : > { %v11770_v18 = vpop.f32.mrb[163].mxu1 }
 0xf5c   : > { %v19240_v46 = vadd.f32 %v11770_v18, %v11769_v63  ;;  %v14806_v18 = vmov 0.0  }
 0xf5d   : > { %13144 = vmatprep.mubr.msk.f32.mxu1 %vm14805_vm0, %v14806_v18  ;;  %13147 = vmatprep.subr.bf16.mxu0 %v14806_v18 }
 0xf5e   : > { %v11644_v26 = vpop.f32.mrb[84].mxu0  ;;  %13163 = vmatprep.mubr.msk.bf16.mxu0 %vm14805_vm0, %v14806_v18 }
 0xf5f   : > { %v11645_v31 = vpop.f32.mrb[85].mxu0 }
 0xf60   : > { %v19236_v62 = vadd.f32 %v11645_v31, %v11644_v26  ;;  %v11647_v56 = vpop.f32.mrb[86].mxu0  ;;  %v11772_v16 = vpop.f32.mrb[164].mxu1 }
 0xf61   : > { %v11648_v30 = vpop.f32.mrb[87].mxu0  ;;  %v11773_v20 = vpop.f32.mrb[165].mxu1 }
 0xf62   : > { %v19238_v55 = vadd.f32 %v11648_v30, %v11647_v56  ;;  %v19242_v11 = vadd.f32 %v11773_v20, %v11772_v16  ;;  %v11775_v7 = vpop.f32.mrb[166].mxu1 }
 0xf63   : > { %v11776_v34 = vpop.f32.mrb[167].mxu1 }
 0xf64   : > { %v19248_v60 = vadd.f32 %v11776_v34, %v11775_v7 }
 0xf66   : > { %v11650_v33 = vpop.f32.mrb[88].mxu0 }
 0xf67   : > { %v11651_v44 = vpop.f32.mrb[89].mxu0 }
 0xf68   : > { %v19244_v38 = vadd.f32 %v11651_v44, %v11650_v33  ;;  %v11653_v9 = vpop.f32.mrb[90].mxu0  ;;  %v11778_v48 = vpop.f32.mrb[168].mxu1  ;;  %v13898_v33 = vld [vmem:[%s15437_s28] sm:$0xff]  }
 0xf69   : > { %v11654_v49 = vpop.f32.mrb[91].mxu0  ;;  %v11779_v29 = vpop.f32.mrb[169].mxu1  ;;  %13148 = vmatpush3.bf16.msra.mxu0 %v13898_v33 }
 0xf6a   : > { %v19246_v6 = vadd.f32 %v11654_v49, %v11653_v9  ;;  %v19250_v58 = vadd.f32 %v11779_v29, %v11778_v48  ;;  %v11781_v4 = vpop.f32.mrb[170].mxu1  ;;  %v13899_v9 = vld [vmem:[%s15437_s28 + $0x8] sm:$0xff]   ;;  %13149 = vmatprep.subr.bf16.mxu0 %v14806_v18  ;;  %v13900_v48 = vld [vmem:[%s15437_s28 + $0x10] sm:$0xff]  }
 0xf6b   : > { %v11782_v27 = vpop.f32.mrb[171].mxu1 }
 0xf6c   : > { %v19256_v25 = vadd.f32 %v11782_v27, %v11781_v4 }
 0xf6d   : > { %13150 = vmatpush3.bf16.msra.mxu0 %v13899_v9 }
 0xf6e   : > { %v11656_v0 = vpop.f32.mrb[92].mxu0  ;;  %13151 = vmatprep.subr.bf16.mxu0 %v14806_v18 }
 0xf6f   : > { %v11657_v13 = vpop.f32.mrb[93].mxu0 }
 0xf70   : > { %v19252_v52 = vadd.f32 %v11657_v13, %v11656_v0  ;;  %v11659_v47 = vpop.f32.mrb[94].mxu0  ;;  %v11784_v41 = vpop.f32.mrb[172].mxu1 }
 0xf71   : > { %v11660_v37 = vpop.f32.mrb[95].mxu0  ;;  %v11785_v21 = vpop.f32.mrb[173].mxu1  ;;  %13152 = vmatpush3.bf16.msra.mxu0 %v13900_v48 }
 0xf72   : > { %v19254_v57 = vadd.f32 %v11660_v37, %v11659_v47  ;;  %v19258_v45 = vadd.f32 %v11785_v21, %v11784_v41  ;;  %v11787_v28 = vpop.f32.mrb[174].mxu1  ;;  %13153 = vmatprep.subr.bf16.mxu0 %v14806_v18  ;;  %v13902_v41 = vld [vmem:[%s15437_s28 + $0x20] sm:$0xff]  }
 0xf73   : > { %v11788_v35 = vpop.f32.mrb[175].mxu1 }
 0xf74   : > { %v19263_v31 = vadd.f32 %v11788_v35, %v11787_v28 }
 0xf76   : > { %v11678_v19 = vpop.f32.mrb[96].mxu0 }
 0xf77   : > { %v11679_v5 = vpop.f32.mrb[97].mxu0 }
 0xf78   : > { %v11680_v36 = vadd.f32 %v11679_v5, %v11678_v19  ;;  %v11681_v1 = vpop.f32.mrb[98].mxu0 }
 0xf79   : > { %v11682_v40 = vpop.f32.mrb[99].mxu0 }
 0xf7a   : > { %v19261_v43 = vadd.f32 %v11680_v36, %v19197_v51  ;;  %v11683_v26 = vadd.f32 %v11682_v40, %v11681_v1  ;;  %v13903_v1 = vld [vmem:[%s15437_s28 + $0x28] sm:$0xff]  }
 0xf7c   : > { %v19266_v56 = vadd.f32 %v11683_v26, %v19199_v14  ;;  %vm9812_vm1 = vcmp.gt.f32.partialorder %v19261_v43, 0.0 }
 0xf7e   : > { %v11684_v63 = vpop.f32.mrb[100].mxu0  ;;  %vm9813_vm2 = vcmp.gt.f32.partialorder %v19266_v56, 0.0 }
 0xf7f   : > { %v11685_v30 = vpop.f32.mrb[101].mxu0 }
 0xf80   : > { %v11686_v16 = vadd.f32 %v11685_v30, %v11684_v63  ;;  %v11687_v20 = vpop.f32.mrb[102].mxu0 }
 0xf81   : > { %v11688_v51 = vpop.f32.mrb[103].mxu0 }
 0xf82   : > { %v19273_v44 = vadd.f32 %v11686_v16, %v19203_v10  ;;  %v11689_v14 = vadd.f32 %v11688_v51, %v11687_v20 }
 0xf84   : > { %v19277_v7 = vadd.f32 %v11689_v14, %v19205_v50  ;;  %v13901_v50 = vld [vmem:[%s15437_s28 + $0x18] sm:$0xff]   ;;  %vm9814_vm3 = vcmp.gt.f32.partialorder %v19273_v44, 0.0 }
 0xf85   : > { %13154 = vmatpush3.bf16.msra.mxu0 %v13901_v50 }
 0xf86   : > { %v11690_v49 = vpop.f32.mrb[104].mxu0  ;;  %13155 = vmatprep.subr.bf16.mxu0 %v14806_v18  ;;  %vm9815_vm4 = vcmp.gt.f32.partialorder %v19277_v7, 0.0 }
 0xf87   : > { %v11691_v34 = vpop.f32.mrb[105].mxu0 }
 0xf88   : > { %v11692_v29 = vadd.f32 %v11691_v34, %v11690_v49  ;;  %v11693_v0 = vpop.f32.mrb[106].mxu0 }
 0xf89   : > { %v11694_v10 = vpop.f32.mrb[107].mxu0  ;;  %13156 = vmatpush3.bf16.msra.mxu0 %v13902_v41 }
 0xf8a   : > { %v19283_v13 = vadd.f32 %v11692_v29, %v19211_v42  ;;  %v11695_v47 = vadd.f32 %v11694_v10, %v11693_v0  ;;  %13157 = vmatprep.subr.bf16.mxu0 %v14806_v18 }
 0xf8c   : > { %v19287_v4 = vadd.f32 %v11695_v47, %v19213_v53  ;;  %vm9816_vm5 = vcmp.gt.f32.partialorder %v19283_v13, 0.0 }
 0xf8d   : > { %13158 = vmatpush3.bf16.msra.mxu0 %v13903_v1  ;;  %v9831_v1 = vsel %vm9815_vm4, %v19277_v7, 1.0  ;;  %v20935_v7 = vld [vmem:[#allocation219_spill] sm:$0xff] }
 0xf8e   : > { %v11696_v37 = vpop.f32.mrb[108].mxu0  ;;  %13159 = vmatprep.subr.bf16.mxu0 %v14806_v18  ;;  %vm9817_vm6 = vcmp.gt.f32.partialorder %v19287_v4, 0.0 }
 0xf8f   : > { %v11697_v27 = vpop.f32.mrb[109].mxu0 }
 0xf90   : > { %v11698_v21 = vadd.f32 %v11697_v27, %v11696_v37  ;;  %v11699_v19 = vpop.f32.mrb[110].mxu0  ;;  %v9829_v27 = vsel %vm9813_vm2, %v19266_v56, 1.0 }
 0xf91   : > { %v11700_v5 = vpop.f32.mrb[111].mxu0 }
 0xf92   : > { %v19293_v42 = vadd.f32 %v11698_v21, %v19220_v17  ;;  %v11701_v36 = vadd.f32 %v11700_v5, %v11699_v19 }
 0xf94   : > { %v19297_v53 = vadd.f32 %v11701_v36, %v19222_v15  ;;  %vm9818_vm7 = vcmp.gt.f32.partialorder %v19293_v42, 0.0 }
 0xf96   : > { %v11702_v28 = vpop.f32.mrb[112].mxu0  ;;  %vm9819_vm8 = vcmp.gt.f32.partialorder %v19297_v53, 0.0 }
 0xf97   : > { %v11703_v40 = vpop.f32.mrb[113].mxu0 }
 0xf98   : > { %v11704_v35 = vadd.f32 %v11703_v40, %v11702_v28  ;;  %v11705_v26 = vpop.f32.mrb[114].mxu0 }
 0xf99   : > { %v11706_v63 = vpop.f32.mrb[115].mxu0 }
 0xf9a   : > { %v19302_v30 = vadd.f32 %v11704_v35, %v19228_v22  ;;  %v11707_v17 = vadd.f32 %v11706_v63, %v11705_v26 }
 0xf9c   : > { %v19305_v16 = vadd.f32 %v11707_v17, %v19230_v32  ;;  %vm9820_vm9 = vcmp.gt.f32.partialorder %v19302_v30, 0.0 }
 0xf9e   : > { %v11708_v20 = vpop.f32.mrb[116].mxu0  ;;  %vm9821_vm10 = vcmp.gt.f32.partialorder %v19305_v16, 0.0 }
 0xf9f   : > { %v11709_v15 = vpop.f32.mrb[117].mxu0 }
 0xfa0   : > { %v11710_v51 = vadd.f32 %v11709_v15, %v11708_v20  ;;  %v11711_v33 = vpop.f32.mrb[118].mxu0  ;;  %v20936_v15 = vmax.f32 %v20935_v7, 0.0 }
 0xfa1   : > { %v11712_v14 = vpop.f32.mrb[119].mxu0 }
 0xfa2   : > { %v19308_v9 = vadd.f32 %v11710_v51, %v19236_v62  ;;  %v11713_v49 = vadd.f32 %v11712_v14, %v11711_v33  ;;  %v9828_v62 = vsel %vm9812_vm1, %v19261_v43, 1.0  ;;  %v9830_v43 = vsel %vm9814_vm3, %v19273_v44, 1.0 }
 0xfa3   : > { %14194 = vrcp.f32 %v9828_v62  ;;  %v9832_v44 = vsel %vm9816_vm5, %v19283_v13, 1.0 }
 0xfa4   : > { %v19311_v34 = vadd.f32 %v11713_v49, %v19238_v55  ;;  %14196 = vrcp.f32 %v9829_v27  ;;  %vm9822_vm11 = vcmp.gt.f32.partialorder %v19308_v9, 0.0 }
 0xfa5   : > { %14198 = vrcp.f32 %v9830_v43 }
 0xfa6   : > { %v11714_v48 = vpop.f32.mrb[120].mxu0  ;;  %14200 = vrcp.f32 %v9831_v1  ;;  %vm9823_vm12 = vcmp.gt.f32.partialorder %v19311_v34, 0.0 }
 0xfa7   : > { %v11715_v29 = vpop.f32.mrb[121].mxu0  ;;  %14202 = vrcp.f32 %v9832_v44 }
 0xfa8   : > { %v11716_v22 = vadd.f32 %v11715_v29, %v11714_v48  ;;  %v11717_v0 = vpop.f32.mrb[122].mxu0  ;;  %v20937_v48 = vld [vmem:[#allocation220_spill] sm:$0xff] }
 0xfa9   : > { %v11718_v10 = vpop.f32.mrb[123].mxu0  ;;  %v20938_v29 = vmax.f32 %v20937_v48, 0.0 }
 0xfaa   : > { %v19314_v32 = vadd.f32 %v11716_v22, %v19244_v38  ;;  %v11719_v47 = vadd.f32 %v11718_v10, %v11717_v0 }
 0xfac   : > { %v19318_v50 = vadd.f32 %v11719_v47, %v19246_v6  ;;  %vm9824_vm13 = vcmp.gt.f32.partialorder %v19314_v32, 0.0 }
 0xfad   : > { %v14195_v63 = vpop.eup %14194 }
 0xfae   : > { %v11720_v55 = vpop.f32.mrb[124].mxu0  ;;  %v14197_v20 = vpop.eup %14196  ;;  %vm9825_vm14 = vcmp.gt.f32.partialorder %v19318_v50, 0.0 }
 0xfaf   : > { %v11721_v37 = vpop.f32.mrb[125].mxu0 }
 0xfb0   : > { %v11722_v41 = vadd.f32 %v11721_v37, %v11720_v55  ;;  %v11723_v21 = vpop.f32.mrb[126].mxu0  ;;  %v14199_v37 = vpop.eup %14198 }
 0xfb1   : > { %v11724_v19 = vpop.f32.mrb[127].mxu0 }
 0xfb2   : > { %v19324_v38 = vadd.f32 %v11722_v41, %v19252_v52  ;;  %v11725_v5 = vadd.f32 %v11724_v19, %v11723_v21  ;;  %v14201_v21 = vpop.eup %14200  ;;  %v9834_v19 = vsel %vm9818_vm7, %v19293_v42, 1.0 }
 0xfb3   : > { %v14203_v44 = vpop.eup %14202 }
 0xfb4   : > { %v19328_v6 = vadd.f32 %v11725_v5, %v19254_v57  ;;  %v20939_v5 = vld [vmem:[#allocation221_spill] sm:$0xff]  ;;  %vm9826_vm15 = vcmp.gt.f32.partialorder %v19324_v38, 0.0 }
 0xfb5   : > { %v20940_v43 = vmax.f32 %v20939_v5, 0.0  ;;  %v20947_v5 = vld [vmem:[#allocation91_spill] sm:$0xff] }
 0xfb6   : > { %v11806_v36 = vpop.f32.mrb[128].mxu0  ;;  %vm9827_vm0 = vcmp.gt.f32.partialorder %v19328_v6, 0.0 }
 0xfb7   : > { %v11807_v56 = vpop.f32.mrb[129].mxu0 }
 0xfb8   : > { %v11808_v28 = vadd.f32 %v11807_v56, %v11806_v36  ;;  %v11809_v40 = vpop.f32.mrb[130].mxu0 }
 0xfb9   : > { %v11810_v52 = vpop.f32.mrb[131].mxu0 }
 0xfba   : > { %v9750_v35 = vadd.f32 %v11808_v28, %v19201_v61  ;;  %v11811_v26 = vadd.f32 %v11810_v52, %v11809_v40  ;;  %v9833_v61 = vsel %vm9817_vm6, %v19287_v4, 1.0  ;;  %v9835_v28 = vsel %vm9819_vm8, %v19297_v53, 1.0  ;;  %v20941_v40 = vld [vmem:[#allocation88_spill] sm:$0xff] }
 0xfbb   : > { %14204 = vrcp.f32 %v9833_v61  ;;  %v20942_v52 = vmax.f32 %v20941_v40, 0.0 }
 0xfbc   : > { %v9860_v57 = vmul.f32 %v14195_v63, %v9750_v35  ;;  %v9753_v17 = vadd.f32 %v11811_v26, %v19207_v2  ;;  %14206 = vrcp.f32 %v9834_v19  ;;  %v9838_v19 = vsel %vm9822_vm11, %v19308_v9, 1.0 }
 0xfbd   : > { %14208 = vrcp.f32 %v9835_v28  ;;  %v20949_v28 = vld [vmem:[#allocation107_spill] sm:$0xff] }
 0xfbe   : > { %v9876_v51 = vadd.f32 %v9860_v57, %v20936_v15  ;;  %v9861_v33 = vmul.f32 %v14197_v20, %v9753_v17  ;;  %v11812_v14 = vpop.f32.mrb[132].mxu0  ;;  %v20950_v40 = vmax.f32 %v20949_v28, 0.0 }
 0xfbf   : > { %v11813_v49 = vpop.f32.mrb[133].mxu0 }
 0xfc0   : > { %v9877_v22 = vadd.f32 %v9861_v33, %v20938_v29  ;;  %v11814_v0 = vadd.f32 %v11813_v49, %v11812_v14  ;;  %v11815_v10 = vpop.f32.mrb[134].mxu0  ;;  %v9892_v47 = vmax.f32 %v9876_v51, 0.0  ;;  %v9836_v33 = vsel %vm9820_vm9, %v19302_v30, 1.0  ;;  %v20943_v14 = vld [vmem:[#allocation90_spill] sm:$0xff] }
 0xfc1   : > { %v11816_v2 = vpop.f32.mrb[135].mxu0  ;;  %v20944_v49 = vmax.f32 %v20943_v14, 0.0  ;;  %14210 = vrcp.f32 %v9836_v33 }
 0xfc2   : > { %v9893_v62 = vmax.f32 %v9877_v22, 0.0  ;;  %v9758_v55 = vadd.f32 %v11814_v0, %v19209_v8  ;;  %v11817_v13 = vadd.f32 %v11816_v2, %v11815_v10  ;;  %v9837_v22 = vsel %vm9821_vm10, %v19305_v16, 1.0  ;;  %v20945_v0 = vld [vmem:[#allocation89_spill] sm:$0xff] }
 0xfc3   : > { %v20946_v10 = vmax.f32 %v20945_v0, 0.0  ;;  %14212 = vrcp.f32 %v9837_v22 }
 0xfc4   : > { %v9862_v27 = vmul.f32 %v14199_v37, %v9758_v55  ;;  %v9761_v41 = vadd.f32 %v11817_v13, %v19215_v3  ;;  %v13168_v4 = vpack.c.bf16 %v9893_v62, %v9892_v47  ;;  %14214 = vrcp.f32 %v9838_v19 }
 0xfc5   : > { %v14205_v51 = vpop.eup %14204 }
 0xfc6   : > { %v9878_v36 = vadd.f32 %v9862_v27, %v20940_v43  ;;  %v9863_v56 = vmul.f32 %v14201_v21, %v9761_v41  ;;  %v11818_v1 = vpop.f32.mrb[136].mxu0  ;;  %13169 = vmatpush3.bf16.msra.mxu1 %v13168_v4  ;;  %v14207_v27 = vpop.eup %14206  ;;  %v20948_v43 = vmax.f32 %v20947_v5, 0.0 }
 0xfc7   : > { %v11819_v8 = vpop.f32.mrb[137].mxu0  ;;  %13170 = vmatprep.subr.bf16.mxu1 %v14804_v12  ;;  %v14209_v21 = vpop.eup %14208 }
 0xfc8   : > { %v9879_v3 = vadd.f32 %v9863_v56, %v20942_v52  ;;  %v11820_v35 = vadd.f32 %v11819_v8, %v11818_v1  ;;  %v11821_v26 = vpop.f32.mrb[138].mxu0  ;;  %v9894_v57 = vmax.f32 %v9878_v36, 0.0  ;;  %v9839_v8 = vsel %vm9823_vm12, %v19311_v34, 1.0 }
 0xfc9   : > { %v11822_v63 = vpop.f32.mrb[139].mxu0  ;;  %14216 = vrcp.f32 %v9839_v8 }
 0xfca   : > { %v9895_v42 = vmax.f32 %v9879_v3, 0.0  ;;  %v9766_v17 = vadd.f32 %v11820_v35, %v19218_v59  ;;  %v11823_v20 = vadd.f32 %v11822_v63, %v11821_v26 }
 0xfcc   : > { %v9864_v7 = vmul.f32 %v14203_v44, %v9766_v17  ;;  %v9769_v15 = vadd.f32 %v11823_v20, %v19224_v24  ;;  %v13171_v53 = vpack.c.bf16 %v9895_v42, %v9894_v57  ;;  %v14211_v42 = vpop.eup %14210 }
 0xfcd   : > { %v14213_v44 = vpop.eup %14212 }
 0xfce   : > { %v9880_v61 = vadd.f32 %v9864_v7, %v20944_v49  ;;  %v9865_v48 = vmul.f32 %v14205_v51, %v9769_v15  ;;  %v11824_v29 = vpop.f32.mrb[140].mxu0  ;;  %13172 = vmatpush3.bf16.msra.mxu1 %v13171_v53  ;;  %v9840_v7 = vsel %vm9824_vm13, %v19314_v32, 1.0  ;;  %v20951_v15 = vld [vmem:[#allocation106_spill] sm:$0xff]  ;;  %v9841_v49 = vsel %vm9825_vm14, %v19318_v50, 1.0 }
 0xfcf   : > { %v11825_v59 = vpop.f32.mrb[141].mxu0  ;;  %13173 = vmatprep.subr.bf16.mxu1 %v14804_v12  ;;  %v20952_v53 = vmax.f32 %v20951_v15, 0.0  ;;  %14218 = vrcp.f32 %v9840_v7 }
 0xfd0   : > { %v9881_v24 = vadd.f32 %v9865_v48, %v20946_v10  ;;  %v11826_v2 = vadd.f32 %v11825_v59, %v11824_v29  ;;  %v11827_v47 = vpop.f32.mrb[142].mxu0  ;;  %v9896_v55 = vmax.f32 %v9880_v61, 0.0  ;;  %v20953_v61 = vld [vmem:[#allocation105_spill] sm:$0xff]  ;;  %14220 = vrcp.f32 %v9841_v49  ;;  %v20963_v49 = vld [vmem:[#allocation94_spill] sm:$0xff] }
 0xfd1   : > { %v11828_v62 = vpop.f32.mrb[143].mxu0  ;;  %v20954_v48 = vmax.f32 %v20953_v61, 0.0  ;;  %v20964_v61 = vmax.f32 %v20963_v49, 0.0 }
 0xfd2   : > { %v9897_v30 = vmax.f32 %v9881_v24, 0.0  ;;  %v9774_v13 = vadd.f32 %v11826_v2, %v19226_v54  ;;  %v11829_v37 = vadd.f32 %v11828_v62, %v11827_v47  ;;  %v14215_v2 = vpop.eup %14214 }
 0xfd4   : > { %v9866_v41 = vmul.f32 %v14207_v27, %v9774_v13  ;;  %v9777_v4 = vadd.f32 %v11829_v37, %v19232_v23  ;;  %v13174_v16 = vpack.c.bf16 %v9897_v30, %v9896_v55  ;;  %v14217_v55 = vpop.eup %14216  ;;  %v9842_v30 = vsel %vm9826_vm15, %v19324_v38, 1.0  ;;  %v20955_v13 = vld [vmem:[#allocation104_spill] sm:$0xff] }
 0xfd5   : > { %v20956_v37 = vmax.f32 %v20955_v13, 0.0  ;;  %14222 = vrcp.f32 %v9842_v30 }
 0xfd6   : > { %v9882_v36 = vadd.f32 %v9866_v41, %v20948_v43  ;;  %v9867_v56 = vmul.f32 %v14209_v21, %v9777_v4  ;;  %v11830_v1 = vpop.f32.mrb[144].mxu0  ;;  %13175 = vmatpush3.bf16.msra.mxu1 %v13174_v16  ;;  %v9843_v16 = vsel %vm9827_vm0, %v19328_v6, 1.0  ;;  %v20957_v21 = vld [vmem:[#allocation111_spill] sm:$0xff]  ;;  %v20959_v6 = vld [vmem:[#allocation110_spill] sm:$0xff] }
 0xfd7   : > { %v11831_v54 = vpop.f32.mrb[145].mxu0  ;;  %13176 = vmatprep.subr.bf16.mxu1 %v14804_v12  ;;  %v20958_v19 = vmax.f32 %v20957_v21, 0.0  ;;  %14224 = vrcp.f32 %v9843_v16 }
 0xfd8   : > { %v9883_v23 = vadd.f32 %v9867_v56, %v20950_v40  ;;  %v11832_v52 = vadd.f32 %v11831_v54, %v11830_v1  ;;  %v11833_v3 = vpop.f32.mrb[146].mxu0  ;;  %v9898_v26 = vmax.f32 %v9882_v36, 0.0 }
 0xfd9   : > { %v11834_v35 = vpop.f32.mrb[147].mxu0  ;;  %v14219_v8 = vpop.eup %14218 }
 0xfda   : > { %v9899_v9 = vmax.f32 %v9883_v23, 0.0  ;;  %v9782_v63 = vadd.f32 %v11832_v52, %v19234_v39  ;;  %v11835_v57 = vadd.f32 %v11834_v35, %v11833_v3  ;;  %v14221_v52 = vpop.eup %14220  ;;  %v20960_v3 = vmax.f32 %v20959_v6, 0.0 }
 0xfdc   : > { %v9868_v17 = vmul.f32 %v14211_v42, %v9782_v63  ;;  %v9785_v20 = vadd.f32 %v11835_v57, %v19240_v46  ;;  %v13177_v34 = vpack.c.bf16 %v9899_v9, %v9898_v26  ;;  %v20961_v57 = vld [vmem:[#allocation95_spill] sm:$0xff] }
 0xfdd   : > { %v20962_v42 = vmax.f32 %v20961_v57, 0.0 }
 0xfde   : > { %v9884_v51 = vadd.f32 %v9868_v17, %v20952_v53  ;;  %v9869_v33 = vmul.f32 %v14213_v44, %v9785_v20  ;;  %v11836_v14 = vpop.f32.mrb[148].mxu0  ;;  %13178 = vmatpush3.bf16.msra.mxu1 %v13177_v34 }
 0xfdf   : > { %v11837_v39 = vpop.f32.mrb[149].mxu0  ;;  %13179 = vmatprep.subr.bf16.mxu1 %v14804_v12  ;;  %v14223_v53 = vpop.eup %14222 }
 0xfe0   : > { %v9885_v46 = vadd.f32 %v9869_v33, %v20954_v48  ;;  %v11838_v29 = vadd.f32 %v11837_v39, %v11836_v14  ;;  %v11839_v59 = vpop.f32.mrb[150].mxu0  ;;  %v9900_v0 = vmax.f32 %v9884_v51, 0.0 }
 0xfe1   : > { %v11840_v22 = vpop.f32.mrb[151].mxu0  ;;  %v14225_v39 = vpop.eup %14224 }
 0xfe2   : > { %v9901_v32 = vmax.f32 %v9885_v46, 0.0  ;;  %v9790_v10 = vadd.f32 %v11838_v29, %v19242_v11  ;;  %v11841_v24 = vadd.f32 %v11840_v22, %v11839_v59  ;;  %v20965_v29 = vld [vmem:[#allocation109_spill] sm:$0xff] }
 0xfe3   : > { %v20966_v59 = vmax.f32 %v20965_v29, 0.0 }
 0xfe4   : > { %v9870_v47 = vmul.f32 %v14215_v2, %v9790_v10  ;;  %v9793_v62 = vadd.f32 %v11841_v24, %v19248_v60  ;;  %v13180_v50 = vpack.c.bf16 %v9901_v32, %v9900_v0  ;;  %v13904_v10 = vld [vmem:[%s15437_s28 + $0x30] sm:$0xff]   ;;  %v13905_v24 = vld [vmem:[%s15437_s28 + $0x38] sm:$0xff]   ;;  %s10107_s28 = sshll.u32 %s945_s14, 4  ;;  %s19429_s28 = int_to_ptr.vmem [resolvable:$true] %s10107_s28 }
 0xfe5   : > { %13160 = vmatpush3.bf16.msra.mxu0 %v13904_v10  ;;  %s14686_s22 = scalar_lea.vmem %s19429_s28, 128  ;;  %p14693_p9 = scmp.lt.s32.totalorder %s19429_s28, %s14691_s18 }
 0xfe6   : > { %v9886_v27 = vadd.f32 %v9870_v47, %v20956_v37  ;;  %v9871_v41 = vmul.f32 %v14217_v55, %v9793_v62  ;;  %v11842_v4 = vpop.f32.mrb[152].mxu0  ;;  %13181 = vmatpush3.bf16.msra.mxu1 %v13180_v50  ;;  %13161 = vmatprep.subr.bf16.mxu0 %v14806_v18  ;;  %v10705_v50 = vld [vmem:[%s959_s3] ss:$0 sm:$0xff]  ;;  %p14687_p13 = scmp.ne.s32.totalorder %s19429_s28, %s14686_s22  ;;  %p14694_p6 = scmp.lt.s32.totalorder %s14692_s11, %s14686_s22 }
 0xfe7   : > { %v11843_v11 = vpop.f32.mrb[153].mxu0  ;;  %13182 = vmatprep.subr.bf16.mxu1 %v14804_v12 }
 0xfe8   : > { %v9887_v60 = vadd.f32 %v9871_v41, %v20958_v19  ;;  %v11844_v5 = vadd.f32 %v11843_v11, %v11842_v4  ;;  %v11845_v43 = vpop.f32.mrb[154].mxu0  ;;  %v9902_v56 = vmax.f32 %v9886_v27, 0.0  ;;  %p14688_p8 = pnand %p14687_p13, %p20971_p7  ;;  %p14695_p10 = por %p14694_p6, %p14693_p9 }
 0xfe9   : > { %v11846_v36 = vpop.f32.mrb[155].mxu0  ;;  %13162 = vmatpush3.bf16.msra.mxu0 %v13905_v24 }
 0xfea   : > { %v9903_v38 = vmax.f32 %v9887_v60, 0.0  ;;  %v9798_v1 = vadd.f32 %v11844_v5, %v19250_v58  ;;  %v11847_v54 = vadd.f32 %v11846_v36, %v11845_v43  ;;  %p14689_p12 = pneg %p14688_p8 }
 0xfec   : > { %v9872_v28 = vmul.f32 %v14219_v8, %v9798_v1  ;;  %v9801_v40 = vadd.f32 %v11847_v54, %v19256_v25  ;;  %v13183_v23 = vpack.c.bf16 %v9903_v38, %v9902_v56  ;;  %p14696_p4 = pnand %p14695_p10, %p14689_p12 }
 0xfee   : > { %v9888_v35 = vadd.f32 %v9872_v28, %v20960_v3  ;;  %v9873_v26 = vmul.f32 %v14221_v52, %v9801_v40  ;;  %v11848_v9 = vpop.f32.mrb[156].mxu0  ;;  %13184 = vmatpush3.bf16.msra.mxu1 %v13183_v23 }
 0xfef   : > { %v11849_v63 = vpop.f32.mrb[157].mxu0  ;;  %13185 = vmatprep.subr.bf16.mxu1 %v14804_v12 }
 0xff0   : > { %v9889_v58 = vadd.f32 %v9873_v26, %v20962_v42  ;;  %v11850_v17 = vadd.f32 %v11849_v63, %v11848_v9  ;;  %v11851_v20 = vpop.f32.mrb[158].mxu0  ;;  %v9904_v44 = vmax.f32 %v9888_v35, 0.0 }
 0xff1   : > { %v11852_v34 = vpop.f32.mrb[159].mxu0 }
 0xff2   : > { %v9905_v7 = vmax.f32 %v9889_v58, 0.0  ;;  %v9806_v25 = vadd.f32 %v11850_v17, %v19258_v45  ;;  %v11853_v15 = vadd.f32 %v11852_v34, %v11851_v20 }
 0xff4   : > { %v9874_v51 = vmul.f32 %v14223_v53, %v9806_v25  ;;  %v9809_v33 = vadd.f32 %v11853_v15, %v19263_v31  ;;  %v13186_v14 = vpack.c.bf16 %v9905_v7, %v9904_v44  ;;  %v9908_v31 = vld [vmem:[%s20967_s30] sm:$0xff] }
 0xff6   : > { %v9890_v48 = vadd.f32 %v9874_v51, %v20964_v61  ;;  %v9875_v46 = vmul.f32 %v14225_v39, %v9809_v33  ;;  %13187 = vmatpush3.bf16.msra.mxu1 %v13186_v14 }
 0xff7   : > { %13188 = vmatprep.subr.bf16.mxu1 %v14804_v12 }
 0xff8   : > { %v9891_v22 = vadd.f32 %v9875_v46, %v20966_v59  ;;  %v9906_v45 = vmax.f32 %v9890_v48, 0.0 }
 0xffa   : > { %v9907_v0 = vmax.f32 %v9891_v22, 0.0 }
 0xffc   : > { %v13189_v32 = vpack.c.bf16 %v9907_v0, %v9906_v45 }
 0xffe   : > { %13190 = vmatpush3.bf16.msra.mxu1 %v13189_v32 }
0x1001   : > { %13145 = vmatmul.mubr.f32.vlgmr.msra.gmra.mrb[176].mxu1 %v9908_v31 }
0x10d4   : > { %v9975_v12 = vpop.f32.mrb[176].mxu1 }
0x10d5   : > { %14226 = vtanh.f32 %v9975_v12  ;;  %v13146_v2 = vpop.f32.mrb[177].mxu1 }
0x10df   : > { %v14227_v47 = vpop.eup %14226 }
0x10e0   : > { %v9980_v62 = vpack.c.bf16 %v14227_v47, %v14227_v47 }
0x10e2   : > { %13164 = vmatmul.mubr.bf16.vlgmr.msra.gmra.mrb[160].mxu0 %v9980_v62 }
0x11b5   : > { %v10086_v55 = vpop.f32.mrb[160].mxu0 }
0x11b6   : > { %v10087_v18 = vadd.f32 %v10705_v50, %v10086_v55  ;;  %v13165_v30 = vpop.f32.mrb[161].mxu0 }
0x11b7   : > { %v10089_v13 = vpop.f32.mrb[162].mxu0 }
0x11b8   : > { %10092 = vst [vmem:[%s945_s14] sm:$0xff] %v10087_v18  ;;  %v13166_v37 = vpop.f32.mrb[163].mxu0 }
0x11b9   : > { %14699 = shalt.err (!%p14696_p4)
}
0x11ba   : > { %s14700_s16 = scalar_lea.hbm %s19427_s13, 128  ;;  %s14704_s17 = scalar_lea.hbm %s20970_s23, 256 }
0x11bb   : > { %p14701_p5 = scmp.ne.s32.totalorder %s19427_s13, %s14700_s16  ;;  %p14705_p1 = scmp.lt.u32.totalorder %s19427_s13, %s20970_s23 }
0x11bc   : > { %p14706_p11 = scmp.lt.u32.totalorder %s14704_s17, %s14700_s16  ;;  %p14708_p13 = scmp.lt.u32.totalorder %s14700_s16, %s19427_s13 }
0x11bd   : > { %p14702_p0 = pnand %p14701_p5, %p20971_p7 }
0x11be   : > { %p14707_p2 = por %p14706_p11, %p14705_p1 }
0x11bf   : > { %p14703_p3 = pneg %p14702_p0 }
0x11c0   : > { %p14709_p8 = por %p14708_p13, %p14707_p2 }
0x11c2   : > { %p14710_p12 = pnand %p14709_p8, %p14703_p3 }
0x11c4   : > { %14713 = shalt.err (!%p14710_p12)
}
0x11c5   : > { %13607 = dma.vmem_to_hbm [thread:$0]  (%p20971_p7), %s19429_s28, 128, %s19427_s13, %s10094_s20  }
0x11c6 PF: > { %s20972_s1 = sld [smem:[#allocation33_spill]]  ;;  %s20973_s9 = sld [smem:[#allocation39_spill]] }
0x11c7   : > { %p20975_p6 = scmp.ge.s32.totalorder %s14784_s27, 2 }
0x11cc   : > { %s10119_s6 = sand.u32 1, %s20972_s1   ;;  %p20974_p9 = scmp.ne.s32.totalorder %s20973_s9, 0 }
0x11cd   : > { %s10120_s2 = scalar_lea.sflag [#allocation4], %s10119_s6 }
0x11ce   : > { %p13648_p10 = pnand %p20975_p6, %p20974_p9 }
0x11d0   : > { %14767 = dma.done.wait (!%p13648_p10), %s10120_s2, 128  }
0x11d1   : > { %14769 = vsyncadd (!%p13648_p10), %s10120_s2, 4294967168  ;;  %s20976_s27 = sld [smem:[#allocation36_spill]]  ;;  %s20977_s3 = sld [smem:[#allocation34_spill]] }
0x11d2   : > { %s20978_s26 = sld [smem:[#allocation37_spill]]  ;;  %s20979_s24 = smov %s14776_s25 }
0x11d7   : > { %p46_p4 = scmp.ge.s32.totalorder %s20976_s27, 4   ;;  %s20980_s25 = smov %s20977_s3 }
0x11d9   :  { %48 = sbr.rel (!%p46_p4) target bundleno = 31 (0x1f), region = 254 }
0x11e0   :  { %10125 = vsyncpa [#allocation3], 1 }
0x11e1   :  { %10127 = vsyncpa [#allocation3 + $0x1], 1 }
0x11e2   :  { %10128 = vsyncpa [#allocation6], 1 }
0x11e3   :  { %10130 = vsyncpa [#allocation6 + $0x1], 1 }
0x11e4   :  { %10131 = vsyncpa [#allocation9], 1 }
0x11e5   :  { %10132 = vsyncpa [#allocation12], 1 }
0x11e6   :  { %10134 = vsyncpa [#allocation12 + $0x1], 1 }
0x11e7   :  { %10135 = vsyncpa [#allocation15], 1 }
0x11e8   :  { %10137 = vsyncpa [#allocation15 + $0x1], 1 }
0x11e9   :  { %10138 = vsyncpa [#allocation18], 1 }
0x11ea   :  { %10140 = vsyncpa [#allocation18 + $0x1], 1 }
0x11eb   :  { %10141 = vsyncpa [#allocation21], 1 }
0x11ec   :  { %10143 = vsyncpa [#allocation21 + $0x1], 1 }
0x11ed   :  { %10144 = vsyncpa [#allocation4], 1 }
0x11ee   :  { %10146 = vsyncpa [#allocation4 + $0x1], 1 }

</bundles_post_ra>
